<compile_context>
chip_gen: v7x
topology: tpu7x:2x2x1
jax: 0.10.0
libtpu: 0.0.40
codegen_flags: <defaults>
</compile_context>

<pallas_src>
import functools
import math

import jax
import jax.numpy as jnp
from jax.experimental import pallas as pl
from jax.experimental.pallas import tpu as pltpu


def _round_up(x, m):
    return ((x + m - 1) // m) * m


_VMEM_LIMIT = 32 * 1024 * 1024


# -----------------------------------------------------------------------------
# Shared fused epilogue: (acc + bias) -> [relu] -> *scale + shift -> [act]
# -----------------------------------------------------------------------------
def _epilogue(y, side, act_mid, act_out):
    y = y + side[0:1, :]
    if act_mid == "relu":
        y = jnp.maximum(y, 0.0)
    y = y * side[1:2, :] + side[2:3, :]
    if act_out == "relu":
        y = jnp.maximum(y, 0.0)
    elif act_out == "tanh":
        y = jnp.tanh(y)
    elif act_out == "sigmoid":
        y = jax.nn.sigmoid(y)
    return y


# -----------------------------------------------------------------------------
# Pallas kernel 1: weight-resident fused matmul  (K = 1 convs / linears)
#   grid = (M/tm,); full K and N per step, weight stays in VMEM.
# -----------------------------------------------------------------------------
def _mm_kernel(a_ref, w_ref, side_ref, o_ref, *, act_mid, act_out):
    y = jnp.dot(a_ref[...], w_ref[...], preferred_element_type=jnp.float32)
    y = _epilogue(y, side_ref[...], act_mid, act_out)
    o_ref[...] = y.astype(o_ref.dtype)


def matmul_fused(a, prep, act_mid="none", act_out="none",
                 out_dtype=jnp.bfloat16, tm_max=256):
    """a: (M, K) -> (M, n).  prep holds pre-padded bf16 weight (K, Np) and the
    packed (3, Np) [bias, scale, shift] sideband."""
    assert a.ndim == 2
    M, K = a.shape
    w, side, n = prep["w"], prep["side"], prep["n"]
    Kw, Np = w.shape
    assert K == Kw, (K, Kw)

    tm = min(tm_max, _round_up(M, 16))
    Mp = _round_up(M, tm)
    a = a.astype(jnp.bfloat16)
    if Mp != M:                               # avoid re-pad when already aligned
        a = jnp.pad(a, ((0, Mp - M), (0, 0)))

    kernel = functools.partial(_mm_kernel, act_mid=act_mid, act_out=act_out)
    cost = pl.CostEstimate(
        flops=2 * Mp * Np * K,
        transcendentals=(Mp * Np if act_out in ("tanh", "sigmoid") else 0),
        bytes_accessed=2 * (Mp * K + K * Np) + 12 * Np
        + Mp * Np * jnp.dtype(out_dtype).itemsize)

    out = pl.pallas_call(
        kernel,
        out_shape=jax.ShapeDtypeStruct((Mp, Np), out_dtype),
        grid_spec=pltpu.PrefetchScalarGridSpec(
            num_scalar_prefetch=0,
            grid=(Mp // tm,),
            in_specs=[
                pl.BlockSpec((tm, K), lambda i: (i, 0)),
                pl.BlockSpec((Kw, Np), lambda i: (0, 0)),   # weight resident
                pl.BlockSpec((3, Np), lambda i: (0, 0)),
            ],
            out_specs=pl.BlockSpec((tm, Np), lambda i: (i, 0)),
        ),
        compiler_params=pltpu.CompilerParams(
            dimension_semantics=("parallel",),
            vmem_limit_bytes=_VMEM_LIMIT),
        cost_estimate=cost,
    )(a, w, side)

    if Np != n:
        out = out[:, :n]
    if Mp != M:
        out = out[:M]
    return out


def dense_tm(x_btc, prep, act_mid="none", act_out="none",
             out_dtype=jnp.bfloat16):
    B, T, Cin = x_btc.shape
    y = matmul_fused(x_btc.reshape(B * T, Cin), prep,
                     act_mid=act_mid, act_out=act_out, out_dtype=out_dtype)
    return y.reshape(B, T, prep["n"])


# -----------------------------------------------------------------------------
# Pallas kernel 2: K>1 Conv1d (time-major) via in-kernel tap accumulation
#   grid = (B,); full-T input slab resident, no im2col materialization.
# -----------------------------------------------------------------------------
def _conv_tap_kernel(x_ref, w_ref, side_ref, o_ref, *, dilation, act_mid,
                     act_out):
    K = w_ref.shape[0]
    t_out = o_ref.shape[1]
    n = o_ref.shape[2]
    xfull = x_ref[0]                                   # (T_need, Cin) bf16
    acc = jnp.zeros((t_out, n), jnp.float32)
    for j in range(K):                                 # static, unrolled
        a = xfull[j * dilation: j * dilation + t_out, :]
        acc = acc + jnp.dot(a, w_ref[j], preferred_element_type=jnp.float32)
    y = _epilogue(acc, side_ref[...], act_mid, act_out)
    o_ref[0] = y.astype(o_ref.dtype)


def conv_tap(x, prep, *, dilation, padding, act_mid="none", act_out="none",
             out_dtype=jnp.bfloat16):
    """PyTorch-style Conv1d (stride 1) on time-major x: (B, T, Cin)."""
    B, T, Cin = x.shape
    w, side, n = prep["w"], prep["side"], prep["n"]
    K, Cin_w, Np = w.shape
    assert Cin == Cin_w, (Cin, Cin_w)

    T_out = T + 2 * padding - dilation * (K - 1)
    T_out_p = _round_up(T_out, 16)
    T_need = dilation * (K - 1) + T_out_p
    pad_r = T_need - (T + padding)
    x_p = jnp.pad(x.astype(jnp.bfloat16), ((0, 0), (padding, pad_r), (0, 0)))

    kernel = functools.partial(_conv_tap_kernel, dilation=dilation,
                               act_mid=act_mid, act_out=act_out)
    out = pl.pallas_call(
        kernel,
        out_shape=jax.ShapeDtypeStruct((B, T_out_p, Np), out_dtype),
        grid_spec=pltpu.PrefetchScalarGridSpec(
            num_scalar_prefetch=0,
            grid=(B,),
            in_specs=[
                pl.BlockSpec((1, T_need, Cin), lambda b: (b, 0, 0)),
                pl.BlockSpec((K, Cin, Np), lambda b: (0, 0, 0)),
                pl.BlockSpec((3, Np), lambda b: (0, 0)),
            ],
            out_specs=pl.BlockSpec((1, T_out_p, Np), lambda b: (b, 0, 0)),
        ),
        compiler_params=pltpu.CompilerParams(
            dimension_semantics=("parallel",),
            vmem_limit_bytes=_VMEM_LIMIT),
    )(x_p, w, side)

    if T_out_p != T_out:
        out = out[:, :T_out, :]
    if Np != n:
        out = out[..., :n]
    return out


# -----------------------------------------------------------------------------
# Pallas kernel 3: online softmax(T) + attentive-statistics pooling (tiled T)
# -----------------------------------------------------------------------------
def _attn_pool_kernel(l_ref, x_ref, mu_ref, sg_ref, m_sc, d_sc, s1_sc, s2_sc):
    @pl.when(pl.program_id(2) == 0)
    def _():
        m_sc[...] = jnp.full_like(m_sc, -jnp.inf)
        d_sc[...] = jnp.zeros_like(d_sc)
        s1_sc[...] = jnp.zeros_like(s1_sc)
        s2_sc[...] = jnp.zeros_like(s2_sc)

    logit = l_ref[...].astype(jnp.float32)                 # (1, tt, tc)
    x = x_ref[...].astype(jnp.float32)
    m_prev = m_sc[...]
    m_new = jnp.maximum(m_prev, jnp.max(logit, axis=1, keepdims=True))
    alpha = jnp.exp(m_prev - m_new)
    p = jnp.exp(logit - m_new)
    d_sc[...] = alpha * d_sc[...] + jnp.sum(p, axis=1, keepdims=True)
    s1_sc[...] = alpha * s1_sc[...] + jnp.sum(x * p, axis=1, keepdims=True)
    s2_sc[...] = alpha * s2_sc[...] + jnp.sum(x * x * p, axis=1, keepdims=True)
    m_sc[...] = m_new

    @pl.when(pl.program_id(2) == pl.num_programs(2) - 1)
    def _():
        inv = pl.reciprocal(d_sc[...], approx=True)
        mu = s1_sc[...] * inv
        ex2 = s2_sc[...] * inv
        mu_ref[...] = mu
        sg_ref[...] = jnp.sqrt(jnp.maximum(ex2 - mu * mu, 1e-4))


def attn_stats_pool(x, logits, *, tc_max=512, tt_max=512):
    """x, logits: (B, T, C) (bf16 ok) -> mu, sg: (B, C) f32."""
    B, T, C = x.shape
    tc = tc_max if C % tc_max == 0 else C
    tt = min(tt_max, _round_up(T, 16))
    T_p = _round_up(T, tt)
    x = x.astype(jnp.bfloat16)
    logits = logits.astype(jnp.bfloat16)
    if T_p != T:
        x = jnp.pad(x, ((0, 0), (0, T_p - T), (0, 0)))
        logits = jnp.pad(logits, ((0, 0), (0, T_p - T), (0, 0)),
                         constant_values=-1e30)

    mu, sg = pl.pallas_call(
        _attn_pool_kernel,
        out_shape=(jax.ShapeDtypeStruct((B, 1, C), jnp.float32),
                   jax.ShapeDtypeStruct((B, 1, C), jnp.float32)),
        grid_spec=pltpu.PrefetchScalarGridSpec(
            num_scalar_prefetch=0,
            grid=(B, C // tc, T_p // tt),
            in_specs=[pl.BlockSpec((1, tt, tc), lambda b, j, t: (b, t, j)),
                      pl.BlockSpec((1, tt, tc), lambda b, j, t: (b, t, j))],
            out_specs=(pl.BlockSpec((1, 1, tc), lambda b, j, t: (b, 0, j)),
                       pl.BlockSpec((1, 1, tc), lambda b, j, t: (b, 0, j))),
            scratch_shapes=[pltpu.VMEM((1, 1, tc), jnp.float32),
                            pltpu.VMEM((1, 1, tc), jnp.float32),
                            pltpu.VMEM((1, 1, tc), jnp.float32),
                            pltpu.VMEM((1, 1, tc), jnp.float32)]),
        compiler_params=pltpu.CompilerParams(
            dimension_semantics=("parallel", "parallel", "arbitrary"),
            vmem_limit_bytes=_VMEM_LIMIT),
    )(logits, x)
    return mu[:, 0, :], sg[:, 0, :]


# -----------------------------------------------------------------------------
# Parameter preparation (run once): transpose / cast / pad weights, fold BN,
# pack bias+scale+shift into a single (3, Np) sideband.
# -----------------------------------------------------------------------------
def _fold_bn(bn, eps=1e-5):
    scale = bn["gamma"] / jnp.sqrt(bn["var"] + eps)
    shift = bn["beta"] - bn["mean"] * scale
    return scale, shift


def _make_side(cout, np_, b, bn):
    bias = jnp.zeros((np_,), jnp.float32)
    if b is not None:
        bias = bias.at[:cout].set(b.astype(jnp.float32))
    scale = jnp.ones((np_,), jnp.float32)
    shift = jnp.zeros((np_,), jnp.float32)
    if bn is not None:
        s, sh = _fold_bn(bn)
        scale = scale.at[:cout].set(s)
        shift = shift.at[:cout].set(sh)
    return jnp.stack([bias, scale, shift], axis=0)


def _prep_dense(w, b=None, bn=None):
    """w: (Cout, Cin, 1) or (Cout, Cin) -> weight-resident matmul prep."""
    if w.ndim == 3:
        w = w[:, :, 0]
    cout, cin = w.shape
    np_ = _round_up(cout, 128)
    wmat = jnp.zeros((cin, np_), jnp.bfloat16)
    wmat = wmat.at[:, :cout].set(w.T.astype(jnp.bfloat16))
    return dict(w=wmat, side=_make_side(cout, np_, b, bn), n=cout)


def _prep_conv_tap(w, b=None, bn=None):
    """w: (Cout, Cin, K) -> (K, Cin, Np) bf16 + sideband for the tap kernel."""
    cout, cin, k = w.shape
    np_ = _round_up(cout, 128)
    wk = jnp.transpose(w, (2, 1, 0)).astype(jnp.bfloat16)       # (K, Cin, Cout)
    wq = jnp.zeros((k, cin, np_), jnp.bfloat16).at[:, :, :cout].set(wk)
    return dict(w=wq, side=_make_side(cout, np_, b, bn), n=cout)


def prepare_params(params):
    prep = {}
    prep["conv1"] = _prep_conv_tap(params["conv1_w"], params["conv1_b"],
                                   params["bn1"])
    for name in ("layer1", "layer2", "layer3"):
        p = params[name]
        lp = {}
        lp["conv1"] = _prep_dense(p["conv1_w"], p["conv1_b"], p["bn1"])
        lp["convs"] = [_prep_conv_tap(p["convs_w"][i], p["convs_b"][i],
                                      p["bns"][i]) for i in range(7)]
        lp["conv3"] = _prep_dense(p["conv3_w"], p["conv3_b"], p["bn3"])
        lp["cbam"] = dict(
            ca_fc1=p["cbam"]["ca"]["fc1_w"][:, :, 0].T,             # (C, 512)
            ca_fc2=p["cbam"]["ca"]["fc2_w"][:, :, 0].T,             # (512, C)
            sa_w=p["cbam"]["sa"]["conv_w"].transpose(2, 1, 0).reshape(-1))
        prep[name] = lp
    prep["layer4"] = _prep_dense(params["layer4_w"], params["layer4_b"])

    # Attention head: split att1's columns so global_x is never materialized.
    w1 = params["att1_w"][:, :, 0]                                  # (512, 4608)
    prep["att1_x"] = _prep_dense(w1[:, :1536])                      # x block
    prep["att1_ms_w"] = w1[:, 1536:].T                              # (3072, 512)
    prep["att1_b"] = params["att1_b"]
    prep["att_scale"], prep["att_shift"] = _fold_bn(params["att_bn"])
    prep["att2"] = _prep_dense(params["att2_w"], params["att2_b"])

    # Fold bn5 into fc6, keep bn6 as an affine epilogue (tiny -> jnp.dot path).
    s5, sh5 = _fold_bn(params["bn5"])
    s6, sh6 = _fold_bn(params["bn6"])
    w6 = params["fc6_w"]                                            # (128, 3072)
    prep["fc6_w_eff"] = (w6 * s5[None, :]).T                        # (3072, 128)
    prep["fc6_b_eff"] = params["fc6_b"] + w6 @ sh5
    prep["bn6_scale"], prep["bn6_shift"] = s6, sh6
    return prep


# -----------------------------------------------------------------------------
# Model blocks (all on (B, T, C) bf16 activations)
# -----------------------------------------------------------------------------
def cbam_apply(p, inp):
    """inp (B, T, C) bf16.  Matches reference: return input * ((input*ca)*sa)."""
    B, T, C = inp.shape
    xf = inp.astype(jnp.float32)
    # Channel attention: avg & max pooled rows batched, tiny -> plain jnp.dot.
    v = jnp.concatenate([jnp.mean(xf, axis=1), jnp.max(xf, axis=1)], axis=0)
    h = jnp.maximum(v @ p["ca_fc1"], 0.0)
    y = h @ p["ca_fc2"]
    ca = jax.nn.sigmoid(y[:B] + y[B:])[:, None, :]                  # (B, 1, C)
    x1 = xf * ca
    # Spatial attention: Cin=2/Cout=1 conv, too small for the MXU -> plain JAX.
    cat = jnp.stack([jnp.mean(x1, axis=2), jnp.max(x1, axis=2)], axis=-1)
    cat = jnp.pad(cat, ((0, 0), (3, 3), (0, 0)))
    K = p["sa_w"].shape[0] // 2
    cols = [cat[:, j: j + T, :] for j in range(K)]
    a = jnp.concatenate(cols, axis=-1)                              # (B, T, 2K)
    sa = jax.nn.sigmoid(jnp.einsum("btf,f->bt", a, p["sa_w"]))[:, :, None]
    return (x1 * sa * xf).astype(jnp.bfloat16)


def bottle2neck(p, x, kernel_size, dilation, scale_groups=8):
    residual = x
    B, T, C = x.shape
    width = C // scale_groups
    num_pad = (kernel_size // 2) * dilation

    out = dense_tm(x, p["conv1"], act_mid="relu")                   # conv+relu+bn
    spx = [out[..., i * width:(i + 1) * width] for i in range(scale_groups)]
    outs = []
    sp = None
    for i in range(scale_groups - 1):
        sp_in = spx[i] if i == 0 else sp + spx[i]
        sp = conv_tap(sp_in, p["convs"][i], dilation=dilation,
                      padding=num_pad, act_mid="relu")              # conv+relu+bn
        outs.append(sp)
    outs.append(spx[scale_groups - 1])
    out = jnp.concatenate(outs, axis=-1)

    out = dense_tm(out, p["conv3"], act_mid="relu")                 # conv+relu+bn
    out = cbam_apply(p["cbam"], out)
    return out + residual


def ecapa_forward(prep, x_ncl):
    # Single layout change at the boundary: (B, Cin, T) -> time-major (B, T, Cin)
    x = jnp.transpose(x_ncl, (0, 2, 1)).astype(jnp.bfloat16)

    x = conv_tap(x, prep["conv1"], dilation=1, padding=2, act_mid="relu")

    x1 = bottle2neck(prep["layer1"], x, kernel_size=3, dilation=2)
    s2 = x + x1
    x2 = bottle2neck(prep["layer2"], s2, kernel_size=3, dilation=3)
    s3 = s2 + x2
    x3 = bottle2neck(prep["layer3"], s3, kernel_size=3, dilation=4)

    x = dense_tm(jnp.concatenate([x1, x2, x3], axis=-1),
                 prep["layer4"], act_out="relu")                    # (B, T, 1536)

    B, T, C1536 = x.shape
    xf = x.astype(jnp.float32)
    mean = jnp.mean(xf, axis=1)
    std = jnp.sqrt(jnp.maximum(jnp.var(xf, axis=1, ddof=1), 1e-4))

    # Attention head: x-part through the MXU kernel, (mean,std)-part is tiny.
    h_x = dense_tm(x, prep["att1_x"])                               # (B, T, 512)
    ms = jnp.concatenate([mean, std], axis=1)                       # (B, 3072)
    h_ms = ms @ prep["att1_ms_w"] + prep["att1_b"]                  # (B, 512)
    # TODO(synk): this (B,T,512) elementwise chain could be fused as an
    # A-prologue of the att2 matmul; kept as one XLA-fused pass for simplicity.
    h = h_x.astype(jnp.float32) + h_ms[:, None, :]
    h = jnp.tanh(jnp.maximum(h, 0.0) * prep["att_scale"] + prep["att_shift"])
    logits = dense_tm(h.astype(jnp.bfloat16), prep["att2"])         # (B, T, 1536)

    mu, sg = attn_stats_pool(x, logits)                             # fused pool
    pooled = jnp.concatenate([mu, sg], axis=1)                      # (B, 3072)

    # bn5 folded into fc6; M=B rows -> plain jnp.dot (MXU can't be filled).
    out = pooled @ prep["fc6_w_eff"] + prep["fc6_b_eff"]
    out = out * prep["bn6_scale"] + prep["bn6_shift"]
    return out


# -----------------------------------------------------------------------------
# Deterministic parameter initialization (shapes follow the PyTorch __init__)
# -----------------------------------------------------------------------------
class KeyGen:
    def __init__(self, seed):
        self.key = jax.random.PRNGKey(seed)

    def __call__(self):
        self.key, sub = jax.random.split(self.key)
        return sub


def init_params(C, kg):
    width = C // 8

    def conv(cout, cin, k, bias=True):
        bound = 1.0 / math.sqrt(cin * k)
        w = jax.random.uniform(kg(), (cout, cin, k), jnp.float32, -bound, bound)
        b = (jax.random.uniform(kg(), (cout,), jnp.float32, -bound, bound)
             if bias else None)
        return w, b

    def bn(c):
        return dict(
            gamma=1.0 + 0.1 * jax.random.normal(kg(), (c,), jnp.float32),
            beta=0.1 * jax.random.normal(kg(), (c,), jnp.float32),
            mean=0.1 * jax.random.normal(kg(), (c,), jnp.float32),
            var=0.5 + jax.random.uniform(kg(), (c,), jnp.float32),
        )

    def bottle(kernel_size):
        p = {}
        p["conv1_w"], p["conv1_b"] = conv(C, C, 1)
        p["bn1"] = bn(C)
        p["convs_w"], p["convs_b"], p["bns"] = [], [], []
        for _ in range(7):  # nums = scale - 1
            w, b = conv(width, width, kernel_size)
            p["convs_w"].append(w)
            p["convs_b"].append(b)
            p["bns"].append(bn(width))
        p["conv3_w"], p["conv3_b"] = conv(C, C, 1)
        p["bn3"] = bn(C)
        ca_fc1_w, _ = conv(512, C, 1, bias=False)
        ca_fc2_w, _ = conv(C, 512, 1, bias=False)
        sa_w, _ = conv(1, 2, 7, bias=False)
        p["cbam"] = dict(ca=dict(fc1_w=ca_fc1_w, fc2_w=ca_fc2_w),
                         sa=dict(conv_w=sa_w))
        return p

    params = {}
    # nn.Parameter(torch.ones(1)) — present in the module but unused in forward.
    params["learnable_param"] = jnp.ones((1,), jnp.float32)
    params["conv1_w"], params["conv1_b"] = conv(C, 299, 5)
    params["bn1"] = bn(C)
    params["layer1"] = bottle(3)
    params["layer2"] = bottle(3)
    params["layer3"] = bottle(3)
    params["layer4_w"], params["layer4_b"] = conv(1536, 3 * C, 1)
    params["att1_w"], params["att1_b"] = conv(512, 4608, 1)
    params["att_bn"] = bn(512)
    params["att2_w"], params["att2_b"] = conv(1536, 512, 1)
    params["bn5"] = bn(3072)
    fb = 1.0 / math.sqrt(3072)
    params["fc6_w"] = jax.random.uniform(kg(), (128, 3072), jnp.float32, -fb, fb)
    params["fc6_b"] = jax.random.uniform(kg(), (128,), jnp.float32, -fb, fb)
    params["bn6"] = bn(128)
    return params


# -----------------------------------------------------------------------------
# Main
# -----------------------------------------------------------------------------
if __name__ == "__main__":
    C = 64          # small ECAPA channel width (divisible by scale=8)
    B, T = 2, 16    # batch, frames
    kg = KeyGen(0)
    params = init_params(C, kg)
    prep = prepare_params(params)       # one-time weight prep (transpose/pad/fold)

    x = jax.random.normal(jax.random.PRNGKey(0), (B, 299, T), jnp.float32)

    fwd = jax.jit(lambda inp: ecapa_forward(prep, inp))
    out = jax.block_until_ready(fwd(x))

    assert out.shape == (B, 128), out.shape
    assert bool(jnp.all(jnp.isfinite(out)))
    print("KERNEL_OK")
</pallas_src>

<mosaic_0001>
module attributes {stable_mosaic.version = 11 : i64} {
  func.func @_conv_tap_kernel(%arg0: i32, %arg1: memref<1x20x299xbf16, #tpu.memory_space<vmem>>, %arg2: memref<5x299x128xbf16, #tpu.memory_space<vmem>>, %arg3: memref<3x128xf32, #tpu.memory_space<vmem>>, %arg4: memref<1x16x128xbf16, #tpu.memory_space<vmem>>) attributes {dimension_semantics = [#tpu.dimension_semantics<parallel>], iteration_bounds = array<i64: 2>, scalar_prefetch = 0 : i64, scratch_operands = 0 : i64, tpu.core_type = #tpu.core_type<tc>, window_params = [{transform_indices = @transform_0, window_bounds = array<i64: 1, 20, 299>}, {pipeline_mode = #tpu.pipeline_mode<synchronous>, transform_indices = @transform_1, window_bounds = array<i64: 5, 299, 128>}, {pipeline_mode = #tpu.pipeline_mode<synchronous>, transform_indices = @transform_2, window_bounds = array<i64: 3, 128>}, {transform_indices = @transform_3, window_bounds = array<i64: 1, 16, 128>}]} {
    %c0 = arith.constant 0 : index
    %c0_0 = arith.constant 0 : index
    %c0_1 = arith.constant 0 : index
    %0 = vector.load %arg1[%c0, %c0_0, %c0_1] : memref<1x20x299xbf16, #tpu.memory_space<vmem>>, vector<1x20x299xbf16>
    %1 = vector.shape_cast %0 : vector<1x20x299xbf16> to vector<20x299xbf16>
    %cst = arith.constant 0.000000e+00 : f32
    %2 = vector.broadcast %cst : f32 to vector<16x128xf32>
    %3 = vector.extract_strided_slice %1 {offsets = [0, 0], sizes = [16, 299], strides = [1, 1]} : vector<20x299xbf16> to vector<16x299xbf16>
    %c0_2 = arith.constant 0 : index
    %c0_3 = arith.constant 0 : index
    %c0_4 = arith.constant 0 : index
    %4 = vector.load %arg2[%c0_2, %c0_3, %c0_4] : memref<5x299x128xbf16, #tpu.memory_space<vmem>>, vector<1x299x128xbf16>
    %5 = vector.shape_cast %4 : vector<1x299x128xbf16> to vector<299x128xbf16>
    %cst_5 = arith.constant dense<0.000000e+00> : vector<16x128xf32>
    %6 = tpu.matmul %3, %5, %cst_5 {dimension_numbers = #tpu.dot_dimension_numbers<[1], [0], [0], [1], [0, 0, 1, 1], [], []>} : vector<16x299xbf16>, vector<299x128xbf16>, vector<16x128xf32> -> vector<16x128xf32>
    %7 = arith.addf %2, %6 : vector<16x128xf32>
    %8 = vector.extract_strided_slice %1 {offsets = [1, 0], sizes = [16, 299], strides = [1, 1]} : vector<20x299xbf16> to vector<16x299xbf16>
    %c1 = arith.constant 1 : index
    %c0_6 = arith.constant 0 : index
    %c0_7 = arith.constant 0 : index
    %9 = vector.load %arg2[%c1, %c0_6, %c0_7] : memref<5x299x128xbf16, #tpu.memory_space<vmem>>, vector<1x299x128xbf16>
    %10 = vector.shape_cast %9 : vector<1x299x128xbf16> to vector<299x128xbf16>
    %cst_8 = arith.constant dense<0.000000e+00> : vector<16x128xf32>
    %11 = tpu.matmul %8, %10, %cst_8 {dimension_numbers = #tpu.dot_dimension_numbers<[1], [0], [0], [1], [0, 0, 1, 1], [], []>} : vector<16x299xbf16>, vector<299x128xbf16>, vector<16x128xf32> -> vector<16x128xf32>
    %12 = arith.addf %7, %11 : vector<16x128xf32>
    %13 = vector.extract_strided_slice %1 {offsets = [2, 0], sizes = [16, 299], strides = [1, 1]} : vector<20x299xbf16> to vector<16x299xbf16>
    %c2 = arith.constant 2 : index
    %c0_9 = arith.constant 0 : index
    %c0_10 = arith.constant 0 : index
    %14 = vector.load %arg2[%c2, %c0_9, %c0_10] : memref<5x299x128xbf16, #tpu.memory_space<vmem>>, vector<1x299x128xbf16>
    %15 = vector.shape_cast %14 : vector<1x299x128xbf16> to vector<299x128xbf16>
    %cst_11 = arith.constant dense<0.000000e+00> : vector<16x128xf32>
    %16 = tpu.matmul %13, %15, %cst_11 {dimension_numbers = #tpu.dot_dimension_numbers<[1], [0], [0], [1], [0, 0, 1, 1], [], []>} : vector<16x299xbf16>, vector<299x128xbf16>, vector<16x128xf32> -> vector<16x128xf32>
    %17 = arith.addf %12, %16 : vector<16x128xf32>
    %18 = vector.extract_strided_slice %1 {offsets = [3, 0], sizes = [16, 299], strides = [1, 1]} : vector<20x299xbf16> to vector<16x299xbf16>
    %c3 = arith.constant 3 : index
    %c0_12 = arith.constant 0 : index
    %c0_13 = arith.constant 0 : index
    %19 = vector.load %arg2[%c3, %c0_12, %c0_13] : memref<5x299x128xbf16, #tpu.memory_space<vmem>>, vector<1x299x128xbf16>
    %20 = vector.shape_cast %19 : vector<1x299x128xbf16> to vector<299x128xbf16>
    %cst_14 = arith.constant dense<0.000000e+00> : vector<16x128xf32>
    %21 = tpu.matmul %18, %20, %cst_14 {dimension_numbers = #tpu.dot_dimension_numbers<[1], [0], [0], [1], [0, 0, 1, 1], [], []>} : vector<16x299xbf16>, vector<299x128xbf16>, vector<16x128xf32> -> vector<16x128xf32>
    %22 = arith.addf %17, %21 : vector<16x128xf32>
    %23 = vector.extract_strided_slice %1 {offsets = [4, 0], sizes = [16, 299], strides = [1, 1]} : vector<20x299xbf16> to vector<16x299xbf16>
    %c4 = arith.constant 4 : index
    %c0_15 = arith.constant 0 : index
    %c0_16 = arith.constant 0 : index
    %24 = vector.load %arg2[%c4, %c0_15, %c0_16] : memref<5x299x128xbf16, #tpu.memory_space<vmem>>, vector<1x299x128xbf16>
    %25 = vector.shape_cast %24 : vector<1x299x128xbf16> to vector<299x128xbf16>
    %cst_17 = arith.constant dense<0.000000e+00> : vector<16x128xf32>
    %26 = tpu.matmul %23, %25, %cst_17 {dimension_numbers = #tpu.dot_dimension_numbers<[1], [0], [0], [1], [0, 0, 1, 1], [], []>} : vector<16x299xbf16>, vector<299x128xbf16>, vector<16x128xf32> -> vector<16x128xf32>
    %27 = arith.addf %22, %26 : vector<16x128xf32>
    %c0_18 = arith.constant 0 : index
    %c0_19 = arith.constant 0 : index
    %28 = vector.load %arg3[%c0_18, %c0_19] : memref<3x128xf32, #tpu.memory_space<vmem>>, vector<3x128xf32>
    %29 = vector.extract_strided_slice %28 {offsets = [0, 0], sizes = [1, 128], strides = [1, 1]} : vector<3x128xf32> to vector<1x128xf32>
    %30 = vector.broadcast %29 : vector<1x128xf32> to vector<16x128xf32>
    %31 = arith.addf %27, %30 : vector<16x128xf32>
    %cst_20 = arith.constant 0.000000e+00 : f32
    %32 = vector.broadcast %cst_20 : f32 to vector<16x128xf32>
    %33 = arith.maximumf %31, %32 : vector<16x128xf32>
    %34 = vector.extract_strided_slice %28 {offsets = [1, 0], sizes = [1, 128], strides = [1, 1]} : vector<3x128xf32> to vector<1x128xf32>
    %35 = vector.broadcast %34 : vector<1x128xf32> to vector<16x128xf32>
    %36 = arith.mulf %33, %35 : vector<16x128xf32>
    %37 = vector.extract_strided_slice %28 {offsets = [2, 0], sizes = [1, 128], strides = [1, 1]} : vector<3x128xf32> to vector<1x128xf32>
    %38 = vector.broadcast %37 : vector<1x128xf32> to vector<16x128xf32>
    %39 = arith.addf %36, %38 : vector<16x128xf32>
    %40 = arith.truncf %39 : vector<16x128xf32> to vector<16x128xbf16>
    %c0_21 = arith.constant 0 : index
    %c0_22 = arith.constant 0 : index
    %c0_23 = arith.constant 0 : index
    %41 = vector.load %arg4[%c0_21, %c0_22, %c0_23] : memref<1x16x128xbf16, #tpu.memory_space<vmem>>, vector<1x16x128xbf16>
    %42 = vector.shape_cast %41 : vector<1x16x128xbf16> to vector<16x128xbf16>
    %43 = vector.shape_cast %40 : vector<16x128xbf16> to vector<1x16x128xbf16>
    tpu.vector_store %arg4[%c0_21, %c0_22, %c0_23], %43 {strides = array<i32>} : memref<1x16x128xbf16, #tpu.memory_space<vmem>>, vector<1x16x128xbf16>,
    return
  }
  func.func @transform_0(%arg0: i32) -> (i32, i32, i32) {
    %c0_i32 = arith.constant 0 : i32
    %c0_i32_0 = arith.constant 0 : i32
    %c0_i32_1 = arith.constant 0 : i32
    return %arg0, %c0_i32, %c0_i32_0 : i32, i32, i32
  }
  func.func @transform_1(%arg0: i32) -> (i32, i32, i32) {
    %c0_i32 = arith.constant 0 : i32
    %c0_i32_0 = arith.constant 0 : i32
    %c0_i32_1 = arith.constant 0 : i32
    %c0_i32_2 = arith.constant 0 : i32
    return %c0_i32, %c0_i32_0, %c0_i32_1 : i32, i32, i32
  }
  func.func @transform_2(%arg0: i32) -> (i32, i32) {
    %c0_i32 = arith.constant 0 : i32
    %c0_i32_0 = arith.constant 0 : i32
    %c0_i32_1 = arith.constant 0 : i32
    return %c0_i32, %c0_i32_0 : i32, i32
  }
  func.func @transform_3(%arg0: i32) -> (i32, i32, i32) {
    %c0_i32 = arith.constant 0 : i32
    %c0_i32_0 = arith.constant 0 : i32
    %c0_i32_1 = arith.constant 0 : i32
    return %arg0, %c0_i32, %c0_i32_0 : i32, i32, i32
  }
}

module attributes {stable_mosaic.version = 11 : i64} {
  func.func @_mm_kernel(%arg0: i32, %arg1: memref<32x64xbf16, #tpu.memory_space<vmem>>, %arg2: memref<64x128xbf16, #tpu.memory_space<vmem>>, %arg3: memref<3x128xf32, #tpu.memory_space<vmem>>, %arg4: memref<32x128xbf16, #tpu.memory_space<vmem>>) attributes {dimension_semantics = [#tpu.dimension_semantics<parallel>], iteration_bounds = array<i64: 1>, scalar_prefetch = 0 : i64, scratch_operands = 0 : i64, tpu.core_type = #tpu.core_type<tc>, window_params = [{transform_indices = @transform_0, window_bounds = array<i64: 32, 64>}, {pipeline_mode = #tpu.pipeline_mode<synchronous>, transform_indices = @transform_1, window_bounds = array<i64: 64, 128>}, {pipeline_mode = #tpu.pipeline_mode<synchronous>, transform_indices = @transform_2, window_bounds = array<i64: 3, 128>}, {transform_indices = @transform_3, window_bounds = array<i64: 32, 128>}]} {
    %c0 = arith.constant 0 : index
    %c0_0 = arith.constant 0 : index
    %0 = vector.load %arg1[%c0, %c0_0] : memref<32x64xbf16, #tpu.memory_space<vmem>>, vector<32x64xbf16>
    %c0_1 = arith.constant 0 : index
    %c0_2 = arith.constant 0 : index
    %1 = vector.load %arg2[%c0_1, %c0_2] : memref<64x128xbf16, #tpu.memory_space<vmem>>, vector<64x128xbf16>
    %cst = arith.constant dense<0.000000e+00> : vector<32x128xf32>
    %2 = tpu.matmul %0, %1, %cst {dimension_numbers = #tpu.dot_dimension_numbers<[1], [0], [0], [1], [0, 0, 1, 1], [], []>} : vector<32x64xbf16>, vector<64x128xbf16>, vector<32x128xf32> -> vector<32x128xf32>
    %c0_3 = arith.constant 0 : index
    %c0_4 = arith.constant 0 : index
    %3 = vector.load %arg3[%c0_3, %c0_4] : memref<3x128xf32, #tpu.memory_space<vmem>>, vector<3x128xf32>
    %4 = vector.extract_strided_slice %3 {offsets = [0, 0], sizes = [1, 128], strides = [1, 1]} : vector<3x128xf32> to vector<1x128xf32>
    %5 = vector.broadcast %4 : vector<1x128xf32> to vector<32x128xf32>
    %6 = arith.addf %2, %5 : vector<32x128xf32>
    %cst_5 = arith.constant 0.000000e+00 : f32
    %7 = vector.broadcast %cst_5 : f32 to vector<32x128xf32>
    %8 = arith.maximumf %6, %7 : vector<32x128xf32>
    %9 = vector.extract_strided_slice %3 {offsets = [1, 0], sizes = [1, 128], strides = [1, 1]} : vector<3x128xf32> to vector<1x128xf32>
    %10 = vector.broadcast %9 : vector<1x128xf32> to vector<32x128xf32>
    %11 = arith.mulf %8, %10 : vector<32x128xf32>
    %12 = vector.extract_strided_slice %3 {offsets = [2, 0], sizes = [1, 128], strides = [1, 1]} : vector<3x128xf32> to vector<1x128xf32>
    %13 = vector.broadcast %12 : vector<1x128xf32> to vector<32x128xf32>
    %14 = arith.addf %11, %13 : vector<32x128xf32>
    %15 = arith.truncf %14 : vector<32x128xf32> to vector<32x128xbf16>
    %c0_6 = arith.constant 0 : index
    %c0_7 = arith.constant 0 : index
    %16 = vector.load %arg4[%c0_6, %c0_7] : memref<32x128xbf16, #tpu.memory_space<vmem>>, vector<32x128xbf16>
    tpu.vector_store %arg4[%c0_6, %c0_7], %15 {strides = array<i32>} : memref<32x128xbf16, #tpu.memory_space<vmem>>, vector<32x128xbf16>,
    return
  }
  func.func @transform_0(%arg0: i32) -> (i32, i32) {
    %c0_i32 = arith.constant 0 : i32
    %c0_i32_0 = arith.constant 0 : i32
    return %arg0, %c0_i32 : i32, i32
  }
  func.func @transform_1(%arg0: i32) -> (i32, i32) {
    %c0_i32 = arith.constant 0 : i32
    %c0_i32_0 = arith.constant 0 : i32
    %c0_i32_1 = arith.constant 0 : i32
    return %c0_i32, %c0_i32_0 : i32, i32
  }
  func.func @transform_2(%arg0: i32) -> (i32, i32) {
    %c0_i32 = arith.constant 0 : i32
    %c0_i32_0 = arith.constant 0 : i32
    %c0_i32_1 = arith.constant 0 : i32
    return %c0_i32, %c0_i32_0 : i32, i32
  }
  func.func @transform_3(%arg0: i32) -> (i32, i32) {
    %c0_i32 = arith.constant 0 : i32
    %c0_i32_0 = arith.constant 0 : i32
    return %arg0, %c0_i32 : i32, i32
  }
}

module attributes {stable_mosaic.version = 11 : i64} {
  func.func @_conv_tap_kernel(%arg0: i32, %arg1: memref<1x20x8xbf16, #tpu.memory_space<vmem>>, %arg2: memref<3x8x128xbf16, #tpu.memory_space<vmem>>, %arg3: memref<3x128xf32, #tpu.memory_space<vmem>>, %arg4: memref<1x16x128xbf16, #tpu.memory_space<vmem>>) attributes {dimension_semantics = [#tpu.dimension_semantics<parallel>], iteration_bounds = array<i64: 2>, scalar_prefetch = 0 : i64, scratch_operands = 0 : i64, tpu.core_type = #tpu.core_type<tc>, window_params = [{transform_indices = @transform_0, window_bounds = array<i64: 1, 20, 8>}, {pipeline_mode = #tpu.pipeline_mode<synchronous>, transform_indices = @transform_1, window_bounds = array<i64: 3, 8, 128>}, {pipeline_mode = #tpu.pipeline_mode<synchronous>, transform_indices = @transform_2, window_bounds = array<i64: 3, 128>}, {transform_indices = @transform_3, window_bounds = array<i64: 1, 16, 128>}]} {
    %c0 = arith.constant 0 : index
    %c0_0 = arith.constant 0 : index
    %c0_1 = arith.constant 0 : index
    %0 = vector.load %arg1[%c0, %c0_0, %c0_1] : memref<1x20x8xbf16, #tpu.memory_space<vmem>>, vector<1x20x8xbf16>
    %1 = vector.shape_cast %0 : vector<1x20x8xbf16> to vector<20x8xbf16>
    %cst = arith.constant 0.000000e+00 : f32
    %2 = vector.broadcast %cst : f32 to vector<16x128xf32>
    %3 = vector.extract_strided_slice %1 {offsets = [0, 0], sizes = [16, 8], strides = [1, 1]} : vector<20x8xbf16> to vector<16x8xbf16>
    %c0_2 = arith.constant 0 : index
    %c0_3 = arith.constant 0 : index
    %c0_4 = arith.constant 0 : index
    %4 = vector.load %arg2[%c0_2, %c0_3, %c0_4] : memref<3x8x128xbf16, #tpu.memory_space<vmem>>, vector<1x8x128xbf16>
    %5 = vector.shape_cast %4 : vector<1x8x128xbf16> to vector<8x128xbf16>
    %cst_5 = arith.constant dense<0.000000e+00> : vector<16x128xf32>
    %6 = tpu.matmul %3, %5, %cst_5 {dimension_numbers = #tpu.dot_dimension_numbers<[1], [0], [0], [1], [0, 0, 1, 1], [], []>} : vector<16x8xbf16>, vector<8x128xbf16>, vector<16x128xf32> -> vector<16x128xf32>
    %7 = arith.addf %2, %6 : vector<16x128xf32>
    %8 = vector.extract_strided_slice %1 {offsets = [2, 0], sizes = [16, 8], strides = [1, 1]} : vector<20x8xbf16> to vector<16x8xbf16>
    %c1 = arith.constant 1 : index
    %c0_6 = arith.constant 0 : index
    %c0_7 = arith.constant 0 : index
    %9 = vector.load %arg2[%c1, %c0_6, %c0_7] : memref<3x8x128xbf16, #tpu.memory_space<vmem>>, vector<1x8x128xbf16>
    %10 = vector.shape_cast %9 : vector<1x8x128xbf16> to vector<8x128xbf16>
    %cst_8 = arith.constant dense<0.000000e+00> : vector<16x128xf32>
    %11 = tpu.matmul %8, %10, %cst_8 {dimension_numbers = #tpu.dot_dimension_numbers<[1], [0], [0], [1], [0, 0, 1, 1], [], []>} : vector<16x8xbf16>, vector<8x128xbf16>, vector<16x128xf32> -> vector<16x128xf32>
    %12 = arith.addf %7, %11 : vector<16x128xf32>
    %13 = vector.extract_strided_slice %1 {offsets = [4, 0], sizes = [16, 8], strides = [1, 1]} : vector<20x8xbf16> to vector<16x8xbf16>
    %c2 = arith.constant 2 : index
    %c0_9 = arith.constant 0 : index
    %c0_10 = arith.constant 0 : index
    %14 = vector.load %arg2[%c2, %c0_9, %c0_10] : memref<3x8x128xbf16, #tpu.memory_space<vmem>>, vector<1x8x128xbf16>
    %15 = vector.shape_cast %14 : vector<1x8x128xbf16> to vector<8x128xbf16>
    %cst_11 = arith.constant dense<0.000000e+00> : vector<16x128xf32>
    %16 = tpu.matmul %13, %15, %cst_11 {dimension_numbers = #tpu.dot_dimension_numbers<[1], [0], [0], [1], [0, 0, 1, 1], [], []>} : vector<16x8xbf16>, vector<8x128xbf16>, vector<16x128xf32> -> vector<16x128xf32>
    %17 = arith.addf %12, %16 : vector<16x128xf32>
    %c0_12 = arith.constant 0 : index
    %c0_13 = arith.constant 0 : index
    %18 = vector.load %arg3[%c0_12, %c0_13] : memref<3x128xf32, #tpu.memory_space<vmem>>, vector<3x128xf32>
    %19 = vector.extract_strided_slice %18 {offsets = [0, 0], sizes = [1, 128], strides = [1, 1]} : vector<3x128xf32> to vector<1x128xf32>
    %20 = vector.broadcast %19 : vector<1x128xf32> to vector<16x128xf32>
    %21 = arith.addf %17, %20 : vector<16x128xf32>
    %cst_14 = arith.constant 0.000000e+00 : f32
    %22 = vector.broadcast %cst_14 : f32 to vector<16x128xf32>
    %23 = arith.maximumf %21, %22 : vector<16x128xf32>
    %24 = vector.extract_strided_slice %18 {offsets = [1, 0], sizes = [1, 128], strides = [1, 1]} : vector<3x128xf32> to vector<1x128xf32>
    %25 = vector.broadcast %24 : vector<1x128xf32> to vector<16x128xf32>
    %26 = arith.mulf %23, %25 : vector<16x128xf32>
    %27 = vector.extract_strided_slice %18 {offsets = [2, 0], sizes = [1, 128], strides = [1, 1]} : vector<3x128xf32> to vector<1x128xf32>
    %28 = vector.broadcast %27 : vector<1x128xf32> to vector<16x128xf32>
    %29 = arith.addf %26, %28 : vector<16x128xf32>
    %30 = arith.truncf %29 : vector<16x128xf32> to vector<16x128xbf16>
    %c0_15 = arith.constant 0 : index
    %c0_16 = arith.constant 0 : index
    %c0_17 = arith.constant 0 : index
    %31 = vector.load %arg4[%c0_15, %c0_16, %c0_17] : memref<1x16x128xbf16, #tpu.memory_space<vmem>>, vector<1x16x128xbf16>
    %32 = vector.shape_cast %31 : vector<1x16x128xbf16> to vector<16x128xbf16>
    %33 = vector.shape_cast %30 : vector<16x128xbf16> to vector<1x16x128xbf16>
    tpu.vector_store %arg4[%c0_15, %c0_16, %c0_17], %33 {strides = array<i32>} : memref<1x16x128xbf16, #tpu.memory_space<vmem>>, vector<1x16x128xbf16>,
    return
  }
  func.func @transform_0(%arg0: i32) -> (i32, i32, i32) {
    %c0_i32 = arith.constant 0 : i32
    %c0_i32_0 = arith.constant 0 : i32
    %c0_i32_1 = arith.constant 0 : i32
    return %arg0, %c0_i32, %c0_i32_0 : i32, i32, i32
  }
  func.func @transform_1(%arg0: i32) -> (i32, i32, i32) {
    %c0_i32 = arith.constant 0 : i32
    %c0_i32_0 = arith.constant 0 : i32
    %c0_i32_1 = arith.constant 0 : i32
    %c0_i32_2 = arith.constant 0 : i32
    return %c0_i32, %c0_i32_0, %c0_i32_1 : i32, i32, i32
  }
  func.func @transform_2(%arg0: i32) -> (i32, i32) {
    %c0_i32 = arith.constant 0 : i32
    %c0_i32_0 = arith.constant 0 : i32
    %c0_i32_1 = arith.constant 0 : i32
    return %c0_i32, %c0_i32_0 : i32, i32
  }
  func.func @transform_3(%arg0: i32) -> (i32, i32, i32) {
    %c0_i32 = arith.constant 0 : i32
    %c0_i32_0 = arith.constant 0 : i32
    %c0_i32_1 = arith.constant 0 : i32
    return %arg0, %c0_i32, %c0_i32_0 : i32, i32, i32
  }
}

module attributes {stable_mosaic.version = 11 : i64} {
  func.func @_mm_kernel(%arg0: i32, %arg1: memref<32x64xbf16, #tpu.memory_space<vmem>>, %arg2: memref<64x128xbf16, #tpu.memory_space<vmem>>, %arg3: memref<3x128xf32, #tpu.memory_space<vmem>>, %arg4: memref<32x128xbf16, #tpu.memory_space<vmem>>) attributes {dimension_semantics = [#tpu.dimension_semantics<parallel>], iteration_bounds = array<i64: 1>, scalar_prefetch = 0 : i64, scratch_operands = 0 : i64, tpu.core_type = #tpu.core_type<tc>, window_params = [{transform_indices = @transform_0, window_bounds = array<i64: 32, 64>}, {pipeline_mode = #tpu.pipeline_mode<synchronous>, transform_indices = @transform_1, window_bounds = array<i64: 64, 128>}, {pipeline_mode = #tpu.pipeline_mode<synchronous>, transform_indices = @transform_2, window_bounds = array<i64: 3, 128>}, {transform_indices = @transform_3, window_bounds = array<i64: 32, 128>}]} {
    %c0 = arith.constant 0 : index
    %c0_0 = arith.constant 0 : index
    %0 = vector.load %arg1[%c0, %c0_0] : memref<32x64xbf16, #tpu.memory_space<vmem>>, vector<32x64xbf16>
    %c0_1 = arith.constant 0 : index
    %c0_2 = arith.constant 0 : index
    %1 = vector.load %arg2[%c0_1, %c0_2] : memref<64x128xbf16, #tpu.memory_space<vmem>>, vector<64x128xbf16>
    %cst = arith.constant dense<0.000000e+00> : vector<32x128xf32>
    %2 = tpu.matmul %0, %1, %cst {dimension_numbers = #tpu.dot_dimension_numbers<[1], [0], [0], [1], [0, 0, 1, 1], [], []>} : vector<32x64xbf16>, vector<64x128xbf16>, vector<32x128xf32> -> vector<32x128xf32>
    %c0_3 = arith.constant 0 : index
    %c0_4 = arith.constant 0 : index
    %3 = vector.load %arg3[%c0_3, %c0_4] : memref<3x128xf32, #tpu.memory_space<vmem>>, vector<3x128xf32>
    %4 = vector.extract_strided_slice %3 {offsets = [0, 0], sizes = [1, 128], strides = [1, 1]} : vector<3x128xf32> to vector<1x128xf32>
    %5 = vector.broadcast %4 : vector<1x128xf32> to vector<32x128xf32>
    %6 = arith.addf %2, %5 : vector<32x128xf32>
    %cst_5 = arith.constant 0.000000e+00 : f32
    %7 = vector.broadcast %cst_5 : f32 to vector<32x128xf32>
    %8 = arith.maximumf %6, %7 : vector<32x128xf32>
    %9 = vector.extract_strided_slice %3 {offsets = [1, 0], sizes = [1, 128], strides = [1, 1]} : vector<3x128xf32> to vector<1x128xf32>
    %10 = vector.broadcast %9 : vector<1x128xf32> to vector<32x128xf32>
    %11 = arith.mulf %8, %10 : vector<32x128xf32>
    %12 = vector.extract_strided_slice %3 {offsets = [2, 0], sizes = [1, 128], strides = [1, 1]} : vector<3x128xf32> to vector<1x128xf32>
    %13 = vector.broadcast %12 : vector<1x128xf32> to vector<32x128xf32>
    %14 = arith.addf %11, %13 : vector<32x128xf32>
    %15 = arith.truncf %14 : vector<32x128xf32> to vector<32x128xbf16>
    %c0_6 = arith.constant 0 : index
    %c0_7 = arith.constant 0 : index
    %16 = vector.load %arg4[%c0_6, %c0_7] : memref<32x128xbf16, #tpu.memory_space<vmem>>, vector<32x128xbf16>
    tpu.vector_store %arg4[%c0_6, %c0_7], %15 {strides = array<i32>} : memref<32x128xbf16, #tpu.memory_space<vmem>>, vector<32x128xbf16>,
    return
  }
  func.func @transform_0(%arg0: i32) -> (i32, i32) {
    %c0_i32 = arith.constant 0 : i32
    %c0_i32_0 = arith.constant 0 : i32
    return %arg0, %c0_i32 : i32, i32
  }
  func.func @transform_1(%arg0: i32) -> (i32, i32) {
    %c0_i32 = arith.constant 0 : i32
    %c0_i32_0 = arith.constant 0 : i32
    %c0_i32_1 = arith.constant 0 : i32
    return %c0_i32, %c0_i32_0 : i32, i32
  }
  func.func @transform_2(%arg0: i32) -> (i32, i32) {
    %c0_i32 = arith.constant 0 : i32
    %c0_i32_0 = arith.constant 0 : i32
    %c0_i32_1 = arith.constant 0 : i32
    return %c0_i32, %c0_i32_0 : i32, i32
  }
  func.func @transform_3(%arg0: i32) -> (i32, i32) {
    %c0_i32 = arith.constant 0 : i32
    %c0_i32_0 = arith.constant 0 : i32
    return %arg0, %c0_i32 : i32, i32
  }
}

module attributes {stable_mosaic.version = 11 : i64} {
  func.func @_mm_kernel(%arg0: i32, %arg1: memref<32x64xbf16, #tpu.memory_space<vmem>>, %arg2: memref<64x128xbf16, #tpu.memory_space<vmem>>, %arg3: memref<3x128xf32, #tpu.memory_space<vmem>>, %arg4: memref<32x128xbf16, #tpu.memory_space<vmem>>) attributes {dimension_semantics = [#tpu.dimension_semantics<parallel>], iteration_bounds = array<i64: 1>, scalar_prefetch = 0 : i64, scratch_operands = 0 : i64, tpu.core_type = #tpu.core_type<tc>, window_params = [{transform_indices = @transform_0, window_bounds = array<i64: 32, 64>}, {pipeline_mode = #tpu.pipeline_mode<synchronous>, transform_indices = @transform_1, window_bounds = array<i64: 64, 128>}, {pipeline_mode = #tpu.pipeline_mode<synchronous>, transform_indices = @transform_2, window_bounds = array<i64: 3, 128>}, {transform_indices = @transform_3, window_bounds = array<i64: 32, 128>}]} {
    %c0 = arith.constant 0 : index
    %c0_0 = arith.constant 0 : index
    %0 = vector.load %arg1[%c0, %c0_0] : memref<32x64xbf16, #tpu.memory_space<vmem>>, vector<32x64xbf16>
    %c0_1 = arith.constant 0 : index
    %c0_2 = arith.constant 0 : index
    %1 = vector.load %arg2[%c0_1, %c0_2] : memref<64x128xbf16, #tpu.memory_space<vmem>>, vector<64x128xbf16>
    %cst = arith.constant dense<0.000000e+00> : vector<32x128xf32>
    %2 = tpu.matmul %0, %1, %cst {dimension_numbers = #tpu.dot_dimension_numbers<[1], [0], [0], [1], [0, 0, 1, 1], [], []>} : vector<32x64xbf16>, vector<64x128xbf16>, vector<32x128xf32> -> vector<32x128xf32>
    %c0_3 = arith.constant 0 : index
    %c0_4 = arith.constant 0 : index
    %3 = vector.load %arg3[%c0_3, %c0_4] : memref<3x128xf32, #tpu.memory_space<vmem>>, vector<3x128xf32>
    %4 = vector.extract_strided_slice %3 {offsets = [0, 0], sizes = [1, 128], strides = [1, 1]} : vector<3x128xf32> to vector<1x128xf32>
    %5 = vector.broadcast %4 : vector<1x128xf32> to vector<32x128xf32>
    %6 = arith.addf %2, %5 : vector<32x128xf32>
    %cst_5 = arith.constant 0.000000e+00 : f32
    %7 = vector.broadcast %cst_5 : f32 to vector<32x128xf32>
    %8 = arith.maximumf %6, %7 : vector<32x128xf32>
    %9 = vector.extract_strided_slice %3 {offsets = [1, 0], sizes = [1, 128], strides = [1, 1]} : vector<3x128xf32> to vector<1x128xf32>
    %10 = vector.broadcast %9 : vector<1x128xf32> to vector<32x128xf32>
    %11 = arith.mulf %8, %10 : vector<32x128xf32>
    %12 = vector.extract_strided_slice %3 {offsets = [2, 0], sizes = [1, 128], strides = [1, 1]} : vector<3x128xf32> to vector<1x128xf32>
    %13 = vector.broadcast %12 : vector<1x128xf32> to vector<32x128xf32>
    %14 = arith.addf %11, %13 : vector<32x128xf32>
    %15 = arith.truncf %14 : vector<32x128xf32> to vector<32x128xbf16>
    %c0_6 = arith.constant 0 : index
    %c0_7 = arith.constant 0 : index
    %16 = vector.load %arg4[%c0_6, %c0_7] : memref<32x128xbf16, #tpu.memory_space<vmem>>, vector<32x128xbf16>
    tpu.vector_store %arg4[%c0_6, %c0_7], %15 {strides = array<i32>} : memref<32x128xbf16, #tpu.memory_space<vmem>>, vector<32x128xbf16>,
    return
  }
  func.func @transform_0(%arg0: i32) -> (i32, i32) {
    %c0_i32 = arith.constant 0 : i32
    %c0_i32_0 = arith.constant 0 : i32
    return %arg0, %c0_i32 : i32, i32
  }
  func.func @transform_1(%arg0: i32) -> (i32, i32) {
    %c0_i32 = arith.constant 0 : i32
    %c0_i32_0 = arith.constant 0 : i32
    %c0_i32_1 = arith.constant 0 : i32
    return %c0_i32, %c0_i32_0 : i32, i32
  }
  func.func @transform_2(%arg0: i32) -> (i32, i32) {
    %c0_i32 = arith.constant 0 : i32
    %c0_i32_0 = arith.constant 0 : i32
    %c0_i32_1 = arith.constant 0 : i32
    return %c0_i32, %c0_i32_0 : i32, i32
  }
  func.func @transform_3(%arg0: i32) -> (i32, i32) {
    %c0_i32 = arith.constant 0 : i32
    %c0_i32_0 = arith.constant 0 : i32
    return %arg0, %c0_i32 : i32, i32
  }
}

module attributes {stable_mosaic.version = 11 : i64} {
  func.func @_conv_tap_kernel(%arg0: i32, %arg1: memref<1x22x8xbf16, #tpu.memory_space<vmem>>, %arg2: memref<3x8x128xbf16, #tpu.memory_space<vmem>>, %arg3: memref<3x128xf32, #tpu.memory_space<vmem>>, %arg4: memref<1x16x128xbf16, #tpu.memory_space<vmem>>) attributes {dimension_semantics = [#tpu.dimension_semantics<parallel>], iteration_bounds = array<i64: 2>, scalar_prefetch = 0 : i64, scratch_operands = 0 : i64, tpu.core_type = #tpu.core_type<tc>, window_params = [{transform_indices = @transform_0, window_bounds = array<i64: 1, 22, 8>}, {pipeline_mode = #tpu.pipeline_mode<synchronous>, transform_indices = @transform_1, window_bounds = array<i64: 3, 8, 128>}, {pipeline_mode = #tpu.pipeline_mode<synchronous>, transform_indices = @transform_2, window_bounds = array<i64: 3, 128>}, {transform_indices = @transform_3, window_bounds = array<i64: 1, 16, 128>}]} {
    %c0 = arith.constant 0 : index
    %c0_0 = arith.constant 0 : index
    %c0_1 = arith.constant 0 : index
    %0 = vector.load %arg1[%c0, %c0_0, %c0_1] : memref<1x22x8xbf16, #tpu.memory_space<vmem>>, vector<1x22x8xbf16>
    %1 = vector.shape_cast %0 : vector<1x22x8xbf16> to vector<22x8xbf16>
    %cst = arith.constant 0.000000e+00 : f32
    %2 = vector.broadcast %cst : f32 to vector<16x128xf32>
    %3 = vector.extract_strided_slice %1 {offsets = [0, 0], sizes = [16, 8], strides = [1, 1]} : vector<22x8xbf16> to vector<16x8xbf16>
    %c0_2 = arith.constant 0 : index
    %c0_3 = arith.constant 0 : index
    %c0_4 = arith.constant 0 : index
    %4 = vector.load %arg2[%c0_2, %c0_3, %c0_4] : memref<3x8x128xbf16, #tpu.memory_space<vmem>>, vector<1x8x128xbf16>
    %5 = vector.shape_cast %4 : vector<1x8x128xbf16> to vector<8x128xbf16>
    %cst_5 = arith.constant dense<0.000000e+00> : vector<16x128xf32>
    %6 = tpu.matmul %3, %5, %cst_5 {dimension_numbers = #tpu.dot_dimension_numbers<[1], [0], [0], [1], [0, 0, 1, 1], [], []>} : vector<16x8xbf16>, vector<8x128xbf16>, vector<16x128xf32> -> vector<16x128xf32>
    %7 = arith.addf %2, %6 : vector<16x128xf32>
    %8 = vector.extract_strided_slice %1 {offsets = [3, 0], sizes = [16, 8], strides = [1, 1]} : vector<22x8xbf16> to vector<16x8xbf16>
    %c1 = arith.constant 1 : index
    %c0_6 = arith.constant 0 : index
    %c0_7 = arith.constant 0 : index
    %9 = vector.load %arg2[%c1, %c0_6, %c0_7] : memref<3x8x128xbf16, #tpu.memory_space<vmem>>, vector<1x8x128xbf16>
    %10 = vector.shape_cast %9 : vector<1x8x128xbf16> to vector<8x128xbf16>
    %cst_8 = arith.constant dense<0.000000e+00> : vector<16x128xf32>
    %11 = tpu.matmul %8, %10, %cst_8 {dimension_numbers = #tpu.dot_dimension_numbers<[1], [0], [0], [1], [0, 0, 1, 1], [], []>} : vector<16x8xbf16>, vector<8x128xbf16>, vector<16x128xf32> -> vector<16x128xf32>
    %12 = arith.addf %7, %11 : vector<16x128xf32>
    %13 = vector.extract_strided_slice %1 {offsets = [6, 0], sizes = [16, 8], strides = [1, 1]} : vector<22x8xbf16> to vector<16x8xbf16>
    %c2 = arith.constant 2 : index
    %c0_9 = arith.constant 0 : index
    %c0_10 = arith.constant 0 : index
    %14 = vector.load %arg2[%c2, %c0_9, %c0_10] : memref<3x8x128xbf16, #tpu.memory_space<vmem>>, vector<1x8x128xbf16>
    %15 = vector.shape_cast %14 : vector<1x8x128xbf16> to vector<8x128xbf16>
    %cst_11 = arith.constant dense<0.000000e+00> : vector<16x128xf32>
    %16 = tpu.matmul %13, %15, %cst_11 {dimension_numbers = #tpu.dot_dimension_numbers<[1], [0], [0], [1], [0, 0, 1, 1], [], []>} : vector<16x8xbf16>, vector<8x128xbf16>, vector<16x128xf32> -> vector<16x128xf32>
    %17 = arith.addf %12, %16 : vector<16x128xf32>
    %c0_12 = arith.constant 0 : index
    %c0_13 = arith.constant 0 : index
    %18 = vector.load %arg3[%c0_12, %c0_13] : memref<3x128xf32, #tpu.memory_space<vmem>>, vector<3x128xf32>
    %19 = vector.extract_strided_slice %18 {offsets = [0, 0], sizes = [1, 128], strides = [1, 1]} : vector<3x128xf32> to vector<1x128xf32>
    %20 = vector.broadcast %19 : vector<1x128xf32> to vector<16x128xf32>
    %21 = arith.addf %17, %20 : vector<16x128xf32>
    %cst_14 = arith.constant 0.000000e+00 : f32
    %22 = vector.broadcast %cst_14 : f32 to vector<16x128xf32>
    %23 = arith.maximumf %21, %22 : vector<16x128xf32>
    %24 = vector.extract_strided_slice %18 {offsets = [1, 0], sizes = [1, 128], strides = [1, 1]} : vector<3x128xf32> to vector<1x128xf32>
    %25 = vector.broadcast %24 : vector<1x128xf32> to vector<16x128xf32>
    %26 = arith.mulf %23, %25 : vector<16x128xf32>
    %27 = vector.extract_strided_slice %18 {offsets = [2, 0], sizes = [1, 128], strides = [1, 1]} : vector<3x128xf32> to vector<1x128xf32>
    %28 = vector.broadcast %27 : vector<1x128xf32> to vector<16x128xf32>
    %29 = arith.addf %26, %28 : vector<16x128xf32>
    %30 = arith.truncf %29 : vector<16x128xf32> to vector<16x128xbf16>
    %c0_15 = arith.constant 0 : index
    %c0_16 = arith.constant 0 : index
    %c0_17 = arith.constant 0 : index
    %31 = vector.load %arg4[%c0_15, %c0_16, %c0_17] : memref<1x16x128xbf16, #tpu.memory_space<vmem>>, vector<1x16x128xbf16>
    %32 = vector.shape_cast %31 : vector<1x16x128xbf16> to vector<16x128xbf16>
    %33 = vector.shape_cast %30 : vector<16x128xbf16> to vector<1x16x128xbf16>
    tpu.vector_store %arg4[%c0_15, %c0_16, %c0_17], %33 {strides = array<i32>} : memref<1x16x128xbf16, #tpu.memory_space<vmem>>, vector<1x16x128xbf16>,
    return
  }
  func.func @transform_0(%arg0: i32) -> (i32, i32, i32) {
    %c0_i32 = arith.constant 0 : i32
    %c0_i32_0 = arith.constant 0 : i32
    %c0_i32_1 = arith.constant 0 : i32
    return %arg0, %c0_i32, %c0_i32_0 : i32, i32, i32
  }
  func.func @transform_1(%arg0: i32) -> (i32, i32, i32) {
    %c0_i32 = arith.constant 0 : i32
    %c0_i32_0 = arith.constant 0 : i32
    %c0_i32_1 = arith.constant 0 : i32
    %c0_i32_2 = arith.constant 0 : i32
    return %c0_i32, %c0_i32_0, %c0_i32_1 : i32, i32, i32
  }
  func.func @transform_2(%arg0: i32) -> (i32, i32) {
    %c0_i32 = arith.constant 0 : i32
    %c0_i32_0 = arith.constant 0 : i32
    %c0_i32_1 = arith.constant 0 : i32
    return %c0_i32, %c0_i32_0 : i32, i32
  }
  func.func @transform_3(%arg0: i32) -> (i32, i32, i32) {
    %c0_i32 = arith.constant 0 : i32
    %c0_i32_0 = arith.constant 0 : i32
    %c0_i32_1 = arith.constant 0 : i32
    return %arg0, %c0_i32, %c0_i32_0 : i32, i32, i32
  }
}

module attributes {stable_mosaic.version = 11 : i64} {
  func.func @_conv_tap_kernel(%arg0: i32, %arg1: memref<1x24x8xbf16, #tpu.memory_space<vmem>>, %arg2: memref<3x8x128xbf16, #tpu.memory_space<vmem>>, %arg3: memref<3x128xf32, #tpu.memory_space<vmem>>, %arg4: memref<1x16x128xbf16, #tpu.memory_space<vmem>>) attributes {dimension_semantics = [#tpu.dimension_semantics<parallel>], iteration_bounds = array<i64: 2>, scalar_prefetch = 0 : i64, scratch_operands = 0 : i64, tpu.core_type = #tpu.core_type<tc>, window_params = [{transform_indices = @transform_0, window_bounds = array<i64: 1, 24, 8>}, {pipeline_mode = #tpu.pipeline_mode<synchronous>, transform_indices = @transform_1, window_bounds = array<i64: 3, 8, 128>}, {pipeline_mode = #tpu.pipeline_mode<synchronous>, transform_indices = @transform_2, window_bounds = array<i64: 3, 128>}, {transform_indices = @transform_3, window_bounds = array<i64: 1, 16, 128>}]} {
    %c0 = arith.constant 0 : index
    %c0_0 = arith.constant 0 : index
    %c0_1 = arith.constant 0 : index
    %0 = vector.load %arg1[%c0, %c0_0, %c0_1] : memref<1x24x8xbf16, #tpu.memory_space<vmem>>, vector<1x24x8xbf16>
    %1 = vector.shape_cast %0 : vector<1x24x8xbf16> to vector<24x8xbf16>
    %cst = arith.constant 0.000000e+00 : f32
    %2 = vector.broadcast %cst : f32 to vector<16x128xf32>
    %3 = vector.extract_strided_slice %1 {offsets = [0, 0], sizes = [16, 8], strides = [1, 1]} : vector<24x8xbf16> to vector<16x8xbf16>
    %c0_2 = arith.constant 0 : index
    %c0_3 = arith.constant 0 : index
    %c0_4 = arith.constant 0 : index
    %4 = vector.load %arg2[%c0_2, %c0_3, %c0_4] : memref<3x8x128xbf16, #tpu.memory_space<vmem>>, vector<1x8x128xbf16>
    %5 = vector.shape_cast %4 : vector<1x8x128xbf16> to vector<8x128xbf16>
    %cst_5 = arith.constant dense<0.000000e+00> : vector<16x128xf32>
    %6 = tpu.matmul %3, %5, %cst_5 {dimension_numbers = #tpu.dot_dimension_numbers<[1], [0], [0], [1], [0, 0, 1, 1], [], []>} : vector<16x8xbf16>, vector<8x128xbf16>, vector<16x128xf32> -> vector<16x128xf32>
    %7 = arith.addf %2, %6 : vector<16x128xf32>
    %8 = vector.extract_strided_slice %1 {offsets = [4, 0], sizes = [16, 8], strides = [1, 1]} : vector<24x8xbf16> to vector<16x8xbf16>
    %c1 = arith.constant 1 : index
    %c0_6 = arith.constant 0 : index
    %c0_7 = arith.constant 0 : index
    %9 = vector.load %arg2[%c1, %c0_6, %c0_7] : memref<3x8x128xbf16, #tpu.memory_space<vmem>>, vector<1x8x128xbf16>
    %10 = vector.shape_cast %9 : vector<1x8x128xbf16> to vector<8x128xbf16>
    %cst_8 = arith.constant dense<0.000000e+00> : vector<16x128xf32>
    %11 = tpu.matmul %8, %10, %cst_8 {dimension_numbers = #tpu.dot_dimension_numbers<[1], [0], [0], [1], [0, 0, 1, 1], [], []>} : vector<16x8xbf16>, vector<8x128xbf16>, vector<16x128xf32> -> vector<16x128xf32>
    %12 = arith.addf %7, %11 : vector<16x128xf32>
    %13 = vector.extract_strided_slice %1 {offsets = [8, 0], sizes = [16, 8], strides = [1, 1]} : vector<24x8xbf16> to vector<16x8xbf16>
    %c2 = arith.constant 2 : index
    %c0_9 = arith.constant 0 : index
    %c0_10 = arith.constant 0 : index
    %14 = vector.load %arg2[%c2, %c0_9, %c0_10] : memref<3x8x128xbf16, #tpu.memory_space<vmem>>, vector<1x8x128xbf16>
    %15 = vector.shape_cast %14 : vector<1x8x128xbf16> to vector<8x128xbf16>
    %cst_11 = arith.constant dense<0.000000e+00> : vector<16x128xf32>
    %16 = tpu.matmul %13, %15, %cst_11 {dimension_numbers = #tpu.dot_dimension_numbers<[1], [0], [0], [1], [0, 0, 1, 1], [], []>} : vector<16x8xbf16>, vector<8x128xbf16>, vector<16x128xf32> -> vector<16x128xf32>
    %17 = arith.addf %12, %16 : vector<16x128xf32>
    %c0_12 = arith.constant 0 : index
    %c0_13 = arith.constant 0 : index
    %18 = vector.load %arg3[%c0_12, %c0_13] : memref<3x128xf32, #tpu.memory_space<vmem>>, vector<3x128xf32>
    %19 = vector.extract_strided_slice %18 {offsets = [0, 0], sizes = [1, 128], strides = [1, 1]} : vector<3x128xf32> to vector<1x128xf32>
    %20 = vector.broadcast %19 : vector<1x128xf32> to vector<16x128xf32>
    %21 = arith.addf %17, %20 : vector<16x128xf32>
    %cst_14 = arith.constant 0.000000e+00 : f32
    %22 = vector.broadcast %cst_14 : f32 to vector<16x128xf32>
    %23 = arith.maximumf %21, %22 : vector<16x128xf32>
    %24 = vector.extract_strided_slice %18 {offsets = [1, 0], sizes = [1, 128], strides = [1, 1]} : vector<3x128xf32> to vector<1x128xf32>
    %25 = vector.broadcast %24 : vector<1x128xf32> to vector<16x128xf32>
    %26 = arith.mulf %23, %25 : vector<16x128xf32>
    %27 = vector.extract_strided_slice %18 {offsets = [2, 0], sizes = [1, 128], strides = [1, 1]} : vector<3x128xf32> to vector<1x128xf32>
    %28 = vector.broadcast %27 : vector<1x128xf32> to vector<16x128xf32>
    %29 = arith.addf %26, %28 : vector<16x128xf32>
    %30 = arith.truncf %29 : vector<16x128xf32> to vector<16x128xbf16>
    %c0_15 = arith.constant 0 : index
    %c0_16 = arith.constant 0 : index
    %c0_17 = arith.constant 0 : index
    %31 = vector.load %arg4[%c0_15, %c0_16, %c0_17] : memref<1x16x128xbf16, #tpu.memory_space<vmem>>, vector<1x16x128xbf16>
    %32 = vector.shape_cast %31 : vector<1x16x128xbf16> to vector<16x128xbf16>
    %33 = vector.shape_cast %30 : vector<16x128xbf16> to vector<1x16x128xbf16>
    tpu.vector_store %arg4[%c0_15, %c0_16, %c0_17], %33 {strides = array<i32>} : memref<1x16x128xbf16, #tpu.memory_space<vmem>>, vector<1x16x128xbf16>,
    return
  }
  func.func @transform_0(%arg0: i32) -> (i32, i32, i32) {
    %c0_i32 = arith.constant 0 : i32
    %c0_i32_0 = arith.constant 0 : i32
    %c0_i32_1 = arith.constant 0 : i32
    return %arg0, %c0_i32, %c0_i32_0 : i32, i32, i32
  }
  func.func @transform_1(%arg0: i32) -> (i32, i32, i32) {
    %c0_i32 = arith.constant 0 : i32
    %c0_i32_0 = arith.constant 0 : i32
    %c0_i32_1 = arith.constant 0 : i32
    %c0_i32_2 = arith.constant 0 : i32
    return %c0_i32, %c0_i32_0, %c0_i32_1 : i32, i32, i32
  }
  func.func @transform_2(%arg0: i32) -> (i32, i32) {
    %c0_i32 = arith.constant 0 : i32
    %c0_i32_0 = arith.constant 0 : i32
    %c0_i32_1 = arith.constant 0 : i32
    return %c0_i32, %c0_i32_0 : i32, i32
  }
  func.func @transform_3(%arg0: i32) -> (i32, i32, i32) {
    %c0_i32 = arith.constant 0 : i32
    %c0_i32_0 = arith.constant 0 : i32
    %c0_i32_1 = arith.constant 0 : i32
    return %arg0, %c0_i32, %c0_i32_0 : i32, i32, i32
  }
}

module attributes {stable_mosaic.version = 11 : i64} {
  func.func @_mm_kernel(%arg0: i32, %arg1: memref<32x192xbf16, #tpu.memory_space<vmem>>, %arg2: memref<192x1536xbf16, #tpu.memory_space<vmem>>, %arg3: memref<3x1536xf32, #tpu.memory_space<vmem>>, %arg4: memref<32x1536xbf16, #tpu.memory_space<vmem>>) attributes {dimension_semantics = [#tpu.dimension_semantics<parallel>], iteration_bounds = array<i64: 1>, scalar_prefetch = 0 : i64, scratch_operands = 0 : i64, tpu.core_type = #tpu.core_type<tc>, window_params = [{transform_indices = @transform_0, window_bounds = array<i64: 32, 192>}, {pipeline_mode = #tpu.pipeline_mode<synchronous>, transform_indices = @transform_1, window_bounds = array<i64: 192, 1536>}, {pipeline_mode = #tpu.pipeline_mode<synchronous>, transform_indices = @transform_2, window_bounds = array<i64: 3, 1536>}, {transform_indices = @transform_3, window_bounds = array<i64: 32, 1536>}]} {
    %c0 = arith.constant 0 : index
    %c0_0 = arith.constant 0 : index
    %0 = vector.load %arg1[%c0, %c0_0] : memref<32x192xbf16, #tpu.memory_space<vmem>>, vector<32x192xbf16>
    %c0_1 = arith.constant 0 : index
    %c0_2 = arith.constant 0 : index
    %1 = vector.load %arg2[%c0_1, %c0_2] : memref<192x1536xbf16, #tpu.memory_space<vmem>>, vector<192x1536xbf16>
    %cst = arith.constant dense<0.000000e+00> : vector<32x1536xf32>
    %2 = tpu.matmul %0, %1, %cst {dimension_numbers = #tpu.dot_dimension_numbers<[1], [0], [0], [1], [0, 0, 1, 1], [], []>} : vector<32x192xbf16>, vector<192x1536xbf16>, vector<32x1536xf32> -> vector<32x1536xf32>
    %c0_3 = arith.constant 0 : index
    %c0_4 = arith.constant 0 : index
    %3 = vector.load %arg3[%c0_3, %c0_4] : memref<3x1536xf32, #tpu.memory_space<vmem>>, vector<3x1536xf32>
    %4 = vector.extract_strided_slice %3 {offsets = [0, 0], sizes = [1, 1536], strides = [1, 1]} : vector<3x1536xf32> to vector<1x1536xf32>
    %5 = vector.broadcast %4 : vector<1x1536xf32> to vector<32x1536xf32>
    %6 = arith.addf %2, %5 : vector<32x1536xf32>
    %7 = vector.extract_strided_slice %3 {offsets = [1, 0], sizes = [1, 1536], strides = [1, 1]} : vector<3x1536xf32> to vector<1x1536xf32>
    %8 = vector.broadcast %7 : vector<1x1536xf32> to vector<32x1536xf32>
    %9 = arith.mulf %6, %8 : vector<32x1536xf32>
    %10 = vector.extract_strided_slice %3 {offsets = [2, 0], sizes = [1, 1536], strides = [1, 1]} : vector<3x1536xf32> to vector<1x1536xf32>
    %11 = vector.broadcast %10 : vector<1x1536xf32> to vector<32x1536xf32>
    %12 = arith.addf %9, %11 : vector<32x1536xf32>
    %cst_5 = arith.constant 0.000000e+00 : f32
    %13 = vector.broadcast %cst_5 : f32 to vector<32x1536xf32>
    %14 = arith.maximumf %12, %13 : vector<32x1536xf32>
    %15 = arith.truncf %14 : vector<32x1536xf32> to vector<32x1536xbf16>
    %c0_6 = arith.constant 0 : index
    %c0_7 = arith.constant 0 : index
    %16 = vector.load %arg4[%c0_6, %c0_7] : memref<32x1536xbf16, #tpu.memory_space<vmem>>, vector<32x1536xbf16>
    tpu.vector_store %arg4[%c0_6, %c0_7], %15 {strides = array<i32>} : memref<32x1536xbf16, #tpu.memory_space<vmem>>, vector<32x1536xbf16>,
    return
  }
  func.func @transform_0(%arg0: i32) -> (i32, i32) {
    %c0_i32 = arith.constant 0 : i32
    %c0_i32_0 = arith.constant 0 : i32
    return %arg0, %c0_i32 : i32, i32
  }
  func.func @transform_1(%arg0: i32) -> (i32, i32) {
    %c0_i32 = arith.constant 0 : i32
    %c0_i32_0 = arith.constant 0 : i32
    %c0_i32_1 = arith.constant 0 : i32
    return %c0_i32, %c0_i32_0 : i32, i32
  }
  func.func @transform_2(%arg0: i32) -> (i32, i32) {
    %c0_i32 = arith.constant 0 : i32
    %c0_i32_0 = arith.constant 0 : i32
    %c0_i32_1 = arith.constant 0 : i32
    return %c0_i32, %c0_i32_0 : i32, i32
  }
  func.func @transform_3(%arg0: i32) -> (i32, i32) {
    %c0_i32 = arith.constant 0 : i32
    %c0_i32_0 = arith.constant 0 : i32
    return %arg0, %c0_i32 : i32, i32
  }
}

module attributes {stable_mosaic.version = 11 : i64} {
  func.func @_mm_kernel(%arg0: i32, %arg1: memref<32x1536xbf16, #tpu.memory_space<vmem>>, %arg2: memref<1536x512xbf16, #tpu.memory_space<vmem>>, %arg3: memref<3x512xf32, #tpu.memory_space<vmem>>, %arg4: memref<32x512xbf16, #tpu.memory_space<vmem>>) attributes {dimension_semantics = [#tpu.dimension_semantics<parallel>], iteration_bounds = array<i64: 1>, scalar_prefetch = 0 : i64, scratch_operands = 0 : i64, tpu.core_type = #tpu.core_type<tc>, window_params = [{transform_indices = @transform_0, window_bounds = array<i64: 32, 1536>}, {pipeline_mode = #tpu.pipeline_mode<synchronous>, transform_indices = @transform_1, window_bounds = array<i64: 1536, 512>}, {pipeline_mode = #tpu.pipeline_mode<synchronous>, transform_indices = @transform_2, window_bounds = array<i64: 3, 512>}, {transform_indices = @transform_3, window_bounds = array<i64: 32, 512>}]} {
    %c0 = arith.constant 0 : index
    %c0_0 = arith.constant 0 : index
    %0 = vector.load %arg1[%c0, %c0_0] : memref<32x1536xbf16, #tpu.memory_space<vmem>>, vector<32x1536xbf16>
    %c0_1 = arith.constant 0 : index
    %c0_2 = arith.constant 0 : index
    %1 = vector.load %arg2[%c0_1, %c0_2] : memref<1536x512xbf16, #tpu.memory_space<vmem>>, vector<1536x512xbf16>
    %cst = arith.constant dense<0.000000e+00> : vector<32x512xf32>
    %2 = tpu.matmul %0, %1, %cst {dimension_numbers = #tpu.dot_dimension_numbers<[1], [0], [0], [1], [0, 0, 1, 1], [], []>} : vector<32x1536xbf16>, vector<1536x512xbf16>, vector<32x512xf32> -> vector<32x512xf32>
    %c0_3 = arith.constant 0 : index
    %c0_4 = arith.constant 0 : index
    %3 = vector.load %arg3[%c0_3, %c0_4] : memref<3x512xf32, #tpu.memory_space<vmem>>, vector<3x512xf32>
    %4 = vector.extract_strided_slice %3 {offsets = [0, 0], sizes = [1, 512], strides = [1, 1]} : vector<3x512xf32> to vector<1x512xf32>
    %5 = vector.broadcast %4 : vector<1x512xf32> to vector<32x512xf32>
    %6 = arith.addf %2, %5 : vector<32x512xf32>
    %7 = vector.extract_strided_slice %3 {offsets = [1, 0], sizes = [1, 512], strides = [1, 1]} : vector<3x512xf32> to vector<1x512xf32>
    %8 = vector.broadcast %7 : vector<1x512xf32> to vector<32x512xf32>
    %9 = arith.mulf %6, %8 : vector<32x512xf32>
    %10 = vector.extract_strided_slice %3 {offsets = [2, 0], sizes = [1, 512], strides = [1, 1]} : vector<3x512xf32> to vector<1x512xf32>
    %11 = vector.broadcast %10 : vector<1x512xf32> to vector<32x512xf32>
    %12 = arith.addf %9, %11 : vector<32x512xf32>
    %13 = arith.truncf %12 : vector<32x512xf32> to vector<32x512xbf16>
    %c0_5 = arith.constant 0 : index
    %c0_6 = arith.constant 0 : index
    %14 = vector.load %arg4[%c0_5, %c0_6] : memref<32x512xbf16, #tpu.memory_space<vmem>>, vector<32x512xbf16>
    tpu.vector_store %arg4[%c0_5, %c0_6], %13 {strides = array<i32>} : memref<32x512xbf16, #tpu.memory_space<vmem>>, vector<32x512xbf16>,
    return
  }
  func.func @transform_0(%arg0: i32) -> (i32, i32) {
    %c0_i32 = arith.constant 0 : i32
    %c0_i32_0 = arith.constant 0 : i32
    return %arg0, %c0_i32 : i32, i32
  }
  func.func @transform_1(%arg0: i32) -> (i32, i32) {
    %c0_i32 = arith.constant 0 : i32
    %c0_i32_0 = arith.constant 0 : i32
    %c0_i32_1 = arith.constant 0 : i32
    return %c0_i32, %c0_i32_0 : i32, i32
  }
  func.func @transform_2(%arg0: i32) -> (i32, i32) {
    %c0_i32 = arith.constant 0 : i32
    %c0_i32_0 = arith.constant 0 : i32
    %c0_i32_1 = arith.constant 0 : i32
    return %c0_i32, %c0_i32_0 : i32, i32
  }
  func.func @transform_3(%arg0: i32) -> (i32, i32) {
    %c0_i32 = arith.constant 0 : i32
    %c0_i32_0 = arith.constant 0 : i32
    return %arg0, %c0_i32 : i32, i32
  }
}

module attributes {stable_mosaic.version = 11 : i64} {
  func.func @_mm_kernel(%arg0: i32, %arg1: memref<32x512xbf16, #tpu.memory_space<vmem>>, %arg2: memref<512x1536xbf16, #tpu.memory_space<vmem>>, %arg3: memref<3x1536xf32, #tpu.memory_space<vmem>>, %arg4: memref<32x1536xbf16, #tpu.memory_space<vmem>>) attributes {dimension_semantics = [#tpu.dimension_semantics<parallel>], iteration_bounds = array<i64: 1>, scalar_prefetch = 0 : i64, scratch_operands = 0 : i64, tpu.core_type = #tpu.core_type<tc>, window_params = [{transform_indices = @transform_0, window_bounds = array<i64: 32, 512>}, {pipeline_mode = #tpu.pipeline_mode<synchronous>, transform_indices = @transform_1, window_bounds = array<i64: 512, 1536>}, {pipeline_mode = #tpu.pipeline_mode<synchronous>, transform_indices = @transform_2, window_bounds = array<i64: 3, 1536>}, {transform_indices = @transform_3, window_bounds = array<i64: 32, 1536>}]} {
    %c0 = arith.constant 0 : index
    %c0_0 = arith.constant 0 : index
    %0 = vector.load %arg1[%c0, %c0_0] : memref<32x512xbf16, #tpu.memory_space<vmem>>, vector<32x512xbf16>
    %c0_1 = arith.constant 0 : index
    %c0_2 = arith.constant 0 : index
    %1 = vector.load %arg2[%c0_1, %c0_2] : memref<512x1536xbf16, #tpu.memory_space<vmem>>, vector<512x1536xbf16>
    %cst = arith.constant dense<0.000000e+00> : vector<32x1536xf32>
    %2 = tpu.matmul %0, %1, %cst {dimension_numbers = #tpu.dot_dimension_numbers<[1], [0], [0], [1], [0, 0, 1, 1], [], []>} : vector<32x512xbf16>, vector<512x1536xbf16>, vector<32x1536xf32> -> vector<32x1536xf32>
    %c0_3 = arith.constant 0 : index
    %c0_4 = arith.constant 0 : index
    %3 = vector.load %arg3[%c0_3, %c0_4] : memref<3x1536xf32, #tpu.memory_space<vmem>>, vector<3x1536xf32>
    %4 = vector.extract_strided_slice %3 {offsets = [0, 0], sizes = [1, 1536], strides = [1, 1]} : vector<3x1536xf32> to vector<1x1536xf32>
    %5 = vector.broadcast %4 : vector<1x1536xf32> to vector<32x1536xf32>
    %6 = arith.addf %2, %5 : vector<32x1536xf32>
    %7 = vector.extract_strided_slice %3 {offsets = [1, 0], sizes = [1, 1536], strides = [1, 1]} : vector<3x1536xf32> to vector<1x1536xf32>
    %8 = vector.broadcast %7 : vector<1x1536xf32> to vector<32x1536xf32>
    %9 = arith.mulf %6, %8 : vector<32x1536xf32>
    %10 = vector.extract_strided_slice %3 {offsets = [2, 0], sizes = [1, 1536], strides = [1, 1]} : vector<3x1536xf32> to vector<1x1536xf32>
    %11 = vector.broadcast %10 : vector<1x1536xf32> to vector<32x1536xf32>
    %12 = arith.addf %9, %11 : vector<32x1536xf32>
    %13 = arith.truncf %12 : vector<32x1536xf32> to vector<32x1536xbf16>
    %c0_5 = arith.constant 0 : index
    %c0_6 = arith.constant 0 : index
    %14 = vector.load %arg4[%c0_5, %c0_6] : memref<32x1536xbf16, #tpu.memory_space<vmem>>, vector<32x1536xbf16>
    tpu.vector_store %arg4[%c0_5, %c0_6], %13 {strides = array<i32>} : memref<32x1536xbf16, #tpu.memory_space<vmem>>, vector<32x1536xbf16>,
    return
  }
  func.func @transform_0(%arg0: i32) -> (i32, i32) {
    %c0_i32 = arith.constant 0 : i32
    %c0_i32_0 = arith.constant 0 : i32
    return %arg0, %c0_i32 : i32, i32
  }
  func.func @transform_1(%arg0: i32) -> (i32, i32) {
    %c0_i32 = arith.constant 0 : i32
    %c0_i32_0 = arith.constant 0 : i32
    %c0_i32_1 = arith.constant 0 : i32
    return %c0_i32, %c0_i32_0 : i32, i32
  }
  func.func @transform_2(%arg0: i32) -> (i32, i32) {
    %c0_i32 = arith.constant 0 : i32
    %c0_i32_0 = arith.constant 0 : i32
    %c0_i32_1 = arith.constant 0 : i32
    return %c0_i32, %c0_i32_0 : i32, i32
  }
  func.func @transform_3(%arg0: i32) -> (i32, i32) {
    %c0_i32 = arith.constant 0 : i32
    %c0_i32_0 = arith.constant 0 : i32
    return %arg0, %c0_i32 : i32, i32
  }
}

module attributes {stable_mosaic.version = 11 : i64} {
  func.func @_attn_pool_kernel(%arg0: i32, %arg1: i32, %arg2: i32, %arg3: memref<1x16x512xbf16, #tpu.memory_space<vmem>>, %arg4: memref<1x16x512xbf16, #tpu.memory_space<vmem>>, %arg5: memref<1x1x512xf32, #tpu.memory_space<vmem>>, %arg6: memref<1x1x512xf32, #tpu.memory_space<vmem>>, %arg7: memref<1x1x512xf32, #tpu.memory_space<vmem>>, %arg8: memref<1x1x512xf32, #tpu.memory_space<vmem>>, %arg9: memref<1x1x512xf32, #tpu.memory_space<vmem>>, %arg10: memref<1x1x512xf32, #tpu.memory_space<vmem>>) attributes {dimension_semantics = [#tpu.dimension_semantics<parallel>, #tpu.dimension_semantics<parallel>, #tpu.dimension_semantics<arbitrary>], iteration_bounds = array<i64: 2, 3, 1>, scalar_prefetch = 0 : i64, scratch_operands = 4 : i64, tpu.core_type = #tpu.core_type<tc>, window_params = [{transform_indices = @transform_0, window_bounds = array<i64: 1, 16, 512>}, {transform_indices = @transform_1, window_bounds = array<i64: 1, 16, 512>}, {transform_indices = @transform_2, window_bounds = array<i64: 1, 1, 512>}, {transform_indices = @transform_3, window_bounds = array<i64: 1, 1, 512>}]} {
    %c0_i32 = arith.constant 0 : i32
    %0 = arith.cmpi eq, %arg2, %c0_i32 : i32
    %1 = arith.extui %0 : i1 to i32
    %c0_i32_0 = arith.constant 0 : i32
    %2 = arith.cmpi ne, %1, %c0_i32_0 : i32
    scf.if %2 {
      %cst_35 = arith.constant 0xFF800000 : f32
      %41 = vector.broadcast %cst_35 : f32 to vector<1x1x512xf32>
      %c0_36 = arith.constant 0 : index
      %c0_37 = arith.constant 0 : index
      %c0_38 = arith.constant 0 : index
      %42 = vector.load %arg7[%c0_36, %c0_37, %c0_38] : memref<1x1x512xf32, #tpu.memory_space<vmem>>, vector<1x1x512xf32>
      tpu.vector_store %arg7[%c0_36, %c0_37, %c0_38], %41 {strides = array<i32>} : memref<1x1x512xf32, #tpu.memory_space<vmem>>, vector<1x1x512xf32>,
      %cst_39 = arith.constant 0.000000e+00 : f32
      %43 = vector.broadcast %cst_39 : f32 to vector<1x1x512xf32>
      %c0_40 = arith.constant 0 : index
      %c0_41 = arith.constant 0 : index
      %c0_42 = arith.constant 0 : index
      %44 = vector.load %arg8[%c0_40, %c0_41, %c0_42] : memref<1x1x512xf32, #tpu.memory_space<vmem>>, vector<1x1x512xf32>
      tpu.vector_store %arg8[%c0_40, %c0_41, %c0_42], %43 {strides = array<i32>} : memref<1x1x512xf32, #tpu.memory_space<vmem>>, vector<1x1x512xf32>,
      %cst_43 = arith.constant 0.000000e+00 : f32
      %45 = vector.broadcast %cst_43 : f32 to vector<1x1x512xf32>
      %c0_44 = arith.constant 0 : index
      %c0_45 = arith.constant 0 : index
      %c0_46 = arith.constant 0 : index
      %46 = vector.load %arg9[%c0_44, %c0_45, %c0_46] : memref<1x1x512xf32, #tpu.memory_space<vmem>>, vector<1x1x512xf32>
      tpu.vector_store %arg9[%c0_44, %c0_45, %c0_46], %45 {strides = array<i32>} : memref<1x1x512xf32, #tpu.memory_space<vmem>>, vector<1x1x512xf32>,
      %cst_47 = arith.constant 0.000000e+00 : f32
      %47 = vector.broadcast %cst_47 : f32 to vector<1x1x512xf32>
      %c0_48 = arith.constant 0 : index
      %c0_49 = arith.constant 0 : index
      %c0_50 = arith.constant 0 : index
      %48 = vector.load %arg10[%c0_48, %c0_49, %c0_50] : memref<1x1x512xf32, #tpu.memory_space<vmem>>, vector<1x1x512xf32>
      tpu.vector_store %arg10[%c0_48, %c0_49, %c0_50], %47 {strides = array<i32>} : memref<1x1x512xf32, #tpu.memory_space<vmem>>, vector<1x1x512xf32>,
    } else {
    }
    %c0 = arith.constant 0 : index
    %c0_1 = arith.constant 0 : index
    %c0_2 = arith.constant 0 : index
    %3 = vector.load %arg3[%c0, %c0_1, %c0_2] : memref<1x16x512xbf16, #tpu.memory_space<vmem>>, vector<1x16x512xbf16>
    %4 = arith.extf %3 : vector<1x16x512xbf16> to vector<1x16x512xf32>
    %c0_3 = arith.constant 0 : index
    %c0_4 = arith.constant 0 : index
    %c0_5 = arith.constant 0 : index
    %5 = vector.load %arg4[%c0_3, %c0_4, %c0_5] : memref<1x16x512xbf16, #tpu.memory_space<vmem>>, vector<1x16x512xbf16>
    %6 = arith.extf %5 : vector<1x16x512xbf16> to vector<1x16x512xf32>
    %c0_6 = arith.constant 0 : index
    %c0_7 = arith.constant 0 : index
    %c0_8 = arith.constant 0 : index
    %7 = vector.load %arg7[%c0_6, %c0_7, %c0_8] : memref<1x1x512xf32, #tpu.memory_space<vmem>>, vector<1x1x512xf32>
    %cst = arith.constant dense<0xFF800000> : vector<1x512xf32>
    %8 = vector.multi_reduction <maximumf>, %4, %cst [1] : vector<1x16x512xf32> to vector<1x512xf32>
    %9 = vector.shape_cast %8 : vector<1x512xf32> to vector<1x1x512xf32>
    %10 = arith.maximumf %7, %9 : vector<1x1x512xf32>
    %11 = arith.subf %7, %10 : vector<1x1x512xf32>
    %12 = math.exp %11 : vector<1x1x512xf32>
    %13 = vector.broadcast %10 : vector<1x1x512xf32> to vector<1x16x512xf32>
    %14 = arith.subf %4, %13 : vector<1x16x512xf32>
    %15 = math.exp %14 : vector<1x16x512xf32>
    %c0_9 = arith.constant 0 : index
    %c0_10 = arith.constant 0 : index
    %c0_11 = arith.constant 0 : index
    %16 = vector.load %arg8[%c0_9, %c0_10, %c0_11] : memref<1x1x512xf32, #tpu.memory_space<vmem>>, vector<1x1x512xf32>
    %17 = arith.mulf %12, %16 : vector<1x1x512xf32>
    %cst_12 = arith.constant dense<0.000000e+00> : vector<1x512xf32>
    %18 = vector.multi_reduction <add>, %15, %cst_12 [1] : vector<1x16x512xf32> to vector<1x512xf32>
    %19 = vector.shape_cast %18 : vector<1x512xf32> to vector<1x1x512xf32>
    %20 = arith.addf %17, %19 : vector<1x1x512xf32>
    %c0_13 = arith.constant 0 : index
    %c0_14 = arith.constant 0 : index
    %c0_15 = arith.constant 0 : index
    %21 = vector.load %arg8[%c0_13, %c0_14, %c0_15] : memref<1x1x512xf32, #tpu.memory_space<vmem>>, vector<1x1x512xf32>
    tpu.vector_store %arg8[%c0_13, %c0_14, %c0_15], %20 {strides = array<i32>} : memref<1x1x512xf32, #tpu.memory_space<vmem>>, vector<1x1x512xf32>,
    %c0_16 = arith.constant 0 : index
    %c0_17 = arith.constant 0 : index
    %c0_18 = arith.constant 0 : index
    %22 = vector.load %arg9[%c0_16, %c0_17, %c0_18] : memref<1x1x512xf32, #tpu.memory_space<vmem>>, vector<1x1x512xf32>
    %23 = arith.mulf %12, %22 : vector<1x1x512xf32>
    %24 = arith.mulf %6, %15 : vector<1x16x512xf32>
    %cst_19 = arith.constant dense<0.000000e+00> : vector<1x512xf32>
    %25 = vector.multi_reduction <add>, %24, %cst_19 [1] : vector<1x16x512xf32> to vector<1x512xf32>
    %26 = vector.shape_cast %25 : vector<1x512xf32> to vector<1x1x512xf32>
    %27 = arith.addf %23, %26 : vector<1x1x512xf32>
    %c0_20 = arith.constant 0 : index
    %c0_21 = arith.constant 0 : index
    %c0_22 = arith.constant 0 : index
    %28 = vector.load %arg9[%c0_20, %c0_21, %c0_22] : memref<1x1x512xf32, #tpu.memory_space<vmem>>, vector<1x1x512xf32>
    tpu.vector_store %arg9[%c0_20, %c0_21, %c0_22], %27 {strides = array<i32>} : memref<1x1x512xf32, #tpu.memory_space<vmem>>, vector<1x1x512xf32>,
    %c0_23 = arith.constant 0 : index
    %c0_24 = arith.constant 0 : index
    %c0_25 = arith.constant 0 : index
    %29 = vector.load %arg10[%c0_23, %c0_24, %c0_25] : memref<1x1x512xf32, #tpu.memory_space<vmem>>, vector<1x1x512xf32>
    %30 = arith.mulf %12, %29 : vector<1x1x512xf32>
    %31 = arith.mulf %6, %6 : vector<1x16x512xf32>
    %32 = arith.mulf %31, %15 : vector<1x16x512xf32>
    %cst_26 = arith.constant dense<0.000000e+00> : vector<1x512xf32>
    %33 = vector.multi_reduction <add>, %32, %cst_26 [1] : vector<1x16x512xf32> to vector<1x512xf32>
    %34 = vector.shape_cast %33 : vector<1x512xf32> to vector<1x1x512xf32>
    %35 = arith.addf %30, %34 : vector<1x1x512xf32>
    %c0_27 = arith.constant 0 : index
    %c0_28 = arith.constant 0 : index
    %c0_29 = arith.constant 0 : index
    %36 = vector.load %arg10[%c0_27, %c0_28, %c0_29] : memref<1x1x512xf32, #tpu.memory_space<vmem>>, vector<1x1x512xf32>
    tpu.vector_store %arg10[%c0_27, %c0_28, %c0_29], %35 {strides = array<i32>} : memref<1x1x512xf32, #tpu.memory_space<vmem>>, vector<1x1x512xf32>,
    %c0_30 = arith.constant 0 : index
    %c0_31 = arith.constant 0 : index
    %c0_32 = arith.constant 0 : index
    %37 = vector.load %arg7[%c0_30, %c0_31, %c0_32] : memref<1x1x512xf32, #tpu.memory_space<vmem>>, vector<1x1x512xf32>
    tpu.vector_store %arg7[%c0_30, %c0_31, %c0_32], %10 {strides = array<i32>} : memref<1x1x512xf32, #tpu.memory_space<vmem>>, vector<1x1x512xf32>,
    %c0_i32_33 = arith.constant 0 : i32
    %38 = arith.cmpi eq, %arg2, %c0_i32_33 : i32
    %39 = arith.extui %38 : i1 to i32
    %c0_i32_34 = arith.constant 0 : i32
    %40 = arith.cmpi ne, %39, %c0_i32_34 : i32
    scf.if %40 {
      %c0_35 = arith.constant 0 : index
      %c0_36 = arith.constant 0 : index
      %c0_37 = arith.constant 0 : index
      %41 = vector.load %arg8[%c0_35, %c0_36, %c0_37] : memref<1x1x512xf32, #tpu.memory_space<vmem>>, vector<1x1x512xf32>
      %42 = tpu.reciprocal %41 {approx = true} : vector<1x1x512xf32> -> vector<1x1x512xf32>
      %c0_38 = arith.constant 0 : index
      %c0_39 = arith.constant 0 : index
      %c0_40 = arith.constant 0 : index
      %43 = vector.load %arg9[%c0_38, %c0_39, %c0_40] : memref<1x1x512xf32, #tpu.memory_space<vmem>>, vector<1x1x512xf32>
      %44 = arith.mulf %43, %42 : vector<1x1x512xf32>
      %c0_41 = arith.constant 0 : index
      %c0_42 = arith.constant 0 : index
      %c0_43 = arith.constant 0 : index
      %45 = vector.load %arg10[%c0_41, %c0_42, %c0_43] : memref<1x1x512xf32, #tpu.memory_space<vmem>>, vector<1x1x512xf32>
      %46 = arith.mulf %45, %42 : vector<1x1x512xf32>
      %c0_44 = arith.constant 0 : index
      %c0_45 = arith.constant 0 : index
      %c0_46 = arith.constant 0 : index
      %47 = vector.load %arg5[%c0_44, %c0_45, %c0_46] : memref<1x1x512xf32, #tpu.memory_space<vmem>>, vector<1x1x512xf32>
      tpu.vector_store %arg5[%c0_44, %c0_45, %c0_46], %44 {strides = array<i32>} : memref<1x1x512xf32, #tpu.memory_space<vmem>>, vector<1x1x512xf32>,
      %48 = arith.mulf %44, %44 : vector<1x1x512xf32>
      %49 = arith.subf %46, %48 : vector<1x1x512xf32>
      %cst_47 = arith.constant 9.99999974E-5 : f32
      %50 = vector.broadcast %cst_47 : f32 to vector<1x1x512xf32>
      %51 = arith.maximumf %49, %50 : vector<1x1x512xf32>
      %52 = math.sqrt %51 : vector<1x1x512xf32>
      %c0_48 = arith.constant 0 : index
      %c0_49 = arith.constant 0 : index
      %c0_50 = arith.constant 0 : index
      %53 = vector.load %arg6[%c0_48, %c0_49, %c0_50] : memref<1x1x512xf32, #tpu.memory_space<vmem>>, vector<1x1x512xf32>
      tpu.vector_store %arg6[%c0_48, %c0_49, %c0_50], %52 {strides = array<i32>} : memref<1x1x512xf32, #tpu.memory_space<vmem>>, vector<1x1x512xf32>,
    } else {
    }
    return
  }
  func.func @transform_0(%arg0: i32, %arg1: i32, %arg2: i32) -> (i32, i32, i32) {
    %c0_i32 = arith.constant 0 : i32
    return %arg0, %arg2, %arg1 : i32, i32, i32
  }
  func.func @transform_1(%arg0: i32, %arg1: i32, %arg2: i32) -> (i32, i32, i32) {
    %c0_i32 = arith.constant 0 : i32
    return %arg0, %arg2, %arg1 : i32, i32, i32
  }
  func.func @transform_2(%arg0: i32, %arg1: i32, %arg2: i32) -> (i32, i32, i32) {
    %c0_i32 = arith.constant 0 : i32
    %c0_i32_0 = arith.constant 0 : i32
    return %arg0, %c0_i32, %arg1 : i32, i32, i32
  }
  func.func @transform_3(%arg0: i32, %arg1: i32, %arg2: i32) -> (i32, i32, i32) {
    %c0_i32 = arith.constant 0 : i32
    %c0_i32_0 = arith.constant 0 : i32
    return %arg0, %c0_i32, %arg1 : i32, i32, i32
  }
}

</mosaic_0001>

<bundles_post_ra>
// kernel: _lambda_.33
= control target key start
LH: loop header
LB: loop body
LE: loop exit
PB: predicated region body
PF: predicated region fallthrough
CT: control target
= control target key end

     0   :  { %8 = vsyncpa [#allocation3], 0  ;;  %s357_s0 = inlined_call_operand.vmem [shape: bf16[32,64], index: 0, kind: input, shape index: {}]   ;;  %s358_s1 = inlined_call_operand.hbm [shape: bf16[64,128], index: 1, kind: input, shape index: {}]   ;;  %s359_s2 = inlined_call_operand.hbm [shape: f32[3,128], index: 2, kind: input, shape index: {}]   ;;  %s360_s3 = inlined_call_operand.vmem [shape: bf16[32,128], index: 3, kind: output, shape index: {}]  }
   0x1   :  { %9 = vsyncpa [#allocation5], 0  ;;  %s297_s12 = smov [#allocation2]   ;;  %s249_s16 = scalar_lea.hbm %s358_s1, 512 }
   0x2   :  { %s17_s13 = sshll.u32 %s297_s12, 4  ;;  %p250_p0 = scmp.ne.s32.totalorder %s358_s1, %s249_s16  ;;  %s18_s13 = int_to_ptr.vmem [resolvable:$true] %s17_s13 }
   0x3   :  { %p253_p1 = scmp.lt.u32.totalorder %s249_s16, %s358_s1 }
   0x5   :  { %p255_p2 = pnand %p253_p1, %p250_p0 }
   0x7   :  { %258 = shalt.err (!%p255_p2)
}
   0x8   :  { %s259_s21 = scalar_lea.vmem %s18_s13, 512  ;;  %p264_p4 = scmp.lt.s32.totalorder %s18_s13, %s18_s13 }
   0x9   :  { %p260_p3 = scmp.ne.s32.totalorder %s18_s13, %s259_s21  ;;  %p265_p5 = scmp.lt.s32.totalorder %s259_s21, %s259_s21 }
   0xb   :  { %p266_p6 = por %p265_p5, %p264_p4 }
   0xd   :  { %p267_p7 = pnand %p266_p6, %p260_p3 }
   0xf   :  { %270 = shalt.err (!%p267_p7)
}
  0x10   :  { %s298_s22 = smov 64   ;;  %s299_s23 = smov 4  }
  0x11   :  { %23 = dma.hbm_to_vmem [thread:$0]  %s358_s1, 512, %s18_s13, [#allocation3], %s298_s22, %s298_s22, %s299_s23  }
  0x12   :  { %s300_s26 = smov [#allocation4]   ;;  %s271_s30 = scalar_lea.hbm %s359_s2, 64 }
  0x13   :  { %s30_s27 = sshll.u32 %s300_s26, 4  ;;  %p272_p8 = scmp.ne.s32.totalorder %s359_s2, %s271_s30  ;;  %s31_s27 = int_to_ptr.vmem [resolvable:$true] %s30_s27 }
  0x14   :  { %p275_p9 = scmp.lt.u32.totalorder %s271_s30, %s359_s2 }
  0x16   :  { %p277_p10 = pnand %p275_p9, %p272_p8 }
  0x18   :  { %280 = shalt.err (!%p277_p10)
}
  0x19   :  { %s281_s8 = scalar_lea.vmem %s31_s27, 64  ;;  %p286_p12 = scmp.lt.s32.totalorder %s31_s27, %s31_s27 }
  0x1a   :  { %p282_p11 = scmp.ne.s32.totalorder %s31_s27, %s281_s8  ;;  %p287_p13 = scmp.lt.s32.totalorder %s281_s8, %s281_s8 }
  0x1c   :  { %p288_p0 = por %p287_p13, %p286_p12 }
  0x1e   :  { %p289_p1 = pnand %p288_p0, %p282_p11 }
  0x20   :  { %292 = shalt.err (!%p289_p1)
}
  0x21   :  { %33 = dma.hbm_to_vmem [thread:$0]  %s359_s2, 64, %s31_s27, [#allocation5]  }
  0x22   :  { %293 = dma.done.wait [#allocation3], 512  }
  0x23   :  { %294 = vsyncadd [#allocation3], 4294966784 }
  0x24   :  { %295 = dma.done.wait [#allocation5], 64  }
  0x25   :  { %296 = vsyncadd [#allocation5], 4294967232  ;;  %v243_v0 = vld [vmem:[#allocation2] sm:$0xff]   ;;  %v244_v1 = vld [vmem:[#allocation2 + $0x8] sm:$0xff]   ;;  %vm92_vm0 = vcmask 523264   ;;  %v54_v6 = vlaneseq }
  0x26   :  { %227 = vmatprep.subr.bf16.mxu0 %v243_v0  ;;  %v245_v2 = vld [vmem:[#allocation2 + $0x10] sm:$0xff]   ;;  %v247_v3 = vld [vmem:[%s357_s0] sm:$0xff]   ;;  %v246_v4 = vld [vmem:[#allocation2 + $0x18] sm:$0xff]  }
  0x27   :  { %228 = vmatpush3.bf16.msra.mxu0 %v243_v0  ;;  %235 = vmatprep.mubr.msk.bf16.mxu0 %vm92_vm0, %v247_v3  ;;  %v248_v5 = vld [vmem:[%s357_s0 + $0x8] sm:$0xff]   ;;  %v55_v7 = vshrl.u32 %v54_v6, 7  ;;  %v53_v9 = vld [vmem:[#allocation4] sm:$0x7] }
  0x28   :  { %229 = vmatprep.subr.bf16.mxu0 %v244_v1 }
  0x29   :  { %v56_v8 = vsub.s32 0, %v55_v7  ;;  %v154_v11 = vsub.s32 1, %v55_v7  ;;  %v162_v15 = vsub.s32 2, %v55_v7 }
  0x2b   :  { %230 = vmatpush3.bf16.msra.mxu0 %v244_v1  ;;  %v57_v10 = vrot.slane %v53_v9, %v56_v8  ;;  %v155_v14 = vrot.slane %v53_v9, %v154_v11  ;;  %v163_v25 = vrot.slane %v53_v9, %v162_v15 }
  0x2c   :  { %231 = vmatprep.subr.bf16.mxu0 %v245_v2 }
  0x2f   :  { %232 = vmatpush3.bf16.msra.mxu0 %v245_v2 }
  0x30   :  { %233 = vmatprep.subr.bf16.mxu0 %v246_v4 }
  0x33   :  { %234 = vmatpush3.bf16.msra.mxu0 %v246_v4 }
  0x36   :  { %236 = vmatmul.mubr.msk.bf16.vlgmr.msra.gmra.mrb[0].mxu0 %vm92_vm0, %v248_v5 }
 0x109   :  { %v237_v12 = vpop.f32.mrb[0].mxu0 }
 0x10a   :  { %v142_v13 = vadd.f32 %v237_v12, %v57_v10  ;;  %v133_v16 = vpop.f32.mrb[1].mxu0 }
 0x10b   :  { %v134_v17 = vadd.f32 %v133_v16, %v57_v10  ;;  %v238_v18 = vpop.f32.mrb[2].mxu0 }
 0x10c   :  { %v150_v19 = vmax.f32 %v142_v13, 0.0  ;;  %v145_v20 = vadd.f32 %v238_v18, %v57_v10  ;;  %v136_v21 = vpop.f32.mrb[3].mxu0 }
 0x10d   :  { %v148_v22 = vmax.f32 %v134_v17, 0.0  ;;  %v137_v23 = vadd.f32 %v136_v21, %v57_v10 }
 0x10e   :  { %v158_v24 = vmul.f32 %v155_v14, %v150_v19  ;;  %v151_v26 = vmax.f32 %v145_v20, 0.0 }
 0x10f   :  { %v156_v27 = vmul.f32 %v155_v14, %v148_v22  ;;  %v149_v28 = vmax.f32 %v137_v23, 0.0 }
 0x110   :  { %v159_v29 = vmul.f32 %v155_v14, %v151_v26  ;;  %v166_v31 = vadd.f32 %v163_v25, %v158_v24 }
 0x111   :  { %v157_v30 = vmul.f32 %v155_v14, %v149_v28  ;;  %v164_v33 = vadd.f32 %v163_v25, %v156_v27 }
 0x112   :  { %v167_v32 = vadd.f32 %v163_v25, %v159_v29 }
 0x113   :  { %v165_v34 = vadd.f32 %v163_v25, %v157_v30 }
 0x114   :  { %v218_v35 = vpack.c.bf16 %v167_v32, %v166_v31 }
 0x115   :  { %v213_v36 = vpack.c.bf16 %v165_v34, %v164_v33 }
 0x116   :  { %220 = vst [vmem:[%s360_s3 + $0x8] sm:$0xff] %v218_v35  }
 0x117   :  { %214 = vst [vmem:[%s360_s3] sm:$0xff] %v213_v36  }
 0x118   :  { %192 = vsyncpa [#allocation3], 1 }
 0x119   :  { %193 = vsyncpa [#allocation5], 1 }

// kernel: _lambda_.34
= control target key start
LH: loop header
LB: loop body
LE: loop exit
PB: predicated region body
PF: predicated region fallthrough
CT: control target
= control target key end

     0   :  { %8 = vsyncpa [#allocation3], 0  ;;  %s770_s0 = inlined_call_operand.vmem [shape: bf16[2,20,8], index: 0, kind: input, shape index: {}]   ;;  %s771_s1 = inlined_call_operand.hbm [shape: bf16[3,8,128], index: 1, kind: input, shape index: {}]   ;;  %s772_s2 = inlined_call_operand.hbm [shape: f32[3,128], index: 2, kind: input, shape index: {}]   ;;  %s773_s3 = inlined_call_operand.vmem [shape: bf16[2,16,128], index: 3, kind: output, shape index: {}]  }
   0x1   :  { %9 = vsyncpa [#allocation5], 0  ;;  %s664_s12 = smov 0  }
   0x2 LB: > { %s670_s13 = sadd.s32 4294967295, %s636_s12   ;;  %p479_p0 = scmp.ge.s32.totalorder %s636_s12, 1  ;;  %s636_s12 = sphi %s664_s12, %s15_s12  }
   0x3   : > { %p114_p1 = scmp.lt.s32.totalorder %s636_s12, 3  ;;  %s638_s14 = smov [#allocation2]  }
   0x4   : > { %s126_s15 = sshll.u32 %s638_s14, 4  ;;  %p774_p3 = scmp.eq.s32.totalorder %s670_s13, 0  ;;  %s127_s15 = int_to_ptr.vmem [resolvable:$true] %s126_s15 }
   0x5   : > { %p674_p2 = pnand %p479_p0, %p114_p1  ;;  %s639_s17 = smov [#allocation4]  }
   0x6   : > { %s140_s18 = sshll.u32 %s639_s17, 4  ;;  %s566_s22 = scalar_lea.hbm %s771_s1, 192  ;;  %s687_s18 = int_to_ptr.vmem [resolvable:$true] %s140_s18 }
   0x7   : > { %s776_s16 = scalar_select %p674_p2, 1, 0 }
   0x8   : > { %p539_p4 = pneg %p674_p2  ;;  %p567_p6 = scmp.ne.s32.totalorder %s771_s1, %s566_s22 }
   0x9   : > { %p573_p10 = scmp.lt.u32.totalorder %s566_s22, %s771_s1 }
   0xa   : > { %p683_p5 = pnand %p774_p3, %p539_p4 }
   0xc   : > { %p568_p7 = pneg %p683_p5 }
   0xe   : > { %p569_p8 = pnand %p568_p7, %p567_p6 }
  0x10   : > { %p570_p9 = pneg %p569_p8 }
  0x12   : > { %p575_p11 = pnand %p573_p10, %p570_p9 }
  0x14   : > { %578 = shalt.err (!%p575_p11)
}
  0x15   : > { %s579_s27 = scalar_lea.vmem %s127_s15, 192  ;;  %p587_p1 = scmp.lt.s32.totalorder %s127_s15, %s127_s15 }
  0x16   : > { %p580_p12 = scmp.ne.s32.totalorder %s127_s15, %s579_s27  ;;  %p588_p4 = scmp.lt.s32.totalorder %s579_s27, %s579_s27 }
  0x18   : > { %p582_p13 = pnand %p580_p12, %p568_p7  ;;  %p589_p3 = por %p588_p4, %p587_p1 }
  0x1a   : > { %p583_p0 = pneg %p582_p13 }
  0x1c   : > { %p590_p2 = pnand %p589_p3, %p583_p0 }
  0x1e   : > { %593 = shalt.err (!%p590_p2)
}
  0x1f   : > { %s640_s28 = smov 64   ;;  %s641_s29 = smov 4  }
  0x20   : > { %542 = dma.hbm_to_vmem [thread:$0]  (!%p683_p5), %s771_s1, 192, %s127_s15, [#allocation3], %s640_s28, %s640_s28, %s641_s29  }
  0x21   : > { %s594_s7 = scalar_lea.hbm %s772_s2, 64 }
  0x22   : > { %p595_p6 = scmp.ne.s32.totalorder %s772_s2, %s594_s7  ;;  %p601_p8 = scmp.lt.u32.totalorder %s594_s7, %s772_s2 }
  0x24   : > { %p597_p2 = pnand %p595_p6, %p568_p7 }
  0x26   : > { %p598_p3 = pneg %p597_p2 }
  0x28   : > { %p603_p9 = pnand %p601_p8, %p598_p3 }
  0x2a   : > { %606 = shalt.err (!%p603_p9)
}
  0x2b   : > { %s607_s14 = scalar_lea.vmem %s687_s18, 64  ;;  %p615_p13 = scmp.lt.s32.totalorder %s687_s18, %s687_s18 }
  0x2c   : > { %p608_p10 = scmp.ne.s32.totalorder %s687_s18, %s607_s14  ;;  %p616_p0 = scmp.lt.s32.totalorder %s607_s14, %s607_s14 }
  0x2e   : > { %p610_p11 = pnand %p608_p10, %p568_p7  ;;  %p617_p1 = por %p616_p0, %p615_p13 }
  0x30   : > { %p611_p12 = pneg %p610_p11 }
  0x32   : > { %p618_p4 = pnand %p617_p1, %p611_p12 }
  0x34   : > { %621 = shalt.err (!%p618_p4)
}
  0x35   : > { %545 = dma.hbm_to_vmem [thread:$0]  (!%p683_p5), %s772_s2, 64, %s687_s18, [#allocation5]  }
  0x36   : > { %p778_p6 = scmp.ne.s32.totalorder %s776_s16, 0 }
  0x37   : > { %p779_p2 = scmp.eq.s32.totalorder (!%p778_p6), %s670_s13, 0 }
  0x38   : > { %161 = sbr.rel (%p778_p6) target bundleno = 312 (0x138), region = 32 }
  0x3f   : > { %627 = dma.done.wait (%p779_p2), [#allocation3], 192   ;;  %p780_p7 = pmov %p779_p2 }
  0x40   : > { %p781_p3 = pmov %p779_p2 }
  0x41   : > { %629 = vsyncadd (%p780_p7), [#allocation3], 4294967104 }
  0x42   : > { %631 = dma.done.wait (%p781_p3), [#allocation5], 64   ;;  %p782_p8 = pmov %p779_p2 }
  0x43   : > { %p189_p9 = scmp.lt.s32.totalorder %s670_s13, 1  ;;  %v642_v0 = vmov 0.0   ;;  %vm643_vm0 = vmmov 0   ;;  %vm222_vm1 = vcmask 1043456   ;;  %vm218_vm2 = vcmask 64512  }
  0x44   : > { %633 = vsyncadd (%p782_p8), [#allocation5], 4294967232  ;;  %512 = vmatprep.subr.bf16.mxu0 %v642_v0  ;;  %518 = vmatprep.subr.bf16.mxu1 %v642_v0  ;;  %v205_v1 = vld [vmem:[#allocation2 + $0x4] sm:$0xf]  ;;  %v203_v2 = vld [vmem:[#allocation2] sm:$0xf]  ;;  %v370_v15 = vlaneseq }
  0x45   : > { %514 = vmatprep.mubr.msk.bf16.mxu0 %vm643_vm0, %v642_v0  ;;  %520 = vmatprep.mubr.msk.bf16.mxu1 %vm643_vm0, %v642_v0  ;;  %s784_s13 = smov (!%p189_p9, %s670_s13), 1  ;;  %v224_v3 = vsel %vm222_vm1, %v205_v1, 0  ;;  %v271_v4 = vsel %vm222_vm1, %v203_v2, 0  ;;  %v315_v7 = vld [vmem:[#allocation2 + $0x8] sm:$0xf]  ;;  %vm214_vm3 = vcmask 1046528  }
  0x46   : > { %s530_s16 = smul.u32 12, %s784_s13  ;;  %513 = vmatpush3.bf16.msra.mxu0 %v224_v3  ;;  %519 = vmatpush3.bf16.msra.mxu1 %v271_v4  ;;  %v324_v10 = vsel %vm222_vm1, %v315_v7, 0  ;;  %vm316_vm4 = vcmask 1045504   ;;  %v371_v18 = vshrl.u32 %v370_v15, 7  ;;  %v369_v28 = vld [vmem:[#allocation4] sm:$0x7] }
  0x47   : > { %524 = vmatprep.subr.bf16.mxu0 %v642_v0  ;;  %s498_s21 = sshll.u32 %s784_s13, 3 }
  0x48   : > { %s193_s20 = scalar_lea.vmem %s770_s0, %s530_s16  ;;  %v372_v27 = vsub.s32 0, %v371_v18  ;;  %v380_v30 = vsub.s32 1, %v371_v18  ;;  %v386_v37 = vsub.s32 2, %v371_v18  ;;  %s198_s24 = scalar_lea.vmem %s773_s3, %s498_s21 }
  0x49   : > { %v564_v5 = vld [vmem:[%s193_s20] sm:$0xff]   ;;  %v565_v6 = vld [vmem:[%s193_s20 + $0x8] ss:$0 sps:$4 sm:$0x33]  }
  0x4a   : > { %v215_v8 = vrot.slane %v564_v5, 1  ;;  %v216_v9 = vrot.slane %v565_v6, 1  ;;  %521 = vmatmul.mubr.msk.bf16.vlgmr.msra.gmra.mrb[0].mxu1 %vm218_vm2, %v564_v5  ;;  %v317_v12 = vrot.slane %v564_v5, 2  ;;  %v318_v13 = vrot.slane %v565_v6, 2 }
  0x4b   : > { %v373_v29 = vrot.slane %v369_v28, %v372_v27  ;;  %v381_v36 = vrot.slane %v369_v28, %v380_v30  ;;  %v387_v43 = vrot.slane %v369_v28, %v386_v37 }
  0x4c   : > { %v217_v11 = vsel %vm214_vm3, %v215_v8, %v216_v9  ;;  %v319_v14 = vsel %vm316_vm4, %v317_v12, %v318_v13 }
  0x4d   : > { %515 = vmatmul.mubr.msk.bf16.vlgmr.msra.gmra.mrb[0].mxu0 %vm218_vm2, %v217_v11 }
  0x4e   : > { %525 = vmatpush3.bf16.msra.mxu0 %v324_v10  ;;  %526 = vmatprep.mubr.msk.bf16.mxu0 %vm643_vm0, %v642_v0 }
  0x55   : > { %527 = vmatmul.mubr.msk.bf16.vlgmr.msra.gmra.mrb[4].mxu0 %vm218_vm2, %v319_v14 }
 0x11d   : > { %v307_v16 = vpop.f32.mrb[0].mxu1 }
 0x11e   : > { %v522_v17 = vpop.f32.mrb[1].mxu1 }
 0x11f   : > { %v310_v20 = vpop.f32.mrb[2].mxu1 }
 0x120   : > { %v260_v19 = vpop.f32.mrb[0].mxu0  ;;  %v523_v23 = vpop.f32.mrb[3].mxu1 }
 0x121   : > { %v308_v21 = vadd.f32 %v307_v16, %v260_v19  ;;  %v516_v22 = vpop.f32.mrb[1].mxu0 }
 0x122   : > { %v263_v24 = vpop.f32.mrb[2].mxu0 }
 0x123   : > { %v311_v25 = vadd.f32 %v310_v20, %v263_v24  ;;  %v517_v26 = vpop.f32.mrb[3].mxu0 }
 0x128   : > { %v360_v31 = vpop.f32.mrb[4].mxu0 }
 0x129   : > { %v367_v32 = vadd.f32 %v360_v31, %v308_v21  ;;  %v528_v33 = vpop.f32.mrb[5].mxu0 }
 0x12a   : > { %v363_v34 = vpop.f32.mrb[6].mxu0 }
 0x12b   : > { %v374_v35 = vadd.f32 %v373_v29, %v367_v32  ;;  %v368_v38 = vadd.f32 %v363_v34, %v311_v25  ;;  %v529_v39 = vpop.f32.mrb[7].mxu0 }
 0x12d   : > { %v376_v40 = vmax.f32 %v374_v35, 0.0  ;;  %v375_v41 = vadd.f32 %v373_v29, %v368_v38 }
 0x12f   : > { %v382_v42 = vmul.f32 %v381_v36, %v376_v40  ;;  %v377_v44 = vmax.f32 %v375_v41, 0.0 }
 0x131   : > { %v383_v45 = vmul.f32 %v381_v36, %v377_v44  ;;  %v388_v46 = vadd.f32 %v387_v43, %v382_v42 }
 0x133   : > { %v389_v47 = vadd.f32 %v387_v43, %v383_v45 }
 0x135   : > { %v504_v48 = vpack.c.bf16 %v389_v47, %v388_v46 }
 0x137   : > { %505 = vst [vmem:[%s198_s24] sm:$0xff] %v504_v48  }
 0x138 PF: > { %s15_s12 = sadd.s32 1, %s636_s12  }
 0x139   : > { %p12_p5 = scmp.ge.s32.totalorder %s15_s12, 4  }
 0x13b   :  { %14 = sbr.rel (!%p12_p5) target bundleno = 2 (0x2), region = 73 }
 0x142   :  { %421 = vsyncpa [#allocation3], 1 }
 0x143   :  { %423 = vsyncpa [#allocation3 + $0x1], 1 }
 0x144   :  { %424 = vsyncpa [#allocation5], 1 }

// kernel: mul.37
= control target key start
LH: loop header
LB: loop body
LE: loop exit
PB: predicated region body
PF: predicated region fallthrough
CT: control target
= control target key end

     0   :  { %s46_s0 = inlined_call_operand.vmem [shape: f32[2,64], index: 0, kind: input, shape index: {}]   ;;  %s47_s1 = inlined_call_operand.vmem [shape: f32[2,16,64], index: 1, kind: output, shape index: {}]  }
   0x1   :  { %v4_v0 = vld [vmem:[%s46_s0] ss:$0 sm:$0xff]  ;;  %v14_v1 = vld [vmem:[%s46_s0 + $0x1] ss:$0 sm:$0xff] }
   0x2   :  { %5 = vst [vmem:[%s47_s1] sm:$0xff] %v4_v0  ;;  %15 = vst [vmem:[%s47_s1 + $0x10] sm:$0xff] %v14_v1 }
   0x3   :  { %16 = vst [vmem:[%s47_s1 + $0x8] sm:$0xff] %v4_v0  ;;  %17 = vst [vmem:[%s47_s1 + $0x18] sm:$0xff] %v14_v1 }

// kernel: _lambda_.32
= control target key start
LH: loop header
LB: loop body
LE: loop exit
PB: predicated region body
PF: predicated region fallthrough
CT: control target
= control target key end

     0   :  { %8 = vsyncpa [#allocation3], 0  ;;  %s2411_s0 = inlined_call_operand.vmem [shape: bf16[2,20,299], index: 0, kind: input, shape index: {}]   ;;  %s2412_s1 = inlined_call_operand.hbm [shape: bf16[5,299,128], index: 1, kind: input, shape index: {}]   ;;  %s2413_s2 = inlined_call_operand.hbm [shape: f32[3,128], index: 2, kind: input, shape index: {}]   ;;  %s2414_s3 = inlined_call_operand.vmem [shape: bf16[2,16,128], index: 3, kind: output, shape index: {}]  }
   0x1   :  { %9 = vsyncpa [#allocation5], 0  ;;  %s2185_s12 = smov 0  }
   0x2 LB: > { %s2191_s13 = sadd.s32 4294967295, %s2156_s12   ;;  %p1641_p0 = scmp.ge.s32.totalorder %s2156_s12, 1  ;;  %s2156_s12 = sphi %s2185_s12, %s15_s12  }
   0x3   : > { %p114_p1 = scmp.lt.s32.totalorder %s2156_s12, 3  ;;  %s2158_s14 = smov [#allocation2]  }
   0x4   : > { %s126_s15 = sshll.u32 %s2158_s14, 4  ;;  %p2415_p3 = scmp.eq.s32.totalorder %s2191_s13, 0  ;;  %s127_s15 = int_to_ptr.vmem [resolvable:$true] %s126_s15 }
   0x5   : > { %p2195_p2 = pnand %p1641_p0, %p114_p1  ;;  %s2159_s17 = smov [#allocation4]  }
   0x6   : > { %s140_s18 = sshll.u32 %s2159_s17, 4  ;;  %s2086_s22 = scalar_lea.hbm %s2412_s1, 12160  ;;  %s2208_s18 = int_to_ptr.vmem [resolvable:$true] %s140_s18 }
   0x7   : > { %s2417_s16 = scalar_select %p2195_p2, 1, 0 }
   0x8   : > { %p1958_p4 = pneg %p2195_p2  ;;  %p2087_p6 = scmp.ne.s32.totalorder %s2412_s1, %s2086_s22 }
   0x9   : > { %p2093_p10 = scmp.lt.u32.totalorder %s2086_s22, %s2412_s1 }
   0xa   : > { %p2204_p5 = pnand %p2415_p3, %p1958_p4 }
   0xc   : > { %p2088_p7 = pneg %p2204_p5 }
   0xe   : > { %p2089_p8 = pnand %p2088_p7, %p2087_p6 }
  0x10   : > { %p2090_p9 = pneg %p2089_p8 }
  0x12   : > { %p2095_p11 = pnand %p2093_p10, %p2090_p9 }
  0x14   : > { %2098 = shalt.err (!%p2095_p11)
}
  0x15   : > { %s2099_s27 = scalar_lea.vmem %s127_s15, 12160  ;;  %p2107_p1 = scmp.lt.s32.totalorder %s127_s15, %s127_s15 }
  0x16   : > { %p2100_p12 = scmp.ne.s32.totalorder %s127_s15, %s2099_s27  ;;  %p2108_p4 = scmp.lt.s32.totalorder %s2099_s27, %s2099_s27 }
  0x18   : > { %p2102_p13 = pnand %p2100_p12, %p2088_p7  ;;  %p2109_p3 = por %p2108_p4, %p2107_p1 }
  0x1a   : > { %p2103_p0 = pneg %p2102_p13 }
  0x1c   : > { %p2110_p2 = pnand %p2109_p3, %p2103_p0 }
  0x1e   : > { %2113 = shalt.err (!%p2110_p2)
}
  0x1f   : > { %s2160_s28 = smov 64   ;;  %s2161_s29 = smov 4  }
  0x20   : > { %1961 = dma.hbm_to_vmem [thread:$0]  (!%p2204_p5), %s2412_s1, 12160, %s127_s15, [#allocation3], %s2160_s28, %s2160_s28, %s2161_s29  }
  0x21   : > { %s2114_s7 = scalar_lea.hbm %s2413_s2, 64 }
  0x22   : > { %p2115_p6 = scmp.ne.s32.totalorder %s2413_s2, %s2114_s7  ;;  %p2121_p8 = scmp.lt.u32.totalorder %s2114_s7, %s2413_s2 }
  0x24   : > { %p2117_p2 = pnand %p2115_p6, %p2088_p7 }
  0x26   : > { %p2118_p3 = pneg %p2117_p2 }
  0x28   : > { %p2123_p9 = pnand %p2121_p8, %p2118_p3 }
  0x2a   : > { %2126 = shalt.err (!%p2123_p9)
}
  0x2b   : > { %s2127_s14 = scalar_lea.vmem %s2208_s18, 64  ;;  %p2135_p13 = scmp.lt.s32.totalorder %s2208_s18, %s2208_s18 }
  0x2c   : > { %p2128_p10 = scmp.ne.s32.totalorder %s2208_s18, %s2127_s14  ;;  %p2136_p0 = scmp.lt.s32.totalorder %s2127_s14, %s2127_s14 }
  0x2e   : > { %p2130_p11 = pnand %p2128_p10, %p2088_p7  ;;  %p2137_p1 = por %p2136_p0, %p2135_p13 }
  0x30   : > { %p2131_p12 = pneg %p2130_p11 }
  0x32   : > { %p2138_p4 = pnand %p2137_p1, %p2131_p12 }
  0x34   : > { %2141 = shalt.err (!%p2138_p4)
}
  0x35   : > { %1964 = dma.hbm_to_vmem [thread:$0]  (!%p2204_p5), %s2413_s2, 64, %s2208_s18, [#allocation5]  }
  0x36   : > { %p2419_p6 = scmp.ne.s32.totalorder %s2417_s16, 0 }
  0x37   : > { %p2420_p2 = scmp.eq.s32.totalorder (!%p2419_p6), %s2191_s13, 0 }
  0x38   : > { %161 = sbr.rel (%p2419_p6) target bundleno = 410 (0x19a), region = 32 }
  0x3f   : > { %2147 = dma.done.wait (%p2420_p2), [#allocation3], 12160   ;;  %p2421_p7 = pmov %p2420_p2 }
  0x40   : > { %p2422_p3 = pmov %p2420_p2 }
  0x41   : > { %2149 = vsyncadd (%p2421_p7), [#allocation3], 4294955136 }
  0x42   : > { %2151 = dma.done.wait (%p2422_p3), [#allocation5], 64   ;;  %p2423_p8 = pmov %p2420_p2 }
  0x43   : > { %v2162_v0 = vmov 0.0   ;;  %vm2163_vm0 = vmmov 0   ;;  %p189_p5 = scmp.lt.s32.totalorder %s2191_s13, 1  ;;  %vm460_vm1 = vcmask 1044480   ;;  %v1984_v1 = vld [vmem:[#allocation2 + $0xd8] sm:$0xff]   ;;  %vm461_vm2 = vcmask 1045504  }
  0x44   : > { %2153 = vsyncadd (%p2423_p8), [#allocation5], 4294967232  ;;  %1899 = vmatprep.subr.bf16.mxu1 %v2162_v0  ;;  %1905 = vmatprep.mubr.msk.bf16.mxu1 %vm2163_vm0, %v2162_v0  ;;  %v1985_v2 = vld [vmem:[#allocation2 + $0x118] sm:$0xff]   ;;  %v2164_v4 = vmov 65535   ;;  %v1987_v6 = vld [vmem:[#allocation2 + $0xe0] sm:$0xff]   ;;  %vm456_vm4 = vcmask 351232  }
  0x45   : > { %s2425_s13 = smov (!%p189_p5, %s2191_s13), 1  ;;  %1769 = vmatprep.subr.bf16.mxu0 %v1984_v1  ;;  %v1986_v3 = vld [vmem:[#allocation2 + $0x98] sm:$0xff]   ;;  %v462_v5 = vsel %vm460_vm1, 4294967295, %v2164_v4  ;;  %1900 = vmatpush3.bf16.msra.mxu1 %v1985_v2  ;;  %v1988_v7 = vld [vmem:[#allocation2 + $0x120] sm:$0xff]   ;;  %v1990_v9 = vld [vmem:[#allocation2 + $0xe8] sm:$0xff]   ;;  %vm790_vm6 = vcmask 1046528  }
  0x46   : > { %s1949_s16 = smul.u32 36, %s2425_s13  ;;  %1770 = vmatpush3.bf16.msra.mxu0 %v1986_v3  ;;  %1901 = vmatprep.subr.bf16.mxu1 %v2162_v0  ;;  %v1989_v8 = vld [vmem:[#allocation2 + $0xa0] sm:$0xff]   ;;  %v2277_v10 = vsel %vm461_vm2, %v462_v5, 0  ;;  %v1991_v11 = vld [vmem:[#allocation2 + $0x128] sm:$0x3f]   ;;  %v1996_v20 = vld [vmem:[#allocation2 + $0xf0] sm:$0xff]  }
  0x47   : > { %1771 = vmatprep.subr.bf16.mxu0 %v1987_v6  ;;  %vm304_vm3 = vsmask.f32 7424  ;;  %v1992_v12 = vld [vmem:[#allocation2 + $0xa8] sm:$0xff]   ;;  %v465_v13 = vand.u32 %v1991_v11, %v2277_v10  ;;  %v1995_v16 = vld [vmem:[#allocation2 + $0x40] sm:$0xff]   ;;  %vm1044_vm5 = vsmask.f32 6400 }
  0x48   : > { %s2282_s20 = scalar_lea.vmem %s2411_s0, %s1949_s16  ;;  %v1997_v24 = vld [vmem:[#allocation2] sm:$0xff]   ;;  %v1998_v26 = vld [vmem:[#allocation2 + $0xb0] sm:$0xff]   ;;  %v1999_v28 = vld [vmem:[#allocation2 + $0x48] sm:$0xff]   ;;  %s1761_s21 = sshll.u32 %s2425_s13, 3 }
  0x49   : > { %1902 = vmatpush3.bf16.msra.mxu1 %v1988_v7  ;;  %v2287_v14 = vld [vmem:[%s2282_s20 + $0x8] ss:$12 sps:$4 sm:$0xff]   ;;  %v2290_v15 = vld [vmem:[%s2282_s20 + $0x20] ss:$0 sps:$4 sm:$0x33]   ;;  %v2000_v30 = vld [vmem:[#allocation2 + $0xf8] sm:$0xff]   ;;  %s198_s24 = scalar_lea.vmem %s2414_s3, %s1761_s21 }
  0x4a   : > { %1772 = vmatpush3.bf16.msra.mxu0 %v1989_v8  ;;  %1903 = vmatprep.subr.bf16.mxu1 %v2162_v0  ;;  %v330_v17 = vshrl.u32 %v2287_v14, 16  ;;  %v332_v18 = vshll.u32 %v2287_v14, 16  ;;  %v337_v19 = vshll.u32 %v2290_v15, 16  ;;  %v1066_v31 = vshrl.u32 %v2290_v15, 16  ;;  %v2001_v33 = vld [vmem:[#allocation2 + $0x8] sm:$0xff]   ;;  %v2002_v36 = vld [vmem:[#allocation2 + $0xb8] sm:$0xff]  }
  0x4b   : > { %1773 = vmatprep.subr.bf16.mxu0 %v1990_v9  ;;  %v1323_v35 = vrot.slane %v2287_v14, 2  ;;  %v2003_v38 = vld [vmem:[#allocation2 + $0x50] sm:$0xff]   ;;  %v1324_v39 = vrot.slane %v2290_v15, 2  ;;  %v2004_v40 = vld [vmem:[#allocation2 + $0x100] sm:$0xff]   ;;  %v2007_v46 = vld [vmem:[#allocation2 + $0x58] sm:$0xff]  }
  0x4c   : > { %v334_v21 = vrot.slane %v332_v18, 1  ;;  %v339_v22 = vrot.slane %v337_v19, 1  ;;  %v1063_v23 = vrot.slane %v330_v17, 1  ;;  %v1069_v25 = vrot.slane %v337_v19, 2  ;;  %v2005_v42 = vld [vmem:[#allocation2 + $0x10] sm:$0xff]   ;;  %v2006_v44 = vld [vmem:[#allocation2 + $0xc0] sm:$0xff]  }
  0x4d   : > { %1904 = vmatpush3.bf16.msra.mxu1 %v465_v13  ;;  %v1064_v29 = vrot.slane %v332_v18, 2  ;;  %v1068_v37 = vrot.slane %v1066_v31, 1  ;;  %v2301_v43 = vsel %vm461_vm2, %v1323_v35, %v1324_v39  ;;  %v2008_v47 = vld [vmem:[#allocation2 + $0x108] sm:$0xff]   ;;  %v2009_v48 = vld [vmem:[#allocation2 + $0x18] sm:$0xff]   ;;  %v2011_v50 = vld [vmem:[#allocation2 + $0x60] sm:$0xff]  }
  0x4e   : > { %1774 = vmatpush3.bf16.msra.mxu0 %v1992_v12  ;;  %1795 = vmatprep.subr.bf16.mxu1 %v1995_v16  ;;  %v335_v27 = vor.u32 %v334_v21, %v330_v17  ;;  %v2010_v49 = vld [vmem:[#allocation2 + $0xc8] sm:$0xff]   ;;  %v2012_v51 = vld [vmem:[#allocation2 + $0x110] sm:$0xff]   ;;  %v2013_v52 = vld [vmem:[#allocation2 + $0x20] sm:$0xff]  }
  0x4f   : > { %1775 = vmatprep.subr.bf16.mxu0 %v1996_v20  ;;  %v1065_v34 = vor.u32 %v1064_v29, %v1063_v23  ;;  %v1070_v41 = vor.u32 %v1069_v25, %v1068_v37  ;;  %v2014_v53 = vld [vmem:[#allocation2 + $0xd0] sm:$0xff]   ;;  %v204_v54 = vld [vmem:[%s2282_s20 + $0x18] sm:$0x33]  ;;  %v2018_v57 = vld [vmem:[#allocation2 + $0x68] sm:$0xff]  }
  0x50   : > { %v340_v32 = vsel %vm304_vm3, %v335_v27, %v339_v22  ;;  %v2308_v55 = vld [vmem:[%s2282_s20 + $0x4] ss:$12 sps:$4 sm:$0xff]   ;;  %v2310_v56 = vcombine.high %v204_v54, %v204_v54  ;;  %v2312_v58 = vcombine.low %v204_v54, %v204_v54  ;;  %v2317_v61 = vld [vmem:[%s2282_s20] ss:$12 sps:$4 sm:$0xff]   ;;  %v2026_v19 = vld [vmem:[#allocation2 + $0x178] sm:$0xff]  }
  0x51   : > { %1906 = vmatmul.mubr.msk.bf16.vlgmr.msra.gmra.mrb[0].mxu1 %vm456_vm4, %v340_v32  ;;  %v2304_v45 = vsel %vm1044_vm5, %v1065_v34, %v1070_v41  ;;  %v318_v59 = vshrl.u32 %v2308_v55, 16  ;;  %v320_v60 = vshll.u32 %v2308_v55, 16  ;;  %v2022_v1 = vld [vmem:[#allocation2 + $0x170] sm:$0xff]   ;;  %v306_v3 = vshrl.u32 %v2317_v61, 16  ;;  %v2021_v5 = vld [vmem:[#allocation2 + $0x28] sm:$0xff]   ;;  %v2027_v22 = vld [vmem:[#allocation2 + $0x138] sm:$0xff]  }
  0x52   : > { %1776 = vmatpush3.bf16.msra.mxu0 %v1998_v26  ;;  %1796 = vmatpush3.bf16.msra.mxu1 %v1997_v24  ;;  %v325_v62 = vshll.u32 %v2310_v56, 16  ;;  %v313_v63 = vshll.u32 %v2312_v58, 16  ;;  %v308_v4 = vshll.u32 %v2317_v61, 16  ;;  %v2023_v11 = vld [vmem:[#allocation2 + $0x130] sm:$0xff]   ;;  %v794_v18 = vrot.slane %v2308_v55, 1  ;;  %v2028_v23 = vld [vmem:[#allocation2 + $0x78] sm:$0xff]  }
  0x53   : > { %1777 = vmatprep.subr.bf16.mxu0 %v2000_v30  ;;  %1797 = vmatprep.subr.bf16.mxu1 %v1999_v28  ;;  %v322_v2 = vrot.slane %v320_v60, 1  ;;  %v2024_v12 = vld [vmem:[#allocation2 + $0x70] sm:$0xff]   ;;  %v795_v20 = vrot.slane %v2310_v56, 1  ;;  %v2029_v25 = vld [vmem:[#allocation2 + $0x38] sm:$0xff]   ;;  %v2030_v26 = vld [vmem:[#allocation2 + $0x180] sm:$0xff]   ;;  %v1317_v37 = vrot.slane %v2317_v61, 2 }
  0x54   : > { %701 = vmatprep.mubr.bf16.mxu1 %v2308_v55  ;;  %v327_v6 = vrot.slane %v325_v62, 1  ;;  %v315_v7 = vrot.slane %v313_v63, 1  ;;  %v310_v9 = vrot.slane %v308_v4, 1  ;;  %v2025_v17 = vld [vmem:[#allocation2 + $0x30] sm:$0xff]   ;;  %v2031_v27 = vld [vmem:[#allocation2 + $0x140] sm:$0xff]   ;;  %v2033_v29 = vld [vmem:[#allocation2 + $0x188] sm:$0xff]  }
  0x55   : > { %v323_v8 = vor.u32 %v322_v2, %v318_v59  ;;  %v796_v24 = vsel %vm790_vm6, %v794_v18, %v795_v20  ;;  %v2032_v28 = vld [vmem:[#allocation2 + $0x80] sm:$0xff]   ;;  %v2034_v30 = vld [vmem:[#allocation2 + $0x148] sm:$0xff]   ;;  %v2036_v32 = vld [vmem:[#allocation2 + $0x190] sm:$0xff]   ;;  %v1060_v54 = vrot.slane %v325_v62, 2 }
  0x56   : > { %1778 = vmatpush3.bf16.msra.mxu0 %v2002_v36  ;;  %1798 = vmatpush3.bf16.msra.mxu1 %v2001_v33  ;;  %v311_v16 = vor.u32 %v310_v9, %v306_v3  ;;  %v2035_v31 = vld [vmem:[#allocation2 + $0x88] sm:$0xff]   ;;  %v2038_v33 = vld [vmem:[#allocation2 + $0x90] sm:$0x3f]   ;;  %v2039_v36 = vld [vmem:[#allocation2 + $0x198] sm:$0xff]  }
  0x57   : > { %1779 = vmatprep.subr.bf16.mxu0 %v2004_v40  ;;  %1799 = vmatprep.subr.bf16.mxu1 %v2003_v38  ;;  %v328_v13 = vsel %vm304_vm3, %v323_v8, %v327_v6  ;;  %v2037_v34 = vld [vmem:[#allocation2 + $0x150] sm:$0xff]   ;;  %v667_v35 = vand.u32 %v2038_v33, %v2277_v10  ;;  %v1318_v38 = vrot.slane %v2312_v58, 2  ;;  %v2040_v39 = vld [vmem:[#allocation2 + $0x158] sm:$0xff]   ;;  %v2048_v6 = vld [vmem:[#allocation2 + $0x248] sm:$0xff]  }
  0x58   : > { %499 = vmatprep.mubr.bf16.mxu0 %v328_v13  ;;  %v316_v21 = vsel %vm304_vm3, %v311_v16, %v315_v7  ;;  %v2042_v40 = vld [vmem:[#allocation2 + $0x1b0] sm:$0xff]   ;;  %v2050_v8 = vld [vmem:[#allocation2 + $0x1c8] sm:$0xff]   ;;  %v2054_v16 = vld [vmem:[#allocation2 + $0x258] sm:$0x3f]  }
  0x59   : > { %v2351_v41 = vsel %vm461_vm2, %v1317_v37, %v1318_v38  ;;  %v2052_v9 = vld [vmem:[#allocation2 + $0x210] sm:$0xff]   ;;  %v2056_v18 = vld [vmem:[#allocation2 + $0x1d8] sm:$0xff]   ;;  %v2057_v20 = vld [vmem:[#allocation2 + $0x2a0] sm:$0xff]   ;;  %v1046_v37 = vrot.slane %v308_v4, 2 }
  0x5a   : > { %1780 = vmatpush3.bf16.msra.mxu0 %v2006_v44  ;;  %1800 = vmatpush3.bf16.msra.mxu1 %v2005_v42  ;;  %v2041_v42 = vld [vmem:[#allocation2 + $0x1a0] sm:$0xff]   ;;  %v797_v44 = vrot.slane %v2287_v14, 1  ;;  %v2069_v33 = vld [vmem:[#allocation2 + $0x2b8] sm:$0xff]  }
  0x5b   : > { %1781 = vmatprep.subr.bf16.mxu0 %v2008_v47  ;;  %1801 = vmatprep.subr.bf16.mxu1 %v2007_v46  ;;  %v2043_v46 = vld [vmem:[#allocation2 + $0x160] sm:$0xff]   ;;  %v798_v47 = vrot.slane %v2290_v15, 1  ;;  %v1054_v15 = vrot.slane %v318_v59, 1  ;;  %v2072_v38 = vld [vmem:[#allocation2 + $0x1f8] sm:$0xff]  }
  0x5c   : > { %v2080_v4 = vld [vmem:[#allocation2 + $0x2e0] sm:$0xff]  }
  0x5d   : > { %v799_v62 = vsel %vm790_vm6, %v797_v44, %v798_v47  ;;  %v2075_v44 = vld [vmem:[#allocation2 + $0x240] sm:$0xff]  }
  0x5e   : > { %1782 = vmatpush3.bf16.msra.mxu0 %v2010_v49  ;;  %1802 = vmatpush3.bf16.msra.mxu1 %v2009_v48  ;;  %v2045_v48 = vld [vmem:[#allocation2 + $0x1b8] sm:$0xff]   ;;  %v1057_v49 = vshrl.u32 %v2310_v56, 16  ;;  %v2076_v47 = vld [vmem:[#allocation2 + $0x200] sm:$0xff]  }
  0x5f   : > { %1783 = vmatprep.subr.bf16.mxu0 %v2012_v51  ;;  %1803 = vmatprep.subr.bf16.mxu1 %v2011_v50  ;;  %v2047_v50 = vld [vmem:[#allocation2 + $0x1c0] sm:$0x3f]   ;;  %v2044_v51 = vld [vmem:[#allocation2 + $0x1a8] sm:$0xff]  }
  0x60   : > { %v919_v2 = vand.u32 %v2047_v50, %v2277_v10  ;;  %v2081_v50 = vld [vmem:[#allocation2 + $0x290] sm:$0xff]  }
  0x62   : > { %1784 = vmatpush3.bf16.msra.mxu0 %v2014_v53  ;;  %1804 = vmatpush3.bf16.msra.mxu1 %v2013_v52  ;;  %v791_v52 = vrot.slane %v2317_v61, 1  ;;  %v1059_v53 = vrot.slane %v1057_v49, 1  ;;  %v2079_v49 = vld [vmem:[#allocation2 + $0x2d0] sm:$0xff]  }
  0x63   : > { %1805 = vmatprep.subr.bf16.mxu1 %v2018_v57  ;;  %1821 = vmatprep.subr.bf16.mxu0 %v2022_v1  ;;  %v2046_v57 = vld [vmem:[#allocation2 + $0x168] sm:$0xff]   ;;  %v792_v1 = vrot.slane %v2312_v58, 1 }
  0x64   : > { %v1061_v7 = vor.u32 %v1060_v54, %v1059_v53 }
  0x65   : > { %500 = vmatmul.mubr.bf16.vlgmr.msra.gmra.mrb[0].mxu0 %v316_v21  ;;  %v2059_v21 = vld [vmem:[#allocation2 + $0x220] sm:$0xff]  }
  0x66   : > { %1806 = vmatpush3.bf16.msra.mxu1 %v2021_v5  ;;  %1822 = vmatpush3.bf16.msra.mxu0 %v2023_v11  ;;  %v2049_v5 = vld [vmem:[#allocation2 + $0x208] sm:$0xff]   ;;  %v2051_v11 = vld [vmem:[#allocation2 + $0x250] sm:$0xff]  }
  0x67   : > { %1807 = vmatprep.subr.bf16.mxu1 %v2024_v12  ;;  %1823 = vmatprep.subr.bf16.mxu0 %v2026_v19  ;;  %v2053_v12 = vld [vmem:[#allocation2 + $0x1d0] sm:$0xff]   ;;  %v1191_v19 = vand.u32 %v2054_v16, %v2277_v10 }
  0x68   : > { %953 = vmatprep.mubr.bf16.mxu0 %v796_v24  ;;  %v2060_v24 = vld [vmem:[#allocation2 + $0x1e0] sm:$0xff]  }
  0x6a   : > { %1808 = vmatpush3.bf16.msra.mxu1 %v2025_v17  ;;  %1824 = vmatpush3.bf16.msra.mxu0 %v2027_v22  ;;  %v2055_v17 = vld [vmem:[#allocation2 + $0x218] sm:$0xff]   ;;  %v2058_v22 = vld [vmem:[#allocation2 + $0x260] sm:$0xff]  }
  0x6b   : > { %1809 = vmatprep.subr.bf16.mxu1 %v2028_v23  ;;  %1825 = vmatprep.subr.bf16.mxu0 %v2030_v26  ;;  %v1320_v23 = vrot.slane %v2308_v55, 2  ;;  %v2061_v26 = vld [vmem:[#allocation2 + $0x2a8] sm:$0xff]   ;;  %v2067_v55 = vld [vmem:[#allocation2 + $0x230] sm:$0xff]  }
  0x6e   : > { %1810 = vmatpush3.bf16.msra.mxu1 %v2029_v25  ;;  %1826 = vmatpush3.bf16.msra.mxu0 %v2031_v27  ;;  %v1321_v25 = vrot.slane %v2310_v56, 2  ;;  %v2063_v27 = vld [vmem:[#allocation2 + $0x228] sm:$0xff]   ;;  %v2066_v56 = vld [vmem:[#allocation2 + $0x270] sm:$0xff]  }
  0x6f   : > { %1909 = vmatprep.subr.bf16.mxu1 %v2162_v0  ;;  %1827 = vmatprep.subr.bf16.mxu0 %v2033_v29  ;;  %v2064_v29 = vld [vmem:[#allocation2 + $0x1e8] sm:$0xff]  }
  0x71   : > { %702 = vmatmul.mubr.bf16.vlgmr.msra.gmra.mrb[4].mxu1 %v2317_v61  ;;  %v2077_v61 = vld [vmem:[#allocation2 + $0x2c8] sm:$0xff]  }
  0x72   : > { %1910 = vmatpush3.bf16.msra.mxu1 %v2032_v28  ;;  %1915 = vmatprep.mubr.msk.bf16.mxu1 %vm2163_vm0, %v2162_v0  ;;  %v2062_v28 = vld [vmem:[#allocation2 + $0x268] sm:$0xff]  }
  0x73   : > { %1911 = vmatprep.subr.bf16.mxu1 %v2162_v0  ;;  %1828 = vmatpush3.bf16.msra.mxu0 %v2034_v30  ;;  %v1322_v30 = vsel %vm461_vm2, %v1320_v23, %v1321_v25 }
  0x74   : > { %1829 = vmatprep.subr.bf16.mxu0 %v2036_v32  ;;  %v2068_v32 = vld [vmem:[#allocation2 + $0x1f0] sm:$0xff]  }
  0x76   : > { %1912 = vmatpush3.bf16.msra.mxu1 %v2035_v31  ;;  %v2065_v31 = vld [vmem:[#allocation2 + $0x2b0] sm:$0xff]  }
  0x77   : > { %1913 = vmatprep.subr.bf16.mxu1 %v2162_v0  ;;  %1830 = vmatpush3.bf16.msra.mxu0 %v2037_v34  ;;  %v1048_v34 = vshrl.u32 %v2312_v58, 16  ;;  %v2078_v58 = vld [vmem:[#allocation2 + $0x288] sm:$0xff]  }
  0x78   : > { %1831 = vmatprep.subr.bf16.mxu0 %v2039_v36  ;;  %v2070_v36 = vld [vmem:[#allocation2 + $0x278] sm:$0xff]  }
  0x7a   : > { %1914 = vmatpush3.bf16.msra.mxu1 %v667_v35  ;;  %v1045_v35 = vrot.slane %v306_v3, 1 }
  0x7b   : > { %1919 = vmatprep.subr.bf16.mxu1 %v2162_v0  ;;  %1832 = vmatpush3.bf16.msra.mxu0 %v2040_v39  ;;  %v1051_v39 = vrot.slane %v313_v63, 2 }
  0x7c   : > { %1833 = vmatprep.subr.bf16.mxu0 %v2041_v42  ;;  %v1050_v42 = vrot.slane %v1048_v34, 1  ;;  %v1047_v3 = vor.u32 %v1046_v37, %v1045_v35 }
  0x7d   : > { %1916 = vmatmul.mubr.msk.bf16.vlgmr.msra.gmra.mrb[8].mxu1 %vm456_vm4, %v2287_v14  ;;  %v1055_v14 = vrot.slane %v320_v60, 2  ;;  %v793_v60 = vsel %vm790_vm6, %v791_v52, %v792_v1  ;;  %v2085_v52 = vld [vmem:[#allocation2 + $0x2f0] sm:$0x3f]  }
  0x7e   : > { %1920 = vmatpush3.bf16.msra.mxu1 %v2042_v40  ;;  %1925 = vmatprep.mubr.msk.bf16.mxu1 %vm2163_vm0, %v2162_v0  ;;  %v2073_v40 = vld [vmem:[#allocation2 + $0x2c0] sm:$0xff]   ;;  %v1445_v53 = vand.u32 %v2085_v52, %v2277_v10  ;;  %v1531_v52 = vld [vmem:[#allocation4] sm:$0x7] }
  0x7f   : > { %1921 = vmatprep.subr.bf16.mxu1 %v2162_v0  ;;  %1834 = vmatpush3.bf16.msra.mxu0 %v2043_v46  ;;  %v1056_v59 = vor.u32 %v1055_v14, %v1054_v15  ;;  %v2074_v46 = vld [vmem:[#allocation2 + $0x280] sm:$0xff]   ;;  %v2082_v15 = vld [vmem:[#allocation2 + $0x2d8] sm:$0xff]  }
  0x80   : > { %1835 = vmatprep.subr.bf16.mxu0 %v2044_v51  ;;  %v2083_v51 = vld [vmem:[#allocation2 + $0x2e8] sm:$0xff]   ;;  %v2084_v14 = vld [vmem:[#allocation2 + $0x298] sm:$0xff]  }
  0x81   : > { %v1062_v13 = vsel %vm1044_vm5, %v1056_v59, %v1061_v7 }
  0x82   : > { %1922 = vmatpush3.bf16.msra.mxu1 %v2045_v48  ;;  %v1052_v48 = vor.u32 %v1051_v39, %v1050_v42 }
  0x83   : > { %1923 = vmatprep.subr.bf16.mxu1 %v2162_v0  ;;  %1836 = vmatpush3.bf16.msra.mxu0 %v2046_v57 }
  0x84   : > { %1929 = vmatprep.subr.bf16.mxu0 %v2162_v0  ;;  %v1053_v63 = vsel %vm1044_vm5, %v1047_v3, %v1052_v48  ;;  %v1532_v3 = vlaneseq }
  0x86   : > { %1924 = vmatpush3.bf16.msra.mxu1 %v919_v2  ;;  %954 = vmatmul.mubr.bf16.vlgmr.msra.gmra.mrb[4].mxu0 %v793_v60 }
  0x87   : > { %1847 = vmatprep.subr.bf16.mxu1 %v2049_v5  ;;  %1930 = vmatpush3.bf16.msra.mxu0 %v2048_v6 }
  0x88   : > { %1931 = vmatprep.subr.bf16.mxu0 %v2162_v0  ;;  %1935 = vmatprep.mubr.msk.bf16.mxu0 %vm2163_vm0, %v2162_v0 }
  0x89   : > { %1926 = vmatmul.mubr.msk.bf16.vlgmr.msra.gmra.mrb[12].mxu1 %vm456_vm4, %v799_v62 }
  0x8a   : > { %1848 = vmatpush3.bf16.msra.mxu1 %v2050_v8  ;;  %1225 = vmatprep.mubr.bf16.mxu1 %v1062_v13 }
  0x8b   : > { %1849 = vmatprep.subr.bf16.mxu1 %v2052_v9  ;;  %1932 = vmatpush3.bf16.msra.mxu0 %v2051_v11 }
  0x8c   : > { %1933 = vmatprep.subr.bf16.mxu0 %v2162_v0 }
  0x8e   : > { %1850 = vmatpush3.bf16.msra.mxu1 %v2053_v12 }
  0x8f   : > { %1851 = vmatprep.subr.bf16.mxu1 %v2055_v17  ;;  %1934 = vmatpush3.bf16.msra.mxu0 %v1191_v19 }
  0x90   : > { %1873 = vmatprep.subr.bf16.mxu0 %v2057_v20 }
  0x92   : > { %1852 = vmatpush3.bf16.msra.mxu1 %v2056_v18  ;;  %1936 = vmatmul.mubr.msk.bf16.vlgmr.msra.gmra.mrb[8].mxu0 %vm456_vm4, %v2304_v45  ;;  %v2071_v45 = vld [vmem:[#allocation2 + $0x238] sm:$0xff]  }
  0x93   : > { %1853 = vmatprep.subr.bf16.mxu1 %v2059_v21  ;;  %1874 = vmatpush3.bf16.msra.mxu0 %v2058_v22 }
  0x94   : > { %1875 = vmatprep.subr.bf16.mxu0 %v2061_v26  ;;  %1479 = vmatprep.mubr.bf16.mxu0 %v1322_v30 }
  0x96   : > { %1854 = vmatpush3.bf16.msra.mxu1 %v2060_v24 }
  0x97   : > { %1855 = vmatprep.subr.bf16.mxu1 %v2063_v27  ;;  %1876 = vmatpush3.bf16.msra.mxu0 %v2062_v28 }
  0x98   : > { %1877 = vmatprep.subr.bf16.mxu0 %v2065_v31 }
  0x9a   : > { %1856 = vmatpush3.bf16.msra.mxu1 %v2064_v29 }
  0x9b   : > { %1857 = vmatprep.subr.bf16.mxu1 %v2067_v55  ;;  %1878 = vmatpush3.bf16.msra.mxu0 %v2066_v56 }
  0x9c   : > { %1879 = vmatprep.subr.bf16.mxu0 %v2069_v33 }
  0x9e   : > { %1858 = vmatpush3.bf16.msra.mxu1 %v2068_v32 }
  0x9f   : > { %1859 = vmatprep.subr.bf16.mxu1 %v2071_v45  ;;  %1880 = vmatpush3.bf16.msra.mxu0 %v2070_v36 }
  0xa0   : > { %1881 = vmatprep.subr.bf16.mxu0 %v2073_v40 }
  0xa2   : > { %1860 = vmatpush3.bf16.msra.mxu1 %v2072_v38 }
  0xa3   : > { %1861 = vmatprep.subr.bf16.mxu1 %v2075_v44  ;;  %1882 = vmatpush3.bf16.msra.mxu0 %v2074_v46 }
  0xa4   : > { %1883 = vmatprep.subr.bf16.mxu0 %v2077_v61 }
  0xa6   : > { %1862 = vmatpush3.bf16.msra.mxu1 %v2076_v47 }
  0xa7   : > { %1939 = vmatprep.subr.bf16.mxu1 %v2162_v0  ;;  %1884 = vmatpush3.bf16.msra.mxu0 %v2078_v58  ;;  %v1533_v58 = vshrl.u32 %v1532_v3, 7 }
  0xa8   : > { %1885 = vmatprep.subr.bf16.mxu0 %v2079_v49 }
  0xa9   : > { %1226 = vmatmul.mubr.bf16.vlgmr.msra.gmra.mrb[16].mxu1 %v1053_v63 }
  0xaa   : > { %1940 = vmatpush3.bf16.msra.mxu1 %v2080_v4  ;;  %1945 = vmatprep.mubr.msk.bf16.mxu1 %vm2163_vm0, %v2162_v0 }
  0xab   : > { %1941 = vmatprep.subr.bf16.mxu1 %v2162_v0  ;;  %1886 = vmatpush3.bf16.msra.mxu0 %v2081_v50  ;;  %v1534_v50 = vsub.s32 0, %v1533_v58 }
  0xac   : > { %1887 = vmatprep.subr.bf16.mxu0 %v2082_v15 }
  0xae   : > { %1942 = vmatpush3.bf16.msra.mxu1 %v2083_v51 }
  0xaf   : > { %1943 = vmatprep.subr.bf16.mxu1 %v2162_v0  ;;  %1888 = vmatpush3.bf16.msra.mxu0 %v2084_v14 }
  0xb2   : > { %1944 = vmatpush3.bf16.msra.mxu1 %v1445_v53  ;;  %1480 = vmatmul.mubr.bf16.vlgmr.msra.gmra.mrb[12].mxu0 %v2351_v41 }
  0xb5   : > { %1946 = vmatmul.mubr.msk.bf16.vlgmr.msra.gmra.mrb[20].mxu1 %vm456_vm4, %v2301_v43 }
 0x124   : > { %v542_v54 = vpop.f32.mrb[0].mxu1 }
 0x125   : > { %v1907_v57 = vpop.f32.mrb[1].mxu1 }
 0x126   : > { %v545_v1 = vpop.f32.mrb[2].mxu1 }
 0x127   : > { %v1908_v2 = vpop.f32.mrb[3].mxu1 }
 0x138   : > { %v1785_v5 = vpop.f32.mrb[0].mxu0 }
 0x139   : > { %v1786_v6 = vpop.f32.mrb[1].mxu0 }
 0x13a   : > { %v1787_v59 = vadd.f32 %v1786_v6, %v1785_v5  ;;  %v1788_v7 = vpop.f32.mrb[2].mxu0  ;;  %v1535_v6 = vrot.slane %v1531_v52, %v1534_v50 }
 0x13b   : > { %v1789_v60 = vpop.f32.mrb[3].mxu0 }
 0x13c   : > { %v543_v10 = vadd.f32 %v1787_v59, %v542_v54  ;;  %v1790_v62 = vadd.f32 %v1789_v60, %v1788_v7  ;;  %v1542_v59 = vsub.s32 1, %v1533_v58 }
 0x13e   : > { %v546_v8 = vadd.f32 %v1790_v62, %v545_v1  ;;  %v1543_v62 = vrot.slane %v1531_v52, %v1542_v59 }
 0x144   : > { %v1811_v0 = vpop.f32.mrb[4].mxu1 }
 0x145   : > { %v1812_v9 = vpop.f32.mrb[5].mxu1 }
 0x146   : > { %v1813_v11 = vadd.f32 %v1812_v9, %v1811_v0  ;;  %v1814_v12 = vpop.f32.mrb[6].mxu1 }
 0x147   : > { %v1815_v41 = vpop.f32.mrb[7].mxu1 }
 0x148   : > { %v1816_v13 = vadd.f32 %v1815_v41, %v1814_v12  ;;  %v704_v16 = vadd.f32 %v1813_v11, %v543_v10 }
 0x14a   : > { %v707_v43 = vadd.f32 %v1816_v13, %v546_v8  ;;  %v1548_v8 = vsub.s32 2, %v1533_v58 }
 0x14c   : > { %v1549_v41 = vrot.slane %v1531_v52, %v1548_v8 }
 0x150   : > { %v744_v17 = vpop.f32.mrb[8].mxu1 }
 0x151   : > { %v745_v18 = vadd.f32 %v744_v17, %v704_v16  ;;  %v1917_v19 = vpop.f32.mrb[9].mxu1 }
 0x152   : > { %v747_v20 = vpop.f32.mrb[10].mxu1 }
 0x153   : > { %v748_v21 = vadd.f32 %v747_v20, %v707_v43  ;;  %v1918_v22 = vpop.f32.mrb[11].mxu1 }
 0x159   : > { %v1837_v23 = vpop.f32.mrb[4].mxu0 }
 0x15a   : > { %v1838_v25 = vpop.f32.mrb[5].mxu0 }
 0x15b   : > { %v1839_v27 = vadd.f32 %v1838_v25, %v1837_v23  ;;  %v1840_v28 = vpop.f32.mrb[6].mxu0 }
 0x15c   : > { %v996_v24 = vpop.f32.mrb[12].mxu1  ;;  %v1841_v30 = vpop.f32.mrb[7].mxu0 }
 0x15d   : > { %v1927_v26 = vpop.f32.mrb[13].mxu1  ;;  %v1842_v55 = vadd.f32 %v1841_v30, %v1840_v28  ;;  %v997_v56 = vadd.f32 %v1839_v27, %v996_v24 }
 0x15e   : > { %v999_v29 = vpop.f32.mrb[14].mxu1 }
 0x15f   : > { %v1928_v31 = vpop.f32.mrb[15].mxu1  ;;  %v1003_v32 = vadd.f32 %v997_v56, %v745_v18  ;;  %v1000_v33 = vadd.f32 %v1842_v55, %v999_v29 }
 0x161   : > { %v1004_v34 = vadd.f32 %v1000_v33, %v748_v21 }
 0x165   : > { %v1268_v45 = vpop.f32.mrb[8].mxu0 }
 0x166   : > { %v1937_v35 = vpop.f32.mrb[9].mxu0 }
 0x167   : > { %v1271_v36 = vpop.f32.mrb[10].mxu0 }
 0x168   : > { %v1938_v37 = vpop.f32.mrb[11].mxu0 }
 0x17c   : > { %v1863_v38 = vpop.f32.mrb[16].mxu1 }
 0x17d   : > { %v1864_v39 = vpop.f32.mrb[17].mxu1 }
 0x17e   : > { %v1865_v40 = vadd.f32 %v1864_v39, %v1863_v38  ;;  %v1866_v42 = vpop.f32.mrb[18].mxu1 }
 0x17f   : > { %v1867_v44 = vpop.f32.mrb[19].mxu1 }
 0x180   : > { %v1269_v46 = vadd.f32 %v1865_v40, %v1268_v45  ;;  %v1868_v47 = vadd.f32 %v1867_v44, %v1866_v42 }
 0x182   : > { %v1272_v48 = vadd.f32 %v1868_v47, %v1271_v36  ;;  %v1275_v61 = vadd.f32 %v1269_v46, %v1003_v32 }
 0x184   : > { %v1276_v63 = vadd.f32 %v1272_v48, %v1004_v34 }
 0x185   : > { %v1889_v4 = vpop.f32.mrb[12].mxu0 }
 0x186   : > { %v1890_v51 = vpop.f32.mrb[13].mxu0 }
 0x187   : > { %v1891_v14 = vadd.f32 %v1890_v51, %v1889_v4  ;;  %v1892_v53 = vpop.f32.mrb[14].mxu0 }
 0x188   : > { %v1522_v49 = vpop.f32.mrb[20].mxu1  ;;  %v1893_v57 = vpop.f32.mrb[15].mxu0 }
 0x189   : > { %v1947_v15 = vpop.f32.mrb[21].mxu1  ;;  %v1894_v2 = vadd.f32 %v1893_v57, %v1892_v53  ;;  %v1523_v5 = vadd.f32 %v1891_v14, %v1522_v49 }
 0x18a   : > { %v1525_v54 = vpop.f32.mrb[22].mxu1 }
 0x18b   : > { %v1948_v1 = vpop.f32.mrb[23].mxu1  ;;  %v1529_v7 = vadd.f32 %v1523_v5, %v1275_v61  ;;  %v1526_v60 = vadd.f32 %v1894_v2, %v1525_v54 }
 0x18d   : > { %v1536_v10 = vadd.f32 %v1535_v6, %v1529_v7  ;;  %v1530_v0 = vadd.f32 %v1526_v60, %v1276_v63 }
 0x18f   : > { %v1538_v9 = vmax.f32 %v1536_v10, 0.0  ;;  %v1537_v11 = vadd.f32 %v1535_v6, %v1530_v0 }
 0x191   : > { %v1544_v12 = vmul.f32 %v1543_v62, %v1538_v9  ;;  %v1539_v13 = vmax.f32 %v1537_v11, 0.0 }
 0x193   : > { %v1545_v16 = vmul.f32 %v1543_v62, %v1539_v13  ;;  %v1550_v43 = vadd.f32 %v1549_v41, %v1544_v12 }
 0x195   : > { %v1551_v17 = vadd.f32 %v1549_v41, %v1545_v16 }
 0x197   : > { %v1767_v18 = vpack.c.bf16 %v1551_v17, %v1550_v43 }
 0x199   : > { %1768 = vst [vmem:[%s198_s24] sm:$0xff] %v1767_v18  }
 0x19a PF: > { %s15_s12 = sadd.s32 1, %s2156_s12  }
 0x19b   : > { %p12_p9 = scmp.ge.s32.totalorder %s15_s12, 4  }
 0x19d   :  { %14 = sbr.rel (!%p12_p9) target bundleno = 2 (0x2), region = 75 }
 0x1a4   :  { %1583 = vsyncpa [#allocation3], 1 }
 0x1a5   :  { %1585 = vsyncpa [#allocation3 + $0x1], 1 }
 0x1a6   :  { %1586 = vsyncpa [#allocation5], 1 }

// kernel: _lambda_.50
= control target key start
LH: loop header
LB: loop body
LE: loop exit
PB: predicated region body
PF: predicated region fallthrough
CT: control target
= control target key end

     0   :  { %8 = vsyncpa [#allocation3], 0  ;;  %s255_s12 = smov [#allocation2]   ;;  %s312_s0 = inlined_call_operand.vmem [shape: bf16[32,64], index: 0, kind: input, shape index: {}]   ;;  %s313_s1 = inlined_call_operand.vmem [shape: bf16[64,128], index: 1, kind: input, shape index: {}]   ;;  %s314_s2 = inlined_call_operand.hbm [shape: f32[3,128], index: 2, kind: input, shape index: {}]   ;;  %s315_s3 = inlined_call_operand.vmem [shape: bf16[32,128], index: 3, kind: output, shape index: {}]  }
   0x1   :  { %s19_s13 = sshll.u32 %s255_s12, 4  ;;  %s231_s16 = scalar_lea.hbm %s314_s2, 64  ;;  %s20_s13 = int_to_ptr.vmem [resolvable:$true] %s19_s13 }
   0x2   :  { %p232_p0 = scmp.ne.s32.totalorder %s314_s2, %s231_s16  ;;  %p235_p1 = scmp.lt.u32.totalorder %s231_s16, %s314_s2 }
   0x4   :  { %p237_p2 = pnand %p235_p1, %p232_p0 }
   0x6   :  { %240 = shalt.err (!%p237_p2)
}
   0x7   :  { %s241_s21 = scalar_lea.vmem %s20_s13, 64  ;;  %p246_p4 = scmp.lt.s32.totalorder %s20_s13, %s20_s13 }
   0x8   :  { %p242_p3 = scmp.ne.s32.totalorder %s20_s13, %s241_s21  ;;  %p247_p5 = scmp.lt.s32.totalorder %s241_s21, %s241_s21 }
   0xa   :  { %p248_p6 = por %p247_p5, %p246_p4 }
   0xc   :  { %p249_p7 = pnand %p248_p6, %p242_p3 }
   0xe   :  { %252 = shalt.err (!%p249_p7)
}
   0xf   :  { %22 = dma.hbm_to_vmem [thread:$0]  %s314_s2, 64, %s20_s13, [#allocation3]  }
  0x10   :  { %253 = dma.done.wait [#allocation3], 64  }
  0x11   :  { %254 = vsyncadd [#allocation3], 4294967232  ;;  %v225_v0 = vld [vmem:[%s313_s1] sm:$0xff]   ;;  %v226_v1 = vld [vmem:[%s313_s1 + $0x8] sm:$0xff]   ;;  %vm78_vm0 = vcmask 523264   ;;  %v40_v6 = vlaneseq }
  0x12   :  { %212 = vmatprep.subr.bf16.mxu0 %v225_v0  ;;  %v227_v2 = vld [vmem:[%s313_s1 + $0x10] sm:$0xff]   ;;  %v229_v3 = vld [vmem:[%s312_s0] sm:$0xff]   ;;  %v228_v4 = vld [vmem:[%s313_s1 + $0x18] sm:$0xff]  }
  0x13   :  { %213 = vmatpush3.bf16.msra.mxu0 %v225_v0  ;;  %220 = vmatprep.mubr.msk.bf16.mxu0 %vm78_vm0, %v229_v3  ;;  %v230_v5 = vld [vmem:[%s312_s0 + $0x8] sm:$0xff]   ;;  %v41_v7 = vshrl.u32 %v40_v6, 7  ;;  %v39_v9 = vld [vmem:[#allocation2] sm:$0x7] }
  0x14   :  { %214 = vmatprep.subr.bf16.mxu0 %v226_v1 }
  0x15   :  { %v42_v8 = vsub.s32 0, %v41_v7  ;;  %v140_v11 = vsub.s32 1, %v41_v7  ;;  %v148_v15 = vsub.s32 2, %v41_v7 }
  0x17   :  { %215 = vmatpush3.bf16.msra.mxu0 %v226_v1  ;;  %v43_v10 = vrot.slane %v39_v9, %v42_v8  ;;  %v141_v14 = vrot.slane %v39_v9, %v140_v11  ;;  %v149_v25 = vrot.slane %v39_v9, %v148_v15 }
  0x18   :  { %216 = vmatprep.subr.bf16.mxu0 %v227_v2 }
  0x1b   :  { %217 = vmatpush3.bf16.msra.mxu0 %v227_v2 }
  0x1c   :  { %218 = vmatprep.subr.bf16.mxu0 %v228_v4 }
  0x1f   :  { %219 = vmatpush3.bf16.msra.mxu0 %v228_v4 }
  0x22   :  { %221 = vmatmul.mubr.msk.bf16.vlgmr.msra.gmra.mrb[0].mxu0 %vm78_vm0, %v230_v5 }
  0xf5   :  { %v222_v12 = vpop.f32.mrb[0].mxu0 }
  0xf6   :  { %v128_v13 = vadd.f32 %v222_v12, %v43_v10  ;;  %v119_v16 = vpop.f32.mrb[1].mxu0 }
  0xf7   :  { %v120_v17 = vadd.f32 %v119_v16, %v43_v10  ;;  %v223_v18 = vpop.f32.mrb[2].mxu0 }
  0xf8   :  { %v136_v19 = vmax.f32 %v128_v13, 0.0  ;;  %v131_v20 = vadd.f32 %v223_v18, %v43_v10  ;;  %v122_v21 = vpop.f32.mrb[3].mxu0 }
  0xf9   :  { %v134_v22 = vmax.f32 %v120_v17, 0.0  ;;  %v123_v23 = vadd.f32 %v122_v21, %v43_v10 }
  0xfa   :  { %v144_v24 = vmul.f32 %v141_v14, %v136_v19  ;;  %v137_v26 = vmax.f32 %v131_v20, 0.0 }
  0xfb   :  { %v142_v27 = vmul.f32 %v141_v14, %v134_v22  ;;  %v135_v28 = vmax.f32 %v123_v23, 0.0 }
  0xfc   :  { %v145_v29 = vmul.f32 %v141_v14, %v137_v26  ;;  %v152_v31 = vadd.f32 %v149_v25, %v144_v24 }
  0xfd   :  { %v143_v30 = vmul.f32 %v141_v14, %v135_v28  ;;  %v150_v33 = vadd.f32 %v149_v25, %v142_v27 }
  0xfe   :  { %v153_v32 = vadd.f32 %v149_v25, %v145_v29 }
  0xff   :  { %v151_v34 = vadd.f32 %v149_v25, %v143_v30 }
 0x100   :  { %v203_v35 = vpack.c.bf16 %v153_v32, %v152_v31 }
 0x101   :  { %v198_v36 = vpack.c.bf16 %v151_v34, %v150_v33 }
 0x102   :  { %205 = vst [vmem:[%s315_s3 + $0x8] sm:$0xff] %v203_v35  }
 0x103   :  { %199 = vst [vmem:[%s315_s3] sm:$0xff] %v198_v36  }
 0x104   :  { %178 = vsyncpa [#allocation3], 1 }

// kernel: _lambda_.42
= control target key start
LH: loop header
LB: loop body
LE: loop exit
PB: predicated region body
PF: predicated region fallthrough
CT: control target
= control target key end

     0   :  { %vm66_vm0 = vcmask 523264   ;;  %v28_v6 = vlaneseq  ;;  %s264_s1 = inlined_call_operand.vmem [shape: bf16[64,128], index: 1, kind: input, shape index: {}]   ;;  %s265_s0 = inlined_call_operand.vmem [shape: bf16[32,64], index: 0, kind: input, shape index: {}]   ;;  %s266_s2 = inlined_call_operand.vmem [shape: f32[3,128], index: 2, kind: input, shape index: {}]   ;;  %s267_s3 = inlined_call_operand.vmem [shape: bf16[32,128], index: 3, kind: output, shape index: {}]  }
   0x1   :  { %v211_v0 = vld [vmem:[%s264_s1] sm:$0xff]   ;;  %v212_v1 = vld [vmem:[%s264_s1 + $0x8] sm:$0xff]   ;;  %v213_v2 = vld [vmem:[%s264_s1 + $0x10] sm:$0xff]  }
   0x2   :  { %199 = vmatprep.subr.bf16.mxu0 %v211_v0  ;;  %v215_v3 = vld [vmem:[%s265_s0] sm:$0xff]   ;;  %v214_v4 = vld [vmem:[%s264_s1 + $0x18] sm:$0xff]   ;;  %v216_v5 = vld [vmem:[%s265_s0 + $0x8] sm:$0xff]   ;;  %v29_v7 = vshrl.u32 %v28_v6, 7 }
   0x3   :  { %200 = vmatpush3.bf16.msra.mxu0 %v211_v0  ;;  %207 = vmatprep.mubr.msk.bf16.mxu0 %vm66_vm0, %v215_v3  ;;  %v27_v9 = vld [vmem:[%s266_s2] sm:$0x7] }
   0x4   :  { %201 = vmatprep.subr.bf16.mxu0 %v212_v1  ;;  %v30_v8 = vsub.s32 0, %v29_v7  ;;  %v128_v11 = vsub.s32 1, %v29_v7  ;;  %v136_v15 = vsub.s32 2, %v29_v7 }
   0x6   :  { %v31_v10 = vrot.slane %v27_v9, %v30_v8  ;;  %v129_v14 = vrot.slane %v27_v9, %v128_v11  ;;  %v137_v25 = vrot.slane %v27_v9, %v136_v15 }
   0x7   :  { %202 = vmatpush3.bf16.msra.mxu0 %v212_v1 }
   0x8   :  { %203 = vmatprep.subr.bf16.mxu0 %v213_v2 }
   0xb   :  { %204 = vmatpush3.bf16.msra.mxu0 %v213_v2 }
   0xc   :  { %205 = vmatprep.subr.bf16.mxu0 %v214_v4 }
   0xf   :  { %206 = vmatpush3.bf16.msra.mxu0 %v214_v4 }
  0x12   :  { %208 = vmatmul.mubr.msk.bf16.vlgmr.msra.gmra.mrb[0].mxu0 %vm66_vm0, %v216_v5 }
  0xe5   :  { %v209_v12 = vpop.f32.mrb[0].mxu0 }
  0xe6   :  { %v116_v13 = vadd.f32 %v209_v12, %v31_v10  ;;  %v107_v16 = vpop.f32.mrb[1].mxu0 }
  0xe7   :  { %v108_v17 = vadd.f32 %v107_v16, %v31_v10  ;;  %v210_v18 = vpop.f32.mrb[2].mxu0 }
  0xe8   :  { %v124_v19 = vmax.f32 %v116_v13, 0.0  ;;  %v119_v20 = vadd.f32 %v210_v18, %v31_v10  ;;  %v110_v21 = vpop.f32.mrb[3].mxu0 }
  0xe9   :  { %v122_v22 = vmax.f32 %v108_v17, 0.0  ;;  %v111_v23 = vadd.f32 %v110_v21, %v31_v10 }
  0xea   :  { %v132_v24 = vmul.f32 %v129_v14, %v124_v19  ;;  %v125_v26 = vmax.f32 %v119_v20, 0.0 }
  0xeb   :  { %v130_v27 = vmul.f32 %v129_v14, %v122_v22  ;;  %v123_v28 = vmax.f32 %v111_v23, 0.0 }
  0xec   :  { %v133_v29 = vmul.f32 %v129_v14, %v125_v26  ;;  %v140_v31 = vadd.f32 %v137_v25, %v132_v24 }
  0xed   :  { %v131_v30 = vmul.f32 %v129_v14, %v123_v28  ;;  %v138_v33 = vadd.f32 %v137_v25, %v130_v27 }
  0xee   :  { %v141_v32 = vadd.f32 %v137_v25, %v133_v29 }
  0xef   :  { %v139_v34 = vadd.f32 %v137_v25, %v131_v30 }
  0xf0   :  { %v190_v35 = vpack.c.bf16 %v141_v32, %v140_v31 }
  0xf1   :  { %v185_v36 = vpack.c.bf16 %v139_v34, %v138_v33 }
  0xf2   :  { %192 = vst [vmem:[%s267_s3 + $0x8] sm:$0xff] %v190_v35  }
  0xf3   :  { %186 = vst [vmem:[%s267_s3] sm:$0xff] %v185_v36  }

// kernel: _lambda_.43
= control target key start
LH: loop header
LB: loop body
LE: loop exit
PB: predicated region body
PF: predicated region fallthrough
CT: control target
= control target key end

     0   :  { %s534_s12 = smov 0   ;;  %s576_s0 = inlined_call_operand.vmem [shape: bf16[2,22,8], index: 0, kind: input, shape index: {}]   ;;  %s577_s1 = inlined_call_operand.vmem [shape: bf16[3,8,128], index: 1, kind: input, shape index: {}]   ;;  %s578_s2 = inlined_call_operand.vmem [shape: f32[3,128], index: 2, kind: input, shape index: {}]   ;;  %s579_s3 = inlined_call_operand.vmem [shape: bf16[2,16,128], index: 3, kind: output, shape index: {}]  }
   0x1 LB: > { %s440_s13 = sadd.s32 4294967295, %s510_s12   ;;  %p444_p0 = scmp.ge.s32.totalorder %s510_s12, 1  ;;  %s510_s12 = sphi %s534_s12, %s13_s12  }
   0x2   : > { %p137_p1 = scmp.lt.s32.totalorder %s510_s12, 3 }
   0x4   : > { %p138_p2 = pnand %p444_p0, %p137_p1 }
   0x5   : > { %v448_v0 = vld [vmem:[%s577_s1 + $0x4] sm:$0xf] (!%p138_p2)  ;;  %vm208_vm0 = vcmask (!%p138_p2), 1043456   ;;  %v175_v1 = vld [vmem:[%s577_s1] sm:$0xf] (!%p138_p2)  ;;  %v512_v2 = vmov (!%p138_p2), 0.0   ;;  %v355_v26 = vlaneseq (!%p138_p2) }
   0x6   : > { %141 = sbr.rel (%p138_p2) target bundleno = 260 (0x104), region = 32  ;;  %473 = vmatprep.subr.bf16.mxu0 (!%p138_p2), %v512_v2  ;;  %v210_v3 = vsel (!%p138_p2), %vm208_vm0, %v448_v0, 0  ;;  %479 = vmatprep.subr.bf16.mxu1 (!%p138_p2), %v512_v2  ;;  %v256_v4 = vsel (!%p138_p2), %vm208_vm0, %v175_v1, 0  ;;  %p161_p3 = scmp.lt.s32.totalorder (!%p138_p2), %s440_s13, 1  ;;  %vm513_vm1 = vmmov (!%p138_p2), 0   ;;  %vm204_vm2 = vcmask (!%p138_p2), 64512  }
   0x7   : > { %474 = vmatpush3.bf16.msra.mxu0 (!%p138_p2), %v210_v3  ;;  %480 = vmatpush3.bf16.msra.mxu1 (!%p138_p2), %v256_v4  ;;  %v453_v15 = vld [vmem:[%s577_s1 + $0x8] sm:$0xf] (!%p138_p2)  ;;  %vm186_vm3 = vsmask.f32 (!%p138_p2), 6400  ;;  %vm301_vm4 = vcmask (!%p138_p2), 1044480   ;;  %v356_v28 = vshrl.u32 (!%p138_p2), %v355_v26, 7 }
   0x8   : > { %475 = vmatprep.mubr.msk.bf16.mxu0 (!%p138_p2), %vm513_vm1, %v512_v2  ;;  %481 = vmatprep.mubr.msk.bf16.mxu1 (!%p138_p2), %vm513_vm1, %v512_v2  ;;  %v309_v18 = vsel (!%p138_p2), %vm208_vm0, %v453_v15, 0  ;;  %v354_v36 = vld [vmem:[%s578_s2] sm:$0x7] (!%p138_p2) }
   0x9   : > { %485 = vmatprep.subr.bf16.mxu0 (!%p138_p2), %v512_v2  ;;  %v357_v35 = vsub.s32 (!%p138_p2), 0, %v356_v28  ;;  %v365_v38 = vsub.s32 (!%p138_p2), 1, %v356_v28  ;;  %v371_v45 = vsub.s32 (!%p138_p2), 2, %v356_v28 }
   0xb   : > { %v358_v37 = vrot.slane (!%p138_p2), %v354_v36, %v357_v35  ;;  %v366_v44 = vrot.slane (!%p138_p2), %v354_v36, %v365_v38  ;;  %v372_v51 = vrot.slane (!%p138_p2), %v354_v36, %v371_v45 }
   0xd   : > { %s581_s13 = smov (!%p161_p3, %s440_s13), 1 }
   0xe   : > { %s491_s18 = smul.u32 12, %s581_s13  ;;  %s459_s26 = sshll.u32 %s581_s13, 3 }
   0xf   : > { %s170_s29 = scalar_lea.vmem %s579_s3, %s459_s26 }
  0x10   : > { %s165_s21 = scalar_lea.vmem %s576_s0, %s491_s18 }
  0x11   : > { %v502_v5 = vld [vmem:[%s165_s21] sm:$0xff]   ;;  %v503_v6 = vld [vmem:[%s165_s21 + $0x8] ss:$0 sps:$4 sm:$0x77]  }
  0x12   : > { %v188_v7 = vshrl.u32 %v502_v5, 16  ;;  %v191_v8 = vshll.u32 %v502_v5, 16  ;;  %v196_v9 = vshrl.u32 %v503_v6, 16  ;;  %v199_v10 = vshll.u32 %v503_v6, 16  ;;  %482 = vmatmul.mubr.msk.bf16.vlgmr.msra.gmra.mrb[0].mxu1 %vm204_vm2, %v502_v5 }
  0x13   : > { %v302_v20 = vrot.slane %v502_v5, 3  ;;  %v303_v21 = vrot.slane %v503_v6, 3 }
  0x14   : > { %v190_v11 = vrot.slane %v188_v7, 1  ;;  %v193_v12 = vrot.slane %v191_v8, 2  ;;  %v198_v13 = vrot.slane %v196_v9, 1  ;;  %v201_v14 = vrot.slane %v199_v10, 2 }
  0x15   : > { %v304_v22 = vsel %vm301_vm4, %v302_v20, %v303_v21 }
  0x16   : > { %v194_v16 = vor.u32 %v193_v12, %v190_v11  ;;  %v202_v17 = vor.u32 %v201_v14, %v198_v13 }
  0x18   : > { %v203_v19 = vsel %vm186_vm3, %v194_v16, %v202_v17 }
  0x19   : > { %476 = vmatmul.mubr.msk.bf16.vlgmr.msra.gmra.mrb[0].mxu0 %vm204_vm2, %v203_v19 }
  0x1a   : > { %486 = vmatpush3.bf16.msra.mxu0 %v309_v18  ;;  %487 = vmatprep.mubr.msk.bf16.mxu0 %vm513_vm1, %v512_v2 }
  0x21   : > { %488 = vmatmul.mubr.msk.bf16.vlgmr.msra.gmra.mrb[4].mxu0 %vm204_vm2, %v304_v22 }
  0xe5   : > { %v292_v23 = vpop.f32.mrb[0].mxu1 }
  0xe6   : > { %v483_v24 = vpop.f32.mrb[1].mxu1 }
  0xe7   : > { %v295_v25 = vpop.f32.mrb[2].mxu1 }
  0xe8   : > { %v484_v27 = vpop.f32.mrb[3].mxu1 }
  0xec   : > { %v246_v29 = vpop.f32.mrb[0].mxu0 }
  0xed   : > { %v293_v30 = vadd.f32 %v292_v23, %v246_v29  ;;  %v477_v31 = vpop.f32.mrb[1].mxu0 }
  0xee   : > { %v249_v32 = vpop.f32.mrb[2].mxu0 }
  0xef   : > { %v296_v33 = vadd.f32 %v295_v25, %v249_v32  ;;  %v478_v34 = vpop.f32.mrb[3].mxu0 }
  0xf4   : > { %v345_v39 = vpop.f32.mrb[4].mxu0 }
  0xf5   : > { %v352_v40 = vadd.f32 %v345_v39, %v293_v30  ;;  %v489_v41 = vpop.f32.mrb[5].mxu0 }
  0xf6   : > { %v348_v42 = vpop.f32.mrb[6].mxu0 }
  0xf7   : > { %v359_v43 = vadd.f32 %v358_v37, %v352_v40  ;;  %v353_v46 = vadd.f32 %v348_v42, %v296_v33  ;;  %v490_v47 = vpop.f32.mrb[7].mxu0 }
  0xf9   : > { %v361_v48 = vmax.f32 %v359_v43, 0.0  ;;  %v360_v49 = vadd.f32 %v358_v37, %v353_v46 }
  0xfb   : > { %v367_v50 = vmul.f32 %v366_v44, %v361_v48  ;;  %v362_v52 = vmax.f32 %v360_v49, 0.0 }
  0xfd   : > { %v368_v53 = vmul.f32 %v366_v44, %v362_v52  ;;  %v373_v54 = vadd.f32 %v372_v51, %v367_v50 }
  0xff   : > { %v374_v55 = vadd.f32 %v372_v51, %v368_v53 }
 0x101   : > { %v465_v56 = vpack.c.bf16 %v374_v55, %v373_v54 }
 0x103   : > { %466 = vst [vmem:[%s170_s29] sm:$0xff] %v465_v56  }
 0x104 PF: > { %s13_s12 = sadd.s32 1, %s510_s12  }
 0x105   : > { %p10_p4 = scmp.ge.s32.totalorder %s13_s12, 4  }
 0x107   :  { %12 = sbr.rel (!%p10_p4) target bundleno = 1 (0x1), region = 64 }

// kernel: _lambda_.52
= control target key start
LH: loop header
LB: loop body
LE: loop exit
PB: predicated region body
PF: predicated region fallthrough
CT: control target
= control target key end

     0   :  { %s520_s12 = smov 0   ;;  %s562_s0 = inlined_call_operand.vmem [shape: bf16[2,24,8], index: 0, kind: input, shape index: {}]   ;;  %s563_s1 = inlined_call_operand.vmem [shape: bf16[3,8,128], index: 1, kind: input, shape index: {}]   ;;  %s564_s2 = inlined_call_operand.vmem [shape: f32[3,128], index: 2, kind: input, shape index: {}]   ;;  %s565_s3 = inlined_call_operand.vmem [shape: bf16[2,16,128], index: 3, kind: output, shape index: {}]  }
   0x1 LB: > { %s424_s13 = sadd.s32 4294967295, %s496_s12   ;;  %p428_p0 = scmp.ge.s32.totalorder %s496_s12, 1  ;;  %s496_s12 = sphi %s520_s12, %s13_s12  }
   0x2   : > { %p137_p1 = scmp.lt.s32.totalorder %s496_s12, 3 }
   0x4   : > { %p138_p2 = pnand %p428_p0, %p137_p1 }
   0x5   : > { %v432_v0 = vld [vmem:[%s563_s1 + $0x4] sm:$0xf] (!%p138_p2)  ;;  %vm194_vm0 = vcmask (!%p138_p2), 1043456   ;;  %v175_v1 = vld [vmem:[%s563_s1] sm:$0xf] (!%p138_p2)  ;;  %v498_v2 = vmov (!%p138_p2), 0.0   ;;  %v339_v16 = vlaneseq (!%p138_p2) }
   0x6   : > { %141 = sbr.rel (%p138_p2) target bundleno = 258 (0x102), region = 32  ;;  %458 = vmatprep.subr.bf16.mxu0 (!%p138_p2), %v498_v2  ;;  %v196_v3 = vsel (!%p138_p2), %vm194_vm0, %v432_v0, 0  ;;  %464 = vmatprep.subr.bf16.mxu1 (!%p138_p2), %v498_v2  ;;  %v243_v4 = vsel (!%p138_p2), %vm194_vm0, %v175_v1, 0  ;;  %p161_p3 = scmp.lt.s32.totalorder (!%p138_p2), %s424_s13, 1  ;;  %vm499_vm1 = vmmov (!%p138_p2), 0   ;;  %vm190_vm2 = vcmask (!%p138_p2), 64512  }
   0x7   : > { %459 = vmatpush3.bf16.msra.mxu0 (!%p138_p2), %v196_v3  ;;  %465 = vmatpush3.bf16.msra.mxu1 (!%p138_p2), %v243_v4  ;;  %v437_v10 = vld [vmem:[%s563_s1 + $0x8] sm:$0xf] (!%p138_p2)  ;;  %vm186_vm3 = vcmask (!%p138_p2), 1045504   ;;  %v340_v20 = vshrl.u32 (!%p138_p2), %v339_v16, 7  ;;  %v338_v29 = vld [vmem:[%s564_s2] sm:$0x7] (!%p138_p2) }
   0x8   : > { %460 = vmatprep.mubr.msk.bf16.mxu0 (!%p138_p2), %vm499_vm1, %v498_v2  ;;  %466 = vmatprep.mubr.msk.bf16.mxu1 (!%p138_p2), %vm499_vm1, %v498_v2  ;;  %v293_v13 = vsel (!%p138_p2), %vm194_vm0, %v437_v10, 0 }
   0x9   : > { %470 = vmatprep.subr.bf16.mxu0 (!%p138_p2), %v498_v2  ;;  %v341_v28 = vsub.s32 (!%p138_p2), 0, %v340_v20  ;;  %v349_v31 = vsub.s32 (!%p138_p2), 1, %v340_v20  ;;  %v355_v38 = vsub.s32 (!%p138_p2), 2, %v340_v20 }
   0xb   : > { %v342_v30 = vrot.slane (!%p138_p2), %v338_v29, %v341_v28  ;;  %v350_v37 = vrot.slane (!%p138_p2), %v338_v29, %v349_v31  ;;  %v356_v44 = vrot.slane (!%p138_p2), %v338_v29, %v355_v38 }
   0xd   : > { %s567_s13 = smov (!%p161_p3, %s424_s13), 1 }
   0xe   : > { %s476_s18 = smul.u32 12, %s567_s13  ;;  %s444_s26 = sshll.u32 %s567_s13, 3 }
   0xf   : > { %s170_s29 = scalar_lea.vmem %s565_s3, %s444_s26 }
  0x10   : > { %s165_s21 = scalar_lea.vmem %s562_s0, %s476_s18 }
  0x11   : > { %v172_v5 = vld [vmem:[%s165_s21] sm:$0xf]  ;;  %v173_v6 = vld [vmem:[%s165_s21 + $0x4] sm:$0xf]  ;;  %v174_v7 = vld [vmem:[%s165_s21 + $0x8] sm:$0xf] }
  0x12   : > { %v433_v8 = vcombine.low %v172_v5, %v173_v6  ;;  %v434_v9 = vcombine.low %v174_v7, %v174_v7  ;;  %v438_v15 = vcombine.low %v173_v6, %v174_v7 }
  0x14   : > { %v187_v11 = vrot.slane %v433_v8, 2  ;;  %v188_v12 = vrot.slane %v434_v9, 2  ;;  %467 = vmatmul.mubr.msk.bf16.vlgmr.msra.gmra.mrb[0].mxu1 %vm190_vm2, %v433_v8 }
  0x16   : > { %v189_v14 = vsel %vm186_vm3, %v187_v11, %v188_v12 }
  0x17   : > { %461 = vmatmul.mubr.msk.bf16.vlgmr.msra.gmra.mrb[0].mxu0 %vm190_vm2, %v189_v14 }
  0x18   : > { %471 = vmatpush3.bf16.msra.mxu0 %v293_v13  ;;  %472 = vmatprep.mubr.msk.bf16.mxu0 %vm499_vm1, %v498_v2 }
  0x1f   : > { %473 = vmatmul.mubr.msk.bf16.vlgmr.msra.gmra.mrb[4].mxu0 %vm190_vm2, %v438_v15 }
  0xe7   : > { %v279_v17 = vpop.f32.mrb[0].mxu1 }
  0xe8   : > { %v468_v18 = vpop.f32.mrb[1].mxu1 }
  0xe9   : > { %v282_v19 = vpop.f32.mrb[2].mxu1 }
  0xea   : > { %v232_v21 = vpop.f32.mrb[0].mxu0  ;;  %v469_v22 = vpop.f32.mrb[3].mxu1 }
  0xeb   : > { %v280_v23 = vadd.f32 %v279_v17, %v232_v21  ;;  %v462_v24 = vpop.f32.mrb[1].mxu0 }
  0xec   : > { %v235_v25 = vpop.f32.mrb[2].mxu0 }
  0xed   : > { %v283_v26 = vadd.f32 %v282_v19, %v235_v25  ;;  %v463_v27 = vpop.f32.mrb[3].mxu0 }
  0xf2   : > { %v329_v32 = vpop.f32.mrb[4].mxu0 }
  0xf3   : > { %v336_v33 = vadd.f32 %v329_v32, %v280_v23  ;;  %v474_v34 = vpop.f32.mrb[5].mxu0 }
  0xf4   : > { %v332_v35 = vpop.f32.mrb[6].mxu0 }
  0xf5   : > { %v343_v36 = vadd.f32 %v342_v30, %v336_v33  ;;  %v337_v39 = vadd.f32 %v332_v35, %v283_v26  ;;  %v475_v40 = vpop.f32.mrb[7].mxu0 }
  0xf7   : > { %v345_v41 = vmax.f32 %v343_v36, 0.0  ;;  %v344_v42 = vadd.f32 %v342_v30, %v337_v39 }
  0xf9   : > { %v351_v43 = vmul.f32 %v350_v37, %v345_v41  ;;  %v346_v45 = vmax.f32 %v344_v42, 0.0 }
  0xfb   : > { %v352_v46 = vmul.f32 %v350_v37, %v346_v45  ;;  %v357_v47 = vadd.f32 %v356_v44, %v351_v43 }
  0xfd   : > { %v358_v48 = vadd.f32 %v356_v44, %v352_v46 }
  0xff   : > { %v450_v49 = vpack.c.bf16 %v358_v48, %v357_v47 }
 0x101   : > { %451 = vst [vmem:[%s170_s29] sm:$0xff] %v450_v49  }
 0x102 PF: > { %s13_s12 = sadd.s32 1, %s496_s12  }
 0x103   : > { %p10_p4 = scmp.ge.s32.totalorder %s13_s12, 4  }
 0x105   :  { %12 = sbr.rel (!%p10_p4) target bundleno = 1 (0x1), region = 64 }

// kernel: _lambda_.60
= control target key start
LH: loop header
LB: loop body
LE: loop exit
PB: predicated region body
PF: predicated region fallthrough
CT: control target
= control target key end

     0   :  { %vm1021_vm0 = vcmask 523264   ;;  %s3206_s1 = inlined_call_operand.vmem [shape: bf16[192,1536], index: 1, kind: input, shape index: {}]   ;;  %s3207_s0 = inlined_call_operand.vmem [shape: bf16[32,192], index: 0, kind: input, shape index: {}]   ;;  %s3208_s2 = inlined_call_operand.vmem [shape: f32[3,1536], index: 2, kind: input, shape index: {}]   ;;  %s3209_s3 = inlined_call_operand.vmem [shape: bf16[32,1536], index: 3, kind: output, shape index: {}]  }
   0x1   :  { %v2086_v0 = vld [vmem:[%s3206_s1 + $0x4] ss:$48 sps:$4 sm:$0xff]   ;;  %v2088_v1 = vld [vmem:[%s3206_s1 + $0xc] ss:$48 sps:$4 sm:$0xff]   ;;  %v2090_v2 = vld [vmem:[%s3206_s1] ss:$48 sps:$4 sm:$0xff]  }
   0x2   :  { %1028 = vmatprep.subr.bf16.mxu0 %v2086_v0  ;;  %v2091_v3 = vld [vmem:[%s3206_s1 + $0x8] ss:$48 sps:$4 sm:$0xff]   ;;  %1081 = vmatprep.subr.bf16.mxu1 %v2088_v1  ;;  %v2092_v4 = vld [vmem:[%s3206_s1 + $0x64] ss:$48 sps:$4 sm:$0xff]   ;;  %v2094_v5 = vld [vmem:[%s3206_s1 + $0x6c] ss:$48 sps:$4 sm:$0xff]  }
   0x3   :  { %1029 = vmatpush1.bf16.msra.mxu0 %v2090_v2  ;;  %1082 = vmatpush1.bf16.msra.mxu1 %v2091_v3  ;;  %v2096_v6 = vld [vmem:[%s3206_s1 + $0x60] ss:$48 sps:$4 sm:$0xff]   ;;  %v2097_v7 = vld [vmem:[%s3206_s1 + $0x68] ss:$48 sps:$4 sm:$0xff]   ;;  %v2098_v8 = vld [vmem:[%s3206_s1 + $0xc4] ss:$48 sps:$4 sm:$0xff]  }
   0x4   :  { %1030 = vmatprep.subr.bf16.mxu0 %v2092_v4  ;;  %1083 = vmatprep.subr.bf16.mxu1 %v2094_v5  ;;  %v2100_v9 = vld [vmem:[%s3206_s1 + $0xcc] ss:$48 sps:$4 sm:$0xff]   ;;  %v2102_v10 = vld [vmem:[%s3206_s1 + $0xc0] ss:$48 sps:$4 sm:$0xff]   ;;  %v2103_v11 = vld [vmem:[%s3206_s1 + $0xc8] ss:$48 sps:$4 sm:$0xff]  }
   0x5   :  { %v2104_v12 = vld [vmem:[%s3206_s1 + $0x124] ss:$48 sps:$4 sm:$0xff]   ;;  %v2106_v13 = vld [vmem:[%s3206_s1 + $0x12c] ss:$48 sps:$4 sm:$0xff]   ;;  %v2108_v14 = vld [vmem:[%s3206_s1 + $0x120] ss:$48 sps:$4 sm:$0xff]  }
   0x6   :  { %v2109_v15 = vld [vmem:[%s3206_s1 + $0x128] ss:$48 sps:$4 sm:$0xff]   ;;  %v2110_v16 = vld [vmem:[%s3206_s1 + $0x184] ss:$48 sps:$4 sm:$0xff]   ;;  %v2112_v17 = vld [vmem:[%s3206_s1 + $0x18c] ss:$48 sps:$4 sm:$0xff]  }
   0x7   :  { %1031 = vmatpush1.bf16.msra.mxu0 %v2096_v6  ;;  %1084 = vmatpush1.bf16.msra.mxu1 %v2097_v7  ;;  %v2114_v18 = vld [vmem:[%s3206_s1 + $0x180] ss:$48 sps:$4 sm:$0xff]   ;;  %v2115_v19 = vld [vmem:[%s3206_s1 + $0x188] ss:$48 sps:$4 sm:$0xff]   ;;  %v2116_v20 = vld [vmem:[%s3206_s1 + $0x1e4] ss:$48 sps:$4 sm:$0xff]  }
   0x8   :  { %1032 = vmatprep.subr.bf16.mxu0 %v2098_v8  ;;  %1085 = vmatprep.subr.bf16.mxu1 %v2100_v9  ;;  %v2118_v21 = vld [vmem:[%s3206_s1 + $0x1ec] ss:$48 sps:$4 sm:$0xff]   ;;  %v2120_v22 = vld [vmem:[%s3206_s1 + $0x1e0] ss:$48 sps:$4 sm:$0xff]   ;;  %v2121_v23 = vld [vmem:[%s3206_s1 + $0x1e8] ss:$48 sps:$4 sm:$0xff]  }
   0x9   :  { %v2122_v24 = vld [vmem:[%s3206_s1 + $0x244] ss:$48 sps:$4 sm:$0xff]   ;;  %v2124_v25 = vld [vmem:[%s3206_s1 + $0x24c] ss:$48 sps:$4 sm:$0xff]   ;;  %v2126_v26 = vld [vmem:[%s3206_s1 + $0x240] ss:$48 sps:$4 sm:$0xff]  }
   0xa   :  { %v2127_v27 = vld [vmem:[%s3206_s1 + $0x248] ss:$48 sps:$4 sm:$0xff]   ;;  %v2128_v28 = vld [vmem:[%s3206_s1 + $0x2a4] ss:$48 sps:$4 sm:$0xff]   ;;  %v2130_v29 = vld [vmem:[%s3206_s1 + $0x2ac] ss:$48 sps:$4 sm:$0xff]  }
   0xb   :  { %1033 = vmatpush1.bf16.msra.mxu0 %v2102_v10  ;;  %1086 = vmatpush1.bf16.msra.mxu1 %v2103_v11  ;;  %v2132_v30 = vld [vmem:[%s3206_s1 + $0x2a0] ss:$48 sps:$4 sm:$0xff]   ;;  %v2133_v31 = vld [vmem:[%s3206_s1 + $0x2a8] ss:$48 sps:$4 sm:$0xff]   ;;  %v2134_v32 = vld [vmem:[%s3206_s1 + $0x304] ss:$48 sps:$4 sm:$0xff]  }
   0xc   :  { %1034 = vmatprep.subr.bf16.mxu0 %v2104_v12  ;;  %1087 = vmatprep.subr.bf16.mxu1 %v2106_v13  ;;  %v2136_v33 = vld [vmem:[%s3206_s1 + $0x30c] ss:$48 sps:$4 sm:$0xff]   ;;  %v2138_v34 = vld [vmem:[%s3206_s1 + $0x300] ss:$48 sps:$4 sm:$0xff]   ;;  %v2139_v35 = vld [vmem:[%s3206_s1 + $0x308] ss:$48 sps:$4 sm:$0xff]  }
   0xd   :  { %v2140_v36 = vld [vmem:[%s3206_s1 + $0x364] ss:$48 sps:$4 sm:$0xff]   ;;  %v2142_v38 = vld [vmem:[%s3206_s1 + $0x36c] ss:$48 sps:$4 sm:$0xff]   ;;  %v2144_v39 = vld [vmem:[%s3206_s1 + $0x360] ss:$48 sps:$4 sm:$0xff]  }
   0xe   :  { %v2442_v37 = vld [vmem:[%s3207_s0 + $0x4] ss:$8 sps:$4 sm:$0xff]   ;;  %v2145_v40 = vld [vmem:[%s3206_s1 + $0x368] ss:$48 sps:$4 sm:$0xff]   ;;  %v2150_v43 = vld [vmem:[%s3206_s1 + $0x3c0] ss:$48 sps:$4 sm:$0xff]  }
   0xf   :  { %1035 = vmatpush1.bf16.msra.mxu0 %v2108_v14  ;;  %1088 = vmatpush1.bf16.msra.mxu1 %v2109_v15  ;;  %v2146_v41 = vld [vmem:[%s3206_s1 + $0x3c4] ss:$48 sps:$4 sm:$0xff]   ;;  %v2148_v42 = vld [vmem:[%s3206_s1 + $0x3cc] ss:$48 sps:$4 sm:$0xff]   ;;  %v2151_v44 = vld [vmem:[%s3206_s1 + $0x3c8] ss:$48 sps:$4 sm:$0xff]  }
  0x10   :  { %1036 = vmatprep.subr.bf16.mxu0 %v2110_v16  ;;  %1089 = vmatprep.subr.bf16.mxu1 %v2112_v17  ;;  %v2152_v45 = vld [vmem:[%s3206_s1 + $0x424] ss:$48 sps:$4 sm:$0xff]   ;;  %v2154_v46 = vld [vmem:[%s3206_s1 + $0x42c] ss:$48 sps:$4 sm:$0xff]   ;;  %v2156_v47 = vld [vmem:[%s3206_s1 + $0x420] ss:$48 sps:$4 sm:$0xff]  }
  0x11   :  { %2026 = vmatprep.mubr.msk.bf16.mxu0 %vm1021_vm0, %v2442_v37  ;;  %2028 = vmatprep.mubr.msk.bf16.mxu1 %vm1021_vm0, %v2442_v37  ;;  %v2157_v48 = vld [vmem:[%s3206_s1 + $0x428] ss:$48 sps:$4 sm:$0xff]   ;;  %v2163_v49 = vld [vmem:[%s3206_s1 + $0x14] ss:$48 sps:$4 sm:$0xff]   ;;  %v2166_v50 = vld [vmem:[%s3206_s1 + $0x1c] ss:$48 sps:$4 sm:$0xff]  }
  0x12   :  { %v2490_v51 = vld [vmem:[%s3207_s0] ss:$8 sps:$4 sm:$0xff]   ;;  %v2169_v54 = vld [vmem:[%s3206_s1 + $0x74] ss:$48 sps:$4 sm:$0xff]   ;;  %v2172_v55 = vld [vmem:[%s3206_s1 + $0x7c] ss:$48 sps:$4 sm:$0xff]  }
  0x13   :  { %1037 = vmatpush1.bf16.msra.mxu0 %v2114_v18  ;;  %1090 = vmatpush1.bf16.msra.mxu1 %v2115_v19  ;;  %v2161_v52 = vld [vmem:[%s3206_s1 + $0x10] ss:$48 sps:$4 sm:$0xff]   ;;  %v2164_v53 = vld [vmem:[%s3206_s1 + $0x18] ss:$48 sps:$4 sm:$0xff]   ;;  %v2175_v58 = vld [vmem:[%s3206_s1 + $0xd4] ss:$48 sps:$4 sm:$0xff]  }
  0x14   :  { %1038 = vmatprep.subr.bf16.mxu0 %v2116_v20  ;;  %1091 = vmatprep.subr.bf16.mxu1 %v2118_v21  ;;  %v2167_v56 = vld [vmem:[%s3206_s1 + $0x70] ss:$48 sps:$4 sm:$0xff]   ;;  %v2170_v57 = vld [vmem:[%s3206_s1 + $0x78] ss:$48 sps:$4 sm:$0xff]   ;;  %v2178_v59 = vld [vmem:[%s3206_s1 + $0xdc] ss:$48 sps:$4 sm:$0xff]  }
  0x15   :  { %v2173_v60 = vld [vmem:[%s3206_s1 + $0xd0] ss:$48 sps:$4 sm:$0xff]   ;;  %v2176_v61 = vld [vmem:[%s3206_s1 + $0xd8] ss:$48 sps:$4 sm:$0xff]   ;;  %v2181_v62 = vld [vmem:[%s3206_s1 + $0x134] ss:$48 sps:$4 sm:$0xff]  }
  0x16   :  { %v2184_v63 = vld [vmem:[%s3206_s1 + $0x13c] ss:$48 sps:$4 sm:$0xff]   ;;  %v2179_v0 = vld [vmem:[%s3206_s1 + $0x130] ss:$48 sps:$4 sm:$0xff]   ;;  %v2182_v1 = vld [vmem:[%s3206_s1 + $0x138] ss:$48 sps:$4 sm:$0xff]  }
  0x17   :  { %1039 = vmatpush1.bf16.msra.mxu0 %v2120_v22  ;;  %1092 = vmatpush1.bf16.msra.mxu1 %v2121_v23  ;;  %v2187_v2 = vld [vmem:[%s3206_s1 + $0x194] ss:$48 sps:$4 sm:$0xff]   ;;  %v2190_v3 = vld [vmem:[%s3206_s1 + $0x19c] ss:$48 sps:$4 sm:$0xff]   ;;  %v2550_v5 = vld [vmem:[%s3207_s0 + $0x10] ss:$8 sps:$4 sm:$0xff]  }
  0x18   :  { %1040 = vmatprep.subr.bf16.mxu0 %v2122_v24  ;;  %1093 = vmatprep.subr.bf16.mxu1 %v2124_v25  ;;  %v2545_v4 = vld [vmem:[%s3207_s0 + $0x14] ss:$8 sps:$4 sm:$0xff]   ;;  %v2185_v6 = vld [vmem:[%s3206_s1 + $0x190] ss:$48 sps:$4 sm:$0xff]   ;;  %v2188_v7 = vld [vmem:[%s3206_s1 + $0x198] ss:$48 sps:$4 sm:$0xff]  }
  0x19   :  { %v2193_v8 = vld [vmem:[%s3206_s1 + $0x1f4] ss:$48 sps:$4 sm:$0xff]   ;;  %v2196_v9 = vld [vmem:[%s3206_s1 + $0x1fc] ss:$48 sps:$4 sm:$0xff]   ;;  %v2191_v10 = vld [vmem:[%s3206_s1 + $0x1f0] ss:$48 sps:$4 sm:$0xff]  }
  0x1a   :  { %v2194_v11 = vld [vmem:[%s3206_s1 + $0x1f8] ss:$48 sps:$4 sm:$0xff]   ;;  %v2199_v12 = vld [vmem:[%s3206_s1 + $0x254] ss:$48 sps:$4 sm:$0xff]   ;;  %v2202_v13 = vld [vmem:[%s3206_s1 + $0x25c] ss:$48 sps:$4 sm:$0xff]  }
  0x1b   :  { %1041 = vmatpush1.bf16.msra.mxu0 %v2126_v26  ;;  %1094 = vmatpush1.bf16.msra.mxu1 %v2127_v27  ;;  %v2197_v14 = vld [vmem:[%s3206_s1 + $0x250] ss:$48 sps:$4 sm:$0xff]   ;;  %v2200_v15 = vld [vmem:[%s3206_s1 + $0x258] ss:$48 sps:$4 sm:$0xff]   ;;  %v2205_v16 = vld [vmem:[%s3206_s1 + $0x2b4] ss:$48 sps:$4 sm:$0xff]  }
  0x1c   :  { %1042 = vmatprep.subr.bf16.mxu0 %v2128_v28  ;;  %1095 = vmatprep.subr.bf16.mxu1 %v2130_v29  ;;  %v2208_v17 = vld [vmem:[%s3206_s1 + $0x2bc] ss:$48 sps:$4 sm:$0xff]   ;;  %v2203_v18 = vld [vmem:[%s3206_s1 + $0x2b0] ss:$48 sps:$4 sm:$0xff]   ;;  %v2206_v19 = vld [vmem:[%s3206_s1 + $0x2b8] ss:$48 sps:$4 sm:$0xff]  }
  0x1d   :  { %v2211_v20 = vld [vmem:[%s3206_s1 + $0x314] ss:$48 sps:$4 sm:$0xff]   ;;  %v2214_v21 = vld [vmem:[%s3206_s1 + $0x31c] ss:$48 sps:$4 sm:$0xff]   ;;  %v2209_v22 = vld [vmem:[%s3206_s1 + $0x310] ss:$48 sps:$4 sm:$0xff]  }
  0x1e   :  { %v2212_v23 = vld [vmem:[%s3206_s1 + $0x318] ss:$48 sps:$4 sm:$0xff]   ;;  %v2217_v24 = vld [vmem:[%s3206_s1 + $0x374] ss:$48 sps:$4 sm:$0xff]   ;;  %v2220_v25 = vld [vmem:[%s3206_s1 + $0x37c] ss:$48 sps:$4 sm:$0xff]  }
  0x1f   :  { %1043 = vmatpush1.bf16.msra.mxu0 %v2132_v30  ;;  %1096 = vmatpush1.bf16.msra.mxu1 %v2133_v31  ;;  %v2215_v26 = vld [vmem:[%s3206_s1 + $0x370] ss:$48 sps:$4 sm:$0xff]   ;;  %v2218_v27 = vld [vmem:[%s3206_s1 + $0x378] ss:$48 sps:$4 sm:$0xff]   ;;  %v2226_v28 = vld [vmem:[%s3206_s1 + $0x3d4] ss:$48 sps:$4 sm:$0xff]  }
  0x20   :  { %1044 = vmatprep.subr.bf16.mxu0 %v2134_v32  ;;  %1097 = vmatprep.subr.bf16.mxu1 %v2136_v33  ;;  %v2229_v29 = vld [vmem:[%s3206_s1 + $0x3dc] ss:$48 sps:$4 sm:$0xff]   ;;  %v2224_v30 = vld [vmem:[%s3206_s1 + $0x3d0] ss:$48 sps:$4 sm:$0xff]   ;;  %v2227_v31 = vld [vmem:[%s3206_s1 + $0x3d8] ss:$48 sps:$4 sm:$0xff]  }
  0x21   :  { %v2232_v32 = vld [vmem:[%s3206_s1 + $0x434] ss:$48 sps:$4 sm:$0xff]   ;;  %v2235_v33 = vld [vmem:[%s3206_s1 + $0x43c] ss:$48 sps:$4 sm:$0xff]  }
  0x23   :  { %1045 = vmatpush1.bf16.msra.mxu0 %v2138_v34  ;;  %1098 = vmatpush1.bf16.msra.mxu1 %v2139_v35  ;;  %v2230_v34 = vld [vmem:[%s3206_s1 + $0x430] ss:$48 sps:$4 sm:$0xff]   ;;  %v2233_v35 = vld [vmem:[%s3206_s1 + $0x438] ss:$48 sps:$4 sm:$0xff]  }
  0x24   :  { %1046 = vmatprep.subr.bf16.mxu0 %v2140_v36  ;;  %1099 = vmatprep.subr.bf16.mxu1 %v2142_v38  ;;  %v2238_v36 = vld [vmem:[%s3206_s1 + $0x24] ss:$48 sps:$4 sm:$0xff]   ;;  %v2241_v38 = vld [vmem:[%s3206_s1 + $0x2c] ss:$48 sps:$4 sm:$0xff]  }
  0x27   :  { %1047 = vmatpush1.bf16.msra.mxu0 %v2144_v39  ;;  %1100 = vmatpush1.bf16.msra.mxu1 %v2145_v40  ;;  %v2236_v39 = vld [vmem:[%s3206_s1 + $0x20] ss:$48 sps:$4 sm:$0xff]   ;;  %v2239_v40 = vld [vmem:[%s3206_s1 + $0x28] ss:$48 sps:$4 sm:$0xff]  }
  0x28   :  { %1048 = vmatprep.subr.bf16.mxu0 %v2146_v41  ;;  %1101 = vmatprep.subr.bf16.mxu1 %v2148_v42  ;;  %v2244_v41 = vld [vmem:[%s3206_s1 + $0x84] ss:$48 sps:$4 sm:$0xff]   ;;  %v2247_v42 = vld [vmem:[%s3206_s1 + $0x8c] ss:$48 sps:$4 sm:$0xff]  }
  0x2b   :  { %1049 = vmatpush1.bf16.msra.mxu0 %v2150_v43  ;;  %1102 = vmatpush1.bf16.msra.mxu1 %v2151_v44  ;;  %v2242_v43 = vld [vmem:[%s3206_s1 + $0x80] ss:$48 sps:$4 sm:$0xff]   ;;  %v2245_v44 = vld [vmem:[%s3206_s1 + $0x88] ss:$48 sps:$4 sm:$0xff]  }
  0x2c   :  { %1050 = vmatprep.subr.bf16.mxu0 %v2152_v45  ;;  %1103 = vmatprep.subr.bf16.mxu1 %v2154_v46  ;;  %v2250_v45 = vld [vmem:[%s3206_s1 + $0xe4] ss:$48 sps:$4 sm:$0xff]   ;;  %v2253_v46 = vld [vmem:[%s3206_s1 + $0xec] ss:$48 sps:$4 sm:$0xff]  }
  0x2f   :  { %1051 = vmatpush1.bf16.msra.mxu0 %v2156_v47  ;;  %1104 = vmatpush1.bf16.msra.mxu1 %v2157_v48  ;;  %v2248_v47 = vld [vmem:[%s3206_s1 + $0xe0] ss:$48 sps:$4 sm:$0xff]   ;;  %v2251_v48 = vld [vmem:[%s3206_s1 + $0xe8] ss:$48 sps:$4 sm:$0xff]  }
  0x30   :  { %1134 = vmatprep.subr.bf16.mxu0 %v2163_v49  ;;  %1187 = vmatprep.subr.bf16.mxu1 %v2166_v50  ;;  %v2256_v49 = vld [vmem:[%s3206_s1 + $0x144] ss:$48 sps:$4 sm:$0xff]   ;;  %v2259_v50 = vld [vmem:[%s3206_s1 + $0x14c] ss:$48 sps:$4 sm:$0xff]  }
  0x32   :  { %1061 = vmatmul.mubr.bf16.vlgmr.msra.gmra.mrb[0].mxu0 %v2490_v51  ;;  %1114 = vmatmul.mubr.bf16.vlgmr.msra.gmra.mrb[0].mxu1 %v2490_v51 }
  0x33   :  { %1135 = vmatpush1.bf16.msra.mxu0 %v2161_v52  ;;  %1188 = vmatpush1.bf16.msra.mxu1 %v2164_v53  ;;  %v2254_v52 = vld [vmem:[%s3206_s1 + $0x140] ss:$48 sps:$4 sm:$0xff]   ;;  %v2257_v53 = vld [vmem:[%s3206_s1 + $0x148] ss:$48 sps:$4 sm:$0xff]  }
  0x34   :  { %1136 = vmatprep.subr.bf16.mxu0 %v2169_v54  ;;  %1189 = vmatprep.subr.bf16.mxu1 %v2172_v55  ;;  %v2262_v54 = vld [vmem:[%s3206_s1 + $0x1a4] ss:$48 sps:$4 sm:$0xff]   ;;  %v2265_v55 = vld [vmem:[%s3206_s1 + $0x1ac] ss:$48 sps:$4 sm:$0xff]  }
  0x35   :  { %2027 = vmatprep.mubr.msk.bf16.mxu0 %vm1021_vm0, %v2545_v4  ;;  %2029 = vmatprep.mubr.msk.bf16.mxu1 %vm1021_vm0, %v2545_v4 }
  0x37   :  { %1137 = vmatpush1.bf16.msra.mxu0 %v2167_v56  ;;  %1190 = vmatpush1.bf16.msra.mxu1 %v2170_v57  ;;  %v2260_v56 = vld [vmem:[%s3206_s1 + $0x1a0] ss:$48 sps:$4 sm:$0xff]   ;;  %v2263_v57 = vld [vmem:[%s3206_s1 + $0x1a8] ss:$48 sps:$4 sm:$0xff]  }
  0x38   :  { %1138 = vmatprep.subr.bf16.mxu0 %v2175_v58  ;;  %1191 = vmatprep.subr.bf16.mxu1 %v2178_v59  ;;  %v2268_v58 = vld [vmem:[%s3206_s1 + $0x204] ss:$48 sps:$4 sm:$0xff]   ;;  %v2266_v59 = vld [vmem:[%s3206_s1 + $0x200] ss:$48 sps:$4 sm:$0xff]  }
  0x3a   :  { %1071 = vmatmul.mubr.bf16.gmra.mrb[4].mxu0 %v2550_v5  ;;  %1124 = vmatmul.mubr.bf16.gmra.mrb[4].mxu1 %v2550_v5 }
  0x3b   :  { %1139 = vmatpush1.bf16.msra.mxu0 %v2173_v60  ;;  %1192 = vmatpush1.bf16.msra.mxu1 %v2176_v61  ;;  %v2269_v60 = vld [vmem:[%s3206_s1 + $0x208] ss:$48 sps:$4 sm:$0xff]   ;;  %v2274_v61 = vld [vmem:[%s3206_s1 + $0x264] ss:$48 sps:$4 sm:$0xff]  }
  0x3c   :  { %1140 = vmatprep.subr.bf16.mxu0 %v2181_v62  ;;  %1193 = vmatprep.subr.bf16.mxu1 %v2184_v63  ;;  %v2277_v62 = vld [vmem:[%s3206_s1 + $0x26c] ss:$48 sps:$4 sm:$0xff]   ;;  %v2272_v63 = vld [vmem:[%s3206_s1 + $0x260] ss:$48 sps:$4 sm:$0xff]  }
  0x3d   :  { %2030 = vmatprep.mubr.msk.bf16.mxu0 %vm1021_vm0, %v2442_v37  ;;  %2032 = vmatprep.mubr.msk.bf16.mxu1 %vm1021_vm0, %v2442_v37 }
  0x3f   :  { %1141 = vmatpush1.bf16.msra.mxu0 %v2179_v0  ;;  %1194 = vmatpush1.bf16.msra.mxu1 %v2182_v1  ;;  %v2275_v0 = vld [vmem:[%s3206_s1 + $0x268] ss:$48 sps:$4 sm:$0xff]   ;;  %v2280_v1 = vld [vmem:[%s3206_s1 + $0x2c4] ss:$48 sps:$4 sm:$0xff]  }
  0x40   :  { %1142 = vmatprep.subr.bf16.mxu0 %v2187_v2  ;;  %1195 = vmatprep.subr.bf16.mxu1 %v2190_v3  ;;  %v2283_v2 = vld [vmem:[%s3206_s1 + $0x2cc] ss:$48 sps:$4 sm:$0xff]   ;;  %v2278_v3 = vld [vmem:[%s3206_s1 + $0x2c0] ss:$48 sps:$4 sm:$0xff]  }
  0x43   :  { %1143 = vmatpush1.bf16.msra.mxu0 %v2185_v6  ;;  %1196 = vmatpush1.bf16.msra.mxu1 %v2188_v7  ;;  %v2281_v6 = vld [vmem:[%s3206_s1 + $0x2c8] ss:$48 sps:$4 sm:$0xff]   ;;  %v2286_v7 = vld [vmem:[%s3206_s1 + $0x324] ss:$48 sps:$4 sm:$0xff]  }
  0x44   :  { %1144 = vmatprep.subr.bf16.mxu0 %v2193_v8  ;;  %1197 = vmatprep.subr.bf16.mxu1 %v2196_v9  ;;  %v2289_v8 = vld [vmem:[%s3206_s1 + $0x32c] ss:$48 sps:$4 sm:$0xff]   ;;  %v2284_v9 = vld [vmem:[%s3206_s1 + $0x320] ss:$48 sps:$4 sm:$0xff]  }
  0x47   :  { %1145 = vmatpush1.bf16.msra.mxu0 %v2191_v10  ;;  %1198 = vmatpush1.bf16.msra.mxu1 %v2194_v11  ;;  %v2287_v10 = vld [vmem:[%s3206_s1 + $0x328] ss:$48 sps:$4 sm:$0xff]   ;;  %v2292_v11 = vld [vmem:[%s3206_s1 + $0x384] ss:$48 sps:$4 sm:$0xff]  }
  0x48   :  { %1146 = vmatprep.subr.bf16.mxu0 %v2199_v12  ;;  %1199 = vmatprep.subr.bf16.mxu1 %v2202_v13  ;;  %v2295_v12 = vld [vmem:[%s3206_s1 + $0x38c] ss:$48 sps:$4 sm:$0xff]   ;;  %v2290_v13 = vld [vmem:[%s3206_s1 + $0x380] ss:$48 sps:$4 sm:$0xff]  }
  0x4b   :  { %1147 = vmatpush1.bf16.msra.mxu0 %v2197_v14  ;;  %1200 = vmatpush1.bf16.msra.mxu1 %v2200_v15  ;;  %v2293_v14 = vld [vmem:[%s3206_s1 + $0x388] ss:$48 sps:$4 sm:$0xff]   ;;  %v2298_v15 = vld [vmem:[%s3206_s1 + $0x3e4] ss:$48 sps:$4 sm:$0xff]  }
  0x4c   :  { %1148 = vmatprep.subr.bf16.mxu0 %v2205_v16  ;;  %1201 = vmatprep.subr.bf16.mxu1 %v2208_v17  ;;  %v2301_v16 = vld [vmem:[%s3206_s1 + $0x3ec] ss:$48 sps:$4 sm:$0xff]   ;;  %v2296_v17 = vld [vmem:[%s3206_s1 + $0x3e0] ss:$48 sps:$4 sm:$0xff]  }
  0x4f   :  { %1149 = vmatpush1.bf16.msra.mxu0 %v2203_v18  ;;  %1202 = vmatpush1.bf16.msra.mxu1 %v2206_v19  ;;  %v2299_v18 = vld [vmem:[%s3206_s1 + $0x3e8] ss:$48 sps:$4 sm:$0xff]   ;;  %v2304_v19 = vld [vmem:[%s3206_s1 + $0x444] ss:$48 sps:$4 sm:$0xff]  }
  0x50   :  { %1150 = vmatprep.subr.bf16.mxu0 %v2211_v20  ;;  %1203 = vmatprep.subr.bf16.mxu1 %v2214_v21  ;;  %v2307_v20 = vld [vmem:[%s3206_s1 + $0x44c] ss:$48 sps:$4 sm:$0xff]   ;;  %v2302_v21 = vld [vmem:[%s3206_s1 + $0x440] ss:$48 sps:$4 sm:$0xff]  }
  0x53   :  { %1151 = vmatpush1.bf16.msra.mxu0 %v2209_v22  ;;  %1204 = vmatpush1.bf16.msra.mxu1 %v2212_v23  ;;  %v2305_v22 = vld [vmem:[%s3206_s1 + $0x448] ss:$48 sps:$4 sm:$0xff]   ;;  %v175_v23 = vlaneseq }
  0x54   :  { %1152 = vmatprep.subr.bf16.mxu0 %v2217_v24  ;;  %1205 = vmatprep.subr.bf16.mxu1 %v2220_v25 }
  0x55   :  { %v176_v24 = vshrl.u32 %v175_v23, 7 }
  0x57   :  { %1153 = vmatpush1.bf16.msra.mxu0 %v2215_v26  ;;  %1206 = vmatpush1.bf16.msra.mxu1 %v2218_v27  ;;  %v2816_v25 = vsub.s32 0, %v176_v24  ;;  %v163_v26 = vld [vmem:[%s3208_s2] sm:$0x77]  ;;  %v2824_v27 = vsub.s32 4, %v176_v24 }
  0x58   :  { %1154 = vmatprep.subr.bf16.mxu0 %v2226_v28  ;;  %1207 = vmatprep.subr.bf16.mxu1 %v2229_v29  ;;  %v2826_v28 = vsub.s32 1, %v176_v24  ;;  %v2831_v29 = vsub.s32 2, %v176_v24 }
  0x5b   :  { %1155 = vmatpush1.bf16.msra.mxu0 %v2224_v30  ;;  %1208 = vmatpush1.bf16.msra.mxu1 %v2227_v31  ;;  %v182_v31 = vrot.slane %v163_v26, %v2824_v27 }
  0x5c   :  { %1156 = vmatprep.subr.bf16.mxu0 %v2232_v32  ;;  %1209 = vmatprep.subr.bf16.mxu1 %v2235_v33  ;;  %v2835_v32 = vsub.s32 6, %v176_v24 }
  0x5f   :  { %1157 = vmatpush1.bf16.msra.mxu0 %v2230_v34  ;;  %1210 = vmatpush1.bf16.msra.mxu1 %v2233_v35  ;;  %v1349_v34 = vrot.slane %v163_v26, %v2826_v28 }
  0x60   :  { %1240 = vmatprep.subr.bf16.mxu0 %v2238_v36  ;;  %1293 = vmatprep.subr.bf16.mxu1 %v2241_v38 }
  0x62   :  { %1167 = vmatmul.mubr.bf16.vlgmr.msra.gmra.mrb[8].mxu0 %v2490_v51  ;;  %1220 = vmatmul.mubr.bf16.vlgmr.msra.gmra.mrb[8].mxu1 %v2490_v51 }
  0x63   :  { %1241 = vmatpush1.bf16.msra.mxu0 %v2236_v39  ;;  %1294 = vmatpush1.bf16.msra.mxu1 %v2239_v40  ;;  %v1505_v40 = vrot.slane %v163_v26, %v2831_v29 }
  0x64   :  { %1242 = vmatprep.subr.bf16.mxu0 %v2244_v41  ;;  %1295 = vmatprep.subr.bf16.mxu1 %v2247_v42 }
  0x65   :  { %2031 = vmatprep.mubr.msk.bf16.mxu0 %vm1021_vm0, %v2545_v4  ;;  %2033 = vmatprep.mubr.msk.bf16.mxu1 %vm1021_vm0, %v2545_v4 }
  0x67   :  { %1243 = vmatpush1.bf16.msra.mxu0 %v2242_v43  ;;  %1296 = vmatpush1.bf16.msra.mxu1 %v2245_v44  ;;  %v2851_v43 = vrot.slane %v182_v31, %v2816_v25  ;;  %v1509_v44 = vrot.slane %v163_v26, %v2835_v32 }
  0x68   :  { %1244 = vmatprep.subr.bf16.mxu0 %v2250_v45  ;;  %1297 = vmatprep.subr.bf16.mxu1 %v2253_v46 }
  0x6a   :  { %1177 = vmatmul.mubr.bf16.gmra.mrb[12].mxu0 %v2550_v5  ;;  %1230 = vmatmul.mubr.bf16.gmra.mrb[12].mxu1 %v2550_v5 }
  0x6b   :  { %1245 = vmatpush1.bf16.msra.mxu0 %v2248_v47  ;;  %1298 = vmatpush1.bf16.msra.mxu1 %v2251_v48  ;;  %v2859_v47 = vrot.slane %v1349_v34, %v2826_v28 }
  0x6c   :  { %1246 = vmatprep.subr.bf16.mxu0 %v2256_v49  ;;  %1299 = vmatprep.subr.bf16.mxu1 %v2259_v50 }
  0x6d   :  { %2034 = vmatprep.mubr.msk.bf16.mxu0 %vm1021_vm0, %v2442_v37  ;;  %2036 = vmatprep.mubr.msk.bf16.mxu1 %vm1021_vm0, %v2442_v37  ;;  %v2271_v37 = vld [vmem:[%s3206_s1 + $0x20c] ss:$48 sps:$4 sm:$0xff]  }
  0x6f   :  { %1247 = vmatpush1.bf16.msra.mxu0 %v2254_v52  ;;  %1300 = vmatpush1.bf16.msra.mxu1 %v2257_v53 }
  0x70   :  { %1248 = vmatprep.subr.bf16.mxu0 %v2262_v54  ;;  %1301 = vmatprep.subr.bf16.mxu1 %v2265_v55  ;;  %v2872_v55 = vrot.slane %v1505_v40, %v2831_v29 }
  0x73   :  { %1249 = vmatpush1.bf16.msra.mxu0 %v2260_v56  ;;  %1302 = vmatpush1.bf16.msra.mxu1 %v2263_v57 }
  0x74   :  { %1250 = vmatprep.subr.bf16.mxu0 %v2268_v58  ;;  %1303 = vmatprep.subr.bf16.mxu1 %v2271_v37 }
  0x77   :  { %1251 = vmatpush1.bf16.msra.mxu0 %v2266_v59  ;;  %1304 = vmatpush1.bf16.msra.mxu1 %v2269_v60  ;;  %v2880_v60 = vrot.slane %v1509_v44, %v2831_v29 }
  0x78   :  { %1252 = vmatprep.subr.bf16.mxu0 %v2274_v61  ;;  %1305 = vmatprep.subr.bf16.mxu1 %v2277_v62 }
  0x7b   :  { %1253 = vmatpush1.bf16.msra.mxu0 %v2272_v63  ;;  %1306 = vmatpush1.bf16.msra.mxu1 %v2275_v0 }
  0x7c   :  { %1254 = vmatprep.subr.bf16.mxu0 %v2280_v1  ;;  %1307 = vmatprep.subr.bf16.mxu1 %v2283_v2 }
  0x7f   :  { %1255 = vmatpush1.bf16.msra.mxu0 %v2278_v3  ;;  %1308 = vmatpush1.bf16.msra.mxu1 %v2281_v6 }
  0x80   :  { %1256 = vmatprep.subr.bf16.mxu0 %v2286_v7  ;;  %1309 = vmatprep.subr.bf16.mxu1 %v2289_v8 }
  0x83   :  { %1257 = vmatpush1.bf16.msra.mxu0 %v2284_v9  ;;  %1310 = vmatpush1.bf16.msra.mxu1 %v2287_v10 }
  0x84   :  { %1258 = vmatprep.subr.bf16.mxu0 %v2292_v11  ;;  %1311 = vmatprep.subr.bf16.mxu1 %v2295_v12 }
  0x87   :  { %1259 = vmatpush1.bf16.msra.mxu0 %v2290_v13  ;;  %1312 = vmatpush1.bf16.msra.mxu1 %v2293_v14 }
  0x88   :  { %1260 = vmatprep.subr.bf16.mxu0 %v2298_v15  ;;  %1313 = vmatprep.subr.bf16.mxu1 %v2301_v16 }
  0x8b   :  { %1261 = vmatpush1.bf16.msra.mxu0 %v2296_v17  ;;  %1314 = vmatpush1.bf16.msra.mxu1 %v2299_v18 }
  0x8c   :  { %1262 = vmatprep.subr.bf16.mxu0 %v2304_v19  ;;  %1315 = vmatprep.subr.bf16.mxu1 %v2307_v20 }
  0x8f   :  { %1263 = vmatpush1.bf16.msra.mxu0 %v2302_v21  ;;  %1316 = vmatpush1.bf16.msra.mxu1 %v2305_v22 }
  0x92   :  { %1273 = vmatmul.mubr.bf16.vlgmr.msra.gmra.mrb[16].mxu0 %v2490_v51  ;;  %1326 = vmatmul.mubr.bf16.vlgmr.msra.gmra.mrb[16].mxu1 %v2490_v51  ;;  %v164_v51 = vld [vmem:[%s3208_s2 + $0x8] sm:$0x77] }
  0x93   :  { %2035 = vmatprep.mubr.msk.bf16.mxu0 %vm1021_vm0, %v2545_v4  ;;  %2037 = vmatprep.mubr.msk.bf16.mxu1 %vm1021_vm0, %v2545_v4  ;;  %v2828_v4 = vsub.s32 5, %v176_v24  ;;  %v186_v30 = vrot.slane %v164_v51, %v2816_v25  ;;  %v190_v33 = vrot.slane %v164_v51, %v2824_v27  ;;  %v1357_v35 = vrot.slane %v164_v51, %v2826_v28 }
  0x94   :  { %v1513_v42 = vrot.slane %v164_v51, %v2831_v29  ;;  %v1517_v46 = vrot.slane %v164_v51, %v2835_v32 }
  0x95   :  { %v1353_v36 = vrot.slane %v163_v26, %v2828_v4  ;;  %v1361_v38 = vrot.slane %v164_v51, %v2828_v4  ;;  %v2847_v41 = vrot.slane %v186_v30, %v2816_v25  ;;  %v2855_v45 = vrot.slane %v190_v33, %v2816_v25 }
  0x96   :  { %v2862_v48 = vrot.slane %v1357_v35, %v2826_v28  ;;  %v2876_v57 = vrot.slane %v1513_v42, %v2831_v29  ;;  %v2884_v62 = vrot.slane %v1517_v46, %v2831_v29 }
  0x97   :  { %v2865_v52 = vrot.slane %v1353_v36, %v2826_v28  ;;  %v2868_v53 = vrot.slane %v1361_v38, %v2826_v28 }
  0x9a   :  { %1283 = vmatmul.mubr.bf16.gmra.mrb[20].mxu0 %v2550_v5  ;;  %1336 = vmatmul.mubr.bf16.gmra.mrb[20].mxu1 %v2550_v5  ;;  %v178_v5 = vrot.slane %v163_v26, %v2816_v25 }
  0x9c   :  { %v2843_v39 = vrot.slane %v178_v5, %v2816_v25 }
 0x105   :  { %v1062_v49 = vpop.f32.mrb[0].mxu0  ;;  %v1115_v50 = vpop.f32.mrb[0].mxu1 }
 0x106   :  { %v1063_v54 = vadd.f32 %v1062_v49, %v2843_v39  ;;  %v1116_v56 = vadd.f32 %v1115_v50, %v2847_v41  ;;  %v1064_v58 = vpop.f32.mrb[1].mxu0  ;;  %v1117_v37 = vpop.f32.mrb[1].mxu1 }
 0x107   :  { %v1065_v59 = vadd.f32 %v1064_v58, %v2851_v43  ;;  %v1118_v61 = vadd.f32 %v1117_v37, %v2855_v45  ;;  %v1066_v63 = vpop.f32.mrb[2].mxu0  ;;  %v1119_v0 = vpop.f32.mrb[2].mxu1 }
 0x108   :  { %v1454_v1 = vmul.f32 %v2859_v47, %v1063_v54  ;;  %v1456_v2 = vmul.f32 %v2862_v48, %v1116_v56  ;;  %v1067_v3 = vadd.f32 %v1066_v63, %v2843_v39  ;;  %v1120_v6 = vadd.f32 %v1119_v0, %v2847_v41  ;;  %v1068_v7 = vpop.f32.mrb[3].mxu0  ;;  %v1121_v8 = vpop.f32.mrb[3].mxu1 }
 0x109   :  { %v1455_v9 = vmul.f32 %v2865_v52, %v1065_v59  ;;  %v1457_v10 = vmul.f32 %v2868_v53, %v1118_v61  ;;  %v1069_v11 = vadd.f32 %v1068_v7, %v2851_v43  ;;  %v1122_v12 = vadd.f32 %v1121_v8, %v2855_v45 }
 0x10a   :  { %v1610_v13 = vadd.f32 %v2872_v55, %v1454_v1  ;;  %v1612_v14 = vadd.f32 %v2876_v57, %v1456_v2  ;;  %v1466_v15 = vmul.f32 %v2859_v47, %v1067_v3  ;;  %v1468_v16 = vmul.f32 %v2862_v48, %v1120_v6 }
 0x10b   :  { %v1611_v17 = vadd.f32 %v2880_v60, %v1455_v9  ;;  %v1613_v18 = vadd.f32 %v2884_v62, %v1457_v10  ;;  %v1467_v19 = vmul.f32 %v2865_v52, %v1069_v11  ;;  %v1469_v20 = vmul.f32 %v2868_v53, %v1122_v12 }
 0x10c   :  { %v1658_v21 = vmax.f32 %v1610_v13, 0.0  ;;  %v1660_v22 = vmax.f32 %v1612_v14, 0.0  ;;  %v1622_v23 = vadd.f32 %v2872_v55, %v1466_v15  ;;  %v1624_v24 = vadd.f32 %v2876_v57, %v1468_v16 }
 0x10d   :  { %v1659_v26 = vmax.f32 %v1611_v17, 0.0  ;;  %v1661_v51 = vmax.f32 %v1613_v18, 0.0  ;;  %v1623_v5 = vadd.f32 %v2880_v60, %v1467_v19  ;;  %v1625_v30 = vadd.f32 %v2884_v62, %v1469_v20  ;;  %v1072_v44 = vpop.f32.mrb[4].mxu0  ;;  %v1125_v46 = vpop.f32.mrb[4].mxu1 }
 0x10e   :  { %v1670_v31 = vmax.f32 %v1622_v23, 0.0  ;;  %v1672_v33 = vmax.f32 %v1624_v24, 0.0  ;;  %v1073_v49 = vadd.f32 %v1072_v44, %v2843_v39  ;;  %v1126_v50 = vadd.f32 %v1125_v46, %v2847_v41  ;;  %v1074_v54 = vpop.f32.mrb[5].mxu0  ;;  %v1127_v56 = vpop.f32.mrb[5].mxu1 }
 0x10f   :  { %v2062_v34 = vpack.c.bf16 %v1659_v26, %v1658_v21  ;;  %v2063_v35 = vpack.c.bf16 %v1661_v51, %v1660_v22  ;;  %v1671_v36 = vmax.f32 %v1623_v5, 0.0  ;;  %v1673_v38 = vmax.f32 %v1625_v30, 0.0  ;;  %v1076_v59 = vpop.f32.mrb[6].mxu0  ;;  %v1129_v61 = vpop.f32.mrb[6].mxu1 }
 0x110   :  { %v1075_v58 = vadd.f32 %v1074_v54, %v2851_v43  ;;  %v1128_v37 = vadd.f32 %v1127_v56, %v2855_v45  ;;  %v1478_v63 = vmul.f32 %v2859_v47, %v1073_v49  ;;  %v1480_v0 = vmul.f32 %v2862_v48, %v1126_v50  ;;  %v1078_v3 = vpop.f32.mrb[7].mxu0  ;;  %v1131_v6 = vpop.f32.mrb[7].mxu1 }
 0x111   :  { %1850 = vst [vmem:[%s3209_s3] sm:$0xff] %v2062_v34  ;;  %1851 = vst [vmem:[%s3209_s3 + $0x8] sm:$0xff] %v2063_v35  ;;  %v2068_v40 = vpack.c.bf16 %v1671_v36, %v1670_v31  ;;  %v2069_v42 = vpack.c.bf16 %v1673_v38, %v1672_v33  ;;  %v1077_v1 = vadd.f32 %v1076_v59, %v2843_v39 }
 0x112   :  { %v1130_v2 = vadd.f32 %v1129_v61, %v2847_v41  ;;  %v1479_v7 = vmul.f32 %v2865_v52, %v1075_v58  ;;  %v1481_v8 = vmul.f32 %v2868_v53, %v1128_v37  ;;  %v1079_v9 = vadd.f32 %v1078_v3, %v2851_v43 }
 0x113   :  { %1856 = vst [vmem:[%s3209_s3 + $0x30] sm:$0xff] %v2068_v40  ;;  %1857 = vst [vmem:[%s3209_s3 + $0x38] sm:$0xff] %v2069_v42  ;;  %v1132_v10 = vadd.f32 %v1131_v6, %v2855_v45  ;;  %v1634_v11 = vadd.f32 %v2872_v55, %v1478_v63  ;;  %v1636_v12 = vadd.f32 %v2876_v57, %v1480_v0 }
 0x114   :  { %v1490_v13 = vmul.f32 %v2859_v47, %v1077_v1  ;;  %v1492_v39 = vmul.f32 %v2862_v48, %v1130_v2  ;;  %v1635_v41 = vadd.f32 %v2880_v60, %v1479_v7  ;;  %v1637_v14 = vadd.f32 %v2884_v62, %v1481_v8 }
 0x115   :  { %v1491_v15 = vmul.f32 %v2865_v52, %v1079_v9  ;;  %v1493_v16 = vmul.f32 %v2868_v53, %v1132_v10  ;;  %v1682_v17 = vmax.f32 %v1634_v11, 0.0  ;;  %v1684_v43 = vmax.f32 %v1636_v12, 0.0 }
 0x116   :  { %v1646_v45 = vadd.f32 %v2872_v55, %v1490_v13  ;;  %v1648_v18 = vadd.f32 %v2876_v57, %v1492_v39  ;;  %v1683_v19 = vmax.f32 %v1635_v41, 0.0  ;;  %v1685_v20 = vmax.f32 %v1637_v14, 0.0  ;;  %v165_v57 = vld [vmem:[%s3208_s2 + $0x10] sm:$0x77] }
 0x117   :  { %v1647_v47 = vadd.f32 %v2880_v60, %v1491_v15  ;;  %v1649_v48 = vadd.f32 %v2884_v62, %v1493_v16  ;;  %v166_v60 = vld [vmem:[%s3208_s2 + $0x18] sm:$0x77]  ;;  %v194_v62 = vrot.slane %v165_v57, %v2816_v25  ;;  %v198_v5 = vrot.slane %v165_v57, %v2824_v27 }
 0x118   :  { %v1694_v21 = vmax.f32 %v1646_v45, 0.0  ;;  %v1696_v22 = vmax.f32 %v1648_v18, 0.0  ;;  %v2074_v23 = vpack.c.bf16 %v1683_v19, %v1682_v17  ;;  %v2075_v24 = vpack.c.bf16 %v1685_v20, %v1684_v43 }
 0x119   :  { %v1695_v26 = vmax.f32 %v1647_v47, 0.0  ;;  %v1697_v52 = vmax.f32 %v1649_v48, 0.0  ;;  %v202_v51 = vrot.slane %v166_v60, %v2816_v25  ;;  %v206_v30 = vrot.slane %v166_v60, %v2824_v27 }
 0x11a   :  { %1862 = vst [vmem:[%s3209_s3 + $0x60] sm:$0xff] %v2074_v23  ;;  %1863 = vst [vmem:[%s3209_s3 + $0x68] sm:$0xff] %v2075_v24  ;;  %v1365_v31 = vrot.slane %v165_v57, %v2826_v28  ;;  %v1373_v33 = vrot.slane %v166_v60, %v2826_v28  ;;  %v1369_v34 = vrot.slane %v165_v57, %v2828_v4 }
 0x11b   :  { %v2080_v53 = vpack.c.bf16 %v1695_v26, %v1694_v21  ;;  %v2081_v55 = vpack.c.bf16 %v1697_v52, %v1696_v22  ;;  %v1377_v35 = vrot.slane %v166_v60, %v2828_v4  ;;  %v2969_v36 = vrot.slane %v194_v62, %v2816_v25 }
 0x11c   :  { %v1521_v38 = vrot.slane %v165_v57, %v2831_v29  ;;  %v2973_v40 = vrot.slane %v202_v51, %v2816_v25  ;;  %v1529_v42 = vrot.slane %v166_v60, %v2831_v29  ;;  %v2977_v44 = vrot.slane %v198_v5, %v2816_v25 }
 0x11d   :  { %1868 = vst [vmem:[%s3209_s3 + $0x90] sm:$0xff] %v2080_v53  ;;  %1869 = vst [vmem:[%s3209_s3 + $0x98] sm:$0xff] %v2081_v55  ;;  %v1525_v46 = vrot.slane %v165_v57, %v2835_v32  ;;  %v2981_v49 = vrot.slane %v206_v30, %v2816_v25  ;;  %v1533_v50 = vrot.slane %v166_v60, %v2835_v32 }
 0x11e   :  { %v2985_v54 = vrot.slane %v1365_v31, %v2826_v28  ;;  %v2988_v56 = vrot.slane %v1373_v33, %v2826_v28  ;;  %v2991_v59 = vrot.slane %v1369_v34, %v2826_v28  ;;  %v2994_v61 = vrot.slane %v1377_v35, %v2826_v28 }
 0x11f   :  { %v2998_v0 = vrot.slane %v1521_v38, %v2831_v29  ;;  %v3002_v2 = vrot.slane %v1529_v42, %v2831_v29  ;;  %v3006_v8 = vrot.slane %v1525_v46, %v2831_v29  ;;  %v3010_v10 = vrot.slane %v1533_v50, %v2831_v29 }
 0x135   :  { %v1168_v58 = vpop.f32.mrb[8].mxu0  ;;  %v1221_v37 = vpop.f32.mrb[8].mxu1 }
 0x136   :  { %v1169_v63 = vadd.f32 %v1168_v58, %v2969_v36  ;;  %v1222_v1 = vadd.f32 %v1221_v37, %v2973_v40  ;;  %v1170_v3 = vpop.f32.mrb[9].mxu0  ;;  %v1223_v6 = vpop.f32.mrb[9].mxu1 }
 0x137   :  { %v1171_v7 = vadd.f32 %v1170_v3, %v2977_v44  ;;  %v1224_v9 = vadd.f32 %v1223_v6, %v2981_v49  ;;  %v1172_v11 = vpop.f32.mrb[10].mxu0  ;;  %v1225_v12 = vpop.f32.mrb[10].mxu1 }
 0x138   :  { %v1458_v13 = vmul.f32 %v2985_v54, %v1169_v63  ;;  %v1460_v39 = vmul.f32 %v2988_v56, %v1222_v1  ;;  %v1173_v41 = vadd.f32 %v1172_v11, %v2969_v36  ;;  %v1226_v14 = vadd.f32 %v1225_v12, %v2973_v40  ;;  %v1174_v15 = vpop.f32.mrb[11].mxu0  ;;  %v1227_v16 = vpop.f32.mrb[11].mxu1 }
 0x139   :  { %v1459_v17 = vmul.f32 %v2991_v59, %v1171_v7  ;;  %v1461_v43 = vmul.f32 %v2994_v61, %v1224_v9  ;;  %v1175_v45 = vadd.f32 %v1174_v15, %v2977_v44  ;;  %v1228_v18 = vadd.f32 %v1227_v16, %v2981_v49 }
 0x13a   :  { %v1614_v19 = vadd.f32 %v2998_v0, %v1458_v13  ;;  %v1616_v20 = vadd.f32 %v3002_v2, %v1460_v39  ;;  %v1470_v47 = vmul.f32 %v2985_v54, %v1173_v41  ;;  %v1472_v48 = vmul.f32 %v2988_v56, %v1226_v14 }
 0x13b   :  { %v1615_v21 = vadd.f32 %v3006_v8, %v1459_v17  ;;  %v1617_v22 = vadd.f32 %v3010_v10, %v1461_v43  ;;  %v1471_v23 = vmul.f32 %v2991_v59, %v1175_v45  ;;  %v1473_v24 = vmul.f32 %v2994_v61, %v1228_v18 }
 0x13c   :  { %v1662_v26 = vmax.f32 %v1614_v19, 0.0  ;;  %v1664_v52 = vmax.f32 %v1616_v20, 0.0  ;;  %v1626_v53 = vadd.f32 %v2998_v0, %v1470_v47  ;;  %v1628_v55 = vadd.f32 %v3002_v2, %v1472_v48 }
 0x13d   :  { %v1663_v57 = vmax.f32 %v1615_v21, 0.0  ;;  %v1665_v60 = vmax.f32 %v1617_v22, 0.0  ;;  %v1627_v62 = vadd.f32 %v3006_v8, %v1471_v23  ;;  %v1629_v51 = vadd.f32 %v3010_v10, %v1473_v24  ;;  %v1178_v5 = vpop.f32.mrb[12].mxu0  ;;  %v1231_v30 = vpop.f32.mrb[12].mxu1 }
 0x13e   :  { %v1674_v31 = vmax.f32 %v1626_v53, 0.0  ;;  %v1676_v33 = vmax.f32 %v1628_v55, 0.0  ;;  %v1179_v34 = vadd.f32 %v1178_v5, %v2969_v36  ;;  %v1232_v35 = vadd.f32 %v1231_v30, %v2973_v40  ;;  %v1180_v38 = vpop.f32.mrb[13].mxu0  ;;  %v1233_v42 = vpop.f32.mrb[13].mxu1 }
 0x13f   :  { %v2064_v46 = vpack.c.bf16 %v1663_v57, %v1662_v26  ;;  %v2065_v50 = vpack.c.bf16 %v1665_v60, %v1664_v52  ;;  %v1675_v58 = vmax.f32 %v1627_v62, 0.0  ;;  %v1677_v37 = vmax.f32 %v1629_v51, 0.0  ;;  %v1182_v63 = vpop.f32.mrb[14].mxu0  ;;  %v1235_v1 = vpop.f32.mrb[14].mxu1 }
 0x140   :  { %v1482_v3 = vmul.f32 %v2985_v54, %v1179_v34  ;;  %v1484_v6 = vmul.f32 %v2988_v56, %v1232_v35  ;;  %v1181_v7 = vadd.f32 %v1180_v38, %v2977_v44  ;;  %v1234_v9 = vadd.f32 %v1233_v42, %v2981_v49  ;;  %v1184_v11 = vpop.f32.mrb[15].mxu0  ;;  %v1237_v12 = vpop.f32.mrb[15].mxu1 }
 0x141   :  { %1852 = vst [vmem:[%s3209_s3 + $0x10] sm:$0xff] %v2064_v46  ;;  %1853 = vst [vmem:[%s3209_s3 + $0x18] sm:$0xff] %v2065_v50  ;;  %v2070_v13 = vpack.c.bf16 %v1675_v58, %v1674_v31  ;;  %v2071_v39 = vpack.c.bf16 %v1677_v37, %v1676_v33  ;;  %v1183_v41 = vadd.f32 %v1182_v63, %v2969_v36 }
 0x142   :  { %v1236_v14 = vadd.f32 %v1235_v1, %v2973_v40  ;;  %v1638_v15 = vadd.f32 %v2998_v0, %v1482_v3  ;;  %v1640_v16 = vadd.f32 %v3002_v2, %v1484_v6  ;;  %v1483_v17 = vmul.f32 %v2991_v59, %v1181_v7 }
 0x143   :  { %v1485_v43 = vmul.f32 %v2994_v61, %v1234_v9  ;;  %1858 = vst [vmem:[%s3209_s3 + $0x40] sm:$0xff] %v2070_v13  ;;  %1859 = vst [vmem:[%s3209_s3 + $0x48] sm:$0xff] %v2071_v39  ;;  %v1494_v36 = vmul.f32 %v2985_v54, %v1183_v41  ;;  %v1185_v45 = vadd.f32 %v1184_v11, %v2977_v44 }
 0x144   :  { %v1496_v40 = vmul.f32 %v2988_v56, %v1236_v14  ;;  %v1238_v18 = vadd.f32 %v1237_v12, %v2981_v49  ;;  %v1686_v19 = vmax.f32 %v1638_v15, 0.0  ;;  %v1688_v20 = vmax.f32 %v1640_v16, 0.0 }
 0x145   :  { %v1639_v47 = vadd.f32 %v3006_v8, %v1483_v17  ;;  %v1641_v48 = vadd.f32 %v3010_v10, %v1485_v43  ;;  %v1650_v21 = vadd.f32 %v2998_v0, %v1494_v36  ;;  %v1495_v23 = vmul.f32 %v2991_v59, %v1185_v45  ;;  %v167_v0 = vld [vmem:[%s3208_s2 + $0x20] sm:$0x77] }
 0x146   :  { %v1652_v22 = vadd.f32 %v3002_v2, %v1496_v40  ;;  %v1497_v54 = vmul.f32 %v2994_v61, %v1238_v18  ;;  %v168_v2 = vld [vmem:[%s3208_s2 + $0x28] sm:$0x77]  ;;  %v214_v62 = vrot.slane %v167_v0, %v2824_v27  ;;  %v1381_v5 = vrot.slane %v167_v0, %v2826_v28 }
 0x147   :  { %v1687_v24 = vmax.f32 %v1639_v47, 0.0  ;;  %v1689_v56 = vmax.f32 %v1641_v48, 0.0  ;;  %v1698_v26 = vmax.f32 %v1650_v21, 0.0  ;;  %v1651_v49 = vadd.f32 %v3006_v8, %v1495_v23 }
 0x148   :  { %v1700_v44 = vmax.f32 %v1652_v22, 0.0  ;;  %v1653_v52 = vadd.f32 %v3010_v10, %v1497_v54  ;;  %v210_v8 = vrot.slane %v167_v0, %v2816_v25  ;;  %v218_v10 = vrot.slane %v168_v2, %v2816_v25 }
 0x149   :  { %v2076_v53 = vpack.c.bf16 %v1687_v24, %v1686_v19  ;;  %v2077_v55 = vpack.c.bf16 %v1689_v56, %v1688_v20  ;;  %v1699_v57 = vmax.f32 %v1651_v49, 0.0  ;;  %v222_v51 = vrot.slane %v168_v2, %v2824_v27 }
 0x14a   :  { %v1701_v60 = vmax.f32 %v1653_v52, 0.0  ;;  %v1389_v30 = vrot.slane %v168_v2, %v2826_v28  ;;  %v1385_v31 = vrot.slane %v167_v0, %v2828_v4  ;;  %v1393_v33 = vrot.slane %v168_v2, %v2828_v4 }
 0x14b   :  { %1864 = vst [vmem:[%s3209_s3 + $0x70] sm:$0xff] %v2076_v53  ;;  %1865 = vst [vmem:[%s3209_s3 + $0x78] sm:$0xff] %v2077_v55  ;;  %v2082_v59 = vpack.c.bf16 %v1699_v57, %v1698_v26  ;;  %v3095_v34 = vrot.slane %v210_v8, %v2816_v25  ;;  %v1537_v35 = vrot.slane %v167_v0, %v2831_v29 }
 0x14c   :  { %v2083_v61 = vpack.c.bf16 %v1701_v60, %v1700_v44  ;;  %v3099_v38 = vrot.slane %v218_v10, %v2816_v25  ;;  %v1545_v42 = vrot.slane %v168_v2, %v2831_v29  ;;  %v3103_v27 = vrot.slane %v214_v62, %v2816_v25 }
 0x14d   :  { %1870 = vst [vmem:[%s3209_s3 + $0xa0] sm:$0xff] %v2082_v59  ;;  %v1541_v46 = vrot.slane %v167_v0, %v2835_v32  ;;  %v3107_v50 = vrot.slane %v222_v51, %v2816_v25  ;;  %v1549_v4 = vrot.slane %v168_v2, %v2835_v32  ;;  %v3111_v58 = vrot.slane %v1381_v5, %v2826_v28 }
 0x14e   :  { %1871 = vst [vmem:[%s3209_s3 + $0xa8] sm:$0xff] %v2083_v61  ;;  %v3114_v37 = vrot.slane %v1389_v30, %v2826_v28  ;;  %v3117_v3 = vrot.slane %v1385_v31, %v2826_v28  ;;  %v3120_v6 = vrot.slane %v1393_v33, %v2826_v28  ;;  %v3124_v25 = vrot.slane %v1537_v35, %v2831_v29 }
 0x14f   :  { %v3128_v9 = vrot.slane %v1545_v42, %v2831_v29  ;;  %v3132_v39 = vrot.slane %v1541_v46, %v2831_v29  ;;  %v3136_v41 = vrot.slane %v1549_v4, %v2831_v29 }
 0x165   :  { %v1274_v63 = vpop.f32.mrb[16].mxu0  ;;  %v1327_v1 = vpop.f32.mrb[16].mxu1 }
 0x166   :  { %v1275_v7 = vadd.f32 %v1274_v63, %v3095_v34  ;;  %v1328_v32 = vadd.f32 %v1327_v1, %v3099_v38  ;;  %v1276_v11 = vpop.f32.mrb[17].mxu0  ;;  %v1329_v12 = vpop.f32.mrb[17].mxu1 }
 0x167   :  { %v1277_v13 = vadd.f32 %v1276_v11, %v3103_v27  ;;  %v1330_v28 = vadd.f32 %v1329_v12, %v3107_v50  ;;  %v1278_v14 = vpop.f32.mrb[18].mxu0  ;;  %v1331_v15 = vpop.f32.mrb[18].mxu1 }
 0x168   :  { %v1462_v16 = vmul.f32 %v3111_v58, %v1275_v7  ;;  %v1464_v17 = vmul.f32 %v3114_v37, %v1328_v32  ;;  %v1279_v43 = vadd.f32 %v1278_v14, %v3095_v34  ;;  %v1332_v36 = vadd.f32 %v1331_v15, %v3099_v38  ;;  %v1280_v40 = vpop.f32.mrb[19].mxu0  ;;  %v1333_v45 = vpop.f32.mrb[19].mxu1 }
 0x169   :  { %v1463_v18 = vmul.f32 %v3117_v3, %v1277_v13  ;;  %v1465_v19 = vmul.f32 %v3120_v6, %v1330_v28  ;;  %v1281_v20 = vadd.f32 %v1280_v40, %v3103_v27  ;;  %v1334_v29 = vadd.f32 %v1333_v45, %v3107_v50 }
 0x16a   :  { %v1618_v47 = vadd.f32 %v3124_v25, %v1462_v16  ;;  %v1620_v48 = vadd.f32 %v3128_v9, %v1464_v17  ;;  %v1474_v21 = vmul.f32 %v3111_v58, %v1279_v43  ;;  %v1476_v22 = vmul.f32 %v3114_v37, %v1332_v36 }
 0x16b   :  { %v1619_v23 = vadd.f32 %v3132_v39, %v1463_v18  ;;  %v1621_v54 = vadd.f32 %v3136_v41, %v1465_v19  ;;  %v1475_v24 = vmul.f32 %v3117_v3, %v1281_v20  ;;  %v1477_v56 = vmul.f32 %v3120_v6, %v1334_v29 }
 0x16c   :  { %v1666_v26 = vmax.f32 %v1618_v47, 0.0  ;;  %v1668_v44 = vmax.f32 %v1620_v48, 0.0  ;;  %v1630_v49 = vadd.f32 %v3124_v25, %v1474_v21  ;;  %v1632_v52 = vadd.f32 %v3128_v9, %v1476_v22 }
 0x16d   :  { %v1667_v53 = vmax.f32 %v1619_v23, 0.0  ;;  %v1669_v55 = vmax.f32 %v1621_v54, 0.0  ;;  %v1631_v57 = vadd.f32 %v3132_v39, %v1475_v24  ;;  %v1633_v60 = vadd.f32 %v3136_v41, %v1477_v56  ;;  %v1284_v59 = vpop.f32.mrb[20].mxu0  ;;  %v1337_v61 = vpop.f32.mrb[20].mxu1 }
 0x16e   :  { %v1678_v0 = vmax.f32 %v1630_v49, 0.0  ;;  %v1680_v2 = vmax.f32 %v1632_v52, 0.0  ;;  %v1285_v8 = vadd.f32 %v1284_v59, %v3095_v34  ;;  %v1338_v10 = vadd.f32 %v1337_v61, %v3099_v38  ;;  %v1286_v62 = vpop.f32.mrb[21].mxu0  ;;  %v1339_v51 = vpop.f32.mrb[21].mxu1 }
 0x16f   :  { %v2066_v5 = vpack.c.bf16 %v1667_v53, %v1666_v26  ;;  %v2067_v30 = vpack.c.bf16 %v1669_v55, %v1668_v44  ;;  %v1679_v31 = vmax.f32 %v1631_v57, 0.0  ;;  %v1681_v33 = vmax.f32 %v1633_v60, 0.0  ;;  %v1288_v35 = vpop.f32.mrb[22].mxu0  ;;  %v1341_v42 = vpop.f32.mrb[22].mxu1 }
 0x170   :  { %v1486_v46 = vmul.f32 %v3111_v58, %v1285_v8  ;;  %v1488_v4 = vmul.f32 %v3114_v37, %v1338_v10  ;;  %v1287_v63 = vadd.f32 %v1286_v62, %v3103_v27  ;;  %v1340_v1 = vadd.f32 %v1339_v51, %v3107_v50  ;;  %v1290_v7 = vpop.f32.mrb[23].mxu0  ;;  %v1343_v32 = vpop.f32.mrb[23].mxu1 }
 0x171   :  { %1854 = vst [vmem:[%s3209_s3 + $0x20] sm:$0xff] %v2066_v5  ;;  %1855 = vst [vmem:[%s3209_s3 + $0x28] sm:$0xff] %v2067_v30  ;;  %v2072_v11 = vpack.c.bf16 %v1679_v31, %v1678_v0  ;;  %v2073_v12 = vpack.c.bf16 %v1681_v33, %v1680_v2  ;;  %v1289_v13 = vadd.f32 %v1288_v35, %v3095_v34 }
 0x172   :  { %v1342_v28 = vadd.f32 %v1341_v42, %v3099_v38  ;;  %v1642_v14 = vadd.f32 %v3124_v25, %v1486_v46  ;;  %v1644_v15 = vadd.f32 %v3128_v9, %v1488_v4  ;;  %v1487_v16 = vmul.f32 %v3117_v3, %v1287_v63 }
 0x173   :  { %v1489_v17 = vmul.f32 %v3120_v6, %v1340_v1  ;;  %1860 = vst [vmem:[%s3209_s3 + $0x50] sm:$0xff] %v2072_v11  ;;  %1861 = vst [vmem:[%s3209_s3 + $0x58] sm:$0xff] %v2073_v12  ;;  %v1498_v34 = vmul.f32 %v3111_v58, %v1289_v13  ;;  %v1291_v43 = vadd.f32 %v1290_v7, %v3103_v27 }
 0x174   :  { %v1500_v38 = vmul.f32 %v3114_v37, %v1342_v28  ;;  %v1344_v36 = vadd.f32 %v1343_v32, %v3107_v50  ;;  %v1690_v40 = vmax.f32 %v1642_v14, 0.0  ;;  %v1692_v45 = vmax.f32 %v1644_v15, 0.0 }
 0x175   :  { %v1643_v18 = vadd.f32 %v3132_v39, %v1487_v16  ;;  %v1645_v19 = vadd.f32 %v3136_v41, %v1489_v17  ;;  %v1654_v20 = vadd.f32 %v3124_v25, %v1498_v34  ;;  %v1499_v47 = vmul.f32 %v3117_v3, %v1291_v43 }
 0x176   :  { %v1656_v29 = vadd.f32 %v3128_v9, %v1500_v38  ;;  %v1501_v58 = vmul.f32 %v3120_v6, %v1344_v36 }
 0x177   :  { %v1691_v48 = vmax.f32 %v1643_v18, 0.0  ;;  %v1693_v37 = vmax.f32 %v1645_v19, 0.0  ;;  %v1702_v21 = vmax.f32 %v1654_v20, 0.0  ;;  %v1655_v50 = vadd.f32 %v3132_v39, %v1499_v47 }
 0x178   :  { %v1704_v27 = vmax.f32 %v1656_v29, 0.0  ;;  %v1657_v22 = vadd.f32 %v3136_v41, %v1501_v58 }
 0x179   :  { %v2078_v23 = vpack.c.bf16 %v1691_v48, %v1690_v40  ;;  %v2079_v54 = vpack.c.bf16 %v1693_v37, %v1692_v45  ;;  %v1703_v24 = vmax.f32 %v1655_v50, 0.0 }
 0x17a   :  { %v1705_v56 = vmax.f32 %v1657_v22, 0.0 }
 0x17b   :  { %1866 = vst [vmem:[%s3209_s3 + $0x80] sm:$0xff] %v2078_v23  ;;  %1867 = vst [vmem:[%s3209_s3 + $0x88] sm:$0xff] %v2079_v54  ;;  %v2084_v3 = vpack.c.bf16 %v1703_v24, %v1702_v21 }
 0x17c   :  { %v2085_v6 = vpack.c.bf16 %v1705_v56, %v1704_v27 }
 0x17d   :  { %1872 = vst [vmem:[%s3209_s3 + $0xb0] sm:$0xff] %v2084_v3 }
 0x17e   :  { %1873 = vst [vmem:[%s3209_s3 + $0xb8] sm:$0xff] %v2085_v6 }

// kernel: _lambda_.61
= control target key start
LH: loop header
LB: loop body
LE: loop exit
PB: predicated region body
PF: predicated region fallthrough
CT: control target
= control target key end

     0   :  { %s5780_s1 = inlined_call_operand.vmem [shape: bf16[1536,512], index: 1, kind: input, shape index: {}]   ;;  %s5781_s0 = inlined_call_operand.vmem [shape: bf16[32,1536], index: 0, kind: input, shape index: {}]   ;;  %s5782_s2 = inlined_call_operand.vmem [shape: f32[3,512], index: 2, kind: input, shape index: {}]   ;;  %s5783_s3 = inlined_call_operand.vmem [shape: bf16[32,512], index: 3, kind: output, shape index: {}]  }
   0x1   :  { %v3822_v0 = vld [vmem:[%s5780_s1 + $0x4] ss:$16 sps:$4 sm:$0xff]   ;;  %v3824_v1 = vld [vmem:[%s5780_s1 + $0xc] ss:$16 sps:$4 sm:$0xff]   ;;  %v3826_v2 = vld [vmem:[%s5780_s1] ss:$16 sps:$4 sm:$0xff]  }
   0x2   :  { %2502 = vmatprep.subr.bf16.mxu0 %v3822_v0  ;;  %v3827_v3 = vld [vmem:[%s5780_s1 + $0x8] ss:$16 sps:$4 sm:$0xff]   ;;  %2820 = vmatprep.subr.bf16.mxu1 %v3824_v1  ;;  %v3828_v4 = vld [vmem:[%s5780_s1 + $0x24] ss:$16 sps:$4 sm:$0xff]   ;;  %v3830_v5 = vld [vmem:[%s5780_s1 + $0x2c] ss:$16 sps:$4 sm:$0xff]  }
   0x3   :  { %2503 = vmatpush1.bf16.msra.mxu0 %v3826_v2  ;;  %2821 = vmatpush1.bf16.msra.mxu1 %v3827_v3  ;;  %v3832_v6 = vld [vmem:[%s5780_s1 + $0x20] ss:$16 sps:$4 sm:$0xff]   ;;  %v3833_v7 = vld [vmem:[%s5780_s1 + $0x28] ss:$16 sps:$4 sm:$0xff]   ;;  %v3834_v8 = vld [vmem:[%s5780_s1 + $0x44] ss:$16 sps:$4 sm:$0xff]  }
   0x4   :  { %2504 = vmatprep.subr.bf16.mxu0 %v3828_v4  ;;  %2822 = vmatprep.subr.bf16.mxu1 %v3830_v5  ;;  %v3836_v9 = vld [vmem:[%s5780_s1 + $0x4c] ss:$16 sps:$4 sm:$0xff]   ;;  %v3838_v10 = vld [vmem:[%s5780_s1 + $0x40] ss:$16 sps:$4 sm:$0xff]   ;;  %v3839_v11 = vld [vmem:[%s5780_s1 + $0x48] ss:$16 sps:$4 sm:$0xff]  }
   0x5   :  { %v3840_v12 = vld [vmem:[%s5780_s1 + $0x64] ss:$16 sps:$4 sm:$0xff]   ;;  %v3842_v13 = vld [vmem:[%s5780_s1 + $0x6c] ss:$16 sps:$4 sm:$0xff]   ;;  %v3844_v14 = vld [vmem:[%s5780_s1 + $0x60] ss:$16 sps:$4 sm:$0xff]  }
   0x6   :  { %v3845_v15 = vld [vmem:[%s5780_s1 + $0x68] ss:$16 sps:$4 sm:$0xff]   ;;  %v3846_v16 = vld [vmem:[%s5780_s1 + $0x84] ss:$16 sps:$4 sm:$0xff]   ;;  %v3848_v17 = vld [vmem:[%s5780_s1 + $0x8c] ss:$16 sps:$4 sm:$0xff]  }
   0x7   :  { %2505 = vmatpush1.bf16.msra.mxu0 %v3832_v6  ;;  %2823 = vmatpush1.bf16.msra.mxu1 %v3833_v7  ;;  %v3850_v18 = vld [vmem:[%s5780_s1 + $0x80] ss:$16 sps:$4 sm:$0xff]   ;;  %v3851_v19 = vld [vmem:[%s5780_s1 + $0x88] ss:$16 sps:$4 sm:$0xff]   ;;  %v3852_v20 = vld [vmem:[%s5780_s1 + $0xa4] ss:$16 sps:$4 sm:$0xff]  }
   0x8   :  { %2506 = vmatprep.subr.bf16.mxu0 %v3834_v8  ;;  %2824 = vmatprep.subr.bf16.mxu1 %v3836_v9  ;;  %v3854_v21 = vld [vmem:[%s5780_s1 + $0xac] ss:$16 sps:$4 sm:$0xff]   ;;  %v3856_v22 = vld [vmem:[%s5780_s1 + $0xa0] ss:$16 sps:$4 sm:$0xff]   ;;  %v3857_v23 = vld [vmem:[%s5780_s1 + $0xa8] ss:$16 sps:$4 sm:$0xff]  }
   0x9   :  { %v3858_v24 = vld [vmem:[%s5780_s1 + $0xc4] ss:$16 sps:$4 sm:$0xff]   ;;  %v3860_v25 = vld [vmem:[%s5780_s1 + $0xcc] ss:$16 sps:$4 sm:$0xff]   ;;  %v3862_v26 = vld [vmem:[%s5780_s1 + $0xc0] ss:$16 sps:$4 sm:$0xff]  }
   0xa   :  { %v3863_v27 = vld [vmem:[%s5780_s1 + $0xc8] ss:$16 sps:$4 sm:$0xff]   ;;  %v3864_v28 = vld [vmem:[%s5780_s1 + $0xe4] ss:$16 sps:$4 sm:$0xff]   ;;  %v3866_v29 = vld [vmem:[%s5780_s1 + $0xec] ss:$16 sps:$4 sm:$0xff]  }
   0xb   :  { %2507 = vmatpush1.bf16.msra.mxu0 %v3838_v10  ;;  %2825 = vmatpush1.bf16.msra.mxu1 %v3839_v11  ;;  %v3868_v30 = vld [vmem:[%s5780_s1 + $0xe0] ss:$16 sps:$4 sm:$0xff]   ;;  %v3869_v31 = vld [vmem:[%s5780_s1 + $0xe8] ss:$16 sps:$4 sm:$0xff]   ;;  %v3870_v32 = vld [vmem:[%s5780_s1 + $0x104] ss:$16 sps:$4 sm:$0xff]  }
   0xc   :  { %2508 = vmatprep.subr.bf16.mxu0 %v3840_v12  ;;  %2826 = vmatprep.subr.bf16.mxu1 %v3842_v13  ;;  %v3872_v33 = vld [vmem:[%s5780_s1 + $0x10c] ss:$16 sps:$4 sm:$0xff]   ;;  %v3874_v34 = vld [vmem:[%s5780_s1 + $0x100] ss:$16 sps:$4 sm:$0xff]   ;;  %v3875_v35 = vld [vmem:[%s5780_s1 + $0x108] ss:$16 sps:$4 sm:$0xff]  }
   0xd   :  { %v3876_v36 = vld [vmem:[%s5780_s1 + $0x124] ss:$16 sps:$4 sm:$0xff]   ;;  %v3878_v37 = vld [vmem:[%s5780_s1 + $0x12c] ss:$16 sps:$4 sm:$0xff]   ;;  %v3880_v38 = vld [vmem:[%s5780_s1 + $0x120] ss:$16 sps:$4 sm:$0xff]  }
   0xe   :  { %v3881_v39 = vld [vmem:[%s5780_s1 + $0x128] ss:$16 sps:$4 sm:$0xff]   ;;  %v3882_v40 = vld [vmem:[%s5780_s1 + $0x144] ss:$16 sps:$4 sm:$0xff]   ;;  %v3884_v41 = vld [vmem:[%s5780_s1 + $0x14c] ss:$16 sps:$4 sm:$0xff]  }
   0xf   :  { %2509 = vmatpush1.bf16.msra.mxu0 %v3844_v14  ;;  %2827 = vmatpush1.bf16.msra.mxu1 %v3845_v15  ;;  %v3886_v42 = vld [vmem:[%s5780_s1 + $0x140] ss:$16 sps:$4 sm:$0xff]   ;;  %v3887_v43 = vld [vmem:[%s5780_s1 + $0x148] ss:$16 sps:$4 sm:$0xff]   ;;  %v3888_v44 = vld [vmem:[%s5780_s1 + $0x164] ss:$16 sps:$4 sm:$0xff]  }
  0x10   :  { %2510 = vmatprep.subr.bf16.mxu0 %v3846_v16  ;;  %2828 = vmatprep.subr.bf16.mxu1 %v3848_v17  ;;  %v3890_v45 = vld [vmem:[%s5780_s1 + $0x16c] ss:$16 sps:$4 sm:$0xff]   ;;  %v3892_v46 = vld [vmem:[%s5780_s1 + $0x160] ss:$16 sps:$4 sm:$0xff]   ;;  %v3893_v47 = vld [vmem:[%s5780_s1 + $0x168] ss:$16 sps:$4 sm:$0xff]  }
  0x11   :  { %v3920_v48 = vld [vmem:[%s5781_s0 + $0x4] ss:$48 sps:$4 sm:$0xff]   ;;  %v3896_v50 = vld [vmem:[%s5780_s1 + $0x18c] ss:$16 sps:$4 sm:$0xff]   ;;  %v3898_v51 = vld [vmem:[%s5780_s1 + $0x180] ss:$16 sps:$4 sm:$0xff]  }
  0x12   :  { %v3894_v49 = vld [vmem:[%s5780_s1 + $0x184] ss:$16 sps:$4 sm:$0xff]   ;;  %2534 = vmatprep.mubr.bf16.mxu0 %v3920_v48  ;;  %2852 = vmatprep.mubr.bf16.mxu1 %v3920_v48  ;;  %v3899_v52 = vld [vmem:[%s5780_s1 + $0x188] ss:$16 sps:$4 sm:$0xff]   ;;  %v3902_v54 = vld [vmem:[%s5780_s1 + $0x1ac] ss:$16 sps:$4 sm:$0xff]  }
  0x13   :  { %2511 = vmatpush1.bf16.msra.mxu0 %v3850_v18  ;;  %2829 = vmatpush1.bf16.msra.mxu1 %v3851_v19  ;;  %v3900_v53 = vld [vmem:[%s5780_s1 + $0x1a4] ss:$16 sps:$4 sm:$0xff]   ;;  %v3904_v55 = vld [vmem:[%s5780_s1 + $0x1a0] ss:$16 sps:$4 sm:$0xff]   ;;  %v3905_v56 = vld [vmem:[%s5780_s1 + $0x1a8] ss:$16 sps:$4 sm:$0xff]  }
  0x14   :  { %2512 = vmatprep.subr.bf16.mxu0 %v3852_v20  ;;  %2830 = vmatprep.subr.bf16.mxu1 %v3854_v21  ;;  %v3906_v57 = vld [vmem:[%s5780_s1 + $0x1c4] ss:$16 sps:$4 sm:$0xff]   ;;  %v3908_v58 = vld [vmem:[%s5780_s1 + $0x1cc] ss:$16 sps:$4 sm:$0xff]   ;;  %v3910_v59 = vld [vmem:[%s5780_s1 + $0x1c0] ss:$16 sps:$4 sm:$0xff]  }
  0x15   :  { %v3911_v60 = vld [vmem:[%s5780_s1 + $0x1c8] ss:$16 sps:$4 sm:$0xff]   ;;  %v3912_v61 = vld [vmem:[%s5780_s1 + $0x1e4] ss:$16 sps:$4 sm:$0xff]   ;;  %v3914_v62 = vld [vmem:[%s5780_s1 + $0x1ec] ss:$16 sps:$4 sm:$0xff]  }
  0x16   :  { %v3916_v63 = vld [vmem:[%s5780_s1 + $0x1e0] ss:$16 sps:$4 sm:$0xff]   ;;  %v3917_v0 = vld [vmem:[%s5780_s1 + $0x1e8] ss:$16 sps:$4 sm:$0xff]   ;;  %v3923_v1 = vld [vmem:[%s5780_s1 + $0x204] ss:$16 sps:$4 sm:$0xff]  }
  0x17   :  { %2513 = vmatpush1.bf16.msra.mxu0 %v3856_v22  ;;  %2831 = vmatpush1.bf16.msra.mxu1 %v3857_v23  ;;  %v3926_v2 = vld [vmem:[%s5780_s1 + $0x20c] ss:$16 sps:$4 sm:$0xff]   ;;  %v3918_v3 = vld [vmem:[%s5781_s0] ss:$48 sps:$4 sm:$0xff]   ;;  %v3924_v5 = vld [vmem:[%s5780_s1 + $0x208] ss:$16 sps:$4 sm:$0xff]  }
  0x18   :  { %2514 = vmatprep.subr.bf16.mxu0 %v3858_v24  ;;  %2832 = vmatprep.subr.bf16.mxu1 %v3860_v25  ;;  %v3921_v4 = vld [vmem:[%s5780_s1 + $0x200] ss:$16 sps:$4 sm:$0xff]   ;;  %v3929_v6 = vld [vmem:[%s5780_s1 + $0x224] ss:$16 sps:$4 sm:$0xff]   ;;  %v3932_v7 = vld [vmem:[%s5780_s1 + $0x22c] ss:$16 sps:$4 sm:$0xff]  }
  0x19   :  { %v3927_v8 = vld [vmem:[%s5780_s1 + $0x220] ss:$16 sps:$4 sm:$0xff]   ;;  %v3930_v9 = vld [vmem:[%s5780_s1 + $0x228] ss:$16 sps:$4 sm:$0xff]   ;;  %v3935_v10 = vld [vmem:[%s5780_s1 + $0x244] ss:$16 sps:$4 sm:$0xff]  }
  0x1a   :  { %v3938_v11 = vld [vmem:[%s5780_s1 + $0x24c] ss:$16 sps:$4 sm:$0xff]   ;;  %v3933_v12 = vld [vmem:[%s5780_s1 + $0x240] ss:$16 sps:$4 sm:$0xff]   ;;  %v3936_v13 = vld [vmem:[%s5780_s1 + $0x248] ss:$16 sps:$4 sm:$0xff]  }
  0x1b   :  { %2515 = vmatpush1.bf16.msra.mxu0 %v3862_v26  ;;  %2833 = vmatpush1.bf16.msra.mxu1 %v3863_v27  ;;  %v3941_v14 = vld [vmem:[%s5780_s1 + $0x264] ss:$16 sps:$4 sm:$0xff]   ;;  %v3944_v15 = vld [vmem:[%s5780_s1 + $0x26c] ss:$16 sps:$4 sm:$0xff]   ;;  %v3939_v16 = vld [vmem:[%s5780_s1 + $0x260] ss:$16 sps:$4 sm:$0xff]  }
  0x1c   :  { %2516 = vmatprep.subr.bf16.mxu0 %v3864_v28  ;;  %2834 = vmatprep.subr.bf16.mxu1 %v3866_v29  ;;  %v3942_v17 = vld [vmem:[%s5780_s1 + $0x268] ss:$16 sps:$4 sm:$0xff]   ;;  %v3947_v18 = vld [vmem:[%s5780_s1 + $0x284] ss:$16 sps:$4 sm:$0xff]   ;;  %v3950_v19 = vld [vmem:[%s5780_s1 + $0x28c] ss:$16 sps:$4 sm:$0xff]  }
  0x1d   :  { %v3945_v20 = vld [vmem:[%s5780_s1 + $0x280] ss:$16 sps:$4 sm:$0xff]   ;;  %v3948_v21 = vld [vmem:[%s5780_s1 + $0x288] ss:$16 sps:$4 sm:$0xff]   ;;  %v3953_v22 = vld [vmem:[%s5780_s1 + $0x2a4] ss:$16 sps:$4 sm:$0xff]  }
  0x1e   :  { %v3956_v23 = vld [vmem:[%s5780_s1 + $0x2ac] ss:$16 sps:$4 sm:$0xff]   ;;  %v4005_v24 = vld [vmem:[%s5781_s0 + $0x64] ss:$48 sps:$4 sm:$0xff]   ;;  %v3951_v25 = vld [vmem:[%s5780_s1 + $0x2a0] ss:$16 sps:$4 sm:$0xff]  }
  0x1f   :  { %2517 = vmatpush1.bf16.msra.mxu0 %v3868_v30  ;;  %2835 = vmatpush1.bf16.msra.mxu1 %v3869_v31  ;;  %v3954_v26 = vld [vmem:[%s5780_s1 + $0x2a8] ss:$16 sps:$4 sm:$0xff]   ;;  %v3959_v27 = vld [vmem:[%s5780_s1 + $0x2c4] ss:$16 sps:$4 sm:$0xff]   ;;  %v3962_v28 = vld [vmem:[%s5780_s1 + $0x2cc] ss:$16 sps:$4 sm:$0xff]  }
  0x20   :  { %2518 = vmatprep.subr.bf16.mxu0 %v3870_v32  ;;  %2836 = vmatprep.subr.bf16.mxu1 %v3872_v33  ;;  %v4013_v29 = vld [vmem:[%s5781_s0 + $0x60] ss:$48 sps:$4 sm:$0xff]   ;;  %v3960_v31 = vld [vmem:[%s5780_s1 + $0x2c8] ss:$16 sps:$4 sm:$0xff]   ;;  %v3965_v32 = vld [vmem:[%s5780_s1 + $0x2e4] ss:$16 sps:$4 sm:$0xff]  }
  0x21   :  { %v3957_v30 = vld [vmem:[%s5780_s1 + $0x2c0] ss:$16 sps:$4 sm:$0xff]   ;;  %v3968_v33 = vld [vmem:[%s5780_s1 + $0x2ec] ss:$16 sps:$4 sm:$0xff]   ;;  %v3984_v48 = vld [vmem:[%s5780_s1 + $0x348] ss:$16 sps:$4 sm:$0xff]  }
  0x23   :  { %2519 = vmatpush1.bf16.msra.mxu0 %v3874_v34  ;;  %2837 = vmatpush1.bf16.msra.mxu1 %v3875_v35  ;;  %v4022_v34 = vld [vmem:[%s5781_s0 + $0xc] ss:$48 sps:$4 sm:$0xff]   ;;  %v3963_v35 = vld [vmem:[%s5780_s1 + $0x2e0] ss:$16 sps:$4 sm:$0xff]  }
  0x24   :  { %2520 = vmatprep.subr.bf16.mxu0 %v3876_v36  ;;  %2838 = vmatprep.subr.bf16.mxu1 %v3878_v37  ;;  %v3966_v36 = vld [vmem:[%s5780_s1 + $0x2e8] ss:$16 sps:$4 sm:$0xff]   ;;  %v3971_v37 = vld [vmem:[%s5780_s1 + $0x304] ss:$16 sps:$4 sm:$0xff]  }
  0x27   :  { %2521 = vmatpush1.bf16.msra.mxu0 %v3880_v38  ;;  %2839 = vmatpush1.bf16.msra.mxu1 %v3881_v39  ;;  %v3974_v38 = vld [vmem:[%s5780_s1 + $0x30c] ss:$16 sps:$4 sm:$0xff]   ;;  %v3969_v39 = vld [vmem:[%s5780_s1 + $0x300] ss:$16 sps:$4 sm:$0xff]  }
  0x28   :  { %2522 = vmatprep.subr.bf16.mxu0 %v3882_v40  ;;  %2840 = vmatprep.subr.bf16.mxu1 %v3884_v41  ;;  %v3972_v40 = vld [vmem:[%s5780_s1 + $0x308] ss:$16 sps:$4 sm:$0xff]   ;;  %v3977_v41 = vld [vmem:[%s5780_s1 + $0x324] ss:$16 sps:$4 sm:$0xff]  }
  0x2b   :  { %2523 = vmatpush1.bf16.msra.mxu0 %v3886_v42  ;;  %2841 = vmatpush1.bf16.msra.mxu1 %v3887_v43  ;;  %v3980_v42 = vld [vmem:[%s5780_s1 + $0x32c] ss:$16 sps:$4 sm:$0xff]   ;;  %v3975_v43 = vld [vmem:[%s5780_s1 + $0x320] ss:$16 sps:$4 sm:$0xff]  }
  0x2c   :  { %2524 = vmatprep.subr.bf16.mxu0 %v3888_v44  ;;  %2842 = vmatprep.subr.bf16.mxu1 %v3890_v45  ;;  %v3978_v44 = vld [vmem:[%s5780_s1 + $0x328] ss:$16 sps:$4 sm:$0xff]   ;;  %v3983_v45 = vld [vmem:[%s5780_s1 + $0x344] ss:$16 sps:$4 sm:$0xff]  }
  0x2f   :  { %2525 = vmatpush1.bf16.msra.mxu0 %v3892_v46  ;;  %2843 = vmatpush1.bf16.msra.mxu1 %v3893_v47  ;;  %v3986_v46 = vld [vmem:[%s5780_s1 + $0x34c] ss:$16 sps:$4 sm:$0xff]   ;;  %v3981_v47 = vld [vmem:[%s5780_s1 + $0x340] ss:$16 sps:$4 sm:$0xff]  }
  0x30   :  { %2526 = vmatprep.subr.bf16.mxu0 %v3894_v49  ;;  %2844 = vmatprep.subr.bf16.mxu1 %v3896_v50  ;;  %v3989_v49 = vld [vmem:[%s5780_s1 + $0x364] ss:$16 sps:$4 sm:$0xff]   ;;  %v3992_v50 = vld [vmem:[%s5780_s1 + $0x36c] ss:$16 sps:$4 sm:$0xff]  }
  0x33   :  { %2527 = vmatpush1.bf16.msra.mxu0 %v3898_v51  ;;  %2845 = vmatpush1.bf16.msra.mxu1 %v3899_v52  ;;  %v3987_v51 = vld [vmem:[%s5780_s1 + $0x360] ss:$16 sps:$4 sm:$0xff]   ;;  %v3990_v52 = vld [vmem:[%s5780_s1 + $0x368] ss:$16 sps:$4 sm:$0xff]  }
  0x34   :  { %2528 = vmatprep.subr.bf16.mxu0 %v3900_v53  ;;  %2846 = vmatprep.subr.bf16.mxu1 %v3902_v54  ;;  %v3995_v53 = vld [vmem:[%s5780_s1 + $0x384] ss:$16 sps:$4 sm:$0xff]   ;;  %v3998_v54 = vld [vmem:[%s5780_s1 + $0x38c] ss:$16 sps:$4 sm:$0xff]  }
  0x37   :  { %2529 = vmatpush1.bf16.msra.mxu0 %v3904_v55  ;;  %2847 = vmatpush1.bf16.msra.mxu1 %v3905_v56  ;;  %v3993_v55 = vld [vmem:[%s5780_s1 + $0x380] ss:$16 sps:$4 sm:$0xff]   ;;  %v3996_v56 = vld [vmem:[%s5780_s1 + $0x388] ss:$16 sps:$4 sm:$0xff]  }
  0x38   :  { %2530 = vmatprep.subr.bf16.mxu0 %v3906_v57  ;;  %2848 = vmatprep.subr.bf16.mxu1 %v3908_v58  ;;  %v4001_v57 = vld [vmem:[%s5780_s1 + $0x3a4] ss:$16 sps:$4 sm:$0xff]   ;;  %v4004_v58 = vld [vmem:[%s5780_s1 + $0x3ac] ss:$16 sps:$4 sm:$0xff]  }
  0x3b   :  { %2531 = vmatpush1.bf16.msra.mxu0 %v3910_v59  ;;  %2849 = vmatpush1.bf16.msra.mxu1 %v3911_v60  ;;  %v3999_v59 = vld [vmem:[%s5780_s1 + $0x3a0] ss:$16 sps:$4 sm:$0xff]   ;;  %v4002_v60 = vld [vmem:[%s5780_s1 + $0x3a8] ss:$16 sps:$4 sm:$0xff]  }
  0x3c   :  { %2532 = vmatprep.subr.bf16.mxu0 %v3912_v61  ;;  %2850 = vmatprep.subr.bf16.mxu1 %v3914_v62  ;;  %v4009_v61 = vld [vmem:[%s5780_s1 + $0x3c4] ss:$16 sps:$4 sm:$0xff]   ;;  %v4012_v62 = vld [vmem:[%s5780_s1 + $0x3cc] ss:$16 sps:$4 sm:$0xff]  }
  0x3f   :  { %2533 = vmatpush1.bf16.msra.mxu0 %v3916_v63  ;;  %2851 = vmatpush1.bf16.msra.mxu1 %v3917_v0  ;;  %v4007_v63 = vld [vmem:[%s5780_s1 + $0x3c0] ss:$16 sps:$4 sm:$0xff]   ;;  %v4010_v0 = vld [vmem:[%s5780_s1 + $0x3c8] ss:$16 sps:$4 sm:$0xff]  }
  0x40   :  { %2555 = vmatprep.subr.bf16.mxu0 %v3923_v1  ;;  %2873 = vmatprep.subr.bf16.mxu1 %v3926_v2  ;;  %v4016_v1 = vld [vmem:[%s5780_s1 + $0x3e4] ss:$16 sps:$4 sm:$0xff]   ;;  %v4019_v2 = vld [vmem:[%s5780_s1 + $0x3ec] ss:$16 sps:$4 sm:$0xff]  }
  0x42   :  { %2535 = vmatmul.mubr.bf16.vlgmr.msra.gmra.mrb[0].mxu0 %v3918_v3  ;;  %2853 = vmatmul.mubr.bf16.vlgmr.msra.gmra.mrb[0].mxu1 %v3918_v3  ;;  %v4014_v3 = vld [vmem:[%s5780_s1 + $0x3e0] ss:$16 sps:$4 sm:$0xff]  }
  0x43   :  { %2556 = vmatpush1.bf16.msra.mxu0 %v3921_v4  ;;  %2874 = vmatpush1.bf16.msra.mxu1 %v3924_v5  ;;  %v4017_v4 = vld [vmem:[%s5780_s1 + $0x3e8] ss:$16 sps:$4 sm:$0xff]   ;;  %v4025_v5 = vld [vmem:[%s5780_s1 + $0x404] ss:$16 sps:$4 sm:$0xff]  }
  0x44   :  { %2557 = vmatprep.subr.bf16.mxu0 %v3929_v6  ;;  %2875 = vmatprep.subr.bf16.mxu1 %v3932_v7  ;;  %v4028_v6 = vld [vmem:[%s5780_s1 + $0x40c] ss:$16 sps:$4 sm:$0xff]   ;;  %v4020_v7 = vld [vmem:[%s5781_s0 + $0x8] ss:$48 sps:$4 sm:$0xff]  }
  0x45   :  { %2544 = vmatprep.mubr.bf16.mxu0 %v4005_v24  ;;  %2862 = vmatprep.mubr.bf16.mxu1 %v4005_v24  ;;  %v4044_v24 = vld [vmem:[%s5780_s1 + $0x468] ss:$16 sps:$4 sm:$0xff]  }
  0x47   :  { %2558 = vmatpush1.bf16.msra.mxu0 %v3927_v8  ;;  %2876 = vmatpush1.bf16.msra.mxu1 %v3930_v9  ;;  %v4023_v8 = vld [vmem:[%s5780_s1 + $0x400] ss:$16 sps:$4 sm:$0xff]   ;;  %v4026_v9 = vld [vmem:[%s5780_s1 + $0x408] ss:$16 sps:$4 sm:$0xff]  }
  0x48   :  { %2559 = vmatprep.subr.bf16.mxu0 %v3935_v10  ;;  %2877 = vmatprep.subr.bf16.mxu1 %v3938_v11  ;;  %v4031_v10 = vld [vmem:[%s5780_s1 + $0x424] ss:$16 sps:$4 sm:$0xff]   ;;  %v4034_v11 = vld [vmem:[%s5780_s1 + $0x42c] ss:$16 sps:$4 sm:$0xff]  }
  0x4a   :  { %2545 = vmatmul.mubr.bf16.gmra.mrb[4].mxu0 %v4013_v29  ;;  %2863 = vmatmul.mubr.bf16.gmra.mrb[4].mxu1 %v4013_v29  ;;  %v4055_v29 = vld [vmem:[%s5780_s1 + $0x4a4] ss:$16 sps:$4 sm:$0xff]  }
  0x4b   :  { %2560 = vmatpush1.bf16.msra.mxu0 %v3933_v12  ;;  %2878 = vmatpush1.bf16.msra.mxu1 %v3936_v13  ;;  %v4107_v12 = vld [vmem:[%s5781_s0 + $0x6c] ss:$48 sps:$4 sm:$0xff]   ;;  %v4029_v13 = vld [vmem:[%s5780_s1 + $0x420] ss:$16 sps:$4 sm:$0xff]  }
  0x4c   :  { %2561 = vmatprep.subr.bf16.mxu0 %v3941_v14  ;;  %2879 = vmatprep.subr.bf16.mxu1 %v3944_v15  ;;  %v4032_v14 = vld [vmem:[%s5780_s1 + $0x428] ss:$16 sps:$4 sm:$0xff]   ;;  %v4037_v15 = vld [vmem:[%s5780_s1 + $0x444] ss:$16 sps:$4 sm:$0xff]  }
  0x4d   :  { %2587 = vmatprep.mubr.bf16.mxu0 %v4022_v34  ;;  %2905 = vmatprep.mubr.bf16.mxu1 %v4022_v34  ;;  %v4064_v34 = vld [vmem:[%s5780_s1 + $0x4cc] ss:$16 sps:$4 sm:$0xff]  }
  0x4f   :  { %2562 = vmatpush1.bf16.msra.mxu0 %v3939_v16  ;;  %2880 = vmatpush1.bf16.msra.mxu1 %v3942_v17  ;;  %v4040_v16 = vld [vmem:[%s5780_s1 + $0x44c] ss:$16 sps:$4 sm:$0xff]   ;;  %v4035_v17 = vld [vmem:[%s5780_s1 + $0x440] ss:$16 sps:$4 sm:$0xff]  }
  0x50   :  { %2563 = vmatprep.subr.bf16.mxu0 %v3947_v18  ;;  %2881 = vmatprep.subr.bf16.mxu1 %v3950_v19  ;;  %v4038_v18 = vld [vmem:[%s5780_s1 + $0x448] ss:$16 sps:$4 sm:$0xff]  }
  0x51   :  { %v4115_v19 = vld [vmem:[%s5781_s0 + $0x68] ss:$48 sps:$4 sm:$0xff]  }
  0x53   :  { %2564 = vmatpush1.bf16.msra.mxu0 %v3945_v20  ;;  %2882 = vmatpush1.bf16.msra.mxu1 %v3948_v21  ;;  %v4043_v20 = vld [vmem:[%s5780_s1 + $0x464] ss:$16 sps:$4 sm:$0xff]   ;;  %v4046_v21 = vld [vmem:[%s5780_s1 + $0x46c] ss:$16 sps:$4 sm:$0xff]  }
  0x54   :  { %2565 = vmatprep.subr.bf16.mxu0 %v3953_v22  ;;  %2883 = vmatprep.subr.bf16.mxu1 %v3956_v23  ;;  %v4124_v22 = vld [vmem:[%s5781_s0 + $0x14] ss:$48 sps:$4 sm:$0xff]   ;;  %v4041_v23 = vld [vmem:[%s5780_s1 + $0x460] ss:$16 sps:$4 sm:$0xff]  }
  0x57   :  { %2566 = vmatpush1.bf16.msra.mxu0 %v3951_v25  ;;  %2884 = vmatpush1.bf16.msra.mxu1 %v3954_v26  ;;  %v4049_v25 = vld [vmem:[%s5780_s1 + $0x484] ss:$16 sps:$4 sm:$0xff]   ;;  %v4052_v26 = vld [vmem:[%s5780_s1 + $0x48c] ss:$16 sps:$4 sm:$0xff]  }
  0x58   :  { %2567 = vmatprep.subr.bf16.mxu0 %v3959_v27  ;;  %2885 = vmatprep.subr.bf16.mxu1 %v3962_v28  ;;  %v4047_v27 = vld [vmem:[%s5780_s1 + $0x480] ss:$16 sps:$4 sm:$0xff]   ;;  %v4050_v28 = vld [vmem:[%s5780_s1 + $0x488] ss:$16 sps:$4 sm:$0xff]  }
  0x5b   :  { %2568 = vmatpush1.bf16.msra.mxu0 %v3957_v30  ;;  %2886 = vmatpush1.bf16.msra.mxu1 %v3960_v31  ;;  %v4058_v30 = vld [vmem:[%s5780_s1 + $0x4ac] ss:$16 sps:$4 sm:$0xff]   ;;  %v4053_v31 = vld [vmem:[%s5780_s1 + $0x4a0] ss:$16 sps:$4 sm:$0xff]  }
  0x5c   :  { %2569 = vmatprep.subr.bf16.mxu0 %v3965_v32  ;;  %2887 = vmatprep.subr.bf16.mxu1 %v3968_v33  ;;  %v4056_v32 = vld [vmem:[%s5780_s1 + $0x4a8] ss:$16 sps:$4 sm:$0xff]   ;;  %v4061_v33 = vld [vmem:[%s5780_s1 + $0x4c4] ss:$16 sps:$4 sm:$0xff]  }
  0x5f   :  { %2570 = vmatpush1.bf16.msra.mxu0 %v3963_v35  ;;  %2888 = vmatpush1.bf16.msra.mxu1 %v3966_v36  ;;  %v4059_v35 = vld [vmem:[%s5780_s1 + $0x4c0] ss:$16 sps:$4 sm:$0xff]   ;;  %v4062_v36 = vld [vmem:[%s5780_s1 + $0x4c8] ss:$16 sps:$4 sm:$0xff]  }
  0x60   :  { %2571 = vmatprep.subr.bf16.mxu0 %v3971_v37  ;;  %2889 = vmatprep.subr.bf16.mxu1 %v3974_v38  ;;  %v4067_v37 = vld [vmem:[%s5780_s1 + $0x4e4] ss:$16 sps:$4 sm:$0xff]   ;;  %v4070_v38 = vld [vmem:[%s5780_s1 + $0x4ec] ss:$16 sps:$4 sm:$0xff]  }
  0x63   :  { %2572 = vmatpush1.bf16.msra.mxu0 %v3969_v39  ;;  %2890 = vmatpush1.bf16.msra.mxu1 %v3972_v40  ;;  %v4065_v39 = vld [vmem:[%s5780_s1 + $0x4e0] ss:$16 sps:$4 sm:$0xff]   ;;  %v4068_v40 = vld [vmem:[%s5780_s1 + $0x4e8] ss:$16 sps:$4 sm:$0xff]  }
  0x64   :  { %2573 = vmatprep.subr.bf16.mxu0 %v3977_v41  ;;  %2891 = vmatprep.subr.bf16.mxu1 %v3980_v42  ;;  %v4073_v41 = vld [vmem:[%s5780_s1 + $0x504] ss:$16 sps:$4 sm:$0xff]   ;;  %v4076_v42 = vld [vmem:[%s5780_s1 + $0x50c] ss:$16 sps:$4 sm:$0xff]  }
  0x67   :  { %2574 = vmatpush1.bf16.msra.mxu0 %v3975_v43  ;;  %2892 = vmatpush1.bf16.msra.mxu1 %v3978_v44  ;;  %v4071_v43 = vld [vmem:[%s5780_s1 + $0x500] ss:$16 sps:$4 sm:$0xff]   ;;  %v4074_v44 = vld [vmem:[%s5780_s1 + $0x508] ss:$16 sps:$4 sm:$0xff]  }
  0x68   :  { %2575 = vmatprep.subr.bf16.mxu0 %v3983_v45  ;;  %2893 = vmatprep.subr.bf16.mxu1 %v3986_v46  ;;  %v4079_v45 = vld [vmem:[%s5780_s1 + $0x524] ss:$16 sps:$4 sm:$0xff]   ;;  %v4082_v46 = vld [vmem:[%s5780_s1 + $0x52c] ss:$16 sps:$4 sm:$0xff]  }
  0x6b   :  { %2576 = vmatpush1.bf16.msra.mxu0 %v3981_v47  ;;  %2894 = vmatpush1.bf16.msra.mxu1 %v3984_v48  ;;  %v4077_v47 = vld [vmem:[%s5780_s1 + $0x520] ss:$16 sps:$4 sm:$0xff]   ;;  %v4080_v48 = vld [vmem:[%s5780_s1 + $0x528] ss:$16 sps:$4 sm:$0xff]  }
  0x6c   :  { %2577 = vmatprep.subr.bf16.mxu0 %v3989_v49  ;;  %2895 = vmatprep.subr.bf16.mxu1 %v3992_v50  ;;  %v4085_v49 = vld [vmem:[%s5780_s1 + $0x544] ss:$16 sps:$4 sm:$0xff]   ;;  %v4088_v50 = vld [vmem:[%s5780_s1 + $0x54c] ss:$16 sps:$4 sm:$0xff]  }
  0x6f   :  { %2578 = vmatpush1.bf16.msra.mxu0 %v3987_v51  ;;  %2896 = vmatpush1.bf16.msra.mxu1 %v3990_v52  ;;  %v4083_v51 = vld [vmem:[%s5780_s1 + $0x540] ss:$16 sps:$4 sm:$0xff]   ;;  %v4086_v52 = vld [vmem:[%s5780_s1 + $0x548] ss:$16 sps:$4 sm:$0xff]  }
  0x70   :  { %2579 = vmatprep.subr.bf16.mxu0 %v3995_v53  ;;  %2897 = vmatprep.subr.bf16.mxu1 %v3998_v54  ;;  %v4091_v53 = vld [vmem:[%s5780_s1 + $0x564] ss:$16 sps:$4 sm:$0xff]   ;;  %v4094_v54 = vld [vmem:[%s5780_s1 + $0x56c] ss:$16 sps:$4 sm:$0xff]  }
  0x73   :  { %2580 = vmatpush1.bf16.msra.mxu0 %v3993_v55  ;;  %2898 = vmatpush1.bf16.msra.mxu1 %v3996_v56  ;;  %v4089_v55 = vld [vmem:[%s5780_s1 + $0x560] ss:$16 sps:$4 sm:$0xff]   ;;  %v4092_v56 = vld [vmem:[%s5780_s1 + $0x568] ss:$16 sps:$4 sm:$0xff]  }
  0x74   :  { %2581 = vmatprep.subr.bf16.mxu0 %v4001_v57  ;;  %2899 = vmatprep.subr.bf16.mxu1 %v4004_v58  ;;  %v4097_v57 = vld [vmem:[%s5780_s1 + $0x584] ss:$16 sps:$4 sm:$0xff]   ;;  %v4100_v58 = vld [vmem:[%s5780_s1 + $0x58c] ss:$16 sps:$4 sm:$0xff]  }
  0x77   :  { %2582 = vmatpush1.bf16.msra.mxu0 %v3999_v59  ;;  %2900 = vmatpush1.bf16.msra.mxu1 %v4002_v60  ;;  %v4095_v59 = vld [vmem:[%s5780_s1 + $0x580] ss:$16 sps:$4 sm:$0xff]   ;;  %v4098_v60 = vld [vmem:[%s5780_s1 + $0x588] ss:$16 sps:$4 sm:$0xff]  }
  0x78   :  { %2583 = vmatprep.subr.bf16.mxu0 %v4009_v61  ;;  %2901 = vmatprep.subr.bf16.mxu1 %v4012_v62  ;;  %v4103_v61 = vld [vmem:[%s5780_s1 + $0x5a4] ss:$16 sps:$4 sm:$0xff]   ;;  %v4106_v62 = vld [vmem:[%s5780_s1 + $0x5ac] ss:$16 sps:$4 sm:$0xff]  }
  0x7b   :  { %2584 = vmatpush1.bf16.msra.mxu0 %v4007_v63  ;;  %2902 = vmatpush1.bf16.msra.mxu1 %v4010_v0  ;;  %v4101_v63 = vld [vmem:[%s5780_s1 + $0x5a0] ss:$16 sps:$4 sm:$0xff]   ;;  %v4104_v0 = vld [vmem:[%s5780_s1 + $0x5a8] ss:$16 sps:$4 sm:$0xff]  }
  0x7c   :  { %2585 = vmatprep.subr.bf16.mxu0 %v4016_v1  ;;  %2903 = vmatprep.subr.bf16.mxu1 %v4019_v2  ;;  %v4111_v1 = vld [vmem:[%s5780_s1 + $0x5c4] ss:$16 sps:$4 sm:$0xff]   ;;  %v4114_v2 = vld [vmem:[%s5780_s1 + $0x5cc] ss:$16 sps:$4 sm:$0xff]  }
  0x7f   :  { %2586 = vmatpush1.bf16.msra.mxu0 %v4014_v3  ;;  %2904 = vmatpush1.bf16.msra.mxu1 %v4017_v4  ;;  %v4109_v3 = vld [vmem:[%s5780_s1 + $0x5c0] ss:$16 sps:$4 sm:$0xff]   ;;  %v4112_v4 = vld [vmem:[%s5780_s1 + $0x5c8] ss:$16 sps:$4 sm:$0xff]  }
  0x80   :  { %2608 = vmatprep.subr.bf16.mxu0 %v4025_v5  ;;  %2926 = vmatprep.subr.bf16.mxu1 %v4028_v6  ;;  %v4118_v5 = vld [vmem:[%s5780_s1 + $0x5e4] ss:$16 sps:$4 sm:$0xff]   ;;  %v4121_v6 = vld [vmem:[%s5780_s1 + $0x5ec] ss:$16 sps:$4 sm:$0xff]  }
  0x82   :  { %2588 = vmatmul.mubr.bf16.vlgmr.msra.gmra.mrb[0].mxu0 %v4020_v7  ;;  %2906 = vmatmul.mubr.bf16.vlgmr.msra.gmra.mrb[0].mxu1 %v4020_v7  ;;  %v4116_v7 = vld [vmem:[%s5780_s1 + $0x5e0] ss:$16 sps:$4 sm:$0xff]  }
  0x83   :  { %2609 = vmatpush1.bf16.msra.mxu0 %v4023_v8  ;;  %2927 = vmatpush1.bf16.msra.mxu1 %v4026_v9  ;;  %v4119_v8 = vld [vmem:[%s5780_s1 + $0x5e8] ss:$16 sps:$4 sm:$0xff]   ;;  %v4127_v9 = vld [vmem:[%s5780_s1 + $0x604] ss:$16 sps:$4 sm:$0xff]  }
  0x84   :  { %2610 = vmatprep.subr.bf16.mxu0 %v4031_v10  ;;  %2928 = vmatprep.subr.bf16.mxu1 %v4034_v11  ;;  %v4130_v10 = vld [vmem:[%s5780_s1 + $0x60c] ss:$16 sps:$4 sm:$0xff]   ;;  %v4122_v11 = vld [vmem:[%s5781_s0 + $0x10] ss:$48 sps:$4 sm:$0xff]  }
  0x85   :  { %2597 = vmatprep.mubr.bf16.mxu0 %v4107_v12  ;;  %2915 = vmatprep.mubr.bf16.mxu1 %v4107_v12  ;;  %v4125_v12 = vld [vmem:[%s5780_s1 + $0x600] ss:$16 sps:$4 sm:$0xff]  }
  0x87   :  { %2611 = vmatpush1.bf16.msra.mxu0 %v4029_v13  ;;  %2929 = vmatpush1.bf16.msra.mxu1 %v4032_v14  ;;  %v4128_v13 = vld [vmem:[%s5780_s1 + $0x608] ss:$16 sps:$4 sm:$0xff]   ;;  %v4133_v14 = vld [vmem:[%s5780_s1 + $0x624] ss:$16 sps:$4 sm:$0xff]  }
  0x88   :  { %2612 = vmatprep.subr.bf16.mxu0 %v4037_v15  ;;  %2930 = vmatprep.subr.bf16.mxu1 %v4040_v16  ;;  %v4136_v15 = vld [vmem:[%s5780_s1 + $0x62c] ss:$16 sps:$4 sm:$0xff]   ;;  %v4209_v16 = vld [vmem:[%s5781_s0 + $0x74] ss:$48 sps:$4 sm:$0xff]  }
  0x8a   :  { %2598 = vmatmul.mubr.bf16.gmra.mrb[4].mxu0 %v4115_v19  ;;  %2916 = vmatmul.mubr.bf16.gmra.mrb[4].mxu1 %v4115_v19  ;;  %v4139_v19 = vld [vmem:[%s5780_s1 + $0x644] ss:$16 sps:$4 sm:$0xff]  }
  0x8b   :  { %2613 = vmatpush1.bf16.msra.mxu0 %v4035_v17  ;;  %2931 = vmatpush1.bf16.msra.mxu1 %v4038_v18  ;;  %v4131_v17 = vld [vmem:[%s5780_s1 + $0x620] ss:$16 sps:$4 sm:$0xff]   ;;  %v4134_v18 = vld [vmem:[%s5780_s1 + $0x628] ss:$16 sps:$4 sm:$0xff]  }
  0x8c   :  { %2614 = vmatprep.subr.bf16.mxu0 %v4043_v20  ;;  %2932 = vmatprep.subr.bf16.mxu1 %v4046_v21  ;;  %v4142_v20 = vld [vmem:[%s5780_s1 + $0x64c] ss:$16 sps:$4 sm:$0xff]   ;;  %v4137_v21 = vld [vmem:[%s5780_s1 + $0x640] ss:$16 sps:$4 sm:$0xff]  }
  0x8d   :  { %2640 = vmatprep.mubr.bf16.mxu0 %v4124_v22  ;;  %2958 = vmatprep.mubr.bf16.mxu1 %v4124_v22  ;;  %v4140_v22 = vld [vmem:[%s5780_s1 + $0x648] ss:$16 sps:$4 sm:$0xff]  }
  0x8f   :  { %2615 = vmatpush1.bf16.msra.mxu0 %v4041_v23  ;;  %2933 = vmatpush1.bf16.msra.mxu1 %v4044_v24  ;;  %v4217_v23 = vld [vmem:[%s5781_s0 + $0x70] ss:$48 sps:$4 sm:$0xff]   ;;  %v4145_v24 = vld [vmem:[%s5780_s1 + $0x664] ss:$16 sps:$4 sm:$0xff]  }
  0x90   :  { %2616 = vmatprep.subr.bf16.mxu0 %v4049_v25  ;;  %2934 = vmatprep.subr.bf16.mxu1 %v4052_v26  ;;  %v4148_v25 = vld [vmem:[%s5780_s1 + $0x66c] ss:$16 sps:$4 sm:$0xff]  }
  0x91   :  { %v4226_v26 = vld [vmem:[%s5781_s0 + $0x1c] ss:$48 sps:$4 sm:$0xff]  }
  0x93   :  { %2617 = vmatpush1.bf16.msra.mxu0 %v4047_v27  ;;  %2935 = vmatpush1.bf16.msra.mxu1 %v4050_v28  ;;  %v4143_v27 = vld [vmem:[%s5780_s1 + $0x660] ss:$16 sps:$4 sm:$0xff]   ;;  %v4146_v28 = vld [vmem:[%s5780_s1 + $0x668] ss:$16 sps:$4 sm:$0xff]  }
  0x94   :  { %2618 = vmatprep.subr.bf16.mxu0 %v4055_v29  ;;  %2936 = vmatprep.subr.bf16.mxu1 %v4058_v30  ;;  %v4151_v29 = vld [vmem:[%s5780_s1 + $0x684] ss:$16 sps:$4 sm:$0xff]   ;;  %v4154_v30 = vld [vmem:[%s5780_s1 + $0x68c] ss:$16 sps:$4 sm:$0xff]  }
  0x97   :  { %2619 = vmatpush1.bf16.msra.mxu0 %v4053_v31  ;;  %2937 = vmatpush1.bf16.msra.mxu1 %v4056_v32  ;;  %v4149_v31 = vld [vmem:[%s5780_s1 + $0x680] ss:$16 sps:$4 sm:$0xff]   ;;  %v4152_v32 = vld [vmem:[%s5780_s1 + $0x688] ss:$16 sps:$4 sm:$0xff]  }
  0x98   :  { %2620 = vmatprep.subr.bf16.mxu0 %v4061_v33  ;;  %2938 = vmatprep.subr.bf16.mxu1 %v4064_v34  ;;  %v4157_v33 = vld [vmem:[%s5780_s1 + $0x6a4] ss:$16 sps:$4 sm:$0xff]   ;;  %v4160_v34 = vld [vmem:[%s5780_s1 + $0x6ac] ss:$16 sps:$4 sm:$0xff]  }
  0x9b   :  { %2621 = vmatpush1.bf16.msra.mxu0 %v4059_v35  ;;  %2939 = vmatpush1.bf16.msra.mxu1 %v4062_v36  ;;  %v4155_v35 = vld [vmem:[%s5780_s1 + $0x6a0] ss:$16 sps:$4 sm:$0xff]   ;;  %v4158_v36 = vld [vmem:[%s5780_s1 + $0x6a8] ss:$16 sps:$4 sm:$0xff]  }
  0x9c   :  { %2622 = vmatprep.subr.bf16.mxu0 %v4067_v37  ;;  %2940 = vmatprep.subr.bf16.mxu1 %v4070_v38  ;;  %v4163_v37 = vld [vmem:[%s5780_s1 + $0x6c4] ss:$16 sps:$4 sm:$0xff]   ;;  %v4166_v38 = vld [vmem:[%s5780_s1 + $0x6cc] ss:$16 sps:$4 sm:$0xff]  }
  0x9f   :  { %2623 = vmatpush1.bf16.msra.mxu0 %v4065_v39  ;;  %2941 = vmatpush1.bf16.msra.mxu1 %v4068_v40  ;;  %v4161_v39 = vld [vmem:[%s5780_s1 + $0x6c0] ss:$16 sps:$4 sm:$0xff]   ;;  %v4164_v40 = vld [vmem:[%s5780_s1 + $0x6c8] ss:$16 sps:$4 sm:$0xff]  }
  0xa0   :  { %2624 = vmatprep.subr.bf16.mxu0 %v4073_v41  ;;  %2942 = vmatprep.subr.bf16.mxu1 %v4076_v42  ;;  %v4169_v41 = vld [vmem:[%s5780_s1 + $0x6e4] ss:$16 sps:$4 sm:$0xff]   ;;  %v4172_v42 = vld [vmem:[%s5780_s1 + $0x6ec] ss:$16 sps:$4 sm:$0xff]  }
  0xa3   :  { %2625 = vmatpush1.bf16.msra.mxu0 %v4071_v43  ;;  %2943 = vmatpush1.bf16.msra.mxu1 %v4074_v44  ;;  %v4167_v43 = vld [vmem:[%s5780_s1 + $0x6e0] ss:$16 sps:$4 sm:$0xff]   ;;  %v4170_v44 = vld [vmem:[%s5780_s1 + $0x6e8] ss:$16 sps:$4 sm:$0xff]  }
  0xa4   :  { %2626 = vmatprep.subr.bf16.mxu0 %v4079_v45  ;;  %2944 = vmatprep.subr.bf16.mxu1 %v4082_v46  ;;  %v4175_v45 = vld [vmem:[%s5780_s1 + $0x704] ss:$16 sps:$4 sm:$0xff]   ;;  %v4178_v46 = vld [vmem:[%s5780_s1 + $0x70c] ss:$16 sps:$4 sm:$0xff]  }
  0xa7   :  { %2627 = vmatpush1.bf16.msra.mxu0 %v4077_v47  ;;  %2945 = vmatpush1.bf16.msra.mxu1 %v4080_v48  ;;  %v4173_v47 = vld [vmem:[%s5780_s1 + $0x700] ss:$16 sps:$4 sm:$0xff]   ;;  %v4176_v48 = vld [vmem:[%s5780_s1 + $0x708] ss:$16 sps:$4 sm:$0xff]  }
  0xa8   :  { %2628 = vmatprep.subr.bf16.mxu0 %v4085_v49  ;;  %2946 = vmatprep.subr.bf16.mxu1 %v4088_v50  ;;  %v4181_v49 = vld [vmem:[%s5780_s1 + $0x724] ss:$16 sps:$4 sm:$0xff]   ;;  %v4184_v50 = vld [vmem:[%s5780_s1 + $0x72c] ss:$16 sps:$4 sm:$0xff]  }
  0xab   :  { %2629 = vmatpush1.bf16.msra.mxu0 %v4083_v51  ;;  %2947 = vmatpush1.bf16.msra.mxu1 %v4086_v52  ;;  %v4179_v51 = vld [vmem:[%s5780_s1 + $0x720] ss:$16 sps:$4 sm:$0xff]   ;;  %v4182_v52 = vld [vmem:[%s5780_s1 + $0x728] ss:$16 sps:$4 sm:$0xff]  }
  0xac   :  { %2630 = vmatprep.subr.bf16.mxu0 %v4091_v53  ;;  %2948 = vmatprep.subr.bf16.mxu1 %v4094_v54  ;;  %v4187_v53 = vld [vmem:[%s5780_s1 + $0x744] ss:$16 sps:$4 sm:$0xff]   ;;  %v4190_v54 = vld [vmem:[%s5780_s1 + $0x74c] ss:$16 sps:$4 sm:$0xff]  }
  0xaf   :  { %2631 = vmatpush1.bf16.msra.mxu0 %v4089_v55  ;;  %2949 = vmatpush1.bf16.msra.mxu1 %v4092_v56  ;;  %v4185_v55 = vld [vmem:[%s5780_s1 + $0x740] ss:$16 sps:$4 sm:$0xff]   ;;  %v4188_v56 = vld [vmem:[%s5780_s1 + $0x748] ss:$16 sps:$4 sm:$0xff]  }
  0xb0   :  { %2632 = vmatprep.subr.bf16.mxu0 %v4097_v57  ;;  %2950 = vmatprep.subr.bf16.mxu1 %v4100_v58  ;;  %v4193_v57 = vld [vmem:[%s5780_s1 + $0x764] ss:$16 sps:$4 sm:$0xff]   ;;  %v4196_v58 = vld [vmem:[%s5780_s1 + $0x76c] ss:$16 sps:$4 sm:$0xff]  }
  0xb3   :  { %2633 = vmatpush1.bf16.msra.mxu0 %v4095_v59  ;;  %2951 = vmatpush1.bf16.msra.mxu1 %v4098_v60  ;;  %v4191_v59 = vld [vmem:[%s5780_s1 + $0x760] ss:$16 sps:$4 sm:$0xff]   ;;  %v4194_v60 = vld [vmem:[%s5780_s1 + $0x768] ss:$16 sps:$4 sm:$0xff]  }
  0xb4   :  { %2634 = vmatprep.subr.bf16.mxu0 %v4103_v61  ;;  %2952 = vmatprep.subr.bf16.mxu1 %v4106_v62  ;;  %v4199_v61 = vld [vmem:[%s5780_s1 + $0x784] ss:$16 sps:$4 sm:$0xff]   ;;  %v4202_v62 = vld [vmem:[%s5780_s1 + $0x78c] ss:$16 sps:$4 sm:$0xff]  }
  0xb7   :  { %2635 = vmatpush1.bf16.msra.mxu0 %v4101_v63  ;;  %2953 = vmatpush1.bf16.msra.mxu1 %v4104_v0  ;;  %v4197_v63 = vld [vmem:[%s5780_s1 + $0x780] ss:$16 sps:$4 sm:$0xff]   ;;  %v4200_v0 = vld [vmem:[%s5780_s1 + $0x788] ss:$16 sps:$4 sm:$0xff]  }
  0xb8   :  { %2636 = vmatprep.subr.bf16.mxu0 %v4111_v1  ;;  %2954 = vmatprep.subr.bf16.mxu1 %v4114_v2  ;;  %v4205_v1 = vld [vmem:[%s5780_s1 + $0x7a4] ss:$16 sps:$4 sm:$0xff]   ;;  %v4208_v2 = vld [vmem:[%s5780_s1 + $0x7ac] ss:$16 sps:$4 sm:$0xff]  }
  0xbb   :  { %2637 = vmatpush1.bf16.msra.mxu0 %v4109_v3  ;;  %2955 = vmatpush1.bf16.msra.mxu1 %v4112_v4  ;;  %v4203_v3 = vld [vmem:[%s5780_s1 + $0x7a0] ss:$16 sps:$4 sm:$0xff]   ;;  %v4206_v4 = vld [vmem:[%s5780_s1 + $0x7a8] ss:$16 sps:$4 sm:$0xff]  }
  0xbc   :  { %2638 = vmatprep.subr.bf16.mxu0 %v4118_v5  ;;  %2956 = vmatprep.subr.bf16.mxu1 %v4121_v6  ;;  %v4213_v5 = vld [vmem:[%s5780_s1 + $0x7c4] ss:$16 sps:$4 sm:$0xff]   ;;  %v4216_v6 = vld [vmem:[%s5780_s1 + $0x7cc] ss:$16 sps:$4 sm:$0xff]  }
  0xbf   :  { %2639 = vmatpush1.bf16.msra.mxu0 %v4116_v7  ;;  %2957 = vmatpush1.bf16.msra.mxu1 %v4119_v8  ;;  %v4211_v7 = vld [vmem:[%s5780_s1 + $0x7c0] ss:$16 sps:$4 sm:$0xff]   ;;  %v4214_v8 = vld [vmem:[%s5780_s1 + $0x7c8] ss:$16 sps:$4 sm:$0xff]  }
  0xc0   :  { %2661 = vmatprep.subr.bf16.mxu0 %v4127_v9  ;;  %2979 = vmatprep.subr.bf16.mxu1 %v4130_v10  ;;  %v4220_v9 = vld [vmem:[%s5780_s1 + $0x7e4] ss:$16 sps:$4 sm:$0xff]   ;;  %v4223_v10 = vld [vmem:[%s5780_s1 + $0x7ec] ss:$16 sps:$4 sm:$0xff]  }
  0xc2   :  { %2641 = vmatmul.mubr.bf16.vlgmr.msra.gmra.mrb[0].mxu0 %v4122_v11  ;;  %2959 = vmatmul.mubr.bf16.vlgmr.msra.gmra.mrb[0].mxu1 %v4122_v11  ;;  %v4218_v11 = vld [vmem:[%s5780_s1 + $0x7e0] ss:$16 sps:$4 sm:$0xff]  }
  0xc3   :  { %2662 = vmatpush1.bf16.msra.mxu0 %v4125_v12  ;;  %2980 = vmatpush1.bf16.msra.mxu1 %v4128_v13  ;;  %v4221_v12 = vld [vmem:[%s5780_s1 + $0x7e8] ss:$16 sps:$4 sm:$0xff]   ;;  %v4229_v13 = vld [vmem:[%s5780_s1 + $0x804] ss:$16 sps:$4 sm:$0xff]  }
  0xc4   :  { %2663 = vmatprep.subr.bf16.mxu0 %v4133_v14  ;;  %2981 = vmatprep.subr.bf16.mxu1 %v4136_v15  ;;  %v4232_v14 = vld [vmem:[%s5780_s1 + $0x80c] ss:$16 sps:$4 sm:$0xff]   ;;  %v4224_v15 = vld [vmem:[%s5781_s0 + $0x18] ss:$48 sps:$4 sm:$0xff]  }
  0xc5   :  { %2650 = vmatprep.mubr.bf16.mxu0 %v4209_v16  ;;  %2968 = vmatprep.mubr.bf16.mxu1 %v4209_v16  ;;  %v4227_v16 = vld [vmem:[%s5780_s1 + $0x800] ss:$16 sps:$4 sm:$0xff]  }
  0xc7   :  { %2664 = vmatpush1.bf16.msra.mxu0 %v4131_v17  ;;  %2982 = vmatpush1.bf16.msra.mxu1 %v4134_v18  ;;  %v4230_v17 = vld [vmem:[%s5780_s1 + $0x808] ss:$16 sps:$4 sm:$0xff]   ;;  %v4235_v18 = vld [vmem:[%s5780_s1 + $0x824] ss:$16 sps:$4 sm:$0xff]  }
  0xc8   :  { %2665 = vmatprep.subr.bf16.mxu0 %v4139_v19  ;;  %2983 = vmatprep.subr.bf16.mxu1 %v4142_v20  ;;  %v4238_v19 = vld [vmem:[%s5780_s1 + $0x82c] ss:$16 sps:$4 sm:$0xff]  }
  0xc9   :  { %v4311_v20 = vld [vmem:[%s5781_s0 + $0x7c] ss:$48 sps:$4 sm:$0xff]  }
  0xca   :  { %2651 = vmatmul.mubr.bf16.gmra.mrb[4].mxu0 %v4217_v23  ;;  %2969 = vmatmul.mubr.bf16.gmra.mrb[4].mxu1 %v4217_v23  ;;  %v4241_v23 = vld [vmem:[%s5780_s1 + $0x844] ss:$16 sps:$4 sm:$0xff]  }
  0xcb   :  { %2666 = vmatpush1.bf16.msra.mxu0 %v4137_v21  ;;  %2984 = vmatpush1.bf16.msra.mxu1 %v4140_v22  ;;  %v4233_v21 = vld [vmem:[%s5780_s1 + $0x820] ss:$16 sps:$4 sm:$0xff]   ;;  %v4236_v22 = vld [vmem:[%s5780_s1 + $0x828] ss:$16 sps:$4 sm:$0xff]  }
  0xcc   :  { %2667 = vmatprep.subr.bf16.mxu0 %v4145_v24  ;;  %2985 = vmatprep.subr.bf16.mxu1 %v4148_v25  ;;  %v4244_v24 = vld [vmem:[%s5780_s1 + $0x84c] ss:$16 sps:$4 sm:$0xff]   ;;  %v4239_v25 = vld [vmem:[%s5780_s1 + $0x840] ss:$16 sps:$4 sm:$0xff]  }
  0xcd   :  { %2693 = vmatprep.mubr.bf16.mxu0 %v4226_v26  ;;  %3011 = vmatprep.mubr.bf16.mxu1 %v4226_v26  ;;  %v4242_v26 = vld [vmem:[%s5780_s1 + $0x848] ss:$16 sps:$4 sm:$0xff]  }
  0xcf   :  { %2668 = vmatpush1.bf16.msra.mxu0 %v4143_v27  ;;  %2986 = vmatpush1.bf16.msra.mxu1 %v4146_v28  ;;  %v4319_v27 = vld [vmem:[%s5781_s0 + $0x78] ss:$48 sps:$4 sm:$0xff]   ;;  %v4247_v28 = vld [vmem:[%s5780_s1 + $0x864] ss:$16 sps:$4 sm:$0xff]  }
  0xd0   :  { %2669 = vmatprep.subr.bf16.mxu0 %v4151_v29  ;;  %2987 = vmatprep.subr.bf16.mxu1 %v4154_v30  ;;  %v4250_v29 = vld [vmem:[%s5780_s1 + $0x86c] ss:$16 sps:$4 sm:$0xff]   ;;  %v4328_v30 = vld [vmem:[%s5781_s0 + $0x24] ss:$48 sps:$4 sm:$0xff]  }
  0xd3   :  { %2670 = vmatpush1.bf16.msra.mxu0 %v4149_v31  ;;  %2988 = vmatpush1.bf16.msra.mxu1 %v4152_v32  ;;  %v4245_v31 = vld [vmem:[%s5780_s1 + $0x860] ss:$16 sps:$4 sm:$0xff]   ;;  %v4248_v32 = vld [vmem:[%s5780_s1 + $0x868] ss:$16 sps:$4 sm:$0xff]  }
  0xd4   :  { %2671 = vmatprep.subr.bf16.mxu0 %v4157_v33  ;;  %2989 = vmatprep.subr.bf16.mxu1 %v4160_v34  ;;  %v4253_v33 = vld [vmem:[%s5780_s1 + $0x884] ss:$16 sps:$4 sm:$0xff]   ;;  %v4256_v34 = vld [vmem:[%s5780_s1 + $0x88c] ss:$16 sps:$4 sm:$0xff]  }
  0xd7   :  { %2672 = vmatpush1.bf16.msra.mxu0 %v4155_v35  ;;  %2990 = vmatpush1.bf16.msra.mxu1 %v4158_v36  ;;  %v4251_v35 = vld [vmem:[%s5780_s1 + $0x880] ss:$16 sps:$4 sm:$0xff]   ;;  %v4254_v36 = vld [vmem:[%s5780_s1 + $0x888] ss:$16 sps:$4 sm:$0xff]  }
  0xd8   :  { %2673 = vmatprep.subr.bf16.mxu0 %v4163_v37  ;;  %2991 = vmatprep.subr.bf16.mxu1 %v4166_v38  ;;  %v4259_v37 = vld [vmem:[%s5780_s1 + $0x8a4] ss:$16 sps:$4 sm:$0xff]   ;;  %v4262_v38 = vld [vmem:[%s5780_s1 + $0x8ac] ss:$16 sps:$4 sm:$0xff]  }
  0xdb   :  { %2674 = vmatpush1.bf16.msra.mxu0 %v4161_v39  ;;  %2992 = vmatpush1.bf16.msra.mxu1 %v4164_v40  ;;  %v4257_v39 = vld [vmem:[%s5780_s1 + $0x8a0] ss:$16 sps:$4 sm:$0xff]   ;;  %v4260_v40 = vld [vmem:[%s5780_s1 + $0x8a8] ss:$16 sps:$4 sm:$0xff]  }
  0xdc   :  { %2675 = vmatprep.subr.bf16.mxu0 %v4169_v41  ;;  %2993 = vmatprep.subr.bf16.mxu1 %v4172_v42  ;;  %v4265_v41 = vld [vmem:[%s5780_s1 + $0x8c4] ss:$16 sps:$4 sm:$0xff]   ;;  %v4268_v42 = vld [vmem:[%s5780_s1 + $0x8cc] ss:$16 sps:$4 sm:$0xff]  }
  0xdf   :  { %2676 = vmatpush1.bf16.msra.mxu0 %v4167_v43  ;;  %2994 = vmatpush1.bf16.msra.mxu1 %v4170_v44  ;;  %v4263_v43 = vld [vmem:[%s5780_s1 + $0x8c0] ss:$16 sps:$4 sm:$0xff]   ;;  %v4266_v44 = vld [vmem:[%s5780_s1 + $0x8c8] ss:$16 sps:$4 sm:$0xff]  }
  0xe0   :  { %2677 = vmatprep.subr.bf16.mxu0 %v4175_v45  ;;  %2995 = vmatprep.subr.bf16.mxu1 %v4178_v46  ;;  %v4271_v45 = vld [vmem:[%s5780_s1 + $0x8e4] ss:$16 sps:$4 sm:$0xff]   ;;  %v4274_v46 = vld [vmem:[%s5780_s1 + $0x8ec] ss:$16 sps:$4 sm:$0xff]  }
  0xe3   :  { %2678 = vmatpush1.bf16.msra.mxu0 %v4173_v47  ;;  %2996 = vmatpush1.bf16.msra.mxu1 %v4176_v48  ;;  %v4269_v47 = vld [vmem:[%s5780_s1 + $0x8e0] ss:$16 sps:$4 sm:$0xff]   ;;  %v4272_v48 = vld [vmem:[%s5780_s1 + $0x8e8] ss:$16 sps:$4 sm:$0xff]  }
  0xe4   :  { %2679 = vmatprep.subr.bf16.mxu0 %v4181_v49  ;;  %2997 = vmatprep.subr.bf16.mxu1 %v4184_v50  ;;  %v4277_v49 = vld [vmem:[%s5780_s1 + $0x904] ss:$16 sps:$4 sm:$0xff]   ;;  %v4280_v50 = vld [vmem:[%s5780_s1 + $0x90c] ss:$16 sps:$4 sm:$0xff]  }
  0xe7   :  { %2680 = vmatpush1.bf16.msra.mxu0 %v4179_v51  ;;  %2998 = vmatpush1.bf16.msra.mxu1 %v4182_v52  ;;  %v4275_v51 = vld [vmem:[%s5780_s1 + $0x900] ss:$16 sps:$4 sm:$0xff]   ;;  %v4278_v52 = vld [vmem:[%s5780_s1 + $0x908] ss:$16 sps:$4 sm:$0xff]  }
  0xe8   :  { %2681 = vmatprep.subr.bf16.mxu0 %v4187_v53  ;;  %2999 = vmatprep.subr.bf16.mxu1 %v4190_v54  ;;  %v4283_v53 = vld [vmem:[%s5780_s1 + $0x924] ss:$16 sps:$4 sm:$0xff]   ;;  %v4286_v54 = vld [vmem:[%s5780_s1 + $0x92c] ss:$16 sps:$4 sm:$0xff]  }
  0xeb   :  { %2682 = vmatpush1.bf16.msra.mxu0 %v4185_v55  ;;  %3000 = vmatpush1.bf16.msra.mxu1 %v4188_v56  ;;  %v4281_v55 = vld [vmem:[%s5780_s1 + $0x920] ss:$16 sps:$4 sm:$0xff]   ;;  %v4284_v56 = vld [vmem:[%s5780_s1 + $0x928] ss:$16 sps:$4 sm:$0xff]  }
  0xec   :  { %2683 = vmatprep.subr.bf16.mxu0 %v4193_v57  ;;  %3001 = vmatprep.subr.bf16.mxu1 %v4196_v58  ;;  %v4289_v57 = vld [vmem:[%s5780_s1 + $0x944] ss:$16 sps:$4 sm:$0xff]   ;;  %v4292_v58 = vld [vmem:[%s5780_s1 + $0x94c] ss:$16 sps:$4 sm:$0xff]  }
  0xef   :  { %2684 = vmatpush1.bf16.msra.mxu0 %v4191_v59  ;;  %3002 = vmatpush1.bf16.msra.mxu1 %v4194_v60  ;;  %v4287_v59 = vld [vmem:[%s5780_s1 + $0x940] ss:$16 sps:$4 sm:$0xff]   ;;  %v4290_v60 = vld [vmem:[%s5780_s1 + $0x948] ss:$16 sps:$4 sm:$0xff]  }
  0xf0   :  { %2685 = vmatprep.subr.bf16.mxu0 %v4199_v61  ;;  %3003 = vmatprep.subr.bf16.mxu1 %v4202_v62  ;;  %v4295_v61 = vld [vmem:[%s5780_s1 + $0x964] ss:$16 sps:$4 sm:$0xff]   ;;  %v4298_v62 = vld [vmem:[%s5780_s1 + $0x96c] ss:$16 sps:$4 sm:$0xff]  }
  0xf3   :  { %2686 = vmatpush1.bf16.msra.mxu0 %v4197_v63  ;;  %3004 = vmatpush1.bf16.msra.mxu1 %v4200_v0  ;;  %v4293_v63 = vld [vmem:[%s5780_s1 + $0x960] ss:$16 sps:$4 sm:$0xff]   ;;  %v4296_v0 = vld [vmem:[%s5780_s1 + $0x968] ss:$16 sps:$4 sm:$0xff]  }
  0xf4   :  { %2687 = vmatprep.subr.bf16.mxu0 %v4205_v1  ;;  %3005 = vmatprep.subr.bf16.mxu1 %v4208_v2  ;;  %v4301_v1 = vld [vmem:[%s5780_s1 + $0x984] ss:$16 sps:$4 sm:$0xff]   ;;  %v4304_v2 = vld [vmem:[%s5780_s1 + $0x98c] ss:$16 sps:$4 sm:$0xff]  }
  0xf7   :  { %2688 = vmatpush1.bf16.msra.mxu0 %v4203_v3  ;;  %3006 = vmatpush1.bf16.msra.mxu1 %v4206_v4  ;;  %v4299_v3 = vld [vmem:[%s5780_s1 + $0x980] ss:$16 sps:$4 sm:$0xff]   ;;  %v4302_v4 = vld [vmem:[%s5780_s1 + $0x988] ss:$16 sps:$4 sm:$0xff]  }
  0xf8   :  { %2689 = vmatprep.subr.bf16.mxu0 %v4213_v5  ;;  %3007 = vmatprep.subr.bf16.mxu1 %v4216_v6  ;;  %v4307_v5 = vld [vmem:[%s5780_s1 + $0x9a4] ss:$16 sps:$4 sm:$0xff]   ;;  %v4310_v6 = vld [vmem:[%s5780_s1 + $0x9ac] ss:$16 sps:$4 sm:$0xff]  }
  0xfb   :  { %2690 = vmatpush1.bf16.msra.mxu0 %v4211_v7  ;;  %3008 = vmatpush1.bf16.msra.mxu1 %v4214_v8  ;;  %v4305_v7 = vld [vmem:[%s5780_s1 + $0x9a0] ss:$16 sps:$4 sm:$0xff]   ;;  %v4308_v8 = vld [vmem:[%s5780_s1 + $0x9a8] ss:$16 sps:$4 sm:$0xff]  }
  0xfc   :  { %2691 = vmatprep.subr.bf16.mxu0 %v4220_v9  ;;  %3009 = vmatprep.subr.bf16.mxu1 %v4223_v10  ;;  %v4315_v9 = vld [vmem:[%s5780_s1 + $0x9c4] ss:$16 sps:$4 sm:$0xff]   ;;  %v4318_v10 = vld [vmem:[%s5780_s1 + $0x9cc] ss:$16 sps:$4 sm:$0xff]  }
  0xff   :  { %2692 = vmatpush1.bf16.msra.mxu0 %v4218_v11  ;;  %3010 = vmatpush1.bf16.msra.mxu1 %v4221_v12  ;;  %v4313_v11 = vld [vmem:[%s5780_s1 + $0x9c0] ss:$16 sps:$4 sm:$0xff]   ;;  %v4316_v12 = vld [vmem:[%s5780_s1 + $0x9c8] ss:$16 sps:$4 sm:$0xff]  }
 0x100   :  { %2714 = vmatprep.subr.bf16.mxu0 %v4229_v13  ;;  %3032 = vmatprep.subr.bf16.mxu1 %v4232_v14  ;;  %v4322_v13 = vld [vmem:[%s5780_s1 + $0x9e4] ss:$16 sps:$4 sm:$0xff]   ;;  %v4325_v14 = vld [vmem:[%s5780_s1 + $0x9ec] ss:$16 sps:$4 sm:$0xff]  }
 0x102   :  { %2694 = vmatmul.mubr.bf16.vlgmr.msra.gmra.mrb[0].mxu0 %v4224_v15  ;;  %3012 = vmatmul.mubr.bf16.vlgmr.msra.gmra.mrb[0].mxu1 %v4224_v15  ;;  %v4320_v15 = vld [vmem:[%s5780_s1 + $0x9e0] ss:$16 sps:$4 sm:$0xff]  }
 0x103   :  { %2715 = vmatpush1.bf16.msra.mxu0 %v4227_v16  ;;  %3033 = vmatpush1.bf16.msra.mxu1 %v4230_v17  ;;  %v4323_v16 = vld [vmem:[%s5780_s1 + $0x9e8] ss:$16 sps:$4 sm:$0xff]   ;;  %v4331_v17 = vld [vmem:[%s5780_s1 + $0xa04] ss:$16 sps:$4 sm:$0xff]  }
 0x104   :  { %2716 = vmatprep.subr.bf16.mxu0 %v4235_v18  ;;  %3034 = vmatprep.subr.bf16.mxu1 %v4238_v19  ;;  %v4334_v18 = vld [vmem:[%s5780_s1 + $0xa0c] ss:$16 sps:$4 sm:$0xff]   ;;  %v4326_v19 = vld [vmem:[%s5781_s0 + $0x20] ss:$48 sps:$4 sm:$0xff]  }
 0x105   :  { %2703 = vmatprep.mubr.bf16.mxu0 %v4311_v20  ;;  %3021 = vmatprep.mubr.bf16.mxu1 %v4311_v20  ;;  %v4329_v20 = vld [vmem:[%s5780_s1 + $0xa00] ss:$16 sps:$4 sm:$0xff]  }
 0x107   :  { %2717 = vmatpush1.bf16.msra.mxu0 %v4233_v21  ;;  %3035 = vmatpush1.bf16.msra.mxu1 %v4236_v22  ;;  %v4332_v21 = vld [vmem:[%s5780_s1 + $0xa08] ss:$16 sps:$4 sm:$0xff]   ;;  %v4337_v22 = vld [vmem:[%s5780_s1 + $0xa24] ss:$16 sps:$4 sm:$0xff]  }
 0x108   :  { %2718 = vmatprep.subr.bf16.mxu0 %v4241_v23  ;;  %3036 = vmatprep.subr.bf16.mxu1 %v4244_v24  ;;  %v4340_v23 = vld [vmem:[%s5780_s1 + $0xa2c] ss:$16 sps:$4 sm:$0xff]   ;;  %v4413_v24 = vld [vmem:[%s5781_s0 + $0x84] ss:$48 sps:$4 sm:$0xff]  }
 0x10a   :  { %2704 = vmatmul.mubr.bf16.gmra.mrb[4].mxu0 %v4319_v27  ;;  %3022 = vmatmul.mubr.bf16.gmra.mrb[4].mxu1 %v4319_v27  ;;  %v4343_v27 = vld [vmem:[%s5780_s1 + $0xa44] ss:$16 sps:$4 sm:$0xff]  }
 0x10b   :  { %2719 = vmatpush1.bf16.msra.mxu0 %v4239_v25  ;;  %3037 = vmatpush1.bf16.msra.mxu1 %v4242_v26  ;;  %v4335_v25 = vld [vmem:[%s5780_s1 + $0xa20] ss:$16 sps:$4 sm:$0xff]   ;;  %v4338_v26 = vld [vmem:[%s5780_s1 + $0xa28] ss:$16 sps:$4 sm:$0xff]  }
 0x10c   :  { %2720 = vmatprep.subr.bf16.mxu0 %v4247_v28  ;;  %3038 = vmatprep.subr.bf16.mxu1 %v4250_v29  ;;  %v4346_v28 = vld [vmem:[%s5780_s1 + $0xa4c] ss:$16 sps:$4 sm:$0xff]   ;;  %v4415_v29 = vld [vmem:[%s5781_s0 + $0x80] ss:$48 sps:$4 sm:$0xff]  }
 0x10d   :  { %2746 = vmatprep.mubr.bf16.mxu0 %v4328_v30  ;;  %3064 = vmatprep.mubr.bf16.mxu1 %v4328_v30  ;;  %v4341_v30 = vld [vmem:[%s5780_s1 + $0xa40] ss:$16 sps:$4 sm:$0xff]  }
 0x10f   :  { %2721 = vmatpush1.bf16.msra.mxu0 %v4245_v31  ;;  %3039 = vmatpush1.bf16.msra.mxu1 %v4248_v32  ;;  %v4344_v31 = vld [vmem:[%s5780_s1 + $0xa48] ss:$16 sps:$4 sm:$0xff]   ;;  %v4349_v32 = vld [vmem:[%s5780_s1 + $0xa64] ss:$16 sps:$4 sm:$0xff]  }
 0x110   :  { %2722 = vmatprep.subr.bf16.mxu0 %v4253_v33  ;;  %3040 = vmatprep.subr.bf16.mxu1 %v4256_v34  ;;  %v4352_v33 = vld [vmem:[%s5780_s1 + $0xa6c] ss:$16 sps:$4 sm:$0xff]  }
 0x111   :  { %v4430_v34 = vld [vmem:[%s5781_s0 + $0x2c] ss:$48 sps:$4 sm:$0xff]  }
 0x113   :  { %2723 = vmatpush1.bf16.msra.mxu0 %v4251_v35  ;;  %3041 = vmatpush1.bf16.msra.mxu1 %v4254_v36  ;;  %v4347_v35 = vld [vmem:[%s5780_s1 + $0xa60] ss:$16 sps:$4 sm:$0xff]   ;;  %v4350_v36 = vld [vmem:[%s5780_s1 + $0xa68] ss:$16 sps:$4 sm:$0xff]  }
 0x114   :  { %2724 = vmatprep.subr.bf16.mxu0 %v4259_v37  ;;  %3042 = vmatprep.subr.bf16.mxu1 %v4262_v38  ;;  %v4355_v37 = vld [vmem:[%s5780_s1 + $0xa84] ss:$16 sps:$4 sm:$0xff]   ;;  %v4358_v38 = vld [vmem:[%s5780_s1 + $0xa8c] ss:$16 sps:$4 sm:$0xff]  }
 0x117   :  { %2725 = vmatpush1.bf16.msra.mxu0 %v4257_v39  ;;  %3043 = vmatpush1.bf16.msra.mxu1 %v4260_v40  ;;  %v4353_v39 = vld [vmem:[%s5780_s1 + $0xa80] ss:$16 sps:$4 sm:$0xff]   ;;  %v4356_v40 = vld [vmem:[%s5780_s1 + $0xa88] ss:$16 sps:$4 sm:$0xff]  }
 0x118   :  { %2726 = vmatprep.subr.bf16.mxu0 %v4265_v41  ;;  %3044 = vmatprep.subr.bf16.mxu1 %v4268_v42  ;;  %v4361_v41 = vld [vmem:[%s5780_s1 + $0xaa4] ss:$16 sps:$4 sm:$0xff]   ;;  %v4364_v42 = vld [vmem:[%s5780_s1 + $0xaac] ss:$16 sps:$4 sm:$0xff]  }
 0x11b   :  { %2727 = vmatpush1.bf16.msra.mxu0 %v4263_v43  ;;  %3045 = vmatpush1.bf16.msra.mxu1 %v4266_v44  ;;  %v4359_v43 = vld [vmem:[%s5780_s1 + $0xaa0] ss:$16 sps:$4 sm:$0xff]   ;;  %v4362_v44 = vld [vmem:[%s5780_s1 + $0xaa8] ss:$16 sps:$4 sm:$0xff]  }
 0x11c   :  { %2728 = vmatprep.subr.bf16.mxu0 %v4271_v45  ;;  %3046 = vmatprep.subr.bf16.mxu1 %v4274_v46  ;;  %v4367_v45 = vld [vmem:[%s5780_s1 + $0xac4] ss:$16 sps:$4 sm:$0xff]   ;;  %v4370_v46 = vld [vmem:[%s5780_s1 + $0xacc] ss:$16 sps:$4 sm:$0xff]  }
 0x11f   :  { %2729 = vmatpush1.bf16.msra.mxu0 %v4269_v47  ;;  %3047 = vmatpush1.bf16.msra.mxu1 %v4272_v48  ;;  %v4365_v47 = vld [vmem:[%s5780_s1 + $0xac0] ss:$16 sps:$4 sm:$0xff]   ;;  %v4368_v48 = vld [vmem:[%s5780_s1 + $0xac8] ss:$16 sps:$4 sm:$0xff]  }
 0x120   :  { %2730 = vmatprep.subr.bf16.mxu0 %v4277_v49  ;;  %3048 = vmatprep.subr.bf16.mxu1 %v4280_v50  ;;  %v4373_v49 = vld [vmem:[%s5780_s1 + $0xae4] ss:$16 sps:$4 sm:$0xff]   ;;  %v4376_v50 = vld [vmem:[%s5780_s1 + $0xaec] ss:$16 sps:$4 sm:$0xff]  }
 0x123   :  { %2731 = vmatpush1.bf16.msra.mxu0 %v4275_v51  ;;  %3049 = vmatpush1.bf16.msra.mxu1 %v4278_v52  ;;  %v4371_v51 = vld [vmem:[%s5780_s1 + $0xae0] ss:$16 sps:$4 sm:$0xff]   ;;  %v4374_v52 = vld [vmem:[%s5780_s1 + $0xae8] ss:$16 sps:$4 sm:$0xff]  }
 0x124   :  { %2732 = vmatprep.subr.bf16.mxu0 %v4283_v53  ;;  %3050 = vmatprep.subr.bf16.mxu1 %v4286_v54  ;;  %v4379_v53 = vld [vmem:[%s5780_s1 + $0xb04] ss:$16 sps:$4 sm:$0xff]   ;;  %v4382_v54 = vld [vmem:[%s5780_s1 + $0xb0c] ss:$16 sps:$4 sm:$0xff]  }
 0x127   :  { %2733 = vmatpush1.bf16.msra.mxu0 %v4281_v55  ;;  %3051 = vmatpush1.bf16.msra.mxu1 %v4284_v56  ;;  %v4377_v55 = vld [vmem:[%s5780_s1 + $0xb00] ss:$16 sps:$4 sm:$0xff]   ;;  %v4380_v56 = vld [vmem:[%s5780_s1 + $0xb08] ss:$16 sps:$4 sm:$0xff]  }
 0x128   :  { %2734 = vmatprep.subr.bf16.mxu0 %v4289_v57  ;;  %3052 = vmatprep.subr.bf16.mxu1 %v4292_v58  ;;  %v4385_v57 = vld [vmem:[%s5780_s1 + $0xb24] ss:$16 sps:$4 sm:$0xff]   ;;  %v4388_v58 = vld [vmem:[%s5780_s1 + $0xb2c] ss:$16 sps:$4 sm:$0xff]  }
 0x12b   :  { %2735 = vmatpush1.bf16.msra.mxu0 %v4287_v59  ;;  %3053 = vmatpush1.bf16.msra.mxu1 %v4290_v60  ;;  %v4383_v59 = vld [vmem:[%s5780_s1 + $0xb20] ss:$16 sps:$4 sm:$0xff]   ;;  %v4386_v60 = vld [vmem:[%s5780_s1 + $0xb28] ss:$16 sps:$4 sm:$0xff]  }
 0x12c   :  { %2736 = vmatprep.subr.bf16.mxu0 %v4295_v61  ;;  %3054 = vmatprep.subr.bf16.mxu1 %v4298_v62  ;;  %v4391_v61 = vld [vmem:[%s5780_s1 + $0xb44] ss:$16 sps:$4 sm:$0xff]   ;;  %v4394_v62 = vld [vmem:[%s5780_s1 + $0xb4c] ss:$16 sps:$4 sm:$0xff]  }
 0x12f   :  { %2737 = vmatpush1.bf16.msra.mxu0 %v4293_v63  ;;  %3055 = vmatpush1.bf16.msra.mxu1 %v4296_v0  ;;  %v4389_v63 = vld [vmem:[%s5780_s1 + $0xb40] ss:$16 sps:$4 sm:$0xff]   ;;  %v4392_v0 = vld [vmem:[%s5780_s1 + $0xb48] ss:$16 sps:$4 sm:$0xff]  }
 0x130   :  { %2738 = vmatprep.subr.bf16.mxu0 %v4301_v1  ;;  %3056 = vmatprep.subr.bf16.mxu1 %v4304_v2  ;;  %v4397_v1 = vld [vmem:[%s5780_s1 + $0xb64] ss:$16 sps:$4 sm:$0xff]   ;;  %v4400_v2 = vld [vmem:[%s5780_s1 + $0xb6c] ss:$16 sps:$4 sm:$0xff]  }
 0x133   :  { %2739 = vmatpush1.bf16.msra.mxu0 %v4299_v3  ;;  %3057 = vmatpush1.bf16.msra.mxu1 %v4302_v4  ;;  %v4395_v3 = vld [vmem:[%s5780_s1 + $0xb60] ss:$16 sps:$4 sm:$0xff]   ;;  %v4398_v4 = vld [vmem:[%s5780_s1 + $0xb68] ss:$16 sps:$4 sm:$0xff]  }
 0x134   :  { %2740 = vmatprep.subr.bf16.mxu0 %v4307_v5  ;;  %3058 = vmatprep.subr.bf16.mxu1 %v4310_v6  ;;  %v4403_v5 = vld [vmem:[%s5780_s1 + $0xb84] ss:$16 sps:$4 sm:$0xff]   ;;  %v4406_v6 = vld [vmem:[%s5780_s1 + $0xb8c] ss:$16 sps:$4 sm:$0xff]  }
 0x137   :  { %2741 = vmatpush1.bf16.msra.mxu0 %v4305_v7  ;;  %3059 = vmatpush1.bf16.msra.mxu1 %v4308_v8  ;;  %v4401_v7 = vld [vmem:[%s5780_s1 + $0xb80] ss:$16 sps:$4 sm:$0xff]   ;;  %v4404_v8 = vld [vmem:[%s5780_s1 + $0xb88] ss:$16 sps:$4 sm:$0xff]  }
 0x138   :  { %2742 = vmatprep.subr.bf16.mxu0 %v4315_v9  ;;  %3060 = vmatprep.subr.bf16.mxu1 %v4318_v10  ;;  %v4409_v9 = vld [vmem:[%s5780_s1 + $0xba4] ss:$16 sps:$4 sm:$0xff]   ;;  %v4412_v10 = vld [vmem:[%s5780_s1 + $0xbac] ss:$16 sps:$4 sm:$0xff]  }
 0x13b   :  { %2743 = vmatpush1.bf16.msra.mxu0 %v4313_v11  ;;  %3061 = vmatpush1.bf16.msra.mxu1 %v4316_v12  ;;  %v4407_v11 = vld [vmem:[%s5780_s1 + $0xba0] ss:$16 sps:$4 sm:$0xff]   ;;  %v4410_v12 = vld [vmem:[%s5780_s1 + $0xba8] ss:$16 sps:$4 sm:$0xff]  }
 0x13c   :  { %2744 = vmatprep.subr.bf16.mxu0 %v4322_v13  ;;  %3062 = vmatprep.subr.bf16.mxu1 %v4325_v14  ;;  %v4418_v13 = vld [vmem:[%s5780_s1 + $0xbc4] ss:$16 sps:$4 sm:$0xff]   ;;  %v4421_v14 = vld [vmem:[%s5780_s1 + $0xbcc] ss:$16 sps:$4 sm:$0xff]  }
 0x13f   :  { %2745 = vmatpush1.bf16.msra.mxu0 %v4320_v15  ;;  %3063 = vmatpush1.bf16.msra.mxu1 %v4323_v16  ;;  %v4416_v15 = vld [vmem:[%s5780_s1 + $0xbc0] ss:$16 sps:$4 sm:$0xff]   ;;  %v4419_v16 = vld [vmem:[%s5780_s1 + $0xbc8] ss:$16 sps:$4 sm:$0xff]  }
 0x140   :  { %2767 = vmatprep.subr.bf16.mxu0 %v4331_v17  ;;  %3085 = vmatprep.subr.bf16.mxu1 %v4334_v18  ;;  %v4424_v17 = vld [vmem:[%s5780_s1 + $0xbe4] ss:$16 sps:$4 sm:$0xff]   ;;  %v4427_v18 = vld [vmem:[%s5780_s1 + $0xbec] ss:$16 sps:$4 sm:$0xff]  }
 0x142   :  { %2747 = vmatmul.mubr.bf16.vlgmr.msra.gmra.mrb[0].mxu0 %v4326_v19  ;;  %3065 = vmatmul.mubr.bf16.vlgmr.msra.gmra.mrb[0].mxu1 %v4326_v19  ;;  %v4422_v19 = vld [vmem:[%s5780_s1 + $0xbe0] ss:$16 sps:$4 sm:$0xff]  }
 0x143   :  { %2768 = vmatpush1.bf16.msra.mxu0 %v4329_v20  ;;  %3086 = vmatpush1.bf16.msra.mxu1 %v4332_v21  ;;  %v4425_v20 = vld [vmem:[%s5780_s1 + $0xbe8] ss:$16 sps:$4 sm:$0xff]  }
 0x144   :  { %2769 = vmatprep.subr.bf16.mxu0 %v4337_v22  ;;  %3087 = vmatprep.subr.bf16.mxu1 %v4340_v23  ;;  %v4428_v21 = vld [vmem:[%s5781_s0 + $0x28] ss:$48 sps:$4 sm:$0xff]   ;;  %v4431_v22 = vld [vmem:[%s5781_s0 + $0x8c] ss:$48 sps:$4 sm:$0xff]  }
 0x145   :  { %2756 = vmatprep.mubr.bf16.mxu0 %v4413_v24  ;;  %3074 = vmatprep.mubr.bf16.mxu1 %v4413_v24  ;;  %v4433_v23 = vld [vmem:[%s5781_s0 + $0x88] ss:$48 sps:$4 sm:$0xff]   ;;  %v426_v24 = vlaneseq }
 0x147   :  { %2770 = vmatpush1.bf16.msra.mxu0 %v4335_v25  ;;  %3088 = vmatpush1.bf16.msra.mxu1 %v4338_v26  ;;  %v427_v25 = vshrl.u32 %v426_v24, 7 }
 0x148   :  { %2771 = vmatprep.subr.bf16.mxu0 %v4343_v27  ;;  %3089 = vmatprep.subr.bf16.mxu1 %v4346_v28  ;;  %v422_v27 = vld [vmem:[%s5782_s2] sm:$0x77]  ;;  %v423_v28 = vld [vmem:[%s5782_s2 + $0x8] sm:$0x77] }
 0x149   :  { %v428_v26 = vsub.s32 0, %v427_v25 }
 0x14a   :  { %2757 = vmatmul.mubr.bf16.gmra.mrb[4].mxu0 %v4415_v29  ;;  %3075 = vmatmul.mubr.bf16.gmra.mrb[4].mxu1 %v4415_v29  ;;  %v432_v29 = vsub.s32 4, %v427_v25 }
 0x14b   :  { %2772 = vmatpush1.bf16.msra.mxu0 %v4341_v30  ;;  %3090 = vmatpush1.bf16.msra.mxu1 %v4344_v31  ;;  %v3140_v30 = vsub.s32 1, %v427_v25  ;;  %v3144_v31 = vsub.s32 5, %v427_v25 }
 0x14c   :  { %2773 = vmatprep.subr.bf16.mxu0 %v4349_v32  ;;  %3091 = vmatprep.subr.bf16.mxu1 %v4352_v33  ;;  %v429_v32 = vrot.slane %v422_v27, %v428_v26  ;;  %v3192_v33 = vsub.s32 2, %v427_v25 }
 0x14d   :  { %2799 = vmatprep.mubr.bf16.mxu0 %v4430_v34  ;;  %3117 = vmatprep.mubr.bf16.mxu1 %v4430_v34  ;;  %v437_v34 = vrot.slane %v423_v28, %v428_v26 }
 0x14f   :  { %2774 = vmatpush1.bf16.msra.mxu0 %v4347_v35  ;;  %3092 = vmatpush1.bf16.msra.mxu1 %v4350_v36  ;;  %v433_v35 = vrot.slane %v422_v27, %v432_v29  ;;  %v3196_v36 = vsub.s32 6, %v427_v25 }
 0x150   :  { %2775 = vmatprep.subr.bf16.mxu0 %v4355_v37  ;;  %3093 = vmatprep.subr.bf16.mxu1 %v4358_v38  ;;  %v441_v37 = vrot.slane %v423_v28, %v432_v29  ;;  %v3141_v38 = vrot.slane %v422_v27, %v3140_v30 }
 0x153   :  { %2776 = vmatpush1.bf16.msra.mxu0 %v4353_v39  ;;  %3094 = vmatpush1.bf16.msra.mxu1 %v4356_v40  ;;  %v3149_v39 = vrot.slane %v423_v28, %v3140_v30  ;;  %v3145_v40 = vrot.slane %v422_v27, %v3144_v31 }
 0x154   :  { %2777 = vmatprep.subr.bf16.mxu0 %v4361_v41  ;;  %3095 = vmatprep.subr.bf16.mxu1 %v4364_v42  ;;  %v3153_v41 = vrot.slane %v423_v28, %v3144_v31  ;;  %v5684_v42 = vrot.slane %v429_v32, %v428_v26 }
 0x157   :  { %2778 = vmatpush1.bf16.msra.mxu0 %v4359_v43  ;;  %3096 = vmatpush1.bf16.msra.mxu1 %v4362_v44  ;;  %v3193_v43 = vrot.slane %v422_v27, %v3192_v33  ;;  %v5686_v44 = vrot.slane %v437_v34, %v428_v26 }
 0x158   :  { %2779 = vmatprep.subr.bf16.mxu0 %v4367_v45  ;;  %3097 = vmatprep.subr.bf16.mxu1 %v4370_v46  ;;  %v3201_v45 = vrot.slane %v423_v28, %v3192_v33  ;;  %v5688_v46 = vrot.slane %v433_v35, %v428_v26 }
 0x15b   :  { %2780 = vmatpush1.bf16.msra.mxu0 %v4365_v47  ;;  %3098 = vmatpush1.bf16.msra.mxu1 %v4368_v48  ;;  %v3197_v47 = vrot.slane %v422_v27, %v3196_v36  ;;  %v5690_v48 = vrot.slane %v441_v37, %v428_v26 }
 0x15c   :  { %2781 = vmatprep.subr.bf16.mxu0 %v4373_v49  ;;  %3099 = vmatprep.subr.bf16.mxu1 %v4376_v50  ;;  %v3205_v49 = vrot.slane %v423_v28, %v3196_v36  ;;  %v5692_v50 = vrot.slane %v3141_v38, %v3140_v30 }
 0x15f   :  { %2782 = vmatpush1.bf16.msra.mxu0 %v4371_v51  ;;  %3100 = vmatpush1.bf16.msra.mxu1 %v4374_v52  ;;  %v5694_v51 = vrot.slane %v3149_v39, %v3140_v30 }
 0x160   :  { %2783 = vmatprep.subr.bf16.mxu0 %v4379_v53  ;;  %3101 = vmatprep.subr.bf16.mxu1 %v4382_v54  ;;  %v5696_v54 = vrot.slane %v3145_v40, %v3140_v30 }
 0x163   :  { %2784 = vmatpush1.bf16.msra.mxu0 %v4377_v55  ;;  %3102 = vmatpush1.bf16.msra.mxu1 %v4380_v56  ;;  %v5698_v55 = vrot.slane %v3153_v41, %v3140_v30 }
 0x164   :  { %2785 = vmatprep.subr.bf16.mxu0 %v4385_v57  ;;  %3103 = vmatprep.subr.bf16.mxu1 %v4388_v58  ;;  %v5701_v57 = vrot.slane %v3193_v43, %v3192_v33 }
 0x167   :  { %2786 = vmatpush1.bf16.msra.mxu0 %v4383_v59  ;;  %3104 = vmatpush1.bf16.msra.mxu1 %v4386_v60  ;;  %v5704_v59 = vrot.slane %v3201_v45, %v3192_v33 }
 0x168   :  { %2787 = vmatprep.subr.bf16.mxu0 %v4391_v61  ;;  %3105 = vmatprep.subr.bf16.mxu1 %v4394_v62 }
 0x16b   :  { %2788 = vmatpush1.bf16.msra.mxu0 %v4389_v63  ;;  %3106 = vmatpush1.bf16.msra.mxu1 %v4392_v0  ;;  %v5707_v63 = vrot.slane %v3197_v47, %v3192_v33 }
 0x16c   :  { %2789 = vmatprep.subr.bf16.mxu0 %v4397_v1  ;;  %3107 = vmatprep.subr.bf16.mxu1 %v4400_v2  ;;  %v5710_v1 = vrot.slane %v3205_v49, %v3192_v33 }
 0x16f   :  { %2790 = vmatpush1.bf16.msra.mxu0 %v4395_v3  ;;  %3108 = vmatpush1.bf16.msra.mxu1 %v4398_v4 }
 0x170   :  { %2791 = vmatprep.subr.bf16.mxu0 %v4403_v5  ;;  %3109 = vmatprep.subr.bf16.mxu1 %v4406_v6 }
 0x173   :  { %2792 = vmatpush1.bf16.msra.mxu0 %v4401_v7  ;;  %3110 = vmatpush1.bf16.msra.mxu1 %v4404_v8 }
 0x174   :  { %2793 = vmatprep.subr.bf16.mxu0 %v4409_v9  ;;  %3111 = vmatprep.subr.bf16.mxu1 %v4412_v10 }
 0x177   :  { %2794 = vmatpush1.bf16.msra.mxu0 %v4407_v11  ;;  %3112 = vmatpush1.bf16.msra.mxu1 %v4410_v12 }
 0x178   :  { %2795 = vmatprep.subr.bf16.mxu0 %v4418_v13  ;;  %3113 = vmatprep.subr.bf16.mxu1 %v4421_v14 }
 0x17b   :  { %2796 = vmatpush1.bf16.msra.mxu0 %v4416_v15  ;;  %3114 = vmatpush1.bf16.msra.mxu1 %v4419_v16 }
 0x17c   :  { %2797 = vmatprep.subr.bf16.mxu0 %v4424_v17  ;;  %3115 = vmatprep.subr.bf16.mxu1 %v4427_v18 }
 0x17f   :  { %2798 = vmatpush1.bf16.msra.mxu0 %v4422_v19  ;;  %3116 = vmatpush1.bf16.msra.mxu1 %v4425_v20 }
 0x182   :  { %2800 = vmatmul.mubr.bf16.vlgmr.msra.gmra.mrb[0].mxu0 %v4428_v21  ;;  %3118 = vmatmul.mubr.bf16.vlgmr.msra.gmra.mrb[0].mxu1 %v4428_v21 }
 0x183   :  { %2809 = vmatprep.mubr.bf16.mxu0 %v4431_v22  ;;  %3127 = vmatprep.mubr.bf16.mxu1 %v4431_v22 }
 0x18a   :  { %2810 = vmatmul.mubr.bf16.gmra.mrb[4].mxu0 %v4433_v23  ;;  %3128 = vmatmul.mubr.bf16.gmra.mrb[4].mxu1 %v4433_v23 }
 0x255   :  { %v2801_v52 = vpop.f32.mrb[0].mxu0  ;;  %v3119_v53 = vpop.f32.mrb[0].mxu1 }
 0x256   :  { %v3726_v56 = vadd.f32 %v2801_v52, %v5684_v42  ;;  %v3734_v58 = vadd.f32 %v3119_v53, %v5686_v44  ;;  %v2803_v60 = vpop.f32.mrb[1].mxu0  ;;  %v3121_v61 = vpop.f32.mrb[1].mxu1 }
 0x257   :  { %v3727_v62 = vadd.f32 %v2803_v60, %v5688_v46  ;;  %v3735_v0 = vadd.f32 %v3121_v61, %v5690_v48  ;;  %v2805_v2 = vpop.f32.mrb[2].mxu0  ;;  %v3123_v3 = vpop.f32.mrb[2].mxu1 }
 0x258   :  { %v3174_v4 = vmul.f32 %v3726_v56, %v5692_v50  ;;  %v3176_v5 = vmul.f32 %v3734_v58, %v5694_v51  ;;  %v3728_v6 = vadd.f32 %v2805_v2, %v5684_v42  ;;  %v3736_v7 = vadd.f32 %v3123_v3, %v5686_v44  ;;  %v2807_v8 = vpop.f32.mrb[3].mxu0  ;;  %v3125_v9 = vpop.f32.mrb[3].mxu1 }
 0x259   :  { %v3175_v10 = vmul.f32 %v3727_v62, %v5696_v54  ;;  %v3177_v11 = vmul.f32 %v3735_v0, %v5698_v55  ;;  %v3729_v12 = vadd.f32 %v2807_v8, %v5688_v46  ;;  %v3737_v13 = vadd.f32 %v3125_v9, %v5690_v48 }
 0x25a   :  { %v3226_v14 = vadd.f32 %v5701_v57, %v3174_v4  ;;  %v3228_v15 = vadd.f32 %v5704_v59, %v3176_v5  ;;  %v3178_v16 = vmul.f32 %v3728_v6, %v5692_v50  ;;  %v3180_v17 = vmul.f32 %v3736_v7, %v5694_v51 }
 0x25b   :  { %v3227_v18 = vadd.f32 %v5707_v63, %v3175_v10  ;;  %v3229_v19 = vadd.f32 %v5710_v1, %v3177_v11  ;;  %v3179_v20 = vmul.f32 %v3729_v12, %v5696_v54  ;;  %v3181_v21 = vmul.f32 %v3737_v13, %v5698_v55 }
 0x25c   :  { %v3230_v22 = vadd.f32 %v5701_v57, %v3178_v16  ;;  %v3232_v23 = vadd.f32 %v5704_v59, %v3180_v17 }
 0x25d   :  { %v3718_v24 = vpack.c.bf16 %v3227_v18, %v3226_v14  ;;  %v3719_v25 = vpack.c.bf16 %v3229_v19, %v3228_v15  ;;  %v3231_v26 = vadd.f32 %v5707_v63, %v3179_v20  ;;  %v3233_v27 = vadd.f32 %v5710_v1, %v3181_v21  ;;  %v2811_v28 = vpop.f32.mrb[4].mxu0  ;;  %v3129_v29 = vpop.f32.mrb[4].mxu1 }
 0x25e   :  { %v3730_v30 = vadd.f32 %v2811_v28, %v5684_v42  ;;  %v3738_v31 = vadd.f32 %v3129_v29, %v5686_v44  ;;  %v2813_v32 = vpop.f32.mrb[5].mxu0  ;;  %v3131_v33 = vpop.f32.mrb[5].mxu1 }
 0x25f   :  { %3290 = vst [vmem:[%s5783_s3] sm:$0xff] %v3718_v24  ;;  %3291 = vst [vmem:[%s5783_s3 + $0x8] sm:$0xff] %v3719_v25  ;;  %v3720_v34 = vpack.c.bf16 %v3231_v26, %v3230_v22  ;;  %v3721_v35 = vpack.c.bf16 %v3233_v27, %v3232_v23  ;;  %v3731_v36 = vadd.f32 %v2813_v32, %v5688_v46  ;;  %v2815_v38 = vpop.f32.mrb[6].mxu0  ;;  %v3133_v39 = vpop.f32.mrb[6].mxu1 }
 0x260   :  { %v3739_v37 = vadd.f32 %v3131_v33, %v5690_v48  ;;  %v3182_v40 = vmul.f32 %v3730_v30, %v5692_v50  ;;  %v3184_v41 = vmul.f32 %v3738_v31, %v5694_v51  ;;  %v3732_v43 = vadd.f32 %v2815_v38, %v5684_v42  ;;  %v2817_v47 = vpop.f32.mrb[7].mxu0  ;;  %v3135_v49 = vpop.f32.mrb[7].mxu1 }
 0x261   :  { %v3740_v45 = vadd.f32 %v3133_v39, %v5686_v44  ;;  %3292 = vst [vmem:[%s5783_s3 + $0x10] sm:$0xff] %v3720_v34  ;;  %3293 = vst [vmem:[%s5783_s3 + $0x18] sm:$0xff] %v3721_v35  ;;  %v3183_v52 = vmul.f32 %v3731_v36, %v5696_v54  ;;  %v3733_v56 = vadd.f32 %v2817_v47, %v5688_v46 }
 0x262   :  { %v3185_v53 = vmul.f32 %v3739_v37, %v5698_v55  ;;  %v3741_v42 = vadd.f32 %v3135_v49, %v5690_v48  ;;  %v3234_v44 = vadd.f32 %v5701_v57, %v3182_v40  ;;  %v3236_v58 = vadd.f32 %v5704_v59, %v3184_v41 }
 0x263   :  { %v3186_v60 = vmul.f32 %v3732_v43, %v5692_v50  ;;  %v3188_v61 = vmul.f32 %v3740_v45, %v5694_v51  ;;  %v3235_v62 = vadd.f32 %v5707_v63, %v3183_v52  ;;  %v3187_v2 = vmul.f32 %v3733_v56, %v5696_v54 }
 0x264   :  { %v3237_v0 = vadd.f32 %v5710_v1, %v3185_v53  ;;  %v3189_v3 = vmul.f32 %v3741_v42, %v5698_v55 }
 0x265   :  { %v3238_v46 = vadd.f32 %v5701_v57, %v3186_v60  ;;  %v3240_v48 = vadd.f32 %v5704_v59, %v3188_v61  ;;  %v3722_v4 = vpack.c.bf16 %v3235_v62, %v3234_v44  ;;  %v3239_v6 = vadd.f32 %v5707_v63, %v3187_v2 }
 0x266   :  { %v3723_v5 = vpack.c.bf16 %v3237_v0, %v3236_v58  ;;  %v3241_v50 = vadd.f32 %v5710_v1, %v3189_v3 }
 0x267   :  { %3294 = vst [vmem:[%s5783_s3 + $0x20] sm:$0xff] %v3722_v4  ;;  %v3724_v51 = vpack.c.bf16 %v3239_v6, %v3238_v46 }
 0x268   :  { %3295 = vst [vmem:[%s5783_s3 + $0x28] sm:$0xff] %v3723_v5  ;;  %v3725_v54 = vpack.c.bf16 %v3241_v50, %v3240_v48 }
 0x269   :  { %3296 = vst [vmem:[%s5783_s3 + $0x30] sm:$0xff] %v3724_v51 }
 0x26a   :  { %3297 = vst [vmem:[%s5783_s3 + $0x38] sm:$0xff] %v3725_v54 }

// kernel: _lambda_.63
= control target key start
LH: loop header
LB: loop body
LE: loop exit
PB: predicated region body
PF: predicated region fallthrough
CT: control target
= control target key end

     0   :  { %s1030_s12 = smov 0   ;;  %s1032_s13 = smov 0   ;;  %s1218_s0 = inlined_call_operand.vmem [shape: bf16[2,16,1536], index: 0, kind: input, shape index: {}]   ;;  %s1219_s1 = inlined_call_operand.vmem [shape: bf16[2,16,1536], index: 1, kind: input, shape index: {}]   ;;  %s1220_s2 = inlined_call_operand.vmem [shape: f32[2,1,1536], index: 2, kind: output, shape index: {0}]   ;;  %s1221_s3 = inlined_call_operand.vmem [shape: f32[2,1,1536], index: 3, kind: output, shape index: {1}]  }
   0x1   :  { %s1034_s14 = smov 0   ;;  %s1036_s15 = smov 0  }
   0x2   :  { %s1038_s16 = smov 0   ;;  %s1040_s17 = smov 0  }
   0x3   :  { %s1042_s18 = smov 0  }
   0x4 LB: > { %s29_s19 = sadd.s32 1, %s997_s16  ;;  %s33_s20 = sadd.s32 1, %s1001_s17  ;;  %s1005_s18 = sphi %s1042_s18, %s14_s18   ;;  %s1001_s17 = sphi %s1040_s17, %s1230_s17   ;;  %s997_s16 = sphi %s1038_s16, %s1229_s16   ;;  %s993_s15 = sphi %s1036_s15, %s1228_s15   ;;  %s989_s14 = sphi %s1034_s14, %s1227_s14   ;;  %s985_s13 = sphi %s1032_s13, %s1226_s13   ;;  %s981_s12 = sphi %s1030_s12, %s1225_s12  }
   0x5   : > { %p31_p0 = scmp.ge.s32.totalorder %s29_s19, 3  ;;  %p51_p1 = scmp.ne.s32.totalorder %s985_s13, %s981_s12 }
   0x6   : > { %p52_p2 = scmp.eq.s32.totalorder %s1005_s18, 0  ;;  %s44_s25 = sadd.s32 1, %s985_s13 }
   0x7   : > { %s1232_s19 = smov (%p31_p0, %s29_s19), 0  ;;  %s1234_s20 = smov (!%p31_p0, %s33_s20), %s1001_s17 }
   0x8   : > { %p1073_p3 = por %p52_p2, %p51_p1  ;;  %p35_p4 = scmp.ge.s32.totalorder %s1234_s20, 2 }
   0x9   : > { %s40_s22 = ssub.s32 %s997_s16, %s1232_s19  ;;  %p853_p6 = scmp.ge.s32.totalorder %s1005_s18, 6 }
   0xa   : > { %s1236_s20 = smov (%p35_p4, %s1234_s20), 0 }
   0xb   : > { %s37_s23 = ssub.s32 %s1001_s17, %s1236_s20  ;;  %163 = sbr.rel (%p853_p6) target bundleno = 38 (0x26), region = 16 }
   0xc   : > { %s41_s24 = sor.u32 %s40_s22, %s37_s23 }
   0xd   : > { %p42_p5 = scmp.eq.s32.totalorder %s41_s24, 0 }
   0xf   : > { %s1085_s26 = scalar_select %p42_p5, %s985_s13, %s44_s25  }
  0x12   : > { %166 = sbr.rel (!%p1073_p3) target bundleno = 28 (0x1c), region = 20  ;;  %s168_s27 = sand.u32 (%p1073_p3), 1, %s985_s13  }
  0x13   : > { %s855_s28 = sshll.u32 (%p1073_p3), %s997_s16, 2  ;;  %s854_s29 = sshll.u32 (%p1073_p3), %s168_s27, 5 }
  0x14   : > { %s867_s30 = smul.u32 (%p1073_p3), 24, %s1001_s17  ;;  %s170_s9 = scalar_lea.vmem (%p1073_p3), [#allocation6], %s854_s29 }
  0x16   : > { %s176_s4 = sadd.s32 (%p1073_p3), %s867_s30, %s855_s28 }
  0x17   : > { %s856_s5 = sshll.u32 (%p1073_p3), %s176_s4, 2 }
  0x18   : > { %s178_s8 = scalar_lea.vmem (%p1073_p3), %s1218_s0, %s856_s5 }
  0x19   : > { %v191_v0 = vld [vmem:[%s178_s8] sm:$0xff]  ;;  %v193_v1 = vld [vmem:[%s178_s8 + $0x8] sm:$0xff]  ;;  %v195_v2 = vld [vmem:[%s178_s8 + $0x30] sm:$0xff] }
  0x1a   : > { %192 = vst [vmem:[%s170_s9] sm:$0xff] %v191_v0  ;;  %194 = vst [vmem:[%s170_s9 + $0x8] sm:$0xff] %v193_v1  ;;  %v197_v3 = vld [vmem:[%s178_s8 + $0x38] sm:$0xff] }
  0x1b   : > { %196 = vst [vmem:[%s170_s9 + $0x10] sm:$0xff] %v195_v2  ;;  %198 = vst [vmem:[%s170_s9 + $0x18] sm:$0xff] %v197_v3 }
  0x1c PF: > { %204 = sbr.rel (!%p1073_p3) target bundleno = 38 (0x26), region = 43  ;;  %s206_s10 = sand.u32 (%p1073_p3), 1, %s985_s13  }
  0x1d   : > { %s858_s11 = sshll.u32 (%p1073_p3), %s997_s16, 2  ;;  %s857_s22 = sshll.u32 (%p1073_p3), %s206_s10, 5 }
  0x1e   : > { %s868_s23 = smul.u32 (%p1073_p3), 24, %s1001_s17  ;;  %s208_s30 = scalar_lea.vmem (%p1073_p3), [#allocation7], %s857_s22 }
  0x20   : > { %s214_s24 = sadd.s32 (%p1073_p3), %s868_s23, %s858_s11 }
  0x21   : > { %s859_s25 = sshll.u32 (%p1073_p3), %s214_s24, 2 }
  0x22   : > { %s216_s29 = scalar_lea.vmem (%p1073_p3), %s1219_s1, %s859_s25 }
  0x23   : > { %v229_v4 = vld [vmem:[%s216_s29] sm:$0xff]  ;;  %v231_v5 = vld [vmem:[%s216_s29 + $0x8] sm:$0xff]  ;;  %v233_v6 = vld [vmem:[%s216_s29 + $0x30] sm:$0xff] }
  0x24   : > { %230 = vst [vmem:[%s208_s30] sm:$0xff] %v229_v4  ;;  %232 = vst [vmem:[%s208_s30 + $0x8] sm:$0xff] %v231_v5  ;;  %v235_v7 = vld [vmem:[%s216_s29 + $0x38] sm:$0xff] }
  0x25   : > { %234 = vst [vmem:[%s208_s30 + $0x10] sm:$0xff] %v233_v6  ;;  %236 = vst [vmem:[%s208_s30 + $0x18] sm:$0xff] %v235_v7 }
  0x26 PF: > { %p860_p7 = scmp.ge.s32.totalorder %s1005_s18, 1  ;;  %p241_p8 = scmp.lt.s32.totalorder %s1005_s18, 7 }
  0x28   : > { %p242_p9 = pnand %p860_p7, %p241_p8 }
  0x29   : > { %v319_v8 = vlaneseq (!%p242_p9)  ;;  %s248_s21 = sand.u32 (!%p242_p9), 1, %s981_s12   ;;  %v1007_v10 = vmov (!%p242_p9), -inf   ;;  %v1008_v14 = vmov (!%p242_p9), 0.0   ;;  %v1009_v32 = vmov (!%p242_p9), 1966171168   ;;  %p298_p10 = scmp.lt.s32.totalorder (!%p242_p9), %s993_s15, 1 }
  0x2a   : > { %245 = sbr.rel (%p242_p9) target bundleno = 165 (0xa5), region = 66  ;;  %s1107_s4 = sshll.u32 (!%p242_p9), %s248_s21, 5  ;;  %v387_v33 = vunpack.c.l.s4 (!%p242_p9), %v1009_v32 }
  0x2b   : > { %vm1109_vm0 = vcmp.lt.s32.totalorder (!%p242_p9), %v319_v8, 512  ;;  %s250_s5 = scalar_lea.vmem (!%p242_p9), [#allocation6], %s1107_s4  ;;  %v390_v41 = vshrl.u32 (!%p242_p9), %v319_v8, 7  ;;  %s257_s12 = scalar_lea.vmem (!%p242_p9), [#allocation7], %s1107_s4 }
  0x2c   : > { %323 = vst.msk [vmem:[#allocation2] sm:$0xf] (!%p242_p9), %vm1109_vm0, %v1007_v10  ;;  %v1116_v11 = vld [vmem:[%s250_s5] sm:$0xff] (!%p242_p9)  ;;  %v1118_v12 = vld [vmem:[%s250_s5 + $0x8] sm:$0xff] (!%p242_p9)  ;;  %v1120_v13 = vld [vmem:[%s250_s5 + $0x10] sm:$0xff] (!%p242_p9)  ;;  %v388_v43 = vunpack.c.0.s8 (!%p242_p9), %v387_v33  ;;  %s863_s6 = sshll.u32 (!%p242_p9), %s989_s14, 2 }
  0x2d   : > { %324 = vst.msk [vmem:[#allocation3] sm:$0xf] (!%p242_p9), %vm1109_vm0, %v1008_v14  ;;  %325 = vst.msk [vmem:[#allocation4] sm:$0xf] (!%p242_p9), %vm1109_vm0, %v1008_v14  ;;  %v1128_v15 = vld [vmem:[%s250_s5 + $0x18] sm:$0xff] (!%p242_p9)  ;;  %v331_v16 = vunpack.c.l.bf16 (!%p242_p9), %v1116_v11  ;;  %v332_v17 = vunpack.c.h.bf16 (!%p242_p9), %v1116_v11  ;;  %v333_v18 = vunpack.c.l.bf16 (!%p242_p9), %v1118_v12  ;;  %v334_v19 = vunpack.c.h.bf16 (!%p242_p9), %v1118_v12  ;;  %p300_p11 = scmp.lt.s32.totalorder (!%p242_p9), %s863_s6, 11 }
  0x2e   : > { %326 = vst.msk [vmem:[#allocation5] sm:$0xf] (!%p242_p9), %vm1109_vm0, %v1008_v14  ;;  %v335_v20 = vunpack.c.l.bf16 (!%p242_p9), %v1120_v13  ;;  %v336_v21 = vunpack.c.h.bf16 (!%p242_p9), %v1120_v13  ;;  %v337_v22 = vunpack.c.l.bf16 (!%p242_p9), %v1128_v15  ;;  %v338_v23 = vunpack.c.h.bf16 (!%p242_p9), %v1128_v15 }
  0x2f   : > { %v1138_v52 = vsub.s32 (!%p242_p9), %v388_v43, %v390_v41  ;;  %v416_v0 = vsub.s32 (!%p242_p9), 0, %v390_v41  ;;  %v420_v1 = vsub.s32 (!%p242_p9), 1, %v390_v41  ;;  %v424_v2 = vsub.s32 (!%p242_p9), 2, %v390_v41 }
  0x30   : > { %v352_v24 = vmax.f32 (!%p242_p9), %v331_v16, %v335_v20  ;;  %v359_v25 = vmax.f32 (!%p242_p9), %v332_v17, %v336_v21  ;;  %v366_v26 = vmax.f32 (!%p242_p9), %v333_v18, %v337_v22  ;;  %v373_v27 = vmax.f32 (!%p242_p9), %v334_v19, %v338_v23 }
  0x31   : > { %v428_v3 = vsub.s32 3, %v390_v41  ;;  %s1238_s15 = smov (!%p298_p10, %s993_s15), 1  ;;  %s1240_s6 = smov (!%p300_p11, %s863_s6), 11 }
  0x32   : > { %v353_v28 = vrot.slane %v352_v24, 4  ;;  %v360_v29 = vrot.slane %v359_v25, 4  ;;  %v367_v30 = vrot.slane %v366_v26, 4  ;;  %v374_v31 = vrot.slane %v373_v27, 4  ;;  %s869_s7 = smul.u32 12, %s1238_s15 }
  0x33   : > { %v351_v62 = vld [vmem:[#allocation2] sm:$0xf] }
  0x34   : > { %v354_v34 = vmax.f32 %v352_v24, %v353_v28  ;;  %v361_v35 = vmax.f32 %v359_v25, %v360_v29  ;;  %v368_v36 = vmax.f32 %v366_v26, %v367_v30  ;;  %v375_v37 = vmax.f32 %v373_v27, %v374_v31  ;;  %s303_s14 = sadd.s32 %s869_s7, %s1240_s6 }
  0x35   : > { %s304_s10 = scalar_lea.vmem %s1220_s2, %s303_s14  ;;  %s313_s22 = scalar_lea.vmem %s1221_s3, %s303_s14 }
  0x36   : > { %v355_v38 = vrot.slane %v354_v34, 2  ;;  %v362_v39 = vrot.slane %v361_v35, 2  ;;  %v369_v40 = vrot.slane %v368_v36, 2  ;;  %v376_v42 = vrot.slane %v375_v37, 2 }
  0x38   : > { %v356_v44 = vmax.f32 %v354_v34, %v355_v38  ;;  %v363_v45 = vmax.f32 %v361_v35, %v362_v39  ;;  %v370_v46 = vmax.f32 %v368_v36, %v369_v40  ;;  %v377_v47 = vmax.f32 %v375_v37, %v376_v42 }
  0x3a   : > { %v357_v48 = vrot.slane %v356_v44, 1  ;;  %v364_v49 = vrot.slane %v363_v45, 1  ;;  %v371_v50 = vrot.slane %v370_v46, 1  ;;  %v378_v51 = vrot.slane %v377_v47, 1 }
  0x3c   : > { %v358_v53 = vmax.f32 %v356_v44, %v357_v48  ;;  %v365_v54 = vmax.f32 %v363_v45, %v364_v49  ;;  %v372_v55 = vmax.f32 %v370_v46, %v371_v50  ;;  %v379_v56 = vmax.f32 %v377_v47, %v378_v51 }
  0x3e   : > { %v384_v57 = vcombine.low %v358_v53, %v365_v54  ;;  %v385_v58 = vcombine.low %v372_v55, %v379_v56 }
  0x40   : > { %v392_v59 = vrot.slane %v384_v57, %v1138_v52  ;;  %v399_v60 = vrot.slane %v385_v58, %v1138_v52 }
  0x42   : > { %v400_v61 = vcombine.low %v392_v59, %v399_v60 }
  0x44   : > { %v407_v63 = vrot.slane %v400_v61, %v1138_v52 }
  0x46   : > { %v409_v4 = vmax.f32 %v351_v62, %v407_v63 }
  0x48   : > { %v417_v5 = vrot.slane %v409_v4, %v416_v0  ;;  %v421_v6 = vrot.slane %v409_v4, %v420_v1  ;;  %v425_v7 = vrot.slane %v409_v4, %v424_v2  ;;  %669 = vst.msk [vmem:[#allocation2] sm:$0xf] %vm1109_vm0, %v409_v4  ;;  %v429_v8 = vrot.slane %v409_v4, %v428_v3 }
  0x4a   : > { %v434_v10 = vsub.f32 %v331_v16, %v417_v5  ;;  %v435_v11 = vsub.f32 %v332_v17, %v421_v6  ;;  %v436_v12 = vsub.f32 %v333_v18, %v425_v7  ;;  %v437_v13 = vsub.f32 %v334_v19, %v429_v8  ;;  %v339_v16 = vld [vmem:[%s257_s12] sm:$0xff]  ;;  %v340_v18 = vld [vmem:[%s257_s12 + $0x8] sm:$0xff] }
  0x4b   : > { %v438_v14 = vsub.f32 %v335_v20, %v417_v5  ;;  %v439_v15 = vsub.f32 %v336_v21, %v421_v6  ;;  %v440_v24 = vsub.f32 %v337_v22, %v425_v7  ;;  %v441_v27 = vsub.f32 %v338_v23, %v429_v8  ;;  %v341_v20 = vld [vmem:[%s257_s12 + $0x10] sm:$0xff]  ;;  %v342_v21 = vld [vmem:[%s257_s12 + $0x18] sm:$0xff] }
  0x4c   : > { %v442_v25 = vmul.f32 1.442695, %v434_v10  ;;  %v444_v26 = vmul.f32 1.442695, %v435_v11  ;;  %v446_v28 = vmul.f32 1.442695, %v436_v12  ;;  %v410_v19 = vsub.f32 %v351_v62, %v409_v4 }
  0x4d   : > { %v448_v29 = vmul.f32 1.442695, %v437_v13  ;;  %v450_v30 = vmul.f32 1.442695, %v438_v14  ;;  %v452_v31 = vmul.f32 1.442695, %v439_v15  ;;  %v343_v22 = vunpack.c.l.bf16 %v339_v16 }
  0x4e   : > { %929 = vpow2.f32 %v442_v25  ;;  %v454_v32 = vmul.f32 1.442695, %v440_v24  ;;  %v456_v17 = vmul.f32 1.442695, %v441_v27  ;;  %v344_v23 = vunpack.c.h.bf16 %v339_v16 }
  0x4f   : > { %931 = vpow2.f32 %v444_v26  ;;  %v345_v33 = vunpack.c.l.bf16 %v340_v18  ;;  %v346_v34 = vunpack.c.h.bf16 %v340_v18  ;;  %v347_v35 = vunpack.c.l.bf16 %v341_v20 }
  0x50   : > { %933 = vpow2.f32 %v446_v28  ;;  %v348_v36 = vunpack.c.h.bf16 %v341_v20  ;;  %v349_v37 = vunpack.c.l.bf16 %v342_v21  ;;  %v411_v38 = vmul.f32 1.442695, %v410_v19 }
  0x51   : > { %935 = vpow2.f32 %v448_v29  ;;  %v350_v39 = vunpack.c.h.bf16 %v342_v21  ;;  %v594_v40 = vmul.f32 %v343_v22, %v343_v22  ;;  %v595_v42 = vmul.f32 %v344_v23, %v344_v23 }
  0x52   : > { %937 = vpow2.f32 %v450_v30  ;;  %v596_v43 = vmul.f32 %v345_v33, %v345_v33  ;;  %v597_v45 = vmul.f32 %v346_v34, %v346_v34  ;;  %v598_v47 = vmul.f32 %v347_v35, %v347_v35 }
  0x53   : > { %939 = vpow2.f32 %v452_v31  ;;  %v599_v48 = vmul.f32 %v348_v36, %v348_v36  ;;  %v1146_v49 = vmul.f32 %v349_v37, %v349_v37  ;;  %v1148_v53 = vmul.f32 %v350_v39, %v350_v39 }
  0x54   : > { %941 = vpow2.f32 %v454_v32 }
  0x55   : > { %943 = vpow2.f32 %v456_v17 }
  0x56   : > { %945 = vpow2.f32 %v411_v38 }
  0x58   : > { %v930_v41 = vpop.eup %929 }
  0x59   : > { %v932_v44 = vpop.eup %931  ;;  %v525_v51 = vmul.f32 %v930_v41, %v343_v22  ;;  %v1150_v54 = vmul.f32 %v930_v41, %v594_v40 }
  0x5a   : > { %v934_v46 = vpop.eup %933  ;;  %v526_v56 = vmul.f32 %v932_v44, %v344_v23  ;;  %v1152_v58 = vmul.f32 %v932_v44, %v595_v42 }
  0x5b   : > { %v936_v50 = vpop.eup %935  ;;  %v527_v57 = vmul.f32 %v934_v46, %v345_v33  ;;  %v1154_v59 = vmul.f32 %v934_v46, %v596_v43 }
  0x5c   : > { %v938_v55 = vpop.eup %937  ;;  %v528_v62 = vmul.f32 %v936_v50, %v346_v34  ;;  %v1156_v0 = vmul.f32 %v936_v50, %v597_v45 }
  0x5d   : > { %v940_v60 = vpop.eup %939  ;;  %v460_v61 = vadd.f32 %v938_v55, %v930_v41  ;;  %v529_v63 = vmul.f32 %v938_v55, %v347_v35  ;;  %v606_v4 = vmul.f32 %v938_v55, %v598_v47 }
  0x5e   : > { %v942_v1 = vpop.eup %941  ;;  %v467_v2 = vadd.f32 %v940_v60, %v932_v44  ;;  %v530_v3 = vmul.f32 %v940_v60, %v348_v36  ;;  %v607_v5 = vmul.f32 %v940_v60, %v599_v48 }
  0x5f   : > { %v944_v6 = vpop.eup %943  ;;  %v461_v7 = vrot.slane %v460_v61, 4  ;;  %v474_v8 = vadd.f32 %v942_v1, %v934_v46  ;;  %v531_v10 = vmul.f32 %v942_v1, %v349_v37  ;;  %v533_v11 = vadd.f32 %v529_v63, %v525_v51 }
  0x60   : > { %v468_v12 = vrot.slane %v467_v2, 4  ;;  %v481_v13 = vadd.f32 %v944_v6, %v936_v50  ;;  %v532_v14 = vmul.f32 %v944_v6, %v350_v39  ;;  %v540_v15 = vadd.f32 %v530_v3, %v526_v56  ;;  %v1158_v23 = vpop.eup %945 }
  0x61   : > { %v462_v24 = vadd.f32 %v461_v7, %v460_v61  ;;  %v475_v25 = vrot.slane %v474_v8, 4  ;;  %v534_v26 = vrot.slane %v533_v11, 4  ;;  %v547_v27 = vadd.f32 %v531_v10, %v527_v57 }
  0x62   : > { %v469_v28 = vadd.f32 %v468_v12, %v467_v2  ;;  %v482_v29 = vrot.slane %v481_v13, 4  ;;  %v541_v30 = vrot.slane %v540_v15, 4  ;;  %v554_v31 = vadd.f32 %v532_v14, %v528_v62 }
  0x63   : > { %v463_v32 = vrot.slane %v462_v24, 2  ;;  %v476_v16 = vadd.f32 %v475_v25, %v474_v8  ;;  %v535_v17 = vadd.f32 %v534_v26, %v533_v11  ;;  %v548_v18 = vrot.slane %v547_v27, 4 }
  0x64   : > { %v470_v19 = vrot.slane %v469_v28, 2  ;;  %v483_v20 = vadd.f32 %v482_v29, %v481_v13  ;;  %v542_v21 = vadd.f32 %v541_v30, %v540_v15  ;;  %v555_v22 = vrot.slane %v554_v31, 4 }
  0x65   : > { %v464_v33 = vadd.f32 %v463_v32, %v462_v24  ;;  %v477_v34 = vrot.slane %v476_v16, 2  ;;  %v536_v35 = vrot.slane %v535_v17, 2  ;;  %v549_v36 = vadd.f32 %v548_v18, %v547_v27  ;;  %v523_v18 = vld [vmem:[#allocation4] sm:$0xf] }
  0x66   : > { %v471_v37 = vadd.f32 %v470_v19, %v469_v28  ;;  %v484_v38 = vrot.slane %v483_v20, 2  ;;  %v543_v39 = vrot.slane %v542_v21, 2  ;;  %v556_v40 = vadd.f32 %v555_v22, %v554_v31 }
  0x67   : > { %v465_v41 = vrot.slane %v464_v33, 1  ;;  %v478_v42 = vadd.f32 %v477_v34, %v476_v16  ;;  %v537_v43 = vadd.f32 %v536_v35, %v535_v17  ;;  %v550_v44 = vrot.slane %v549_v36, 2 }
  0x68   : > { %v472_v45 = vrot.slane %v471_v37, 1  ;;  %v485_v46 = vadd.f32 %v484_v38, %v483_v20  ;;  %v544_v47 = vadd.f32 %v543_v39, %v542_v21  ;;  %v557_v48 = vrot.slane %v556_v40, 2 }
  0x69   : > { %v466_v50 = vadd.f32 %v465_v41, %v464_v33  ;;  %v479_v51 = vrot.slane %v478_v42, 1  ;;  %v538_v55 = vrot.slane %v537_v43, 1  ;;  %v551_v56 = vadd.f32 %v550_v44, %v549_v36 }
  0x6a   : > { %v473_v57 = vadd.f32 %v472_v45, %v471_v37  ;;  %v486_v60 = vrot.slane %v485_v46, 1  ;;  %v545_v61 = vrot.slane %v544_v47, 1  ;;  %v558_v62 = vadd.f32 %v557_v48, %v556_v40 }
  0x6b   : > { %v480_v63 = vadd.f32 %v479_v51, %v478_v42  ;;  %v539_v2 = vadd.f32 %v538_v55, %v537_v43  ;;  %v552_v3 = vrot.slane %v551_v56, 1  ;;  %v608_v7 = vmul.f32 %v942_v1, %v1146_v49 }
  0x6c   : > { %v487_v8 = vadd.f32 %v486_v60, %v485_v46  ;;  %v492_v10 = vcombine.low %v466_v50, %v473_v57  ;;  %v546_v11 = vadd.f32 %v545_v61, %v544_v47  ;;  %v559_v12 = vrot.slane %v558_v62, 1 }
  0x6d   : > { %v553_v13 = vadd.f32 %v552_v3, %v551_v56  ;;  %v609_v14 = vmul.f32 %v944_v6, %v1148_v53  ;;  %v610_v15 = vadd.f32 %v606_v4, %v1150_v54  ;;  %v617_v24 = vadd.f32 %v607_v5, %v1152_v58  ;;  %v458_v6 = vld [vmem:[#allocation3] sm:$0xf] }
  0x6e   : > { %v493_v25 = vcombine.low %v480_v63, %v487_v8  ;;  %v500_v26 = vrot.slane %v492_v10, %v1138_v52  ;;  %v560_v27 = vadd.f32 %v559_v12, %v558_v62  ;;  %v565_v28 = vcombine.low %v539_v2, %v546_v11  ;;  %v592_v63 = vld [vmem:[#allocation5] sm:$0xf] }
  0x6f   : > { %v611_v29 = vrot.slane %v610_v15, 4  ;;  %v618_v30 = vrot.slane %v617_v24, 4  ;;  %v624_v49 = vadd.f32 %v608_v7, %v1154_v59  ;;  %v631_v1 = vadd.f32 %v609_v14, %v1156_v0 }
  0x70   : > { %v507_v31 = vrot.slane %v493_v25, %v1138_v52  ;;  %v566_v32 = vcombine.low %v553_v13, %v560_v27  ;;  %v573_v53 = vrot.slane %v565_v28, %v1138_v52  ;;  %v459_v0 = vmul.f32 %v1158_v23, %v458_v6 }
  0x71   : > { %v612_v54 = vadd.f32 %v611_v29, %v610_v15  ;;  %v619_v4 = vadd.f32 %v618_v30, %v617_v24  ;;  %v625_v58 = vrot.slane %v624_v49, 4  ;;  %v632_v5 = vrot.slane %v631_v1, 4 }
  0x72   : > { %v508_v16 = vcombine.low %v500_v26, %v507_v31  ;;  %v580_v17 = vrot.slane %v566_v32, %v1138_v52  ;;  %v524_v39 = vmul.f32 %v1158_v23, %v523_v18  ;;  %v593_v3 = vmul.f32 %v1158_v23, %v592_v63 }
  0x73   : > { %v613_v19 = vrot.slane %v612_v54, 2  ;;  %v620_v20 = vrot.slane %v619_v4, 2  ;;  %v626_v21 = vadd.f32 %v625_v58, %v624_v49  ;;  %v633_v59 = vadd.f32 %v632_v5, %v631_v1 }
  0x74   : > { %v515_v22 = vrot.slane %v508_v16, %v1138_v52  ;;  %v581_v33 = vcombine.low %v573_v53, %v580_v17 }
  0x75   : > { %v614_v34 = vadd.f32 %v613_v19, %v612_v54  ;;  %v621_v35 = vadd.f32 %v620_v20, %v619_v4  ;;  %v627_v36 = vrot.slane %v626_v21, 2  ;;  %v634_v37 = vrot.slane %v633_v59, 2 }
  0x76   : > { %v517_v38 = vadd.f32 %v515_v22, %v459_v0  ;;  %v588_v40 = vrot.slane %v581_v33, %v1138_v52 }
  0x77   : > { %v615_v41 = vrot.slane %v614_v34, 1  ;;  %v622_v42 = vrot.slane %v621_v35, 1  ;;  %v628_v43 = vadd.f32 %v627_v36, %v626_v21  ;;  %v635_v44 = vadd.f32 %v634_v37, %v633_v59 }
  0x78   : > { %522 = vst.msk [vmem:[#allocation3] sm:$0xf] %vm1109_vm0, %v517_v38  ;;  %v590_v45 = vadd.f32 %v588_v40, %v524_v39 }
  0x79   : > { %v616_v46 = vadd.f32 %v615_v41, %v614_v34  ;;  %v623_v47 = vadd.f32 %v622_v42, %v621_v35  ;;  %v629_v48 = vrot.slane %v628_v43, 1  ;;  %v636_v50 = vrot.slane %v635_v44, 1 }
  0x7a   : > { %591 = vst.msk [vmem:[#allocation4] sm:$0xf] %vm1109_vm0, %v590_v45 }
  0x7b   : > { %v630_v51 = vadd.f32 %v629_v48, %v628_v43  ;;  %v637_v55 = vadd.f32 %v636_v50, %v635_v44  ;;  %v642_v56 = vcombine.low %v616_v46, %v623_v47 }
  0x7d   : > { %v643_v57 = vcombine.low %v630_v51, %v637_v55  ;;  %v650_v60 = vrot.slane %v642_v56, %v1138_v52 }
  0x7f   : > { %v657_v61 = vrot.slane %v643_v57, %v1138_v52  ;;  %v673_v62 = vld [vmem:[#allocation3] sm:$0xf] }
  0x80   : > { %947 = vrcp.f32 %v673_v62 }
  0x81   : > { %v658_v2 = vcombine.low %v650_v60, %v657_v61  ;;  %v675_v11 = vld [vmem:[#allocation4] sm:$0xf] }
  0x83   : > { %v665_v7 = vrot.slane %v658_v2, %v1138_v52 }
  0x85   : > { %v667_v8 = vadd.f32 %v665_v7, %v593_v3 }
  0x87   : > { %668 = vst.msk [vmem:[#allocation5] sm:$0xf] %vm1109_vm0, %v667_v8 }
  0x8a   : > { %v948_v10 = vpop.eup %947 }
  0x8b   : > { %v676_v12 = vmul.f32 %v948_v10, %v675_v11 }
  0x8d   : > { %679 = vst.msk [vmem:[%s304_s10] sm:$0xf] %vm1109_vm0, %v676_v12  ;;  %v680_v13 = vmul.f32 %v676_v12, %v676_v12 }
  0x8e   : > { %v677_v23 = vld [vmem:[#allocation5] sm:$0xf] }
  0x8f   : > { %v678_v14 = vmul.f32 %v948_v10, %v677_v23 }
  0x91   : > { %v681_v52 = vsub.f32 %v678_v14, %v680_v13 }
  0x93   : > { %v682_v15 = vmax.f32 %v681_v52, 0.0001 }
  0x95   : > { %949 = vrsqrt.f32 %v682_v15  ;;  %vm685_vm1 = vcmp.eq.f32.partialorder %v682_v15, inf  ;;  %v688_v26 = vand.u32 2147483648, %v682_v15  ;;  %vm687_vm2 = vcmp.eq.f32.partialorder %v682_v15, 0.0 }
  0x9f   : > { %v950_v24 = vpop.eup %949 }
  0xa0   : > { %v684_v25 = vmul.f32 %v950_v24, %v682_v15 }
  0xa2   : > { %v686_v27 = vsel %vm685_vm1, %v682_v15, %v684_v25 }
  0xa3   : > { %v689_v28 = vsel %vm687_vm2, %v688_v26, %v686_v27 }
  0xa4   : > { %690 = vst.msk [vmem:[%s313_s22] sm:$0xf] %vm1109_vm0, %v689_v28 }
  0xa5 PF: > { %s14_s18 = sadd.s32 1, %s1005_s18   ;;  %s1225_s12 = smov %s985_s13 }
  0xa6   : > { %p11_p12 = scmp.ge.s32.totalorder %s14_s18, 8   ;;  %s1226_s13 = smov %s1085_s26 }
  0xa7   : > { %s1227_s14 = smov %s997_s16  ;;  %s1228_s15 = smov %s1001_s17 }
  0xa8   : > { %s1229_s16 = smov %s1232_s19  ;;  %s1230_s17 = smov %s1236_s20 }
  0xa9   :  { %13 = sbr.rel (!%p11_p12) target bundleno = 4 (0x4), region = 137 }

// kernel: _lambda_.62
= control target key start
LH: loop header
LB: loop body
LE: loop exit
PB: predicated region body
PF: predicated region fallthrough
CT: control target
= control target key end

     0   :  { %s6396_s1 = inlined_call_operand.vmem [shape: bf16[512,1536], index: 1, kind: input, shape index: {}]   ;;  %s6397_s0 = inlined_call_operand.vmem [shape: bf16[32,512], index: 0, kind: input, shape index: {}]   ;;  %s6398_s2 = inlined_call_operand.vmem [shape: f32[3,1536], index: 2, kind: input, shape index: {}]   ;;  %s6399_s3 = inlined_call_operand.vmem [shape: bf16[32,1536], index: 3, kind: output, shape index: {}]  }
   0x1   :  { %v4142_v0 = vld [vmem:[%s6396_s1 + $0x4] ss:$48 sps:$4 sm:$0xff]   ;;  %v4144_v1 = vld [vmem:[%s6396_s1 + $0xc] ss:$48 sps:$4 sm:$0xff]   ;;  %v4146_v2 = vld [vmem:[%s6396_s1] ss:$48 sps:$4 sm:$0xff]  }
   0x2   :  { %2486 = vmatprep.subr.bf16.mxu0 %v4142_v0  ;;  %v4147_v3 = vld [vmem:[%s6396_s1 + $0x8] ss:$48 sps:$4 sm:$0xff]   ;;  %2592 = vmatprep.subr.bf16.mxu1 %v4144_v1  ;;  %v4148_v4 = vld [vmem:[%s6396_s1 + $0x64] ss:$48 sps:$4 sm:$0xff]   ;;  %v4150_v5 = vld [vmem:[%s6396_s1 + $0x6c] ss:$48 sps:$4 sm:$0xff]  }
   0x3   :  { %2487 = vmatpush1.bf16.msra.mxu0 %v4146_v2  ;;  %2593 = vmatpush1.bf16.msra.mxu1 %v4147_v3  ;;  %v4152_v6 = vld [vmem:[%s6396_s1 + $0x60] ss:$48 sps:$4 sm:$0xff]   ;;  %v4153_v7 = vld [vmem:[%s6396_s1 + $0x68] ss:$48 sps:$4 sm:$0xff]   ;;  %v4154_v8 = vld [vmem:[%s6396_s1 + $0xc4] ss:$48 sps:$4 sm:$0xff]  }
   0x4   :  { %2488 = vmatprep.subr.bf16.mxu0 %v4148_v4  ;;  %2594 = vmatprep.subr.bf16.mxu1 %v4150_v5  ;;  %v4156_v9 = vld [vmem:[%s6396_s1 + $0xcc] ss:$48 sps:$4 sm:$0xff]   ;;  %v4158_v10 = vld [vmem:[%s6396_s1 + $0xc0] ss:$48 sps:$4 sm:$0xff]   ;;  %v4159_v11 = vld [vmem:[%s6396_s1 + $0xc8] ss:$48 sps:$4 sm:$0xff]  }
   0x5   :  { %v4160_v12 = vld [vmem:[%s6396_s1 + $0x124] ss:$48 sps:$4 sm:$0xff]   ;;  %v4162_v13 = vld [vmem:[%s6396_s1 + $0x12c] ss:$48 sps:$4 sm:$0xff]   ;;  %v4164_v14 = vld [vmem:[%s6396_s1 + $0x120] ss:$48 sps:$4 sm:$0xff]  }
   0x6   :  { %v4165_v15 = vld [vmem:[%s6396_s1 + $0x128] ss:$48 sps:$4 sm:$0xff]   ;;  %v4166_v16 = vld [vmem:[%s6396_s1 + $0x184] ss:$48 sps:$4 sm:$0xff]   ;;  %v4168_v17 = vld [vmem:[%s6396_s1 + $0x18c] ss:$48 sps:$4 sm:$0xff]  }
   0x7   :  { %2489 = vmatpush1.bf16.msra.mxu0 %v4152_v6  ;;  %2595 = vmatpush1.bf16.msra.mxu1 %v4153_v7  ;;  %v4170_v18 = vld [vmem:[%s6396_s1 + $0x180] ss:$48 sps:$4 sm:$0xff]   ;;  %v4171_v19 = vld [vmem:[%s6396_s1 + $0x188] ss:$48 sps:$4 sm:$0xff]   ;;  %v4172_v20 = vld [vmem:[%s6396_s1 + $0x1e4] ss:$48 sps:$4 sm:$0xff]  }
   0x8   :  { %2490 = vmatprep.subr.bf16.mxu0 %v4154_v8  ;;  %2596 = vmatprep.subr.bf16.mxu1 %v4156_v9  ;;  %v4174_v21 = vld [vmem:[%s6396_s1 + $0x1ec] ss:$48 sps:$4 sm:$0xff]   ;;  %v4176_v22 = vld [vmem:[%s6396_s1 + $0x1e0] ss:$48 sps:$4 sm:$0xff]   ;;  %v4177_v23 = vld [vmem:[%s6396_s1 + $0x1e8] ss:$48 sps:$4 sm:$0xff]  }
   0x9   :  { %v4178_v24 = vld [vmem:[%s6396_s1 + $0x244] ss:$48 sps:$4 sm:$0xff]   ;;  %v4180_v25 = vld [vmem:[%s6396_s1 + $0x24c] ss:$48 sps:$4 sm:$0xff]   ;;  %v4182_v26 = vld [vmem:[%s6396_s1 + $0x240] ss:$48 sps:$4 sm:$0xff]  }
   0xa   :  { %v4183_v27 = vld [vmem:[%s6396_s1 + $0x248] ss:$48 sps:$4 sm:$0xff]   ;;  %v4184_v28 = vld [vmem:[%s6396_s1 + $0x2a4] ss:$48 sps:$4 sm:$0xff]   ;;  %v4186_v29 = vld [vmem:[%s6396_s1 + $0x2ac] ss:$48 sps:$4 sm:$0xff]  }
   0xb   :  { %2491 = vmatpush1.bf16.msra.mxu0 %v4158_v10  ;;  %2597 = vmatpush1.bf16.msra.mxu1 %v4159_v11  ;;  %v4188_v30 = vld [vmem:[%s6396_s1 + $0x2a0] ss:$48 sps:$4 sm:$0xff]   ;;  %v4189_v31 = vld [vmem:[%s6396_s1 + $0x2a8] ss:$48 sps:$4 sm:$0xff]   ;;  %v4190_v32 = vld [vmem:[%s6396_s1 + $0x304] ss:$48 sps:$4 sm:$0xff]  }
   0xc   :  { %2492 = vmatprep.subr.bf16.mxu0 %v4160_v12  ;;  %2598 = vmatprep.subr.bf16.mxu1 %v4162_v13  ;;  %v4192_v33 = vld [vmem:[%s6396_s1 + $0x30c] ss:$48 sps:$4 sm:$0xff]   ;;  %v4194_v34 = vld [vmem:[%s6396_s1 + $0x300] ss:$48 sps:$4 sm:$0xff]   ;;  %v4195_v35 = vld [vmem:[%s6396_s1 + $0x308] ss:$48 sps:$4 sm:$0xff]  }
   0xd   :  { %v4196_v36 = vld [vmem:[%s6396_s1 + $0x364] ss:$48 sps:$4 sm:$0xff]   ;;  %v4198_v37 = vld [vmem:[%s6396_s1 + $0x36c] ss:$48 sps:$4 sm:$0xff]   ;;  %v4200_v38 = vld [vmem:[%s6396_s1 + $0x360] ss:$48 sps:$4 sm:$0xff]  }
   0xe   :  { %v4201_v39 = vld [vmem:[%s6396_s1 + $0x368] ss:$48 sps:$4 sm:$0xff]   ;;  %v4202_v40 = vld [vmem:[%s6396_s1 + $0x3c4] ss:$48 sps:$4 sm:$0xff]   ;;  %v4204_v41 = vld [vmem:[%s6396_s1 + $0x3cc] ss:$48 sps:$4 sm:$0xff]  }
   0xf   :  { %2493 = vmatpush1.bf16.msra.mxu0 %v4164_v14  ;;  %2599 = vmatpush1.bf16.msra.mxu1 %v4165_v15  ;;  %v4206_v42 = vld [vmem:[%s6396_s1 + $0x3c0] ss:$48 sps:$4 sm:$0xff]   ;;  %v4207_v43 = vld [vmem:[%s6396_s1 + $0x3c8] ss:$48 sps:$4 sm:$0xff]   ;;  %v4208_v44 = vld [vmem:[%s6396_s1 + $0x424] ss:$48 sps:$4 sm:$0xff]  }
  0x10   :  { %2494 = vmatprep.subr.bf16.mxu0 %v4166_v16  ;;  %2600 = vmatprep.subr.bf16.mxu1 %v4168_v17  ;;  %v4210_v45 = vld [vmem:[%s6396_s1 + $0x42c] ss:$48 sps:$4 sm:$0xff]   ;;  %v4212_v46 = vld [vmem:[%s6396_s1 + $0x420] ss:$48 sps:$4 sm:$0xff]   ;;  %v4902_v47 = vld [vmem:[%s6397_s0 + $0x4] ss:$16 sps:$4 sm:$0xff]  }
  0x11   :  { %v4213_v48 = vld [vmem:[%s6396_s1 + $0x428] ss:$48 sps:$4 sm:$0xff]   ;;  %v4214_v49 = vld [vmem:[%s6396_s1 + $0x484] ss:$48 sps:$4 sm:$0xff]   ;;  %v4216_v50 = vld [vmem:[%s6396_s1 + $0x48c] ss:$48 sps:$4 sm:$0xff]   ;;  %2518 = vmatprep.mubr.bf16.mxu0 %v4902_v47  ;;  %2624 = vmatprep.mubr.bf16.mxu1 %v4902_v47 }
  0x12   :  { %v4218_v51 = vld [vmem:[%s6396_s1 + $0x480] ss:$48 sps:$4 sm:$0xff]   ;;  %v4219_v52 = vld [vmem:[%s6396_s1 + $0x488] ss:$48 sps:$4 sm:$0xff]   ;;  %v4220_v53 = vld [vmem:[%s6396_s1 + $0x4e4] ss:$48 sps:$4 sm:$0xff]  }
  0x13   :  { %2495 = vmatpush1.bf16.msra.mxu0 %v4170_v18  ;;  %2601 = vmatpush1.bf16.msra.mxu1 %v4171_v19  ;;  %v4222_v54 = vld [vmem:[%s6396_s1 + $0x4ec] ss:$48 sps:$4 sm:$0xff]   ;;  %v4224_v55 = vld [vmem:[%s6396_s1 + $0x4e0] ss:$48 sps:$4 sm:$0xff]   ;;  %v4225_v56 = vld [vmem:[%s6396_s1 + $0x4e8] ss:$48 sps:$4 sm:$0xff]  }
  0x14   :  { %2496 = vmatprep.subr.bf16.mxu0 %v4172_v20  ;;  %2602 = vmatprep.subr.bf16.mxu1 %v4174_v21  ;;  %v4226_v57 = vld [vmem:[%s6396_s1 + $0x544] ss:$48 sps:$4 sm:$0xff]   ;;  %v4228_v58 = vld [vmem:[%s6396_s1 + $0x54c] ss:$48 sps:$4 sm:$0xff]   ;;  %v4230_v59 = vld [vmem:[%s6396_s1 + $0x540] ss:$48 sps:$4 sm:$0xff]  }
  0x15   :  { %v4231_v60 = vld [vmem:[%s6396_s1 + $0x548] ss:$48 sps:$4 sm:$0xff]   ;;  %v4232_v61 = vld [vmem:[%s6396_s1 + $0x5a4] ss:$48 sps:$4 sm:$0xff]   ;;  %v4234_v62 = vld [vmem:[%s6396_s1 + $0x5ac] ss:$48 sps:$4 sm:$0xff]  }
  0x16   :  { %v4236_v63 = vld [vmem:[%s6396_s1 + $0x5a0] ss:$48 sps:$4 sm:$0xff]   ;;  %v4237_v0 = vld [vmem:[%s6396_s1 + $0x5a8] ss:$48 sps:$4 sm:$0xff]   ;;  %v4242_v1 = vld [vmem:[%s6396_s1 + $0x604] ss:$48 sps:$4 sm:$0xff]  }
  0x17   :  { %2497 = vmatpush1.bf16.msra.mxu0 %v4176_v22  ;;  %2603 = vmatpush1.bf16.msra.mxu1 %v4177_v23  ;;  %v4245_v2 = vld [vmem:[%s6396_s1 + $0x60c] ss:$48 sps:$4 sm:$0xff]   ;;  %v4240_v3 = vld [vmem:[%s6396_s1 + $0x600] ss:$48 sps:$4 sm:$0xff]   ;;  %v4243_v4 = vld [vmem:[%s6396_s1 + $0x608] ss:$48 sps:$4 sm:$0xff]  }
  0x18   :  { %2498 = vmatprep.subr.bf16.mxu0 %v4178_v24  ;;  %2604 = vmatprep.subr.bf16.mxu1 %v4180_v25  ;;  %v4972_v5 = vld [vmem:[%s6397_s0] ss:$16 sps:$4 sm:$0xff]   ;;  %v4249_v6 = vld [vmem:[%s6396_s1 + $0x664] ss:$48 sps:$4 sm:$0xff]   ;;  %v4252_v7 = vld [vmem:[%s6396_s1 + $0x66c] ss:$48 sps:$4 sm:$0xff]  }
  0x19   :  { %v4247_v8 = vld [vmem:[%s6396_s1 + $0x660] ss:$48 sps:$4 sm:$0xff]   ;;  %v4250_v9 = vld [vmem:[%s6396_s1 + $0x668] ss:$48 sps:$4 sm:$0xff]   ;;  %v4255_v10 = vld [vmem:[%s6396_s1 + $0x6c4] ss:$48 sps:$4 sm:$0xff]  }
  0x1a   :  { %v4258_v11 = vld [vmem:[%s6396_s1 + $0x6cc] ss:$48 sps:$4 sm:$0xff]   ;;  %v4253_v12 = vld [vmem:[%s6396_s1 + $0x6c0] ss:$48 sps:$4 sm:$0xff]   ;;  %v4256_v13 = vld [vmem:[%s6396_s1 + $0x6c8] ss:$48 sps:$4 sm:$0xff]  }
  0x1b   :  { %2499 = vmatpush1.bf16.msra.mxu0 %v4182_v26  ;;  %2605 = vmatpush1.bf16.msra.mxu1 %v4183_v27  ;;  %v4261_v14 = vld [vmem:[%s6396_s1 + $0x724] ss:$48 sps:$4 sm:$0xff]   ;;  %v4264_v15 = vld [vmem:[%s6396_s1 + $0x72c] ss:$48 sps:$4 sm:$0xff]   ;;  %v4259_v16 = vld [vmem:[%s6396_s1 + $0x720] ss:$48 sps:$4 sm:$0xff]  }
  0x1c   :  { %2500 = vmatprep.subr.bf16.mxu0 %v4184_v28  ;;  %2606 = vmatprep.subr.bf16.mxu1 %v4186_v29  ;;  %v4262_v17 = vld [vmem:[%s6396_s1 + $0x728] ss:$48 sps:$4 sm:$0xff]   ;;  %v4267_v18 = vld [vmem:[%s6396_s1 + $0x784] ss:$48 sps:$4 sm:$0xff]   ;;  %v4270_v19 = vld [vmem:[%s6396_s1 + $0x78c] ss:$48 sps:$4 sm:$0xff]  }
  0x1d   :  { %v4265_v20 = vld [vmem:[%s6396_s1 + $0x780] ss:$48 sps:$4 sm:$0xff]   ;;  %v4268_v21 = vld [vmem:[%s6396_s1 + $0x788] ss:$48 sps:$4 sm:$0xff]   ;;  %v4273_v22 = vld [vmem:[%s6396_s1 + $0x7e4] ss:$48 sps:$4 sm:$0xff]  }
  0x1e   :  { %v4276_v23 = vld [vmem:[%s6396_s1 + $0x7ec] ss:$48 sps:$4 sm:$0xff]   ;;  %v4271_v24 = vld [vmem:[%s6396_s1 + $0x7e0] ss:$48 sps:$4 sm:$0xff]   ;;  %v5036_v25 = vld [vmem:[%s6397_s0 + $0x24] ss:$16 sps:$4 sm:$0xff]  }
  0x1f   :  { %2501 = vmatpush1.bf16.msra.mxu0 %v4188_v30  ;;  %2607 = vmatpush1.bf16.msra.mxu1 %v4189_v31  ;;  %v4274_v26 = vld [vmem:[%s6396_s1 + $0x7e8] ss:$48 sps:$4 sm:$0xff]   ;;  %v5044_v27 = vld [vmem:[%s6397_s0 + $0x20] ss:$16 sps:$4 sm:$0xff]   ;;  %v4279_v28 = vld [vmem:[%s6396_s1 + $0x844] ss:$48 sps:$4 sm:$0xff]  }
  0x20   :  { %2502 = vmatprep.subr.bf16.mxu0 %v4190_v32  ;;  %2608 = vmatprep.subr.bf16.mxu1 %v4192_v33  ;;  %v4282_v29 = vld [vmem:[%s6396_s1 + $0x84c] ss:$48 sps:$4 sm:$0xff]   ;;  %v4277_v30 = vld [vmem:[%s6396_s1 + $0x840] ss:$48 sps:$4 sm:$0xff]   ;;  %v4280_v31 = vld [vmem:[%s6396_s1 + $0x848] ss:$48 sps:$4 sm:$0xff]  }
  0x21   :  { %v4285_v32 = vld [vmem:[%s6396_s1 + $0x8a4] ss:$48 sps:$4 sm:$0xff]   ;;  %v5068_v33 = vld [vmem:[%s6397_s0 + $0xc] ss:$16 sps:$4 sm:$0xff]  }
  0x23   :  { %2503 = vmatpush1.bf16.msra.mxu0 %v4194_v34  ;;  %2609 = vmatpush1.bf16.msra.mxu1 %v4195_v35  ;;  %v4288_v34 = vld [vmem:[%s6396_s1 + $0x8ac] ss:$48 sps:$4 sm:$0xff]   ;;  %v4283_v35 = vld [vmem:[%s6396_s1 + $0x8a0] ss:$48 sps:$4 sm:$0xff]  }
  0x24   :  { %2504 = vmatprep.subr.bf16.mxu0 %v4196_v36  ;;  %2610 = vmatprep.subr.bf16.mxu1 %v4198_v37  ;;  %v4286_v36 = vld [vmem:[%s6396_s1 + $0x8a8] ss:$48 sps:$4 sm:$0xff]   ;;  %v4291_v37 = vld [vmem:[%s6396_s1 + $0x904] ss:$48 sps:$4 sm:$0xff]  }
  0x27   :  { %2505 = vmatpush1.bf16.msra.mxu0 %v4200_v38  ;;  %2611 = vmatpush1.bf16.msra.mxu1 %v4201_v39  ;;  %v4294_v38 = vld [vmem:[%s6396_s1 + $0x90c] ss:$48 sps:$4 sm:$0xff]   ;;  %v4289_v39 = vld [vmem:[%s6396_s1 + $0x900] ss:$48 sps:$4 sm:$0xff]  }
  0x28   :  { %2506 = vmatprep.subr.bf16.mxu0 %v4202_v40  ;;  %2612 = vmatprep.subr.bf16.mxu1 %v4204_v41  ;;  %v4292_v40 = vld [vmem:[%s6396_s1 + $0x908] ss:$48 sps:$4 sm:$0xff]   ;;  %v4297_v41 = vld [vmem:[%s6396_s1 + $0x964] ss:$48 sps:$4 sm:$0xff]  }
  0x2b   :  { %2507 = vmatpush1.bf16.msra.mxu0 %v4206_v42  ;;  %2613 = vmatpush1.bf16.msra.mxu1 %v4207_v43  ;;  %v4300_v42 = vld [vmem:[%s6396_s1 + $0x96c] ss:$48 sps:$4 sm:$0xff]   ;;  %v4295_v43 = vld [vmem:[%s6396_s1 + $0x960] ss:$48 sps:$4 sm:$0xff]  }
  0x2c   :  { %2508 = vmatprep.subr.bf16.mxu0 %v4208_v44  ;;  %2614 = vmatprep.subr.bf16.mxu1 %v4210_v45  ;;  %v4298_v44 = vld [vmem:[%s6396_s1 + $0x968] ss:$48 sps:$4 sm:$0xff]   ;;  %v4303_v45 = vld [vmem:[%s6396_s1 + $0x9c4] ss:$48 sps:$4 sm:$0xff]  }
  0x2f   :  { %2509 = vmatpush1.bf16.msra.mxu0 %v4212_v46  ;;  %2615 = vmatpush1.bf16.msra.mxu1 %v4213_v48  ;;  %v4306_v46 = vld [vmem:[%s6396_s1 + $0x9cc] ss:$48 sps:$4 sm:$0xff]   ;;  %v4301_v48 = vld [vmem:[%s6396_s1 + $0x9c0] ss:$48 sps:$4 sm:$0xff]  }
  0x30   :  { %2510 = vmatprep.subr.bf16.mxu0 %v4214_v49  ;;  %2616 = vmatprep.subr.bf16.mxu1 %v4216_v50  ;;  %v4304_v49 = vld [vmem:[%s6396_s1 + $0x9c8] ss:$48 sps:$4 sm:$0xff]   ;;  %v4309_v50 = vld [vmem:[%s6396_s1 + $0xa24] ss:$48 sps:$4 sm:$0xff]  }
  0x33   :  { %2511 = vmatpush1.bf16.msra.mxu0 %v4218_v51  ;;  %2617 = vmatpush1.bf16.msra.mxu1 %v4219_v52  ;;  %v4312_v51 = vld [vmem:[%s6396_s1 + $0xa2c] ss:$48 sps:$4 sm:$0xff]   ;;  %v4307_v52 = vld [vmem:[%s6396_s1 + $0xa20] ss:$48 sps:$4 sm:$0xff]  }
  0x34   :  { %2512 = vmatprep.subr.bf16.mxu0 %v4220_v53  ;;  %2618 = vmatprep.subr.bf16.mxu1 %v4222_v54  ;;  %v4310_v53 = vld [vmem:[%s6396_s1 + $0xa28] ss:$48 sps:$4 sm:$0xff]   ;;  %v4315_v54 = vld [vmem:[%s6396_s1 + $0xa84] ss:$48 sps:$4 sm:$0xff]  }
  0x37   :  { %2513 = vmatpush1.bf16.msra.mxu0 %v4224_v55  ;;  %2619 = vmatpush1.bf16.msra.mxu1 %v4225_v56  ;;  %v4318_v55 = vld [vmem:[%s6396_s1 + $0xa8c] ss:$48 sps:$4 sm:$0xff]   ;;  %v4313_v56 = vld [vmem:[%s6396_s1 + $0xa80] ss:$48 sps:$4 sm:$0xff]  }
  0x38   :  { %2514 = vmatprep.subr.bf16.mxu0 %v4226_v57  ;;  %2620 = vmatprep.subr.bf16.mxu1 %v4228_v58  ;;  %v4316_v57 = vld [vmem:[%s6396_s1 + $0xa88] ss:$48 sps:$4 sm:$0xff]   ;;  %v4321_v58 = vld [vmem:[%s6396_s1 + $0xae4] ss:$48 sps:$4 sm:$0xff]  }
  0x3b   :  { %2515 = vmatpush1.bf16.msra.mxu0 %v4230_v59  ;;  %2621 = vmatpush1.bf16.msra.mxu1 %v4231_v60  ;;  %v4324_v59 = vld [vmem:[%s6396_s1 + $0xaec] ss:$48 sps:$4 sm:$0xff]   ;;  %v4319_v60 = vld [vmem:[%s6396_s1 + $0xae0] ss:$48 sps:$4 sm:$0xff]  }
  0x3c   :  { %2516 = vmatprep.subr.bf16.mxu0 %v4232_v61  ;;  %2622 = vmatprep.subr.bf16.mxu1 %v4234_v62  ;;  %v4322_v61 = vld [vmem:[%s6396_s1 + $0xae8] ss:$48 sps:$4 sm:$0xff]   ;;  %v4330_v62 = vld [vmem:[%s6396_s1 + $0xb44] ss:$48 sps:$4 sm:$0xff]  }
  0x3f   :  { %2517 = vmatpush1.bf16.msra.mxu0 %v4236_v63  ;;  %2623 = vmatpush1.bf16.msra.mxu1 %v4237_v0  ;;  %v4333_v63 = vld [vmem:[%s6396_s1 + $0xb4c] ss:$48 sps:$4 sm:$0xff]   ;;  %v4328_v0 = vld [vmem:[%s6396_s1 + $0xb40] ss:$48 sps:$4 sm:$0xff]  }
  0x40   :  { %2539 = vmatprep.subr.bf16.mxu0 %v4242_v1  ;;  %2645 = vmatprep.subr.bf16.mxu1 %v4245_v2  ;;  %v4331_v1 = vld [vmem:[%s6396_s1 + $0xb48] ss:$48 sps:$4 sm:$0xff]   ;;  %v4336_v2 = vld [vmem:[%s6396_s1 + $0xba4] ss:$48 sps:$4 sm:$0xff]  }
  0x42   :  { %2519 = vmatmul.mubr.bf16.vlgmr.msra.gmra.mrb[0].mxu0 %v4972_v5  ;;  %2625 = vmatmul.mubr.bf16.vlgmr.msra.gmra.mrb[0].mxu1 %v4972_v5 }
  0x43   :  { %2540 = vmatpush1.bf16.msra.mxu0 %v4240_v3  ;;  %2646 = vmatpush1.bf16.msra.mxu1 %v4243_v4  ;;  %v4339_v3 = vld [vmem:[%s6396_s1 + $0xbac] ss:$48 sps:$4 sm:$0xff]   ;;  %v4334_v4 = vld [vmem:[%s6396_s1 + $0xba0] ss:$48 sps:$4 sm:$0xff]  }
  0x44   :  { %2541 = vmatprep.subr.bf16.mxu0 %v4249_v6  ;;  %2647 = vmatprep.subr.bf16.mxu1 %v4252_v7  ;;  %v4337_v6 = vld [vmem:[%s6396_s1 + $0xba8] ss:$48 sps:$4 sm:$0xff]   ;;  %v4345_v7 = vld [vmem:[%s6396_s1 + $0x14] ss:$48 sps:$4 sm:$0xff]  }
  0x45   :  { %2528 = vmatprep.mubr.bf16.mxu0 %v5036_v25  ;;  %2634 = vmatprep.mubr.bf16.mxu1 %v5036_v25 }
  0x47   :  { %2542 = vmatpush1.bf16.msra.mxu0 %v4247_v8  ;;  %2648 = vmatpush1.bf16.msra.mxu1 %v4250_v9  ;;  %v4348_v8 = vld [vmem:[%s6396_s1 + $0x1c] ss:$48 sps:$4 sm:$0xff]   ;;  %v5186_v9 = vld [vmem:[%s6397_s0 + $0x8] ss:$16 sps:$4 sm:$0xff]  }
  0x48   :  { %2543 = vmatprep.subr.bf16.mxu0 %v4255_v10  ;;  %2649 = vmatprep.subr.bf16.mxu1 %v4258_v11  ;;  %v4343_v10 = vld [vmem:[%s6396_s1 + $0x10] ss:$48 sps:$4 sm:$0xff]   ;;  %v4346_v11 = vld [vmem:[%s6396_s1 + $0x18] ss:$48 sps:$4 sm:$0xff]  }
  0x4a   :  { %2529 = vmatmul.mubr.bf16.gmra.mrb[4].mxu0 %v5044_v27  ;;  %2635 = vmatmul.mubr.bf16.gmra.mrb[4].mxu1 %v5044_v27 }
  0x4b   :  { %2544 = vmatpush1.bf16.msra.mxu0 %v4253_v12  ;;  %2650 = vmatpush1.bf16.msra.mxu1 %v4256_v13  ;;  %v4351_v12 = vld [vmem:[%s6396_s1 + $0x74] ss:$48 sps:$4 sm:$0xff]   ;;  %v4354_v13 = vld [vmem:[%s6396_s1 + $0x7c] ss:$48 sps:$4 sm:$0xff]  }
  0x4c   :  { %2545 = vmatprep.subr.bf16.mxu0 %v4261_v14  ;;  %2651 = vmatprep.subr.bf16.mxu1 %v4264_v15  ;;  %v5203_v14 = vld [vmem:[%s6397_s0 + $0x2c] ss:$16 sps:$4 sm:$0xff]   ;;  %v4349_v15 = vld [vmem:[%s6396_s1 + $0x70] ss:$48 sps:$4 sm:$0xff]  }
  0x4d   :  { %2571 = vmatprep.mubr.bf16.mxu0 %v5068_v33  ;;  %2677 = vmatprep.mubr.bf16.mxu1 %v5068_v33 }
  0x4f   :  { %2546 = vmatpush1.bf16.msra.mxu0 %v4259_v16  ;;  %2652 = vmatpush1.bf16.msra.mxu1 %v4262_v17  ;;  %v4352_v16 = vld [vmem:[%s6396_s1 + $0x78] ss:$48 sps:$4 sm:$0xff]   ;;  %v4360_v17 = vld [vmem:[%s6396_s1 + $0xd4] ss:$48 sps:$4 sm:$0xff]  }
  0x50   :  { %2547 = vmatprep.subr.bf16.mxu0 %v4267_v18  ;;  %2653 = vmatprep.subr.bf16.mxu1 %v4270_v19  ;;  %v4363_v18 = vld [vmem:[%s6396_s1 + $0xdc] ss:$48 sps:$4 sm:$0xff]   ;;  %v5224_v19 = vld [vmem:[%s6397_s0 + $0x28] ss:$16 sps:$4 sm:$0xff]  }
  0x53   :  { %2548 = vmatpush1.bf16.msra.mxu0 %v4265_v20  ;;  %2654 = vmatpush1.bf16.msra.mxu1 %v4268_v21  ;;  %v4358_v20 = vld [vmem:[%s6396_s1 + $0xd0] ss:$48 sps:$4 sm:$0xff]   ;;  %v4361_v21 = vld [vmem:[%s6396_s1 + $0xd8] ss:$48 sps:$4 sm:$0xff]  }
  0x54   :  { %2549 = vmatprep.subr.bf16.mxu0 %v4273_v22  ;;  %2655 = vmatprep.subr.bf16.mxu1 %v4276_v23  ;;  %v4366_v22 = vld [vmem:[%s6396_s1 + $0x134] ss:$48 sps:$4 sm:$0xff]   ;;  %v4369_v23 = vld [vmem:[%s6396_s1 + $0x13c] ss:$48 sps:$4 sm:$0xff]  }
  0x57   :  { %2550 = vmatpush1.bf16.msra.mxu0 %v4271_v24  ;;  %2656 = vmatpush1.bf16.msra.mxu1 %v4274_v26  ;;  %v4364_v24 = vld [vmem:[%s6396_s1 + $0x130] ss:$48 sps:$4 sm:$0xff]   ;;  %v4367_v26 = vld [vmem:[%s6396_s1 + $0x138] ss:$48 sps:$4 sm:$0xff]  }
  0x58   :  { %2551 = vmatprep.subr.bf16.mxu0 %v4279_v28  ;;  %2657 = vmatprep.subr.bf16.mxu1 %v4282_v29  ;;  %v4372_v28 = vld [vmem:[%s6396_s1 + $0x194] ss:$48 sps:$4 sm:$0xff]   ;;  %v4375_v29 = vld [vmem:[%s6396_s1 + $0x19c] ss:$48 sps:$4 sm:$0xff]  }
  0x5b   :  { %2552 = vmatpush1.bf16.msra.mxu0 %v4277_v30  ;;  %2658 = vmatpush1.bf16.msra.mxu1 %v4280_v31  ;;  %v4370_v30 = vld [vmem:[%s6396_s1 + $0x190] ss:$48 sps:$4 sm:$0xff]   ;;  %v4373_v31 = vld [vmem:[%s6396_s1 + $0x198] ss:$48 sps:$4 sm:$0xff]  }
  0x5c   :  { %2553 = vmatprep.subr.bf16.mxu0 %v4285_v32  ;;  %2659 = vmatprep.subr.bf16.mxu1 %v4288_v34  ;;  %v4378_v32 = vld [vmem:[%s6396_s1 + $0x1f4] ss:$48 sps:$4 sm:$0xff]   ;;  %v4376_v34 = vld [vmem:[%s6396_s1 + $0x1f0] ss:$48 sps:$4 sm:$0xff]  }
  0x5f   :  { %2554 = vmatpush1.bf16.msra.mxu0 %v4283_v35  ;;  %2660 = vmatpush1.bf16.msra.mxu1 %v4286_v36  ;;  %v4379_v35 = vld [vmem:[%s6396_s1 + $0x1f8] ss:$48 sps:$4 sm:$0xff]   ;;  %v4384_v36 = vld [vmem:[%s6396_s1 + $0x254] ss:$48 sps:$4 sm:$0xff]  }
  0x60   :  { %2555 = vmatprep.subr.bf16.mxu0 %v4291_v37  ;;  %2661 = vmatprep.subr.bf16.mxu1 %v4294_v38  ;;  %v4387_v37 = vld [vmem:[%s6396_s1 + $0x25c] ss:$48 sps:$4 sm:$0xff]   ;;  %v4382_v38 = vld [vmem:[%s6396_s1 + $0x250] ss:$48 sps:$4 sm:$0xff]  }
  0x63   :  { %2556 = vmatpush1.bf16.msra.mxu0 %v4289_v39  ;;  %2662 = vmatpush1.bf16.msra.mxu1 %v4292_v40  ;;  %v4385_v39 = vld [vmem:[%s6396_s1 + $0x258] ss:$48 sps:$4 sm:$0xff]   ;;  %v4390_v40 = vld [vmem:[%s6396_s1 + $0x2b4] ss:$48 sps:$4 sm:$0xff]  }
  0x64   :  { %2557 = vmatprep.subr.bf16.mxu0 %v4297_v41  ;;  %2663 = vmatprep.subr.bf16.mxu1 %v4300_v42  ;;  %v4393_v41 = vld [vmem:[%s6396_s1 + $0x2bc] ss:$48 sps:$4 sm:$0xff]   ;;  %v4388_v42 = vld [vmem:[%s6396_s1 + $0x2b0] ss:$48 sps:$4 sm:$0xff]  }
  0x67   :  { %2558 = vmatpush1.bf16.msra.mxu0 %v4295_v43  ;;  %2664 = vmatpush1.bf16.msra.mxu1 %v4298_v44  ;;  %v4391_v43 = vld [vmem:[%s6396_s1 + $0x2b8] ss:$48 sps:$4 sm:$0xff]   ;;  %v4396_v44 = vld [vmem:[%s6396_s1 + $0x314] ss:$48 sps:$4 sm:$0xff]  }
  0x68   :  { %2559 = vmatprep.subr.bf16.mxu0 %v4303_v45  ;;  %2665 = vmatprep.subr.bf16.mxu1 %v4306_v46  ;;  %v4399_v45 = vld [vmem:[%s6396_s1 + $0x31c] ss:$48 sps:$4 sm:$0xff]   ;;  %v4394_v46 = vld [vmem:[%s6396_s1 + $0x310] ss:$48 sps:$4 sm:$0xff]  }
  0x6b   :  { %2560 = vmatpush1.bf16.msra.mxu0 %v4301_v48  ;;  %2666 = vmatpush1.bf16.msra.mxu1 %v4304_v49  ;;  %v4397_v48 = vld [vmem:[%s6396_s1 + $0x318] ss:$48 sps:$4 sm:$0xff]   ;;  %v4402_v49 = vld [vmem:[%s6396_s1 + $0x374] ss:$48 sps:$4 sm:$0xff]  }
  0x6c   :  { %2561 = vmatprep.subr.bf16.mxu0 %v4309_v50  ;;  %2667 = vmatprep.subr.bf16.mxu1 %v4312_v51  ;;  %v4405_v50 = vld [vmem:[%s6396_s1 + $0x37c] ss:$48 sps:$4 sm:$0xff]   ;;  %v4400_v51 = vld [vmem:[%s6396_s1 + $0x370] ss:$48 sps:$4 sm:$0xff]  }
  0x6f   :  { %2562 = vmatpush1.bf16.msra.mxu0 %v4307_v52  ;;  %2668 = vmatpush1.bf16.msra.mxu1 %v4310_v53  ;;  %v4403_v52 = vld [vmem:[%s6396_s1 + $0x378] ss:$48 sps:$4 sm:$0xff]   ;;  %v4408_v53 = vld [vmem:[%s6396_s1 + $0x3d4] ss:$48 sps:$4 sm:$0xff]  }
  0x70   :  { %2563 = vmatprep.subr.bf16.mxu0 %v4315_v54  ;;  %2669 = vmatprep.subr.bf16.mxu1 %v4318_v55  ;;  %v4411_v54 = vld [vmem:[%s6396_s1 + $0x3dc] ss:$48 sps:$4 sm:$0xff]   ;;  %v4406_v55 = vld [vmem:[%s6396_s1 + $0x3d0] ss:$48 sps:$4 sm:$0xff]  }
  0x73   :  { %2564 = vmatpush1.bf16.msra.mxu0 %v4313_v56  ;;  %2670 = vmatpush1.bf16.msra.mxu1 %v4316_v57  ;;  %v4409_v56 = vld [vmem:[%s6396_s1 + $0x3d8] ss:$48 sps:$4 sm:$0xff]   ;;  %v4414_v57 = vld [vmem:[%s6396_s1 + $0x434] ss:$48 sps:$4 sm:$0xff]  }
  0x74   :  { %2565 = vmatprep.subr.bf16.mxu0 %v4321_v58  ;;  %2671 = vmatprep.subr.bf16.mxu1 %v4324_v59  ;;  %v4417_v58 = vld [vmem:[%s6396_s1 + $0x43c] ss:$48 sps:$4 sm:$0xff]   ;;  %v4412_v59 = vld [vmem:[%s6396_s1 + $0x430] ss:$48 sps:$4 sm:$0xff]  }
  0x77   :  { %2566 = vmatpush1.bf16.msra.mxu0 %v4319_v60  ;;  %2672 = vmatpush1.bf16.msra.mxu1 %v4322_v61  ;;  %v4415_v60 = vld [vmem:[%s6396_s1 + $0x438] ss:$48 sps:$4 sm:$0xff]   ;;  %v4420_v61 = vld [vmem:[%s6396_s1 + $0x494] ss:$48 sps:$4 sm:$0xff]  }
  0x78   :  { %2567 = vmatprep.subr.bf16.mxu0 %v4330_v62  ;;  %2673 = vmatprep.subr.bf16.mxu1 %v4333_v63  ;;  %v4423_v62 = vld [vmem:[%s6396_s1 + $0x49c] ss:$48 sps:$4 sm:$0xff]   ;;  %v4418_v63 = vld [vmem:[%s6396_s1 + $0x490] ss:$48 sps:$4 sm:$0xff]  }
  0x7b   :  { %2568 = vmatpush1.bf16.msra.mxu0 %v4328_v0  ;;  %2674 = vmatpush1.bf16.msra.mxu1 %v4331_v1  ;;  %v4421_v0 = vld [vmem:[%s6396_s1 + $0x498] ss:$48 sps:$4 sm:$0xff]   ;;  %v4426_v1 = vld [vmem:[%s6396_s1 + $0x4f4] ss:$48 sps:$4 sm:$0xff]  }
  0x7c   :  { %2569 = vmatprep.subr.bf16.mxu0 %v4336_v2  ;;  %2675 = vmatprep.subr.bf16.mxu1 %v4339_v3  ;;  %v4429_v2 = vld [vmem:[%s6396_s1 + $0x4fc] ss:$48 sps:$4 sm:$0xff]   ;;  %v4424_v3 = vld [vmem:[%s6396_s1 + $0x4f0] ss:$48 sps:$4 sm:$0xff]  }
  0x7f   :  { %2570 = vmatpush1.bf16.msra.mxu0 %v4334_v4  ;;  %2676 = vmatpush1.bf16.msra.mxu1 %v4337_v6  ;;  %v4427_v4 = vld [vmem:[%s6396_s1 + $0x4f8] ss:$48 sps:$4 sm:$0xff]   ;;  %v4432_v6 = vld [vmem:[%s6396_s1 + $0x554] ss:$48 sps:$4 sm:$0xff]  }
  0x80   :  { %2698 = vmatprep.subr.bf16.mxu0 %v4345_v7  ;;  %2804 = vmatprep.subr.bf16.mxu1 %v4348_v8  ;;  %v4435_v7 = vld [vmem:[%s6396_s1 + $0x55c] ss:$48 sps:$4 sm:$0xff]   ;;  %v4430_v8 = vld [vmem:[%s6396_s1 + $0x550] ss:$48 sps:$4 sm:$0xff]  }
  0x82   :  { %2572 = vmatmul.mubr.bf16.vlgmr.msra.gmra.mrb[0].mxu0 %v5186_v9  ;;  %2678 = vmatmul.mubr.bf16.vlgmr.msra.gmra.mrb[0].mxu1 %v5186_v9 }
  0x83   :  { %2699 = vmatpush1.bf16.msra.mxu0 %v4343_v10  ;;  %2805 = vmatpush1.bf16.msra.mxu1 %v4346_v11  ;;  %v4433_v10 = vld [vmem:[%s6396_s1 + $0x558] ss:$48 sps:$4 sm:$0xff]   ;;  %v4438_v11 = vld [vmem:[%s6396_s1 + $0x5b4] ss:$48 sps:$4 sm:$0xff]  }
  0x84   :  { %2700 = vmatprep.subr.bf16.mxu0 %v4351_v12  ;;  %2806 = vmatprep.subr.bf16.mxu1 %v4354_v13  ;;  %v4441_v12 = vld [vmem:[%s6396_s1 + $0x5bc] ss:$48 sps:$4 sm:$0xff]   ;;  %v4436_v13 = vld [vmem:[%s6396_s1 + $0x5b0] ss:$48 sps:$4 sm:$0xff]  }
  0x85   :  { %2581 = vmatprep.mubr.bf16.mxu0 %v5203_v14  ;;  %2687 = vmatprep.mubr.bf16.mxu1 %v5203_v14 }
  0x87   :  { %2701 = vmatpush1.bf16.msra.mxu0 %v4349_v15  ;;  %2807 = vmatpush1.bf16.msra.mxu1 %v4352_v16  ;;  %v4439_v15 = vld [vmem:[%s6396_s1 + $0x5b8] ss:$48 sps:$4 sm:$0xff]   ;;  %v4444_v16 = vld [vmem:[%s6396_s1 + $0x614] ss:$48 sps:$4 sm:$0xff]  }
  0x88   :  { %2702 = vmatprep.subr.bf16.mxu0 %v4360_v17  ;;  %2808 = vmatprep.subr.bf16.mxu1 %v4363_v18  ;;  %v4447_v17 = vld [vmem:[%s6396_s1 + $0x61c] ss:$48 sps:$4 sm:$0xff]   ;;  %v4442_v18 = vld [vmem:[%s6396_s1 + $0x610] ss:$48 sps:$4 sm:$0xff]  }
  0x8a   :  { %2582 = vmatmul.mubr.bf16.gmra.mrb[4].mxu0 %v5224_v19  ;;  %2688 = vmatmul.mubr.bf16.gmra.mrb[4].mxu1 %v5224_v19 }
  0x8b   :  { %2703 = vmatpush1.bf16.msra.mxu0 %v4358_v20  ;;  %2809 = vmatpush1.bf16.msra.mxu1 %v4361_v21  ;;  %v4445_v20 = vld [vmem:[%s6396_s1 + $0x618] ss:$48 sps:$4 sm:$0xff]   ;;  %v4450_v21 = vld [vmem:[%s6396_s1 + $0x674] ss:$48 sps:$4 sm:$0xff]  }
  0x8c   :  { %2704 = vmatprep.subr.bf16.mxu0 %v4366_v22  ;;  %2810 = vmatprep.subr.bf16.mxu1 %v4369_v23  ;;  %v4453_v22 = vld [vmem:[%s6396_s1 + $0x67c] ss:$48 sps:$4 sm:$0xff]   ;;  %v4448_v23 = vld [vmem:[%s6396_s1 + $0x670] ss:$48 sps:$4 sm:$0xff]  }
  0x8d   :  { %2730 = vmatprep.mubr.bf16.mxu0 %v4902_v47  ;;  %2836 = vmatprep.mubr.bf16.mxu1 %v4902_v47  ;;  %v4381_v47 = vld [vmem:[%s6396_s1 + $0x1fc] ss:$48 sps:$4 sm:$0xff]  }
  0x8f   :  { %2705 = vmatpush1.bf16.msra.mxu0 %v4364_v24  ;;  %2811 = vmatpush1.bf16.msra.mxu1 %v4367_v26  ;;  %v4451_v24 = vld [vmem:[%s6396_s1 + $0x678] ss:$48 sps:$4 sm:$0xff]   ;;  %v4456_v26 = vld [vmem:[%s6396_s1 + $0x6d4] ss:$48 sps:$4 sm:$0xff]  }
  0x90   :  { %2706 = vmatprep.subr.bf16.mxu0 %v4372_v28  ;;  %2812 = vmatprep.subr.bf16.mxu1 %v4375_v29  ;;  %v4454_v28 = vld [vmem:[%s6396_s1 + $0x6d0] ss:$48 sps:$4 sm:$0xff]   ;;  %v4457_v29 = vld [vmem:[%s6396_s1 + $0x6d8] ss:$48 sps:$4 sm:$0xff]  }
  0x93   :  { %2707 = vmatpush1.bf16.msra.mxu0 %v4370_v30  ;;  %2813 = vmatpush1.bf16.msra.mxu1 %v4373_v31  ;;  %v4462_v30 = vld [vmem:[%s6396_s1 + $0x734] ss:$48 sps:$4 sm:$0xff]   ;;  %v4460_v31 = vld [vmem:[%s6396_s1 + $0x730] ss:$48 sps:$4 sm:$0xff]  }
  0x94   :  { %2708 = vmatprep.subr.bf16.mxu0 %v4378_v32  ;;  %2814 = vmatprep.subr.bf16.mxu1 %v4381_v47  ;;  %v4463_v32 = vld [vmem:[%s6396_s1 + $0x738] ss:$48 sps:$4 sm:$0xff]   ;;  %v4468_v47 = vld [vmem:[%s6396_s1 + $0x794] ss:$48 sps:$4 sm:$0xff]  }
  0x97   :  { %2709 = vmatpush1.bf16.msra.mxu0 %v4376_v34  ;;  %2815 = vmatpush1.bf16.msra.mxu1 %v4379_v35  ;;  %v4471_v34 = vld [vmem:[%s6396_s1 + $0x79c] ss:$48 sps:$4 sm:$0xff]   ;;  %v4469_v35 = vld [vmem:[%s6396_s1 + $0x798] ss:$48 sps:$4 sm:$0xff]  }
  0x98   :  { %2710 = vmatprep.subr.bf16.mxu0 %v4384_v36  ;;  %2816 = vmatprep.subr.bf16.mxu1 %v4387_v37  ;;  %v4474_v36 = vld [vmem:[%s6396_s1 + $0x7f4] ss:$48 sps:$4 sm:$0xff]   ;;  %v4472_v37 = vld [vmem:[%s6396_s1 + $0x7f0] ss:$48 sps:$4 sm:$0xff]  }
  0x9b   :  { %2711 = vmatpush1.bf16.msra.mxu0 %v4382_v38  ;;  %2817 = vmatpush1.bf16.msra.mxu1 %v4385_v39  ;;  %v4475_v38 = vld [vmem:[%s6396_s1 + $0x7f8] ss:$48 sps:$4 sm:$0xff]   ;;  %v4480_v39 = vld [vmem:[%s6396_s1 + $0x854] ss:$48 sps:$4 sm:$0xff]  }
  0x9c   :  { %2712 = vmatprep.subr.bf16.mxu0 %v4390_v40  ;;  %2818 = vmatprep.subr.bf16.mxu1 %v4393_v41  ;;  %v4483_v40 = vld [vmem:[%s6396_s1 + $0x85c] ss:$48 sps:$4 sm:$0xff]   ;;  %v4478_v41 = vld [vmem:[%s6396_s1 + $0x850] ss:$48 sps:$4 sm:$0xff]  }
  0x9f   :  { %2713 = vmatpush1.bf16.msra.mxu0 %v4388_v42  ;;  %2819 = vmatpush1.bf16.msra.mxu1 %v4391_v43  ;;  %v4481_v42 = vld [vmem:[%s6396_s1 + $0x858] ss:$48 sps:$4 sm:$0xff]   ;;  %v4486_v43 = vld [vmem:[%s6396_s1 + $0x8b4] ss:$48 sps:$4 sm:$0xff]  }
  0xa0   :  { %2714 = vmatprep.subr.bf16.mxu0 %v4396_v44  ;;  %2820 = vmatprep.subr.bf16.mxu1 %v4399_v45  ;;  %v4489_v44 = vld [vmem:[%s6396_s1 + $0x8bc] ss:$48 sps:$4 sm:$0xff]   ;;  %v4484_v45 = vld [vmem:[%s6396_s1 + $0x8b0] ss:$48 sps:$4 sm:$0xff]  }
  0xa3   :  { %2715 = vmatpush1.bf16.msra.mxu0 %v4394_v46  ;;  %2821 = vmatpush1.bf16.msra.mxu1 %v4397_v48  ;;  %v4487_v46 = vld [vmem:[%s6396_s1 + $0x8b8] ss:$48 sps:$4 sm:$0xff]   ;;  %v4492_v48 = vld [vmem:[%s6396_s1 + $0x914] ss:$48 sps:$4 sm:$0xff]  }
  0xa4   :  { %2716 = vmatprep.subr.bf16.mxu0 %v4402_v49  ;;  %2822 = vmatprep.subr.bf16.mxu1 %v4405_v50  ;;  %v4495_v49 = vld [vmem:[%s6396_s1 + $0x91c] ss:$48 sps:$4 sm:$0xff]   ;;  %v4490_v50 = vld [vmem:[%s6396_s1 + $0x910] ss:$48 sps:$4 sm:$0xff]  }
  0xa7   :  { %2717 = vmatpush1.bf16.msra.mxu0 %v4400_v51  ;;  %2823 = vmatpush1.bf16.msra.mxu1 %v4403_v52  ;;  %v4493_v51 = vld [vmem:[%s6396_s1 + $0x918] ss:$48 sps:$4 sm:$0xff]   ;;  %v4498_v52 = vld [vmem:[%s6396_s1 + $0x974] ss:$48 sps:$4 sm:$0xff]  }
  0xa8   :  { %2718 = vmatprep.subr.bf16.mxu0 %v4408_v53  ;;  %2824 = vmatprep.subr.bf16.mxu1 %v4411_v54  ;;  %v4501_v53 = vld [vmem:[%s6396_s1 + $0x97c] ss:$48 sps:$4 sm:$0xff]   ;;  %v4496_v54 = vld [vmem:[%s6396_s1 + $0x970] ss:$48 sps:$4 sm:$0xff]  }
  0xab   :  { %2719 = vmatpush1.bf16.msra.mxu0 %v4406_v55  ;;  %2825 = vmatpush1.bf16.msra.mxu1 %v4409_v56  ;;  %v4499_v55 = vld [vmem:[%s6396_s1 + $0x978] ss:$48 sps:$4 sm:$0xff]   ;;  %v4504_v56 = vld [vmem:[%s6396_s1 + $0x9d4] ss:$48 sps:$4 sm:$0xff]  }
  0xac   :  { %2720 = vmatprep.subr.bf16.mxu0 %v4414_v57  ;;  %2826 = vmatprep.subr.bf16.mxu1 %v4417_v58  ;;  %v4507_v57 = vld [vmem:[%s6396_s1 + $0x9dc] ss:$48 sps:$4 sm:$0xff]   ;;  %v4502_v58 = vld [vmem:[%s6396_s1 + $0x9d0] ss:$48 sps:$4 sm:$0xff]  }
  0xaf   :  { %2721 = vmatpush1.bf16.msra.mxu0 %v4412_v59  ;;  %2827 = vmatpush1.bf16.msra.mxu1 %v4415_v60  ;;  %v4505_v59 = vld [vmem:[%s6396_s1 + $0x9d8] ss:$48 sps:$4 sm:$0xff]   ;;  %v4510_v60 = vld [vmem:[%s6396_s1 + $0xa34] ss:$48 sps:$4 sm:$0xff]  }
  0xb0   :  { %2722 = vmatprep.subr.bf16.mxu0 %v4420_v61  ;;  %2828 = vmatprep.subr.bf16.mxu1 %v4423_v62  ;;  %v4513_v61 = vld [vmem:[%s6396_s1 + $0xa3c] ss:$48 sps:$4 sm:$0xff]   ;;  %v4508_v62 = vld [vmem:[%s6396_s1 + $0xa30] ss:$48 sps:$4 sm:$0xff]  }
  0xb3   :  { %2723 = vmatpush1.bf16.msra.mxu0 %v4418_v63  ;;  %2829 = vmatpush1.bf16.msra.mxu1 %v4421_v0  ;;  %v4511_v63 = vld [vmem:[%s6396_s1 + $0xa38] ss:$48 sps:$4 sm:$0xff]   ;;  %v4516_v0 = vld [vmem:[%s6396_s1 + $0xa94] ss:$48 sps:$4 sm:$0xff]  }
  0xb4   :  { %2724 = vmatprep.subr.bf16.mxu0 %v4426_v1  ;;  %2830 = vmatprep.subr.bf16.mxu1 %v4429_v2  ;;  %v4519_v1 = vld [vmem:[%s6396_s1 + $0xa9c] ss:$48 sps:$4 sm:$0xff]   ;;  %v4514_v2 = vld [vmem:[%s6396_s1 + $0xa90] ss:$48 sps:$4 sm:$0xff]  }
  0xb7   :  { %2725 = vmatpush1.bf16.msra.mxu0 %v4424_v3  ;;  %2831 = vmatpush1.bf16.msra.mxu1 %v4427_v4  ;;  %v4517_v3 = vld [vmem:[%s6396_s1 + $0xa98] ss:$48 sps:$4 sm:$0xff]   ;;  %v4522_v4 = vld [vmem:[%s6396_s1 + $0xaf4] ss:$48 sps:$4 sm:$0xff]  }
  0xb8   :  { %2726 = vmatprep.subr.bf16.mxu0 %v4432_v6  ;;  %2832 = vmatprep.subr.bf16.mxu1 %v4435_v7  ;;  %v4525_v6 = vld [vmem:[%s6396_s1 + $0xafc] ss:$48 sps:$4 sm:$0xff]   ;;  %v4520_v7 = vld [vmem:[%s6396_s1 + $0xaf0] ss:$48 sps:$4 sm:$0xff]  }
  0xbb   :  { %2727 = vmatpush1.bf16.msra.mxu0 %v4430_v8  ;;  %2833 = vmatpush1.bf16.msra.mxu1 %v4433_v10  ;;  %v4523_v8 = vld [vmem:[%s6396_s1 + $0xaf8] ss:$48 sps:$4 sm:$0xff]   ;;  %v4528_v10 = vld [vmem:[%s6396_s1 + $0xb54] ss:$48 sps:$4 sm:$0xff]  }
  0xbc   :  { %2728 = vmatprep.subr.bf16.mxu0 %v4438_v11  ;;  %2834 = vmatprep.subr.bf16.mxu1 %v4441_v12  ;;  %v4531_v11 = vld [vmem:[%s6396_s1 + $0xb5c] ss:$48 sps:$4 sm:$0xff]   ;;  %v4526_v12 = vld [vmem:[%s6396_s1 + $0xb50] ss:$48 sps:$4 sm:$0xff]  }
  0xbf   :  { %2729 = vmatpush1.bf16.msra.mxu0 %v4436_v13  ;;  %2835 = vmatpush1.bf16.msra.mxu1 %v4439_v15  ;;  %v4529_v13 = vld [vmem:[%s6396_s1 + $0xb58] ss:$48 sps:$4 sm:$0xff]   ;;  %v4534_v15 = vld [vmem:[%s6396_s1 + $0xbb4] ss:$48 sps:$4 sm:$0xff]  }
  0xc0   :  { %2751 = vmatprep.subr.bf16.mxu0 %v4444_v16  ;;  %2857 = vmatprep.subr.bf16.mxu1 %v4447_v17  ;;  %v4537_v16 = vld [vmem:[%s6396_s1 + $0xbbc] ss:$48 sps:$4 sm:$0xff]   ;;  %v4532_v17 = vld [vmem:[%s6396_s1 + $0xbb0] ss:$48 sps:$4 sm:$0xff]  }
  0xc2   :  { %2731 = vmatmul.mubr.bf16.vlgmr.msra.gmra.mrb[8].mxu0 %v4972_v5  ;;  %2837 = vmatmul.mubr.bf16.vlgmr.msra.gmra.mrb[8].mxu1 %v4972_v5  ;;  %v4459_v5 = vld [vmem:[%s6396_s1 + $0x6dc] ss:$48 sps:$4 sm:$0xff]  }
  0xc3   :  { %2752 = vmatpush1.bf16.msra.mxu0 %v4442_v18  ;;  %2858 = vmatpush1.bf16.msra.mxu1 %v4445_v20  ;;  %v4535_v18 = vld [vmem:[%s6396_s1 + $0xbb8] ss:$48 sps:$4 sm:$0xff]   ;;  %v4540_v20 = vld [vmem:[%s6396_s1 + $0x24] ss:$48 sps:$4 sm:$0xff]  }
  0xc4   :  { %2753 = vmatprep.subr.bf16.mxu0 %v4450_v21  ;;  %2859 = vmatprep.subr.bf16.mxu1 %v4453_v22  ;;  %v4543_v21 = vld [vmem:[%s6396_s1 + $0x2c] ss:$48 sps:$4 sm:$0xff]   ;;  %v4538_v22 = vld [vmem:[%s6396_s1 + $0x20] ss:$48 sps:$4 sm:$0xff]  }
  0xc5   :  { %2740 = vmatprep.mubr.bf16.mxu0 %v5036_v25  ;;  %2846 = vmatprep.mubr.bf16.mxu1 %v5036_v25  ;;  %v4465_v25 = vld [vmem:[%s6396_s1 + $0x73c] ss:$48 sps:$4 sm:$0xff]  }
  0xc7   :  { %2754 = vmatpush1.bf16.msra.mxu0 %v4448_v23  ;;  %2860 = vmatpush1.bf16.msra.mxu1 %v4451_v24  ;;  %v4541_v23 = vld [vmem:[%s6396_s1 + $0x28] ss:$48 sps:$4 sm:$0xff]   ;;  %v4546_v24 = vld [vmem:[%s6396_s1 + $0x84] ss:$48 sps:$4 sm:$0xff]  }
  0xc8   :  { %2755 = vmatprep.subr.bf16.mxu0 %v4456_v26  ;;  %2861 = vmatprep.subr.bf16.mxu1 %v4459_v5  ;;  %v4549_v26 = vld [vmem:[%s6396_s1 + $0x8c] ss:$48 sps:$4 sm:$0xff]   ;;  %v4544_v5 = vld [vmem:[%s6396_s1 + $0x80] ss:$48 sps:$4 sm:$0xff]  }
  0xca   :  { %2741 = vmatmul.mubr.bf16.gmra.mrb[12].mxu0 %v5044_v27  ;;  %2847 = vmatmul.mubr.bf16.gmra.mrb[12].mxu1 %v5044_v27  ;;  %v4466_v27 = vld [vmem:[%s6396_s1 + $0x790] ss:$48 sps:$4 sm:$0xff]  }
  0xcb   :  { %2756 = vmatpush1.bf16.msra.mxu0 %v4454_v28  ;;  %2862 = vmatpush1.bf16.msra.mxu1 %v4457_v29  ;;  %v4547_v28 = vld [vmem:[%s6396_s1 + $0x88] ss:$48 sps:$4 sm:$0xff]   ;;  %v4552_v29 = vld [vmem:[%s6396_s1 + $0xe4] ss:$48 sps:$4 sm:$0xff]  }
  0xcc   :  { %2757 = vmatprep.subr.bf16.mxu0 %v4462_v30  ;;  %2863 = vmatprep.subr.bf16.mxu1 %v4465_v25  ;;  %v4550_v30 = vld [vmem:[%s6396_s1 + $0xe0] ss:$48 sps:$4 sm:$0xff]   ;;  %v4553_v25 = vld [vmem:[%s6396_s1 + $0xe8] ss:$48 sps:$4 sm:$0xff]  }
  0xcd   :  { %2783 = vmatprep.mubr.bf16.mxu0 %v5068_v33  ;;  %2889 = vmatprep.mubr.bf16.mxu1 %v5068_v33  ;;  %v4477_v33 = vld [vmem:[%s6396_s1 + $0x7fc] ss:$48 sps:$4 sm:$0xff]  }
  0xcf   :  { %2758 = vmatpush1.bf16.msra.mxu0 %v4460_v31  ;;  %2864 = vmatpush1.bf16.msra.mxu1 %v4463_v32  ;;  %v4558_v31 = vld [vmem:[%s6396_s1 + $0x144] ss:$48 sps:$4 sm:$0xff]   ;;  %v4556_v32 = vld [vmem:[%s6396_s1 + $0x140] ss:$48 sps:$4 sm:$0xff]  }
  0xd0   :  { %2759 = vmatprep.subr.bf16.mxu0 %v4468_v47  ;;  %2865 = vmatprep.subr.bf16.mxu1 %v4471_v34  ;;  %v4559_v47 = vld [vmem:[%s6396_s1 + $0x148] ss:$48 sps:$4 sm:$0xff]   ;;  %v4564_v34 = vld [vmem:[%s6396_s1 + $0x1a4] ss:$48 sps:$4 sm:$0xff]  }
  0xd3   :  { %2760 = vmatpush1.bf16.msra.mxu0 %v4466_v27  ;;  %2866 = vmatpush1.bf16.msra.mxu1 %v4469_v35  ;;  %v4730_v27 = vld [vmem:[%s6397_s0 + $0x4] ss:$16 sps:$4 sm:$0xff]   ;;  %v4562_v35 = vld [vmem:[%s6396_s1 + $0x1a0] ss:$48 sps:$4 sm:$0xff]  }
  0xd4   :  { %2761 = vmatprep.subr.bf16.mxu0 %v4474_v36  ;;  %2867 = vmatprep.subr.bf16.mxu1 %v4477_v33  ;;  %v4565_v36 = vld [vmem:[%s6396_s1 + $0x1a8] ss:$48 sps:$4 sm:$0xff]   ;;  %v4570_v33 = vld [vmem:[%s6396_s1 + $0x204] ss:$48 sps:$4 sm:$0xff]  }
  0xd7   :  { %2762 = vmatpush1.bf16.msra.mxu0 %v4472_v37  ;;  %2868 = vmatpush1.bf16.msra.mxu1 %v4475_v38  ;;  %v4573_v37 = vld [vmem:[%s6396_s1 + $0x20c] ss:$48 sps:$4 sm:$0xff]   ;;  %v4568_v38 = vld [vmem:[%s6396_s1 + $0x200] ss:$48 sps:$4 sm:$0xff]  }
  0xd8   :  { %2763 = vmatprep.subr.bf16.mxu0 %v4480_v39  ;;  %2869 = vmatprep.subr.bf16.mxu1 %v4483_v40  ;;  %v4571_v39 = vld [vmem:[%s6396_s1 + $0x208] ss:$48 sps:$4 sm:$0xff]   ;;  %v4576_v40 = vld [vmem:[%s6396_s1 + $0x264] ss:$48 sps:$4 sm:$0xff]  }
  0xdb   :  { %2764 = vmatpush1.bf16.msra.mxu0 %v4478_v41  ;;  %2870 = vmatpush1.bf16.msra.mxu1 %v4481_v42  ;;  %v4579_v41 = vld [vmem:[%s6396_s1 + $0x26c] ss:$48 sps:$4 sm:$0xff]   ;;  %v4574_v42 = vld [vmem:[%s6396_s1 + $0x260] ss:$48 sps:$4 sm:$0xff]  }
  0xdc   :  { %2765 = vmatprep.subr.bf16.mxu0 %v4486_v43  ;;  %2871 = vmatprep.subr.bf16.mxu1 %v4489_v44  ;;  %v4577_v43 = vld [vmem:[%s6396_s1 + $0x268] ss:$48 sps:$4 sm:$0xff]   ;;  %v4582_v44 = vld [vmem:[%s6396_s1 + $0x2c4] ss:$48 sps:$4 sm:$0xff]  }
  0xdf   :  { %2766 = vmatpush1.bf16.msra.mxu0 %v4484_v45  ;;  %2872 = vmatpush1.bf16.msra.mxu1 %v4487_v46  ;;  %v4585_v45 = vld [vmem:[%s6396_s1 + $0x2cc] ss:$48 sps:$4 sm:$0xff]   ;;  %v4580_v46 = vld [vmem:[%s6396_s1 + $0x2c0] ss:$48 sps:$4 sm:$0xff]  }
  0xe0   :  { %2767 = vmatprep.subr.bf16.mxu0 %v4492_v48  ;;  %2873 = vmatprep.subr.bf16.mxu1 %v4495_v49  ;;  %v4583_v48 = vld [vmem:[%s6396_s1 + $0x2c8] ss:$48 sps:$4 sm:$0xff]   ;;  %v4588_v49 = vld [vmem:[%s6396_s1 + $0x324] ss:$48 sps:$4 sm:$0xff]  }
  0xe3   :  { %2768 = vmatpush1.bf16.msra.mxu0 %v4490_v50  ;;  %2874 = vmatpush1.bf16.msra.mxu1 %v4493_v51  ;;  %v4591_v50 = vld [vmem:[%s6396_s1 + $0x32c] ss:$48 sps:$4 sm:$0xff]   ;;  %v4586_v51 = vld [vmem:[%s6396_s1 + $0x320] ss:$48 sps:$4 sm:$0xff]  }
  0xe4   :  { %2769 = vmatprep.subr.bf16.mxu0 %v4498_v52  ;;  %2875 = vmatprep.subr.bf16.mxu1 %v4501_v53  ;;  %v4589_v52 = vld [vmem:[%s6396_s1 + $0x328] ss:$48 sps:$4 sm:$0xff]   ;;  %v4594_v53 = vld [vmem:[%s6396_s1 + $0x384] ss:$48 sps:$4 sm:$0xff]  }
  0xe7   :  { %2770 = vmatpush1.bf16.msra.mxu0 %v4496_v54  ;;  %2876 = vmatpush1.bf16.msra.mxu1 %v4499_v55  ;;  %v4597_v54 = vld [vmem:[%s6396_s1 + $0x38c] ss:$48 sps:$4 sm:$0xff]   ;;  %v4592_v55 = vld [vmem:[%s6396_s1 + $0x380] ss:$48 sps:$4 sm:$0xff]  }
  0xe8   :  { %2771 = vmatprep.subr.bf16.mxu0 %v4504_v56  ;;  %2877 = vmatprep.subr.bf16.mxu1 %v4507_v57  ;;  %v4595_v56 = vld [vmem:[%s6396_s1 + $0x388] ss:$48 sps:$4 sm:$0xff]   ;;  %v4600_v57 = vld [vmem:[%s6396_s1 + $0x3e4] ss:$48 sps:$4 sm:$0xff]  }
  0xeb   :  { %2772 = vmatpush1.bf16.msra.mxu0 %v4502_v58  ;;  %2878 = vmatpush1.bf16.msra.mxu1 %v4505_v59  ;;  %v4603_v58 = vld [vmem:[%s6396_s1 + $0x3ec] ss:$48 sps:$4 sm:$0xff]   ;;  %v4598_v59 = vld [vmem:[%s6396_s1 + $0x3e0] ss:$48 sps:$4 sm:$0xff]  }
  0xec   :  { %2773 = vmatprep.subr.bf16.mxu0 %v4510_v60  ;;  %2879 = vmatprep.subr.bf16.mxu1 %v4513_v61  ;;  %v4601_v60 = vld [vmem:[%s6396_s1 + $0x3e8] ss:$48 sps:$4 sm:$0xff]   ;;  %v4606_v61 = vld [vmem:[%s6396_s1 + $0x444] ss:$48 sps:$4 sm:$0xff]  }
  0xef   :  { %2774 = vmatpush1.bf16.msra.mxu0 %v4508_v62  ;;  %2880 = vmatpush1.bf16.msra.mxu1 %v4511_v63  ;;  %v4609_v62 = vld [vmem:[%s6396_s1 + $0x44c] ss:$48 sps:$4 sm:$0xff]   ;;  %v4604_v63 = vld [vmem:[%s6396_s1 + $0x440] ss:$48 sps:$4 sm:$0xff]  }
  0xf0   :  { %2775 = vmatprep.subr.bf16.mxu0 %v4516_v0  ;;  %2881 = vmatprep.subr.bf16.mxu1 %v4519_v1  ;;  %v4607_v0 = vld [vmem:[%s6396_s1 + $0x448] ss:$48 sps:$4 sm:$0xff]   ;;  %v4612_v1 = vld [vmem:[%s6396_s1 + $0x4a4] ss:$48 sps:$4 sm:$0xff]  }
  0xf3   :  { %2776 = vmatpush1.bf16.msra.mxu0 %v4514_v2  ;;  %2882 = vmatpush1.bf16.msra.mxu1 %v4517_v3  ;;  %v4615_v2 = vld [vmem:[%s6396_s1 + $0x4ac] ss:$48 sps:$4 sm:$0xff]   ;;  %v4610_v3 = vld [vmem:[%s6396_s1 + $0x4a0] ss:$48 sps:$4 sm:$0xff]  }
  0xf4   :  { %2777 = vmatprep.subr.bf16.mxu0 %v4522_v4  ;;  %2883 = vmatprep.subr.bf16.mxu1 %v4525_v6  ;;  %v4613_v4 = vld [vmem:[%s6396_s1 + $0x4a8] ss:$48 sps:$4 sm:$0xff]   ;;  %v4618_v6 = vld [vmem:[%s6396_s1 + $0x504] ss:$48 sps:$4 sm:$0xff]  }
  0xf7   :  { %2778 = vmatpush1.bf16.msra.mxu0 %v4520_v7  ;;  %2884 = vmatpush1.bf16.msra.mxu1 %v4523_v8  ;;  %v4621_v7 = vld [vmem:[%s6396_s1 + $0x50c] ss:$48 sps:$4 sm:$0xff]   ;;  %v4616_v8 = vld [vmem:[%s6396_s1 + $0x500] ss:$48 sps:$4 sm:$0xff]  }
  0xf8   :  { %2779 = vmatprep.subr.bf16.mxu0 %v4528_v10  ;;  %2885 = vmatprep.subr.bf16.mxu1 %v4531_v11  ;;  %v4619_v10 = vld [vmem:[%s6396_s1 + $0x508] ss:$48 sps:$4 sm:$0xff]   ;;  %v4624_v11 = vld [vmem:[%s6396_s1 + $0x564] ss:$48 sps:$4 sm:$0xff]  }
  0xfb   :  { %2780 = vmatpush1.bf16.msra.mxu0 %v4526_v12  ;;  %2886 = vmatpush1.bf16.msra.mxu1 %v4529_v13  ;;  %v4627_v12 = vld [vmem:[%s6396_s1 + $0x56c] ss:$48 sps:$4 sm:$0xff]   ;;  %v4622_v13 = vld [vmem:[%s6396_s1 + $0x560] ss:$48 sps:$4 sm:$0xff]  }
  0xfc   :  { %2781 = vmatprep.subr.bf16.mxu0 %v4534_v15  ;;  %2887 = vmatprep.subr.bf16.mxu1 %v4537_v16  ;;  %v4625_v15 = vld [vmem:[%s6396_s1 + $0x568] ss:$48 sps:$4 sm:$0xff]   ;;  %v4630_v16 = vld [vmem:[%s6396_s1 + $0x5c4] ss:$48 sps:$4 sm:$0xff]  }
  0xff   :  { %2782 = vmatpush1.bf16.msra.mxu0 %v4532_v17  ;;  %2888 = vmatpush1.bf16.msra.mxu1 %v4535_v18  ;;  %v4633_v17 = vld [vmem:[%s6396_s1 + $0x5cc] ss:$48 sps:$4 sm:$0xff]   ;;  %v4628_v18 = vld [vmem:[%s6396_s1 + $0x5c0] ss:$48 sps:$4 sm:$0xff]  }
 0x100   :  { %2910 = vmatprep.subr.bf16.mxu0 %v4540_v20  ;;  %3016 = vmatprep.subr.bf16.mxu1 %v4543_v21  ;;  %v4631_v20 = vld [vmem:[%s6396_s1 + $0x5c8] ss:$48 sps:$4 sm:$0xff]   ;;  %v4636_v21 = vld [vmem:[%s6396_s1 + $0x624] ss:$48 sps:$4 sm:$0xff]  }
 0x102   :  { %2784 = vmatmul.mubr.bf16.vlgmr.msra.gmra.mrb[8].mxu0 %v5186_v9  ;;  %2890 = vmatmul.mubr.bf16.vlgmr.msra.gmra.mrb[8].mxu1 %v5186_v9  ;;  %v4555_v9 = vld [vmem:[%s6396_s1 + $0xec] ss:$48 sps:$4 sm:$0xff]  }
 0x103   :  { %2911 = vmatpush1.bf16.msra.mxu0 %v4538_v22  ;;  %3017 = vmatpush1.bf16.msra.mxu1 %v4541_v23  ;;  %v4639_v22 = vld [vmem:[%s6396_s1 + $0x62c] ss:$48 sps:$4 sm:$0xff]   ;;  %v4634_v23 = vld [vmem:[%s6396_s1 + $0x620] ss:$48 sps:$4 sm:$0xff]  }
 0x104   :  { %2912 = vmatprep.subr.bf16.mxu0 %v4546_v24  ;;  %3018 = vmatprep.subr.bf16.mxu1 %v4549_v26  ;;  %v4637_v24 = vld [vmem:[%s6396_s1 + $0x628] ss:$48 sps:$4 sm:$0xff]   ;;  %v4642_v26 = vld [vmem:[%s6396_s1 + $0x684] ss:$48 sps:$4 sm:$0xff]  }
 0x105   :  { %2793 = vmatprep.mubr.bf16.mxu0 %v5203_v14  ;;  %2899 = vmatprep.mubr.bf16.mxu1 %v5203_v14  ;;  %v4561_v14 = vld [vmem:[%s6396_s1 + $0x14c] ss:$48 sps:$4 sm:$0xff]  }
 0x107   :  { %2913 = vmatpush1.bf16.msra.mxu0 %v4544_v5  ;;  %3019 = vmatpush1.bf16.msra.mxu1 %v4547_v28  ;;  %v4645_v5 = vld [vmem:[%s6396_s1 + $0x68c] ss:$48 sps:$4 sm:$0xff]   ;;  %v4731_v28 = vld [vmem:[%s6397_s0] ss:$16 sps:$4 sm:$0xff]  }
 0x108   :  { %2914 = vmatprep.subr.bf16.mxu0 %v4552_v29  ;;  %3020 = vmatprep.subr.bf16.mxu1 %v4555_v9  ;;  %v418_v29 = vlaneseq  ;;  %v4640_v9 = vld [vmem:[%s6396_s1 + $0x680] ss:$48 sps:$4 sm:$0xff]  }
 0x10a   :  { %2794 = vmatmul.mubr.bf16.gmra.mrb[12].mxu0 %v5224_v19  ;;  %2900 = vmatmul.mubr.bf16.gmra.mrb[12].mxu1 %v5224_v19  ;;  %v4567_v19 = vld [vmem:[%s6396_s1 + $0x1ac] ss:$48 sps:$4 sm:$0xff]  }
 0x10b   :  { %2915 = vmatpush1.bf16.msra.mxu0 %v4550_v30  ;;  %3021 = vmatpush1.bf16.msra.mxu1 %v4553_v25  ;;  %v4643_v30 = vld [vmem:[%s6396_s1 + $0x688] ss:$48 sps:$4 sm:$0xff]   ;;  %v4648_v25 = vld [vmem:[%s6396_s1 + $0x6e4] ss:$48 sps:$4 sm:$0xff]  }
 0x10c   :  { %2916 = vmatprep.subr.bf16.mxu0 %v4558_v31  ;;  %3022 = vmatprep.subr.bf16.mxu1 %v4561_v14  ;;  %v4651_v31 = vld [vmem:[%s6396_s1 + $0x6ec] ss:$48 sps:$4 sm:$0xff]   ;;  %v4732_v14 = vld [vmem:[%s6397_s0 + $0x24] ss:$16 sps:$4 sm:$0xff]  }
 0x10d   :  { %2942 = vmatprep.mubr.bf16.mxu0 %v4730_v27  ;;  %3048 = vmatprep.mubr.bf16.mxu1 %v4730_v27  ;;  %v4657_v27 = vld [vmem:[%s6396_s1 + $0x74c] ss:$48 sps:$4 sm:$0xff]  }
 0x10f   :  { %2917 = vmatpush1.bf16.msra.mxu0 %v4556_v32  ;;  %3023 = vmatpush1.bf16.msra.mxu1 %v4559_v47  ;;  %v419_v32 = vshrl.u32 %v418_v29, 7  ;;  %v4646_v47 = vld [vmem:[%s6396_s1 + $0x6e0] ss:$48 sps:$4 sm:$0xff]  }
 0x110   :  { %2918 = vmatprep.subr.bf16.mxu0 %v4564_v34  ;;  %3024 = vmatprep.subr.bf16.mxu1 %v4567_v19  ;;  %v4649_v34 = vld [vmem:[%s6396_s1 + $0x6e8] ss:$48 sps:$4 sm:$0xff]   ;;  %v4654_v19 = vld [vmem:[%s6396_s1 + $0x744] ss:$48 sps:$4 sm:$0xff]  }
 0x113   :  { %2919 = vmatpush1.bf16.msra.mxu0 %v4562_v35  ;;  %3025 = vmatpush1.bf16.msra.mxu1 %v4565_v36  ;;  %v4652_v35 = vld [vmem:[%s6396_s1 + $0x740] ss:$48 sps:$4 sm:$0xff]   ;;  %v5844_v36 = vsub.s32 0, %v419_v32 }
 0x114   :  { %2920 = vmatprep.subr.bf16.mxu0 %v4570_v33  ;;  %3026 = vmatprep.subr.bf16.mxu1 %v4573_v37  ;;  %v5846_v33 = vsub.s32 4, %v419_v32  ;;  %v4733_v37 = vld [vmem:[%s6397_s0 + $0x20] ss:$16 sps:$4 sm:$0xff]  }
 0x117   :  { %2921 = vmatpush1.bf16.msra.mxu0 %v4568_v38  ;;  %3027 = vmatpush1.bf16.msra.mxu1 %v4571_v39  ;;  %v4655_v38 = vld [vmem:[%s6396_s1 + $0x748] ss:$48 sps:$4 sm:$0xff]   ;;  %v406_v39 = vld [vmem:[%s6398_s2] sm:$0x77] }
 0x118   :  { %2922 = vmatprep.subr.bf16.mxu0 %v4576_v40  ;;  %3028 = vmatprep.subr.bf16.mxu1 %v4579_v41  ;;  %v407_v40 = vld [vmem:[%s6398_s2 + $0x8] sm:$0x77]  ;;  %v4660_v41 = vld [vmem:[%s6396_s1 + $0x7a4] ss:$48 sps:$4 sm:$0xff]  }
 0x11b   :  { %2923 = vmatpush1.bf16.msra.mxu0 %v4574_v42  ;;  %3029 = vmatpush1.bf16.msra.mxu1 %v4577_v43  ;;  %v4663_v42 = vld [vmem:[%s6396_s1 + $0x7ac] ss:$48 sps:$4 sm:$0xff]   ;;  %v5866_v43 = vsub.s32 1, %v419_v32 }
 0x11c   :  { %2924 = vmatprep.subr.bf16.mxu0 %v4582_v44  ;;  %3030 = vmatprep.subr.bf16.mxu1 %v4585_v45  ;;  %v5868_v44 = vsub.s32 2, %v419_v32  ;;  %v5870_v45 = vsub.s32 5, %v419_v32 }
 0x11f   :  { %2925 = vmatpush1.bf16.msra.mxu0 %v4580_v46  ;;  %3031 = vmatpush1.bf16.msra.mxu1 %v4583_v48  ;;  %v4734_v46 = vld [vmem:[%s6397_s0 + $0xc] ss:$16 sps:$4 sm:$0xff]   ;;  %v421_v48 = vrot.slane %v406_v39, %v5844_v36 }
 0x120   :  { %2926 = vmatprep.subr.bf16.mxu0 %v4588_v49  ;;  %3032 = vmatprep.subr.bf16.mxu1 %v4591_v50  ;;  %v429_v49 = vrot.slane %v407_v40, %v5844_v36  ;;  %v5877_v50 = vsub.s32 6, %v419_v32 }
 0x123   :  { %2927 = vmatpush1.bf16.msra.mxu0 %v4586_v51  ;;  %3033 = vmatpush1.bf16.msra.mxu1 %v4589_v52  ;;  %v4658_v51 = vld [vmem:[%s6396_s1 + $0x7a0] ss:$48 sps:$4 sm:$0xff]   ;;  %v4661_v52 = vld [vmem:[%s6396_s1 + $0x7a8] ss:$48 sps:$4 sm:$0xff]  }
 0x124   :  { %2928 = vmatprep.subr.bf16.mxu0 %v4594_v53  ;;  %3034 = vmatprep.subr.bf16.mxu1 %v4597_v54  ;;  %v425_v53 = vrot.slane %v406_v39, %v5846_v33  ;;  %v433_v54 = vrot.slane %v407_v40, %v5846_v33 }
 0x127   :  { %2929 = vmatpush1.bf16.msra.mxu0 %v4592_v55  ;;  %3035 = vmatpush1.bf16.msra.mxu1 %v4595_v56  ;;  %v3125_v55 = vrot.slane %v406_v39, %v5866_v43  ;;  %v3133_v56 = vrot.slane %v407_v40, %v5866_v43 }
 0x128   :  { %2930 = vmatprep.subr.bf16.mxu0 %v4600_v57  ;;  %3036 = vmatprep.subr.bf16.mxu1 %v4603_v58  ;;  %v4666_v57 = vld [vmem:[%s6396_s1 + $0x804] ss:$48 sps:$4 sm:$0xff]   ;;  %v4669_v58 = vld [vmem:[%s6396_s1 + $0x80c] ss:$48 sps:$4 sm:$0xff]  }
 0x12b   :  { %2931 = vmatpush1.bf16.msra.mxu0 %v4598_v59  ;;  %3037 = vmatpush1.bf16.msra.mxu1 %v4601_v60  ;;  %v3281_v59 = vrot.slane %v406_v39, %v5868_v44  ;;  %v3129_v60 = vrot.slane %v406_v39, %v5870_v45 }
 0x12c   :  { %2932 = vmatprep.subr.bf16.mxu0 %v4606_v61  ;;  %3038 = vmatprep.subr.bf16.mxu1 %v4609_v62  ;;  %v3137_v61 = vrot.slane %v407_v40, %v5870_v45  ;;  %v5899_v62 = vrot.slane %v421_v48, %v5844_v36 }
 0x12f   :  { %2933 = vmatpush1.bf16.msra.mxu0 %v4604_v63  ;;  %3039 = vmatpush1.bf16.msra.mxu1 %v4607_v0  ;;  %v5902_v63 = vrot.slane %v429_v49, %v5844_v36  ;;  %v3289_v0 = vrot.slane %v407_v40, %v5868_v44 }
 0x130   :  { %2934 = vmatprep.subr.bf16.mxu0 %v4612_v1  ;;  %3040 = vmatprep.subr.bf16.mxu1 %v4615_v2  ;;  %v3285_v1 = vrot.slane %v406_v39, %v5877_v50  ;;  %v5907_v2 = vrot.slane %v425_v53, %v5844_v36 }
 0x133   :  { %2935 = vmatpush1.bf16.msra.mxu0 %v4610_v3  ;;  %3041 = vmatpush1.bf16.msra.mxu1 %v4613_v4  ;;  %v5910_v3 = vrot.slane %v433_v54, %v5844_v36  ;;  %v3293_v4 = vrot.slane %v407_v40, %v5877_v50 }
 0x134   :  { %2936 = vmatprep.subr.bf16.mxu0 %v4618_v6  ;;  %3042 = vmatprep.subr.bf16.mxu1 %v4621_v7  ;;  %v4664_v6 = vld [vmem:[%s6396_s1 + $0x800] ss:$48 sps:$4 sm:$0xff]   ;;  %v4667_v7 = vld [vmem:[%s6396_s1 + $0x808] ss:$48 sps:$4 sm:$0xff]  }
 0x135   :  { %v5951_v29 = vrot.slane %v3293_v4, %v5868_v44 }
 0x137   :  { %2937 = vmatpush1.bf16.msra.mxu0 %v4616_v8  ;;  %3043 = vmatpush1.bf16.msra.mxu1 %v4619_v10  ;;  %v5920_v8 = vrot.slane %v3125_v55, %v5866_v43  ;;  %v5923_v10 = vrot.slane %v3133_v56, %v5866_v43  ;;  %v4676_v55 = vld [vmem:[%s6396_s1 + $0x8c0] ss:$48 sps:$4 sm:$0xff]  }
 0x138   :  { %2938 = vmatprep.subr.bf16.mxu0 %v4624_v11  ;;  %3044 = vmatprep.subr.bf16.mxu1 %v4627_v12  ;;  %v4672_v11 = vld [vmem:[%s6396_s1 + $0x864] ss:$48 sps:$4 sm:$0xff]  }
 0x13b   :  { %2939 = vmatpush1.bf16.msra.mxu0 %v4622_v13  ;;  %3045 = vmatpush1.bf16.msra.mxu1 %v4625_v15  ;;  %v5929_v13 = vrot.slane %v3281_v59, %v5868_v44 }
 0x13c   :  { %2940 = vmatprep.subr.bf16.mxu0 %v4630_v16  ;;  %3046 = vmatprep.subr.bf16.mxu1 %v4633_v17  ;;  %v5932_v16 = vrot.slane %v3129_v60, %v5866_v43  ;;  %v5935_v17 = vrot.slane %v3137_v61, %v5866_v43 }
 0x13f   :  { %2941 = vmatpush1.bf16.msra.mxu0 %v4628_v18  ;;  %3047 = vmatpush1.bf16.msra.mxu1 %v4631_v20  ;;  %v4675_v18 = vld [vmem:[%s6396_s1 + $0x86c] ss:$48 sps:$4 sm:$0xff]  }
 0x140   :  { %2963 = vmatprep.subr.bf16.mxu0 %v4636_v21  ;;  %3069 = vmatprep.subr.bf16.mxu1 %v4639_v22  ;;  %v5943_v22 = vrot.slane %v3289_v0, %v5868_v44 }
 0x142   :  { %2943 = vmatmul.mubr.bf16.vlgmr.msra.gmra.mrb[16].mxu0 %v4731_v28  ;;  %3049 = vmatmul.mubr.bf16.vlgmr.msra.gmra.mrb[16].mxu1 %v4731_v28 }
 0x143   :  { %2964 = vmatpush1.bf16.msra.mxu0 %v4634_v23  ;;  %3070 = vmatpush1.bf16.msra.mxu1 %v4637_v24  ;;  %v5946_v24 = vrot.slane %v3285_v1, %v5868_v44 }
 0x144   :  { %2965 = vmatprep.subr.bf16.mxu0 %v4642_v26  ;;  %3071 = vmatprep.subr.bf16.mxu1 %v4645_v5 }
 0x145   :  { %2952 = vmatprep.mubr.bf16.mxu0 %v4732_v14  ;;  %3058 = vmatprep.mubr.bf16.mxu1 %v4732_v14 }
 0x147   :  { %2966 = vmatpush1.bf16.msra.mxu0 %v4640_v9  ;;  %3072 = vmatpush1.bf16.msra.mxu1 %v4643_v30 }
 0x148   :  { %2967 = vmatprep.subr.bf16.mxu0 %v4648_v25  ;;  %3073 = vmatprep.subr.bf16.mxu1 %v4651_v31  ;;  %v4670_v25 = vld [vmem:[%s6396_s1 + $0x860] ss:$48 sps:$4 sm:$0xff]  }
 0x14a   :  { %2953 = vmatmul.mubr.bf16.gmra.mrb[20].mxu0 %v4733_v37  ;;  %3059 = vmatmul.mubr.bf16.gmra.mrb[20].mxu1 %v4733_v37 }
 0x14b   :  { %2968 = vmatpush1.bf16.msra.mxu0 %v4646_v47  ;;  %3074 = vmatpush1.bf16.msra.mxu1 %v4649_v34 }
 0x14c   :  { %2969 = vmatprep.subr.bf16.mxu0 %v4654_v19  ;;  %3075 = vmatprep.subr.bf16.mxu1 %v4657_v27  ;;  %v4673_v27 = vld [vmem:[%s6396_s1 + $0x868] ss:$48 sps:$4 sm:$0xff]  }
 0x14d   :  { %2995 = vmatprep.mubr.bf16.mxu0 %v4734_v46  ;;  %3101 = vmatprep.mubr.bf16.mxu1 %v4734_v46 }
 0x14f   :  { %2970 = vmatpush1.bf16.msra.mxu0 %v4652_v35  ;;  %3076 = vmatpush1.bf16.msra.mxu1 %v4655_v38  ;;  %v4678_v35 = vld [vmem:[%s6396_s1 + $0x8c4] ss:$48 sps:$4 sm:$0xff]  }
 0x150   :  { %2971 = vmatprep.subr.bf16.mxu0 %v4660_v41  ;;  %3077 = vmatprep.subr.bf16.mxu1 %v4663_v42  ;;  %v4681_v41 = vld [vmem:[%s6396_s1 + $0x8cc] ss:$48 sps:$4 sm:$0xff]  }
 0x153   :  { %2972 = vmatpush1.bf16.msra.mxu0 %v4658_v51  ;;  %3078 = vmatpush1.bf16.msra.mxu1 %v4661_v52 }
 0x154   :  { %2973 = vmatprep.subr.bf16.mxu0 %v4666_v57  ;;  %3079 = vmatprep.subr.bf16.mxu1 %v4669_v58  ;;  %v4679_v58 = vld [vmem:[%s6396_s1 + $0x8c8] ss:$48 sps:$4 sm:$0xff]  }
 0x155   :  { %v2573_v12 = vpop.f32.mrb[0].mxu0  ;;  %v2679_v15 = vpop.f32.mrb[0].mxu1 }
 0x156   :  { %v4046_v20 = vadd.f32 %v2573_v12, %v5899_v62  ;;  %v4054_v21 = vadd.f32 %v2679_v15, %v5902_v63  ;;  %v2575_v23 = vpop.f32.mrb[1].mxu0  ;;  %v2681_v26 = vpop.f32.mrb[1].mxu1 }
 0x157   :  { %v4047_v5 = vadd.f32 %v2575_v23, %v5907_v2  ;;  %v4055_v28 = vadd.f32 %v2681_v26, %v5910_v3  ;;  %v2577_v9 = vpop.f32.mrb[2].mxu0  ;;  %v2683_v30 = vpop.f32.mrb[2].mxu1  ;;  %2974 = vmatpush1.bf16.msra.mxu0 %v4664_v6  ;;  %3080 = vmatpush1.bf16.msra.mxu1 %v4667_v7  ;;  %v4684_v6 = vld [vmem:[%s6396_s1 + $0x924] ss:$48 sps:$4 sm:$0xff]  }
 0x158   :  { %v3230_v31 = vmul.f32 %v4046_v20, %v5920_v8  ;;  %v3232_v14 = vmul.f32 %v4054_v21, %v5923_v10  ;;  %v4048_v32 = vadd.f32 %v2577_v9, %v5899_v62  ;;  %v4056_v47 = vadd.f32 %v2683_v30, %v5902_v63  ;;  %v2579_v34 = vpop.f32.mrb[3].mxu0  ;;  %v2685_v19 = vpop.f32.mrb[3].mxu1  ;;  %2975 = vmatprep.subr.bf16.mxu0 %v4672_v11  ;;  %v4682_v9 = vld [vmem:[%s6396_s1 + $0x920] ss:$48 sps:$4 sm:$0xff]  }
 0x159   :  { %v3231_v37 = vmul.f32 %v4047_v5, %v5932_v16  ;;  %v3233_v38 = vmul.f32 %v4055_v28, %v5935_v17  ;;  %v4049_v39 = vadd.f32 %v2579_v34, %v5907_v2  ;;  %v4057_v40 = vadd.f32 %v2685_v19, %v5910_v3  ;;  %3081 = vmatprep.subr.bf16.mxu1 %v4675_v18  ;;  %v4687_v18 = vld [vmem:[%s6396_s1 + $0x92c] ss:$48 sps:$4 sm:$0xff]   ;;  %v4685_v34 = vld [vmem:[%s6396_s1 + $0x928] ss:$48 sps:$4 sm:$0xff]   ;;  %v4690_v19 = vld [vmem:[%s6396_s1 + $0x984] ss:$48 sps:$4 sm:$0xff]  }
 0x15a   :  { %v3386_v42 = vadd.f32 %v5929_v13, %v3230_v31  ;;  %v3388_v46 = vadd.f32 %v5943_v22, %v3232_v14  ;;  %v3242_v48 = vmul.f32 %v4048_v32, %v5920_v8  ;;  %v3244_v49 = vmul.f32 %v4056_v47, %v5923_v10 }
 0x15b   :  { %v3387_v51 = vadd.f32 %v5946_v24, %v3231_v37  ;;  %v3389_v52 = vadd.f32 %v5951_v29, %v3233_v38  ;;  %v3243_v53 = vmul.f32 %v4049_v39, %v5932_v16  ;;  %v3245_v54 = vmul.f32 %v4057_v40, %v5935_v17  ;;  %2976 = vmatpush1.bf16.msra.mxu0 %v4670_v25  ;;  %v4693_v37 = vld [vmem:[%s6396_s1 + $0x98c] ss:$48 sps:$4 sm:$0xff]  }
 0x15c   :  { %v3398_v56 = vadd.f32 %v5929_v13, %v3242_v48  ;;  %v3400_v57 = vadd.f32 %v5943_v22, %v3244_v49  ;;  %3082 = vmatpush1.bf16.msra.mxu1 %v4673_v27  ;;  %2977 = vmatprep.subr.bf16.mxu0 %v4678_v35  ;;  %v4688_v48 = vld [vmem:[%s6396_s1 + $0x980] ss:$48 sps:$4 sm:$0xff]  }
 0x15d   :  { %v4022_v59 = vpack.c.bf16 %v3387_v51, %v3386_v42  ;;  %v4023_v60 = vpack.c.bf16 %v3389_v52, %v3388_v46  ;;  %v3399_v61 = vadd.f32 %v5946_v24, %v3243_v53  ;;  %v3401_v0 = vadd.f32 %v5951_v29, %v3245_v54  ;;  %v2583_v1 = vpop.f32.mrb[4].mxu0  ;;  %v2689_v4 = vpop.f32.mrb[4].mxu1  ;;  %3083 = vmatprep.subr.bf16.mxu1 %v4681_v41 }
 0x15e   :  { %v4050_v7 = vadd.f32 %v2583_v1, %v5899_v62  ;;  %v4058_v11 = vadd.f32 %v2689_v4, %v5902_v63  ;;  %v2585_v12 = vpop.f32.mrb[5].mxu0  ;;  %v2691_v15 = vpop.f32.mrb[5].mxu1  ;;  %v4714_v1 = vld [vmem:[%s6396_s1 + $0xb04] ss:$48 sps:$4 sm:$0xff]   ;;  %v4717_v4 = vld [vmem:[%s6396_s1 + $0xb0c] ss:$48 sps:$4 sm:$0xff]  }
 0x15f   :  { %3578 = vst [vmem:[%s6399_s3] sm:$0xff] %v4022_v59  ;;  %3579 = vst [vmem:[%s6399_s3 + $0x8] sm:$0xff] %v4023_v60  ;;  %v4028_v20 = vpack.c.bf16 %v3399_v61, %v3398_v56  ;;  %v4029_v21 = vpack.c.bf16 %v3401_v0, %v3400_v57  ;;  %v4051_v23 = vadd.f32 %v2585_v12, %v5907_v2  ;;  %v2587_v5 = vpop.f32.mrb[6].mxu0  ;;  %v2693_v28 = vpop.f32.mrb[6].mxu1  ;;  %2978 = vmatpush1.bf16.msra.mxu0 %v4676_v55  ;;  %v4702_v55 = vld [vmem:[%s6396_s1 + $0xa44] ss:$48 sps:$4 sm:$0xff]  }
 0x160   :  { %v4059_v26 = vadd.f32 %v2691_v15, %v5910_v3  ;;  %v3254_v30 = vmul.f32 %v4050_v7, %v5920_v8  ;;  %v3256_v25 = vmul.f32 %v4058_v11, %v5923_v10  ;;  %v4052_v31 = vadd.f32 %v2587_v5, %v5899_v62  ;;  %3084 = vmatpush1.bf16.msra.mxu1 %v4679_v58  ;;  %v2589_v32 = vpop.f32.mrb[7].mxu0  ;;  %v2695_v47 = vpop.f32.mrb[7].mxu1  ;;  %v4705_v56 = vld [vmem:[%s6396_s1 + $0xa4c] ss:$48 sps:$4 sm:$0xff]   ;;  %v4700_v57 = vld [vmem:[%s6396_s1 + $0xa40] ss:$48 sps:$4 sm:$0xff]  }
 0x161   :  { %v4060_v14 = vadd.f32 %v2693_v28, %v5902_v63  ;;  %3584 = vst [vmem:[%s6399_s3 + $0x30] sm:$0xff] %v4028_v20  ;;  %3585 = vst [vmem:[%s6399_s3 + $0x38] sm:$0xff] %v4029_v21  ;;  %v3255_v62 = vmul.f32 %v4051_v23, %v5932_v16  ;;  %v4053_v27 = vadd.f32 %v2589_v32, %v5907_v2  ;;  %2979 = vmatprep.subr.bf16.mxu0 %v4684_v6  ;;  %v4703_v58 = vld [vmem:[%s6396_s1 + $0xa48] ss:$48 sps:$4 sm:$0xff]   ;;  %v4708_v59 = vld [vmem:[%s6396_s1 + $0xaa4] ss:$48 sps:$4 sm:$0xff]  }
 0x162   :  { %v3257_v63 = vmul.f32 %v4059_v26, %v5935_v17  ;;  %v4061_v35 = vadd.f32 %v2695_v47, %v5910_v3  ;;  %v3410_v38 = vadd.f32 %v5929_v13, %v3254_v30  ;;  %v3412_v39 = vadd.f32 %v5943_v22, %v3256_v25  ;;  %3085 = vmatprep.subr.bf16.mxu1 %v4687_v18  ;;  %v4711_v60 = vld [vmem:[%s6396_s1 + $0xaac] ss:$48 sps:$4 sm:$0xff]   ;;  %v4706_v61 = vld [vmem:[%s6396_s1 + $0xaa0] ss:$48 sps:$4 sm:$0xff]   ;;  %v4709_v0 = vld [vmem:[%s6396_s1 + $0xaa8] ss:$48 sps:$4 sm:$0xff]  }
 0x163   :  { %v3266_v40 = vmul.f32 %v4052_v31, %v5920_v8  ;;  %v3268_v41 = vmul.f32 %v4060_v14, %v5923_v10  ;;  %v3411_v42 = vadd.f32 %v5946_v24, %v3255_v62  ;;  %v3267_v3 = vmul.f32 %v4053_v27, %v5932_v16  ;;  %2980 = vmatpush1.bf16.msra.mxu0 %v4682_v9  ;;  %v4691_v10 = vld [vmem:[%s6396_s1 + $0x988] ss:$48 sps:$4 sm:$0xff]   ;;  %v4696_v16 = vld [vmem:[%s6396_s1 + $0x9e4] ss:$48 sps:$4 sm:$0xff]   ;;  %v4712_v6 = vld [vmem:[%s6396_s1 + $0xb00] ss:$48 sps:$4 sm:$0xff]  }
 0x164   :  { %v3413_v2 = vadd.f32 %v5951_v29, %v3257_v63  ;;  %v3269_v46 = vmul.f32 %v4061_v35, %v5935_v17  ;;  %3086 = vmatpush1.bf16.msra.mxu1 %v4685_v34  ;;  %2981 = vmatprep.subr.bf16.mxu0 %v4690_v19  ;;  %v4715_v7 = vld [vmem:[%s6396_s1 + $0xb08] ss:$48 sps:$4 sm:$0xff]   ;;  %v4720_v11 = vld [vmem:[%s6396_s1 + $0xb64] ss:$48 sps:$4 sm:$0xff]   ;;  %v4723_v12 = vld [vmem:[%s6396_s1 + $0xb6c] ss:$48 sps:$4 sm:$0xff]  }
 0x165   :  { %v3422_v49 = vadd.f32 %v5929_v13, %v3266_v40  ;;  %v3424_v8 = vadd.f32 %v5943_v22, %v3268_v41  ;;  %v4034_v17 = vpack.c.bf16 %v3411_v42, %v3410_v38  ;;  %v3423_v52 = vadd.f32 %v5946_v24, %v3267_v3  ;;  %3087 = vmatprep.subr.bf16.mxu1 %v4693_v37  ;;  %v4699_v13 = vld [vmem:[%s6396_s1 + $0x9ec] ss:$48 sps:$4 sm:$0xff]   ;;  %v4694_v24 = vld [vmem:[%s6396_s1 + $0x9e0] ss:$48 sps:$4 sm:$0xff]   ;;  %v4721_v18 = vld [vmem:[%s6396_s1 + $0xb68] ss:$48 sps:$4 sm:$0xff]  }
 0x166   :  { %v4035_v51 = vpack.c.bf16 %v3413_v2, %v3412_v39  ;;  %v3425_v53 = vadd.f32 %v5951_v29, %v3269_v46  ;;  %v4697_v29 = vld [vmem:[%s6396_s1 + $0x9e8] ss:$48 sps:$4 sm:$0xff]   ;;  %v4718_v15 = vld [vmem:[%s6396_s1 + $0xb60] ss:$48 sps:$4 sm:$0xff]   ;;  %v4726_v20 = vld [vmem:[%s6396_s1 + $0xbc4] ss:$48 sps:$4 sm:$0xff]  }
 0x167   :  { %3590 = vst [vmem:[%s6399_s3 + $0x60] sm:$0xff] %v4034_v17  ;;  %v4040_v22 = vpack.c.bf16 %v3423_v52, %v3422_v49  ;;  %2982 = vmatpush1.bf16.msra.mxu0 %v4688_v48  ;;  %v4729_v21 = vld [vmem:[%s6396_s1 + $0xbcc] ss:$48 sps:$4 sm:$0xff]   ;;  %v4724_v23 = vld [vmem:[%s6396_s1 + $0xbc0] ss:$48 sps:$4 sm:$0xff]  }
 0x168   :  { %3591 = vst [vmem:[%s6399_s3 + $0x68] sm:$0xff] %v4035_v51  ;;  %v4041_v54 = vpack.c.bf16 %v3425_v53, %v3424_v8  ;;  %3088 = vmatpush1.bf16.msra.mxu1 %v4691_v10  ;;  %2983 = vmatprep.subr.bf16.mxu0 %v4696_v16  ;;  %v4727_v26 = vld [vmem:[%s6396_s1 + $0xbc8] ss:$48 sps:$4 sm:$0xff]   ;;  %v4736_v28 = vld [vmem:[%s6397_s0 + $0x2c] ss:$16 sps:$4 sm:$0xff]  }
 0x169   :  { %3596 = vst [vmem:[%s6399_s3 + $0x90] sm:$0xff] %v4040_v22  ;;  %3089 = vmatprep.subr.bf16.mxu1 %v4699_v13  ;;  %v4735_v5 = vld [vmem:[%s6397_s0 + $0x8] ss:$16 sps:$4 sm:$0xff]   ;;  %v408_v30 = vld [vmem:[%s6398_s2 + $0x10] sm:$0x77] }
 0x16a   :  { %3597 = vst [vmem:[%s6399_s3 + $0x98] sm:$0xff] %v4041_v54  ;;  %v4737_v9 = vld [vmem:[%s6397_s0 + $0x28] ss:$16 sps:$4 sm:$0xff]   ;;  %v437_v31 = vrot.slane %v408_v30, %v5844_v36  ;;  %v441_v32 = vrot.slane %v408_v30, %v5846_v33  ;;  %v3141_v34 = vrot.slane %v408_v30, %v5866_v43  ;;  %v3145_v62 = vrot.slane %v408_v30, %v5870_v45 }
 0x16b   :  { %2984 = vmatpush1.bf16.msra.mxu0 %v4694_v24  ;;  %v409_v25 = vld [vmem:[%s6398_s2 + $0x18] sm:$0x77]  ;;  %v3297_v35 = vrot.slane %v408_v30, %v5868_v44  ;;  %v3301_v40 = vrot.slane %v408_v30, %v5877_v50 }
 0x16c   :  { %3090 = vmatpush1.bf16.msra.mxu1 %v4697_v29  ;;  %2985 = vmatprep.subr.bf16.mxu0 %v4702_v55  ;;  %v445_v14 = vrot.slane %v409_v25, %v5844_v36  ;;  %v449_v47 = vrot.slane %v409_v25, %v5846_v33  ;;  %v3149_v19 = vrot.slane %v409_v25, %v5866_v43 }
 0x16d   :  { %3091 = vmatprep.subr.bf16.mxu1 %v4705_v56  ;;  %v3153_v63 = vrot.slane %v409_v25, %v5870_v45  ;;  %v6159_v27 = vrot.slane %v437_v31, %v5844_v36  ;;  %v3305_v38 = vrot.slane %v409_v25, %v5868_v44  ;;  %v6167_v39 = vrot.slane %v441_v32, %v5844_v36 }
 0x16e   :  { %v6163_v37 = vrot.slane %v445_v14, %v5844_v36  ;;  %v6171_v41 = vrot.slane %v449_v47, %v5844_v36  ;;  %v3309_v42 = vrot.slane %v409_v25, %v5877_v50  ;;  %v6175_v2 = vrot.slane %v3141_v34, %v5866_v43 }
 0x16f   :  { %2986 = vmatpush1.bf16.msra.mxu0 %v4700_v57  ;;  %v6178_v3 = vrot.slane %v3149_v19, %v5866_v43  ;;  %v6181_v49 = vrot.slane %v3145_v62, %v5866_v43  ;;  %v6184_v8 = vrot.slane %v3153_v63, %v5866_v43  ;;  %v6188_v16 = vrot.slane %v3297_v35, %v5868_v44 }
 0x170   :  { %3092 = vmatpush1.bf16.msra.mxu1 %v4703_v58  ;;  %2987 = vmatprep.subr.bf16.mxu0 %v4708_v59  ;;  %v6192_v51 = vrot.slane %v3305_v38, %v5868_v44  ;;  %v6196_v22 = vrot.slane %v3301_v40, %v5868_v44  ;;  %v6200_v24 = vrot.slane %v3309_v42, %v5868_v44 }
 0x171   :  { %3093 = vmatprep.subr.bf16.mxu1 %v4711_v60 }
 0x173   :  { %2988 = vmatpush1.bf16.msra.mxu0 %v4706_v61 }
 0x174   :  { %3094 = vmatpush1.bf16.msra.mxu1 %v4709_v0  ;;  %2989 = vmatprep.subr.bf16.mxu0 %v4714_v1 }
 0x175   :  { %3095 = vmatprep.subr.bf16.mxu1 %v4717_v4 }
 0x177   :  { %2990 = vmatpush1.bf16.msra.mxu0 %v4712_v6 }
 0x178   :  { %3096 = vmatpush1.bf16.msra.mxu1 %v4715_v7  ;;  %2991 = vmatprep.subr.bf16.mxu0 %v4720_v11 }
 0x179   :  { %3097 = vmatprep.subr.bf16.mxu1 %v4723_v12 }
 0x17b   :  { %2992 = vmatpush1.bf16.msra.mxu0 %v4718_v15 }
 0x17c   :  { %3098 = vmatpush1.bf16.msra.mxu1 %v4721_v18  ;;  %2993 = vmatprep.subr.bf16.mxu0 %v4726_v20 }
 0x17d   :  { %3099 = vmatprep.subr.bf16.mxu1 %v4729_v21 }
 0x17f   :  { %2994 = vmatpush1.bf16.msra.mxu0 %v4724_v23 }
 0x180   :  { %3100 = vmatpush1.bf16.msra.mxu1 %v4727_v26 }
 0x182   :  { %2996 = vmatmul.mubr.bf16.vlgmr.msra.gmra.mrb[16].mxu0 %v4735_v5 }
 0x183   :  { %3102 = vmatmul.mubr.bf16.vlgmr.msra.gmra.mrb[16].mxu1 %v4735_v5  ;;  %3005 = vmatprep.mubr.bf16.mxu0 %v4736_v28 }
 0x184   :  { %3111 = vmatprep.mubr.bf16.mxu1 %v4736_v28 }
 0x18a   :  { %3006 = vmatmul.mubr.bf16.gmra.mrb[20].mxu0 %v4737_v9 }
 0x18b   :  { %3112 = vmatmul.mubr.bf16.gmra.mrb[20].mxu1 %v4737_v9 }
 0x1d5   :  { %v2785_v46 = vpop.f32.mrb[8].mxu0  ;;  %v2891_v48 = vpop.f32.mrb[8].mxu1 }
 0x1d6   :  { %v4062_v10 = vadd.f32 %v2785_v46, %v6159_v27  ;;  %v4070_v17 = vadd.f32 %v2891_v48, %v6163_v37  ;;  %v2787_v52 = vpop.f32.mrb[9].mxu0  ;;  %v2893_v53 = vpop.f32.mrb[9].mxu1 }
 0x1d7   :  { %v4063_v13 = vadd.f32 %v2787_v52, %v6167_v39  ;;  %v4071_v54 = vadd.f32 %v2893_v53, %v6171_v41  ;;  %v2789_v29 = vpop.f32.mrb[10].mxu0  ;;  %v2895_v55 = vpop.f32.mrb[10].mxu1 }
 0x1d8   :  { %v3234_v56 = vmul.f32 %v4062_v10, %v6175_v2  ;;  %v3236_v57 = vmul.f32 %v4070_v17, %v6178_v3  ;;  %v4064_v58 = vadd.f32 %v2789_v29, %v6159_v27  ;;  %v4072_v59 = vadd.f32 %v2895_v55, %v6163_v37  ;;  %v2791_v60 = vpop.f32.mrb[11].mxu0  ;;  %v2897_v61 = vpop.f32.mrb[11].mxu1 }
 0x1d9   :  { %v3235_v0 = vmul.f32 %v4063_v13, %v6181_v49  ;;  %v3237_v1 = vmul.f32 %v4071_v54, %v6184_v8  ;;  %v4065_v4 = vadd.f32 %v2791_v60, %v6167_v39  ;;  %v4073_v6 = vadd.f32 %v2897_v61, %v6171_v41 }
 0x1da   :  { %v3390_v7 = vadd.f32 %v6188_v16, %v3234_v56  ;;  %v3392_v11 = vadd.f32 %v6192_v51, %v3236_v57  ;;  %v3246_v12 = vmul.f32 %v4064_v58, %v6175_v2  ;;  %v3248_v15 = vmul.f32 %v4072_v59, %v6178_v3 }
 0x1db   :  { %v3391_v18 = vadd.f32 %v6196_v22, %v3235_v0  ;;  %v3393_v20 = vadd.f32 %v6200_v24, %v3237_v1  ;;  %v3247_v21 = vmul.f32 %v4065_v4, %v6181_v49  ;;  %v3249_v23 = vmul.f32 %v4073_v6, %v6184_v8 }
 0x1dc   :  { %v3402_v26 = vadd.f32 %v6188_v16, %v3246_v12  ;;  %v3404_v5 = vadd.f32 %v6192_v51, %v3248_v15 }
 0x1dd   :  { %v4024_v28 = vpack.c.bf16 %v3391_v18, %v3390_v7  ;;  %v4025_v9 = vpack.c.bf16 %v3393_v20, %v3392_v11  ;;  %v3403_v30 = vadd.f32 %v6196_v22, %v3247_v21  ;;  %v3405_v25 = vadd.f32 %v6200_v24, %v3249_v23  ;;  %v2795_v31 = vpop.f32.mrb[12].mxu0  ;;  %v2901_v14 = vpop.f32.mrb[12].mxu1 }
 0x1de   :  { %v4066_v32 = vadd.f32 %v2795_v31, %v6159_v27  ;;  %v4074_v47 = vadd.f32 %v2901_v14, %v6163_v37  ;;  %v2797_v34 = vpop.f32.mrb[13].mxu0  ;;  %v2903_v19 = vpop.f32.mrb[13].mxu1 }
 0x1df   :  { %3580 = vst [vmem:[%s6399_s3 + $0x10] sm:$0xff] %v4024_v28  ;;  %3581 = vst [vmem:[%s6399_s3 + $0x18] sm:$0xff] %v4025_v9  ;;  %v4030_v62 = vpack.c.bf16 %v3403_v30, %v3402_v26  ;;  %v4031_v63 = vpack.c.bf16 %v3405_v25, %v3404_v5  ;;  %v4067_v35 = vadd.f32 %v2797_v34, %v6167_v39  ;;  %v2799_v40 = vpop.f32.mrb[14].mxu0  ;;  %v2905_v42 = vpop.f32.mrb[14].mxu1 }
 0x1e0   :  { %v4075_v38 = vadd.f32 %v2903_v19, %v6171_v41  ;;  %v3258_v46 = vmul.f32 %v4066_v32, %v6175_v2  ;;  %v3260_v48 = vmul.f32 %v4074_v47, %v6178_v3  ;;  %v4068_v10 = vadd.f32 %v2799_v40, %v6159_v27  ;;  %v2801_v52 = vpop.f32.mrb[15].mxu0  ;;  %v2907_v53 = vpop.f32.mrb[15].mxu1 }
 0x1e1   :  { %v4076_v17 = vadd.f32 %v2905_v42, %v6163_v37  ;;  %3586 = vst [vmem:[%s6399_s3 + $0x40] sm:$0xff] %v4030_v62  ;;  %3587 = vst [vmem:[%s6399_s3 + $0x48] sm:$0xff] %v4031_v63  ;;  %v3259_v13 = vmul.f32 %v4067_v35, %v6181_v49  ;;  %v4069_v29 = vadd.f32 %v2801_v52, %v6167_v39 }
 0x1e2   :  { %v3261_v54 = vmul.f32 %v4075_v38, %v6184_v8  ;;  %v4077_v27 = vadd.f32 %v2907_v53, %v6171_v41  ;;  %v3414_v37 = vadd.f32 %v6188_v16, %v3258_v46  ;;  %v3416_v55 = vadd.f32 %v6192_v51, %v3260_v48 }
 0x1e3   :  { %v3270_v56 = vmul.f32 %v4068_v10, %v6175_v2  ;;  %v3272_v57 = vmul.f32 %v4076_v17, %v6178_v3  ;;  %v3415_v58 = vadd.f32 %v6196_v22, %v3259_v13  ;;  %v3271_v60 = vmul.f32 %v4069_v29, %v6181_v49 }
 0x1e4   :  { %v3417_v59 = vadd.f32 %v6200_v24, %v3261_v54  ;;  %v3273_v61 = vmul.f32 %v4077_v27, %v6184_v8  ;;  %v410_v8 = vld [vmem:[%s6398_s2 + $0x20] sm:$0x77] }
 0x1e5   :  { %v3426_v39 = vadd.f32 %v6188_v16, %v3270_v56  ;;  %v3428_v41 = vadd.f32 %v6192_v51, %v3272_v57  ;;  %v4036_v0 = vpack.c.bf16 %v3415_v58, %v3414_v37  ;;  %v3427_v4 = vadd.f32 %v6196_v22, %v3271_v60  ;;  %v411_v16 = vld [vmem:[%s6398_s2 + $0x28] sm:$0x77] }
 0x1e6   :  { %v4037_v1 = vpack.c.bf16 %v3417_v59, %v3416_v55  ;;  %v3429_v2 = vadd.f32 %v6200_v24, %v3273_v61  ;;  %v453_v51 = vrot.slane %v410_v8, %v5844_v36  ;;  %v461_v22 = vrot.slane %v411_v16, %v5844_v36 }
 0x1e7   :  { %3592 = vst [vmem:[%s6399_s3 + $0x70] sm:$0xff] %v4036_v0  ;;  %v4042_v3 = vpack.c.bf16 %v3427_v4, %v3426_v39  ;;  %v457_v24 = vrot.slane %v410_v8, %v5846_v33  ;;  %v3157_v6 = vrot.slane %v410_v8, %v5866_v43  ;;  %v465_v7 = vrot.slane %v411_v16, %v5846_v33 }
 0x1e8   :  { %3593 = vst [vmem:[%s6399_s3 + $0x78] sm:$0xff] %v4037_v1  ;;  %v4043_v49 = vpack.c.bf16 %v3429_v2, %v3428_v41  ;;  %v3165_v11 = vrot.slane %v411_v16, %v5866_v43  ;;  %v3161_v12 = vrot.slane %v410_v8, %v5870_v45  ;;  %v6284_v15 = vrot.slane %v453_v51, %v5844_v36 }
 0x1e9   :  { %3598 = vst [vmem:[%s6399_s3 + $0xa0] sm:$0xff] %v4042_v3  ;;  %v3313_v18 = vrot.slane %v410_v8, %v5868_v44  ;;  %v3169_v20 = vrot.slane %v411_v16, %v5870_v45  ;;  %v6289_v21 = vrot.slane %v461_v22, %v5844_v36  ;;  %v3321_v23 = vrot.slane %v411_v16, %v5868_v44 }
 0x1ea   :  { %3599 = vst [vmem:[%s6399_s3 + $0xa8] sm:$0xff] %v4043_v49  ;;  %v6293_v26 = vrot.slane %v457_v24, %v5844_v36  ;;  %v3317_v33 = vrot.slane %v410_v8, %v5877_v50  ;;  %v6297_v5 = vrot.slane %v3157_v6, %v5866_v43  ;;  %v6300_v28 = vrot.slane %v465_v7, %v5844_v36 }
 0x1eb   :  { %v3325_v9 = vrot.slane %v411_v16, %v5877_v50  ;;  %v6304_v45 = vrot.slane %v3165_v11, %v5866_v43  ;;  %v6307_v25 = vrot.slane %v3161_v12, %v5866_v43  ;;  %v6311_v14 = vrot.slane %v3313_v18, %v5868_v44 }
 0x1ec   :  { %v6314_v34 = vrot.slane %v3169_v20, %v5866_v43  ;;  %v6318_v50 = vrot.slane %v3321_v23, %v5868_v44  ;;  %v6322_v62 = vrot.slane %v3317_v33, %v5868_v44 }
 0x1ed   :  { %v6327_v42 = vrot.slane %v3325_v9, %v5868_v44 }
 0x255   :  { %v2997_v30 = vpop.f32.mrb[16].mxu0 }
 0x256   :  { %v4078_v31 = vadd.f32 %v2997_v30, %v6284_v15  ;;  %v3103_v32 = vpop.f32.mrb[16].mxu1  ;;  %v2999_v47 = vpop.f32.mrb[17].mxu0 }
 0x257   :  { %v4086_v36 = vadd.f32 %v3103_v32, %v6289_v21  ;;  %v4079_v19 = vadd.f32 %v2999_v47, %v6293_v26  ;;  %v3105_v63 = vpop.f32.mrb[17].mxu1  ;;  %v3001_v35 = vpop.f32.mrb[18].mxu0 }
 0x258   :  { %v3238_v38 = vmul.f32 %v4078_v31, %v6297_v5  ;;  %v4087_v40 = vadd.f32 %v3105_v63, %v6300_v28  ;;  %v4080_v43 = vadd.f32 %v3001_v35, %v6284_v15  ;;  %v3107_v46 = vpop.f32.mrb[18].mxu1  ;;  %v3003_v48 = vpop.f32.mrb[19].mxu0 }
 0x259   :  { %v3240_v10 = vmul.f32 %v4086_v36, %v6304_v45  ;;  %v3239_v17 = vmul.f32 %v4079_v19, %v6307_v25  ;;  %v4088_v52 = vadd.f32 %v3107_v46, %v6289_v21  ;;  %v4081_v53 = vadd.f32 %v3003_v48, %v6293_v26  ;;  %v3109_v13 = vpop.f32.mrb[19].mxu1 }
 0x25a   :  { %v3394_v54 = vadd.f32 %v6311_v14, %v3238_v38  ;;  %v3241_v29 = vmul.f32 %v4087_v40, %v6314_v34  ;;  %v3250_v44 = vmul.f32 %v4080_v43, %v6297_v5  ;;  %v4089_v27 = vadd.f32 %v3109_v13, %v6300_v28 }
 0x25b   :  { %v3396_v37 = vadd.f32 %v6318_v50, %v3240_v10  ;;  %v3395_v55 = vadd.f32 %v6322_v62, %v3239_v17  ;;  %v3252_v56 = vmul.f32 %v4088_v52, %v6304_v45  ;;  %v3251_v57 = vmul.f32 %v4081_v53, %v6307_v25 }
 0x25c   :  { %v3397_v58 = vadd.f32 %v6327_v42, %v3241_v29  ;;  %v3406_v59 = vadd.f32 %v6311_v14, %v3250_v44  ;;  %v3253_v60 = vmul.f32 %v4089_v27, %v6314_v34 }
 0x25d   :  { %v4026_v61 = vpack.c.bf16 %v3395_v55, %v3394_v54  ;;  %v3408_v39 = vadd.f32 %v6318_v50, %v3252_v56  ;;  %v3407_v41 = vadd.f32 %v6322_v62, %v3251_v57  ;;  %v3007_v0 = vpop.f32.mrb[20].mxu0 }
 0x25e   :  { %v4027_v1 = vpack.c.bf16 %v3397_v58, %v3396_v37  ;;  %v3409_v4 = vadd.f32 %v6327_v42, %v3253_v60  ;;  %v4082_v2 = vadd.f32 %v3007_v0, %v6284_v15  ;;  %v3113_v3 = vpop.f32.mrb[20].mxu1  ;;  %v3009_v49 = vpop.f32.mrb[21].mxu0 }
 0x25f   :  { %3582 = vst [vmem:[%s6399_s3 + $0x20] sm:$0xff] %v4026_v61  ;;  %v4032_v8 = vpack.c.bf16 %v3407_v41, %v3406_v59  ;;  %v4090_v16 = vadd.f32 %v3113_v3, %v6289_v21  ;;  %v4083_v51 = vadd.f32 %v3009_v49, %v6293_v26  ;;  %v3115_v22 = vpop.f32.mrb[21].mxu1  ;;  %v3011_v24 = vpop.f32.mrb[22].mxu0 }
 0x260   :  { %3583 = vst [vmem:[%s6399_s3 + $0x28] sm:$0xff] %v4027_v1  ;;  %v4033_v6 = vpack.c.bf16 %v3409_v4, %v3408_v39  ;;  %v3262_v7 = vmul.f32 %v4082_v2, %v6297_v5  ;;  %v4091_v11 = vadd.f32 %v3115_v22, %v6300_v28  ;;  %v4084_v12 = vadd.f32 %v3011_v24, %v6284_v15  ;;  %v3117_v18 = vpop.f32.mrb[22].mxu1  ;;  %v3013_v20 = vpop.f32.mrb[23].mxu0 }
 0x261   :  { %3588 = vst [vmem:[%s6399_s3 + $0x50] sm:$0xff] %v4032_v8  ;;  %v3264_v23 = vmul.f32 %v4090_v16, %v6304_v45  ;;  %v3263_v33 = vmul.f32 %v4083_v51, %v6307_v25  ;;  %v4092_v9 = vadd.f32 %v3117_v18, %v6289_v21  ;;  %v4085_v30 = vadd.f32 %v3013_v20, %v6293_v26  ;;  %v3119_v31 = vpop.f32.mrb[23].mxu1 }
 0x262   :  { %3589 = vst [vmem:[%s6399_s3 + $0x58] sm:$0xff] %v4033_v6  ;;  %v3418_v15 = vadd.f32 %v6311_v14, %v3262_v7  ;;  %v3265_v32 = vmul.f32 %v4091_v11, %v6314_v34  ;;  %v3274_v47 = vmul.f32 %v4084_v12, %v6297_v5  ;;  %v4093_v36 = vadd.f32 %v3119_v31, %v6300_v28 }
 0x263   :  { %v3420_v19 = vadd.f32 %v6318_v50, %v3264_v23  ;;  %v3419_v63 = vadd.f32 %v6322_v62, %v3263_v33  ;;  %v3276_v21 = vmul.f32 %v4092_v9, %v6304_v45  ;;  %v3275_v26 = vmul.f32 %v4085_v30, %v6307_v25 }
 0x264   :  { %v3421_v35 = vadd.f32 %v6327_v42, %v3265_v32  ;;  %v3430_v38 = vadd.f32 %v6311_v14, %v3274_v47  ;;  %v3277_v40 = vmul.f32 %v4093_v36, %v6314_v34 }
 0x265   :  { %v4038_v43 = vpack.c.bf16 %v3419_v63, %v3418_v15  ;;  %v3432_v46 = vadd.f32 %v6318_v50, %v3276_v21  ;;  %v3431_v5 = vadd.f32 %v6322_v62, %v3275_v26 }
 0x266   :  { %v4039_v28 = vpack.c.bf16 %v3421_v35, %v3420_v19  ;;  %v3433_v48 = vadd.f32 %v6327_v42, %v3277_v40 }
 0x267   :  { %3594 = vst [vmem:[%s6399_s3 + $0x80] sm:$0xff] %v4038_v43  ;;  %v4044_v45 = vpack.c.bf16 %v3431_v5, %v3430_v38 }
 0x268   :  { %3595 = vst [vmem:[%s6399_s3 + $0x88] sm:$0xff] %v4039_v28  ;;  %v4045_v25 = vpack.c.bf16 %v3433_v48, %v3432_v46 }
 0x269   :  { %3600 = vst [vmem:[%s6399_s3 + $0xb0] sm:$0xff] %v4044_v45 }
 0x26a   :  { %3601 = vst [vmem:[%s6399_s3 + $0xb8] sm:$0xff] %v4045_v25 }

</bundles_post_ra>
